<compile_context>
chip_gen: v6e
topology: v6e:2x2x1
jax: 0.10.0
libtpu: 0.0.40
codegen_flags: <defaults>
</compile_context>

<pallas_src>
import math

import jax
import jax.numpy as jnp
from jax import lax
from jax.experimental import pallas as pl
from jax.experimental.pallas import tpu as pltpu

# ---------------------------------------------------------------- config ----
C_IN = 4
D_MODEL = 32
INPUT_LEN = 16
SERIES_EMBED_LEN = 1
SEQ_LEN = INPUT_LEN + SERIES_EMBED_LEN          # 17
ENCODER_DEPTH = 2
NHEAD = 4
HEAD_DIM = D_MODEL // NHEAD                     # 8
DIM_FF = 2048                                   # nn.TransformerEncoderLayer default
FF_CHUNK = 512
N_FF_CHUNKS = DIM_FF // FF_CHUNK                # 4
CLS_NUM = 3
BATCH = 2
LN_EPS = 1e-5


# ------------------------------------------------ sinusoidal pos embedding --
def sinusoidal_pe(length, d_model):
    pos = jnp.arange(length, dtype=jnp.float32)[:, None]
    div = jnp.exp(jnp.arange(0, d_model, 2, dtype=jnp.float32)
                  * (-math.log(10000.0) / d_model))
    pe = jnp.zeros((length, d_model), jnp.float32)
    pe = pe.at[:, 0::2].set(jnp.sin(pos * div))
    pe = pe.at[:, 1::2].set(jnp.cos(pos * div))
    return pe


# ------------------------------------------------------- fused forward kernel
def fused_forward_kernel(
        xcat_ref, convw_ref, embbias_ref, cls_ref,
        ln1w_ref, ln1b_ref,
        wq_ref, wk_ref, wv_ref, bq_ref, bk_ref, bv_ref,
        wo_ref, bo_ref,
        ln2w_ref, ln2b_ref,
        w1_ref, b1_ref, w2_ref, b2_ref,
        predw_ref, predb_ref, onehot_ref,
        logits_ref, loss_ref):
    S, B, D, L = SEQ_LEN, BATCH, D_MODEL, INPUT_LEN

    def layer_norm(v, w, b):
        mu = jnp.mean(v, axis=-1, keepdims=True)
        var = jnp.mean(jnp.square(v - mu), axis=-1, keepdims=True)
        return (v - mu) * lax.rsqrt(var + LN_EPS) * w + b

    # ---- embedding: circular Conv1d(k=3, pad=1) as a single matmul + PE ----
    emb = (jnp.dot(xcat_ref[...], convw_ref[...],
                   preferred_element_type=jnp.float32)
           + embbias_ref[...])                              # (B*L, D) conv bias + PE
    cls_row = cls_ref[...]                                  # (1, D) cls_token + PE[0]
    rows = []
    for b in range(B):
        rows.append(cls_row)
        rows.append(emb[b * L:(b + 1) * L, :])
    h = jnp.concatenate(rows, axis=0)                       # (B*S, D)

    scale = 1.0 / math.sqrt(HEAD_DIM)
    nt_dims = (((1,), (1,)), ((), ()))                      # contract last axes (QK^T)

    for l in range(ENCODER_DEPTH):
        # ---------------- pre-norm multi-head self-attention ----------------
        xn = layer_norm(h, ln1w_ref[l], ln1b_ref[l]).astype(jnp.bfloat16)
        attn = jnp.zeros((B * S, D), jnp.float32)
        for hh in range(NHEAD):
            idx = l * NHEAD + hh
            q = jnp.dot(xn, wq_ref[idx],
                        preferred_element_type=jnp.float32) + bq_ref[idx]
            k = jnp.dot(xn, wk_ref[idx],
                        preferred_element_type=jnp.float32) + bk_ref[idx]
            v = jnp.dot(xn, wv_ref[idx],
                        preferred_element_type=jnp.float32) + bv_ref[idx]
            o_rows = []
            for b in range(B):
                lo = b * S
                qb, kb, vb = q[lo:lo + S, :], k[lo:lo + S, :], v[lo:lo + S, :]
                s = lax.dot_general(qb, kb, nt_dims,
                                    preferred_element_type=jnp.float32) * scale
                s = s - jnp.max(s, axis=-1, keepdims=True)
                p = jnp.exp(s)
                p = p * pl.reciprocal(jnp.sum(p, axis=-1, keepdims=True), approx=True)
                o_rows.append(jnp.dot(p, vb, preferred_element_type=jnp.float32))
            oh = jnp.concatenate(o_rows, axis=0).astype(jnp.bfloat16)   # (B*S, hd)
            attn = attn + jnp.dot(oh, wo_ref[idx],
                                  preferred_element_type=jnp.float32)
        x1 = h + attn + bo_ref[l]

        # ---------------- pre-norm feed-forward (chunked over DIM_FF) -------
        xn2 = layer_norm(x1, ln2w_ref[l], ln2b_ref[l]).astype(jnp.bfloat16)
        ff = jnp.zeros((B * S, D), jnp.float32)
        for c in range(N_FF_CHUNKS):
            idx = l * N_FF_CHUNKS + c
            h1 = jnp.dot(xn2, w1_ref[idx],
                         preferred_element_type=jnp.float32) + b1_ref[idx]
            h1 = jnp.maximum(h1, 0.0).astype(jnp.bfloat16)
            ff = ff + jnp.dot(h1, w2_ref[idx], preferred_element_type=jnp.float32)
        h = x1 + ff + b2_ref[l]

    # ---------------- classifier head on CLS tokens + mean cross entropy ----
    feat_rows = [h[b * S:b * S + SERIES_EMBED_LEN, :] for b in range(B)]
    feat = jnp.concatenate(feat_rows, axis=0).reshape(B, SERIES_EMBED_LEN * D)
    logits = (jnp.dot(feat, predw_ref[...], preferred_element_type=jnp.float32)
              + predb_ref[...])                             # (B, cls_num)
    logits_ref[...] = logits
    m = jnp.max(logits, axis=-1, keepdims=True)
    lse = jnp.log(jnp.sum(jnp.exp(logits - m), axis=-1, keepdims=True)) + m
    nll = lse - jnp.sum(onehot_ref[...] * logits, axis=-1, keepdims=True)   # (B, 1)
    loss_ref[...] = jnp.mean(nll, axis=0, keepdims=True)                    # (1, 1)


# -------------------------------------------------------------- forward -----
@jax.jit
def forward(params, x, y):
    pe = sinusoidal_pe(SEQ_LEN, D_MODEL)                            # (S, D)
    cls_row = params['cls_token'] + pe[:SERIES_EMBED_LEN]           # (1, D)
    emb_bias = params['conv_b'] + pe[SERIES_EMBED_LEN:]             # (L, D)
    emb_bias = jnp.tile(emb_bias, (BATCH, 1))                       # (B*L, D)
    onehot = jax.nn.one_hot(y, CLS_NUM, dtype=jnp.float32)          # (B, cls_num)

    # circular k=3 neighborhood built here -> one matmul inside the kernel
    x_prev = jnp.roll(x, 1, axis=1)                                 # x[(l-1) mod L]
    x_next = jnp.roll(x, -1, axis=1)                                # x[(l+1) mod L]
    x_cat = jnp.concatenate([x_prev, x, x_next], axis=-1)           # (B, L, 3C)
    x_cat = x_cat.reshape(BATCH * INPUT_LEN, 3 * C_IN)              # (B*L, 3C)
    conv_w = params['conv_w'].reshape(3 * C_IN, D_MODEL)            # (3C, D)

    args = (x_cat, conv_w, emb_bias, cls_row,
            params['ln1_w'], params['ln1_b'],
            params['w_q'], params['w_k'], params['w_v'],
            params['b_q'], params['b_k'], params['b_v'],
            params['w_o'], params['b_o'],
            params['ln2_w'], params['ln2_b'],
            params['w_ff1'], params['b_ff1'], params['w_ff2'], params['b_ff2'],
            params['pred_w'], params['pred_b'], onehot)

    def full(shape):
        n = len(shape)
        return pl.BlockSpec(shape, lambda i, n=n: (0,) * n)

    logits, loss = pl.pallas_call(
        fused_forward_kernel,
        out_shape=(jax.ShapeDtypeStruct((BATCH, CLS_NUM), jnp.float32),
                   jax.ShapeDtypeStruct((1, 1), jnp.float32)),
        grid=(1,),
        in_specs=[full(a.shape) for a in args],
        out_specs=(full((BATCH, CLS_NUM)), full((1, 1))),
        compiler_params=pltpu.CompilerParams(dimension_semantics=("arbitrary",)),
    )(*args)

    # forward_loss: pred.squeeze(-1) is a no-op for cls_num > 1
    return loss[0, 0], logits


# ------------------------------------------------------------ parameters ----
def init_params(key):
    keys = jax.random.split(key, 3)

    def xavier(k, shape):
        lim = math.sqrt(6.0 / (shape[0] + shape[1]))
        return jax.random.uniform(k, shape, jnp.float32, -lim, lim)

    p = {}
    # Conv1d(c_in, d_model, 3): stored as (3, c_in, d_model) == torch_w[:, :, k].T
    clim = 1.0 / math.sqrt(C_IN * 3)
    p['conv_w'] = jax.random.uniform(keys[0], (3, C_IN, D_MODEL),
                                     jnp.float32, -clim, clim)
    p['conv_b'] = jnp.zeros((1, D_MODEL), jnp.float32)
    # cls_token = nn.Parameter(torch.zeros(1, 1, d_model))
    p['cls_token'] = jnp.zeros((1, D_MODEL), jnp.float32)

    wq, wk, wv, wo, w1, w2 = [], [], [], [], [], []
    lkeys = jax.random.split(keys[1], ENCODER_DEPTH)
    for i in range(ENCODER_DEPTH):
        ks = jax.random.split(lkeys[i], 6)
        for lst, kk in ((wq, ks[0]), (wk, ks[1]), (wv, ks[2])):
            w = xavier(kk, (D_MODEL, D_MODEL))            # (D, D), columns per head
            lst.append(w.reshape(D_MODEL, NHEAD, HEAD_DIM).transpose(1, 0, 2))
        wo.append(xavier(ks[3], (D_MODEL, D_MODEL)).reshape(NHEAD, HEAD_DIM, D_MODEL))
        w1.append(xavier(ks[4], (D_MODEL, DIM_FF))
                  .reshape(D_MODEL, N_FF_CHUNKS, FF_CHUNK).transpose(1, 0, 2))
        w2.append(xavier(ks[5], (DIM_FF, D_MODEL)).reshape(N_FF_CHUNKS, FF_CHUNK, D_MODEL))

    # large matmul weights in bf16 (f32 MXU accumulation inside the kernel)
    p['w_q'] = jnp.concatenate(wq, axis=0).astype(jnp.bfloat16)    # (depth*nhead, D, hd)
    p['w_k'] = jnp.concatenate(wk, axis=0).astype(jnp.bfloat16)
    p['w_v'] = jnp.concatenate(wv, axis=0).astype(jnp.bfloat16)
    p['w_o'] = jnp.concatenate(wo, axis=0).astype(jnp.bfloat16)    # (depth*nhead, hd, D)
    p['w_ff1'] = jnp.concatenate(w1, axis=0).astype(jnp.bfloat16)  # (depth*chunks, D, 512)
    p['w_ff2'] = jnp.concatenate(w2, axis=0).astype(jnp.bfloat16)  # (depth*chunks, 512, D)

    p['b_q'] = jnp.zeros((ENCODER_DEPTH * NHEAD, 1, HEAD_DIM), jnp.float32)
    p['b_k'] = jnp.zeros((ENCODER_DEPTH * NHEAD, 1, HEAD_DIM), jnp.float32)
    p['b_v'] = jnp.zeros((ENCODER_DEPTH * NHEAD, 1, HEAD_DIM), jnp.float32)
    p['b_o'] = jnp.zeros((ENCODER_DEPTH, 1, D_MODEL), jnp.float32)
    p['b_ff1'] = jnp.zeros((ENCODER_DEPTH * N_FF_CHUNKS, 1, FF_CHUNK), jnp.float32)
    p['b_ff2'] = jnp.zeros((ENCODER_DEPTH, 1, D_MODEL), jnp.float32)
    p['ln1_w'] = jnp.ones((ENCODER_DEPTH, 1, D_MODEL), jnp.float32)
    p['ln1_b'] = jnp.zeros((ENCODER_DEPTH, 1, D_MODEL), jnp.float32)
    p['ln2_w'] = jnp.ones((ENCODER_DEPTH, 1, D_MODEL), jnp.float32)
    p['ln2_b'] = jnp.zeros((ENCODER_DEPTH, 1, D_MODEL), jnp.float32)

    # decoder_pred: Linear(series_embed_len * d_model, cls_num), xavier / zero bias
    p['pred_w'] = xavier(keys[2], (SERIES_EMBED_LEN * D_MODEL, CLS_NUM))
    p['pred_b'] = jnp.zeros((1, CLS_NUM), jnp.float32)
    return p


# ------------------------------------------------------------------ main ----
if __name__ == "__main__":
    key = jax.random.PRNGKey(0)
    kx, ky, kp = jax.random.split(key, 3)
    x = jax.random.normal(kx, (BATCH, INPUT_LEN, C_IN), jnp.float32)
    y = jax.random.randint(ky, (BATCH,), 0, CLS_NUM)
    params = init_params(kp)

    loss, pred = forward(params, x, y)
    jax.block_until_ready((loss, pred))
    assert pred.shape == (BATCH, CLS_NUM)
    assert loss.shape == ()
    print("KERNEL_OK")
</pallas_src>

<mosaic_0001>
module attributes {stable_mosaic.version = 11 : i64} {
  func.func @fused_forward_kernel(%arg0: i32, %arg1: memref<32x12xf32, #tpu.memory_space<vmem>>, %arg2: memref<12x32xf32, #tpu.memory_space<vmem>>, %arg3: memref<32x32xf32, #tpu.memory_space<vmem>>, %arg4: memref<1x32xf32, #tpu.memory_space<vmem>>, %arg5: memref<2x1x32xf32, #tpu.memory_space<vmem>>, %arg6: memref<2x1x32xf32, #tpu.memory_space<vmem>>, %arg7: memref<8x32x8xbf16, #tpu.memory_space<vmem>>, %arg8: memref<8x32x8xbf16, #tpu.memory_space<vmem>>, %arg9: memref<8x32x8xbf16, #tpu.memory_space<vmem>>, %arg10: memref<8x1x8xf32, #tpu.memory_space<vmem>>, %arg11: memref<8x1x8xf32, #tpu.memory_space<vmem>>, %arg12: memref<8x1x8xf32, #tpu.memory_space<vmem>>, %arg13: memref<8x8x32xbf16, #tpu.memory_space<vmem>>, %arg14: memref<2x1x32xf32, #tpu.memory_space<vmem>>, %arg15: memref<2x1x32xf32, #tpu.memory_space<vmem>>, %arg16: memref<2x1x32xf32, #tpu.memory_space<vmem>>, %arg17: memref<8x32x512xbf16, #tpu.memory_space<vmem>>, %arg18: memref<8x1x512xf32, #tpu.memory_space<vmem>>, %arg19: memref<8x512x32xbf16, #tpu.memory_space<vmem>>, %arg20: memref<2x1x32xf32, #tpu.memory_space<vmem>>, %arg21: memref<32x3xf32, #tpu.memory_space<vmem>>, %arg22: memref<1x3xf32, #tpu.memory_space<vmem>>, %arg23: memref<2x3xf32, #tpu.memory_space<vmem>>, %arg24: memref<2x3xf32, #tpu.memory_space<vmem>>, %arg25: memref<1x1xf32, #tpu.memory_space<vmem>>) attributes {dimension_semantics = [#tpu.dimension_semantics<arbitrary>], iteration_bounds = array<i64: 1>, scalar_prefetch = 0 : i64, scratch_operands = 0 : i64, tpu.core_type = #tpu.core_type<tc>, window_params = [{pipeline_mode = #tpu.pipeline_mode<synchronous>, transform_indices = @transform_0, window_bounds = array<i64: 32, 12>}, {pipeline_mode = #tpu.pipeline_mode<synchronous>, transform_indices = @transform_1, window_bounds = array<i64: 12, 32>}, {pipeline_mode = #tpu.pipeline_mode<synchronous>, transform_indices = @transform_2, window_bounds = array<i64: 32, 32>}, {pipeline_mode = #tpu.pipeline_mode<synchronous>, transform_indices = @transform_3, window_bounds = array<i64: 1, 32>}, {pipeline_mode = #tpu.pipeline_mode<synchronous>, transform_indices = @transform_4, window_bounds = array<i64: 2, 1, 32>}, {pipeline_mode = #tpu.pipeline_mode<synchronous>, transform_indices = @transform_5, window_bounds = array<i64: 2, 1, 32>}, {pipeline_mode = #tpu.pipeline_mode<synchronous>, transform_indices = @transform_6, window_bounds = array<i64: 8, 32, 8>}, {pipeline_mode = #tpu.pipeline_mode<synchronous>, transform_indices = @transform_7, window_bounds = array<i64: 8, 32, 8>}, {pipeline_mode = #tpu.pipeline_mode<synchronous>, transform_indices = @transform_8, window_bounds = array<i64: 8, 32, 8>}, {pipeline_mode = #tpu.pipeline_mode<synchronous>, transform_indices = @transform_9, window_bounds = array<i64: 8, 1, 8>}, {pipeline_mode = #tpu.pipeline_mode<synchronous>, transform_indices = @transform_10, window_bounds = array<i64: 8, 1, 8>}, {pipeline_mode = #tpu.pipeline_mode<synchronous>, transform_indices = @transform_11, window_bounds = array<i64: 8, 1, 8>}, {pipeline_mode = #tpu.pipeline_mode<synchronous>, transform_indices = @transform_12, window_bounds = array<i64: 8, 8, 32>}, {pipeline_mode = #tpu.pipeline_mode<synchronous>, transform_indices = @transform_13, window_bounds = array<i64: 2, 1, 32>}, {pipeline_mode = #tpu.pipeline_mode<synchronous>, transform_indices = @transform_14, window_bounds = array<i64: 2, 1, 32>}, {pipeline_mode = #tpu.pipeline_mode<synchronous>, transform_indices = @transform_15, window_bounds = array<i64: 2, 1, 32>}, {pipeline_mode = #tpu.pipeline_mode<synchronous>, transform_indices = @transform_16, window_bounds = array<i64: 8, 32, 512>}, {pipeline_mode = #tpu.pipeline_mode<synchronous>, transform_indices = @transform_17, window_bounds = array<i64: 8, 1, 512>}, {pipeline_mode = #tpu.pipeline_mode<synchronous>, transform_indices = @transform_18, window_bounds = array<i64: 8, 512, 32>}, {pipeline_mode = #tpu.pipeline_mode<synchronous>, transform_indices = @transform_19, window_bounds = array<i64: 2, 1, 32>}, {pipeline_mode = #tpu.pipeline_mode<synchronous>, transform_indices = @transform_20, window_bounds = array<i64: 32, 3>}, {pipeline_mode = #tpu.pipeline_mode<synchronous>, transform_indices = @transform_21, window_bounds = array<i64: 1, 3>}, {pipeline_mode = #tpu.pipeline_mode<synchronous>, transform_indices = @transform_22, window_bounds = array<i64: 2, 3>}, {pipeline_mode = #tpu.pipeline_mode<synchronous>, transform_indices = @transform_23, window_bounds = array<i64: 2, 3>}, {pipeline_mode = #tpu.pipeline_mode<synchronous>, transform_indices = @transform_24, window_bounds = array<i64: 1, 1>}]} {
    %c0 = arith.constant 0 : index
    %c0_0 = arith.constant 0 : index
    %0 = vector.load %arg1[%c0, %c0_0] : memref<32x12xf32, #tpu.memory_space<vmem>>, vector<32x12xf32>
    %c0_1 = arith.constant 0 : index
    %c0_2 = arith.constant 0 : index
    %1 = vector.load %arg2[%c0_1, %c0_2] : memref<12x32xf32, #tpu.memory_space<vmem>>, vector<12x32xf32>
    %cst = arith.constant dense<0.000000e+00> : vector<32x32xf32>
    %2 = tpu.matmul %0, %1, %cst {dimension_numbers = #tpu.dot_dimension_numbers<[1], [0], [0], [1], [0, 0, 1, 1], [], []>} : vector<32x12xf32>, vector<12x32xf32>, vector<32x32xf32> -> vector<32x32xf32>
    %c0_3 = arith.constant 0 : index
    %c0_4 = arith.constant 0 : index
    %3 = vector.load %arg3[%c0_3, %c0_4] : memref<32x32xf32, #tpu.memory_space<vmem>>, vector<32x32xf32>
    %4 = arith.addf %2, %3 : vector<32x32xf32>
    %c0_5 = arith.constant 0 : index
    %c0_6 = arith.constant 0 : index
    %5 = vector.load %arg4[%c0_5, %c0_6] : memref<1x32xf32, #tpu.memory_space<vmem>>, vector<1x32xf32>
    %6 = vector.extract_strided_slice %4 {offsets = [0, 0], sizes = [16, 32], strides = [1, 1]} : vector<32x32xf32> to vector<16x32xf32>
    %7 = vector.extract_strided_slice %4 {offsets = [16, 0], sizes = [16, 32], strides = [1, 1]} : vector<32x32xf32> to vector<16x32xf32>
    %8 = tpu.concatenate %5, %6, %5, %7 in 0 : vector<1x32xf32>, vector<16x32xf32>, vector<1x32xf32>, vector<16x32xf32> -> vector<34x32xf32>
    %c0_7 = arith.constant 0 : index
    %c0_8 = arith.constant 0 : index
    %c0_9 = arith.constant 0 : index
    %9 = vector.load %arg5[%c0_7, %c0_8, %c0_9] : memref<2x1x32xf32, #tpu.memory_space<vmem>>, vector<1x1x32xf32>
    %10 = vector.shape_cast %9 : vector<1x1x32xf32> to vector<1x32xf32>
    %c0_10 = arith.constant 0 : index
    %c0_11 = arith.constant 0 : index
    %c0_12 = arith.constant 0 : index
    %11 = vector.load %arg6[%c0_10, %c0_11, %c0_12] : memref<2x1x32xf32, #tpu.memory_space<vmem>>, vector<1x1x32xf32>
    %12 = vector.shape_cast %11 : vector<1x1x32xf32> to vector<1x32xf32>
    %cst_13 = arith.constant dense<0.000000e+00> : vector<34xf32>
    %13 = vector.multi_reduction <add>, %8, %cst_13 [1] : vector<34x32xf32> to vector<34xf32>
    %14 = vector.shape_cast %13 : vector<34xf32> to vector<34x1xf32>
    %cst_14 = arith.constant 3.200000e+01 : f32
    %15 = vector.broadcast %cst_14 : f32 to vector<34x1xf32>
    %16 = arith.divf %14, %15 : vector<34x1xf32>
    %17 = vector.broadcast %16 : vector<34x1xf32> to vector<34x32xf32>
    %18 = arith.subf %8, %17 : vector<34x32xf32>
    %19 = arith.mulf %18, %18 : vector<34x32xf32>
    %cst_15 = arith.constant dense<0.000000e+00> : vector<34xf32>
    %20 = vector.multi_reduction <add>, %19, %cst_15 [1] : vector<34x32xf32> to vector<34xf32>
    %21 = vector.shape_cast %20 : vector<34xf32> to vector<34x1xf32>
    %cst_16 = arith.constant 3.200000e+01 : f32
    %22 = vector.broadcast %cst_16 : f32 to vector<34x1xf32>
    %23 = arith.divf %21, %22 : vector<34x1xf32>
    %24 = vector.broadcast %16 : vector<34x1xf32> to vector<34x32xf32>
    %25 = arith.subf %8, %24 : vector<34x32xf32>
    %cst_17 = arith.constant 9.99999974E-6 : f32
    %26 = vector.broadcast %cst_17 : f32 to vector<34x1xf32>
    %27 = arith.addf %23, %26 : vector<34x1xf32>
    %28 = math.rsqrt %27 : vector<34x1xf32>
    %29 = vector.broadcast %28 : vector<34x1xf32> to vector<34x32xf32>
    %30 = arith.mulf %25, %29 : vector<34x32xf32>
    %31 = vector.broadcast %10 : vector<1x32xf32> to vector<34x32xf32>
    %32 = arith.mulf %30, %31 : vector<34x32xf32>
    %33 = vector.broadcast %12 : vector<1x32xf32> to vector<34x32xf32>
    %34 = arith.addf %32, %33 : vector<34x32xf32>
    %35 = arith.truncf %34 : vector<34x32xf32> to vector<34x32xbf16>
    %cst_18 = arith.constant 0.000000e+00 : f32
    %36 = vector.broadcast %cst_18 : f32 to vector<34x32xf32>
    %c0_19 = arith.constant 0 : index
    %c0_20 = arith.constant 0 : index
    %c0_21 = arith.constant 0 : index
    %37 = vector.load %arg7[%c0_19, %c0_20, %c0_21] : memref<8x32x8xbf16, #tpu.memory_space<vmem>>, vector<1x32x8xbf16>
    %38 = vector.shape_cast %37 : vector<1x32x8xbf16> to vector<32x8xbf16>
    %cst_22 = arith.constant dense<0.000000e+00> : vector<34x8xf32>
    %39 = tpu.matmul %35, %38, %cst_22 {dimension_numbers = #tpu.dot_dimension_numbers<[1], [0], [0], [1], [0, 0, 1, 1], [], []>} : vector<34x32xbf16>, vector<32x8xbf16>, vector<34x8xf32> -> vector<34x8xf32>
    %c0_23 = arith.constant 0 : index
    %c0_24 = arith.constant 0 : index
    %c0_25 = arith.constant 0 : index
    %40 = vector.load %arg10[%c0_23, %c0_24, %c0_25] : memref<8x1x8xf32, #tpu.memory_space<vmem>>, vector<1x1x8xf32>
    %41 = vector.shape_cast %40 : vector<1x1x8xf32> to vector<1x8xf32>
    %42 = vector.broadcast %41 : vector<1x8xf32> to vector<34x8xf32>
    %43 = arith.addf %39, %42 : vector<34x8xf32>
    %c0_26 = arith.constant 0 : index
    %c0_27 = arith.constant 0 : index
    %c0_28 = arith.constant 0 : index
    %44 = vector.load %arg8[%c0_26, %c0_27, %c0_28] : memref<8x32x8xbf16, #tpu.memory_space<vmem>>, vector<1x32x8xbf16>
    %45 = vector.shape_cast %44 : vector<1x32x8xbf16> to vector<32x8xbf16>
    %cst_29 = arith.constant dense<0.000000e+00> : vector<34x8xf32>
    %46 = tpu.matmul %35, %45, %cst_29 {dimension_numbers = #tpu.dot_dimension_numbers<[1], [0], [0], [1], [0, 0, 1, 1], [], []>} : vector<34x32xbf16>, vector<32x8xbf16>, vector<34x8xf32> -> vector<34x8xf32>
    %c0_30 = arith.constant 0 : index
    %c0_31 = arith.constant 0 : index
    %c0_32 = arith.constant 0 : index
    %47 = vector.load %arg11[%c0_30, %c0_31, %c0_32] : memref<8x1x8xf32, #tpu.memory_space<vmem>>, vector<1x1x8xf32>
    %48 = vector.shape_cast %47 : vector<1x1x8xf32> to vector<1x8xf32>
    %49 = vector.broadcast %48 : vector<1x8xf32> to vector<34x8xf32>
    %50 = arith.addf %46, %49 : vector<34x8xf32>
    %c0_33 = arith.constant 0 : index
    %c0_34 = arith.constant 0 : index
    %c0_35 = arith.constant 0 : index
    %51 = vector.load %arg9[%c0_33, %c0_34, %c0_35] : memref<8x32x8xbf16, #tpu.memory_space<vmem>>, vector<1x32x8xbf16>
    %52 = vector.shape_cast %51 : vector<1x32x8xbf16> to vector<32x8xbf16>
    %cst_36 = arith.constant dense<0.000000e+00> : vector<34x8xf32>
    %53 = tpu.matmul %35, %52, %cst_36 {dimension_numbers = #tpu.dot_dimension_numbers<[1], [0], [0], [1], [0, 0, 1, 1], [], []>} : vector<34x32xbf16>, vector<32x8xbf16>, vector<34x8xf32> -> vector<34x8xf32>
    %c0_37 = arith.constant 0 : index
    %c0_38 = arith.constant 0 : index
    %c0_39 = arith.constant 0 : index
    %54 = vector.load %arg12[%c0_37, %c0_38, %c0_39] : memref<8x1x8xf32, #tpu.memory_space<vmem>>, vector<1x1x8xf32>
    %55 = vector.shape_cast %54 : vector<1x1x8xf32> to vector<1x8xf32>
    %56 = vector.broadcast %55 : vector<1x8xf32> to vector<34x8xf32>
    %57 = arith.addf %53, %56 : vector<34x8xf32>
    %58 = vector.extract_strided_slice %43 {offsets = [0, 0], sizes = [17, 8], strides = [1, 1]} : vector<34x8xf32> to vector<17x8xf32>
    %59 = vector.extract_strided_slice %50 {offsets = [0, 0], sizes = [17, 8], strides = [1, 1]} : vector<34x8xf32> to vector<17x8xf32>
    %60 = vector.extract_strided_slice %57 {offsets = [0, 0], sizes = [17, 8], strides = [1, 1]} : vector<34x8xf32> to vector<17x8xf32>
    %cst_40 = arith.constant dense<0.000000e+00> : vector<17x17xf32>
    %61 = tpu.matmul %58, %59, %cst_40 {dimension_numbers = #tpu.dot_dimension_numbers<[1], [1], [0], [0], [0, 0, 1, 0], [], []>} : vector<17x8xf32>, vector<17x8xf32>, vector<17x17xf32> -> vector<17x17xf32>
    %cst_41 = arith.constant 0.353553385 : f32
    %62 = vector.broadcast %cst_41 : f32 to vector<17x17xf32>
    %63 = arith.mulf %61, %62 : vector<17x17xf32>
    %cst_42 = arith.constant dense<0xFF800000> : vector<17xf32>
    %64 = vector.multi_reduction <maximumf>, %63, %cst_42 [1] : vector<17x17xf32> to vector<17xf32>
    %65 = vector.shape_cast %64 : vector<17xf32> to vector<17x1xf32>
    %66 = vector.broadcast %65 : vector<17x1xf32> to vector<17x17xf32>
    %67 = arith.subf %63, %66 : vector<17x17xf32>
    %68 = math.exp %67 : vector<17x17xf32>
    %cst_43 = arith.constant dense<0.000000e+00> : vector<17xf32>
    %69 = vector.multi_reduction <add>, %68, %cst_43 [1] : vector<17x17xf32> to vector<17xf32>
    %70 = vector.shape_cast %69 : vector<17xf32> to vector<17x1xf32>
    %71 = tpu.reciprocal %70 {approx = true} : vector<17x1xf32> -> vector<17x1xf32>
    %72 = vector.broadcast %71 : vector<17x1xf32> to vector<17x17xf32>
    %73 = arith.mulf %68, %72 : vector<17x17xf32>
    %cst_44 = arith.constant dense<0.000000e+00> : vector<17x8xf32>
    %74 = tpu.matmul %73, %60, %cst_44 {dimension_numbers = #tpu.dot_dimension_numbers<[1], [0], [0], [1], [0, 0, 1, 1], [], []>} : vector<17x17xf32>, vector<17x8xf32>, vector<17x8xf32> -> vector<17x8xf32>
    %75 = vector.extract_strided_slice %43 {offsets = [17, 0], sizes = [17, 8], strides = [1, 1]} : vector<34x8xf32> to vector<17x8xf32>
    %76 = vector.extract_strided_slice %50 {offsets = [17, 0], sizes = [17, 8], strides = [1, 1]} : vector<34x8xf32> to vector<17x8xf32>
    %77 = vector.extract_strided_slice %57 {offsets = [17, 0], sizes = [17, 8], strides = [1, 1]} : vector<34x8xf32> to vector<17x8xf32>
    %cst_45 = arith.constant dense<0.000000e+00> : vector<17x17xf32>
    %78 = tpu.matmul %75, %76, %cst_45 {dimension_numbers = #tpu.dot_dimension_numbers<[1], [1], [0], [0], [0, 0, 1, 0], [], []>} : vector<17x8xf32>, vector<17x8xf32>, vector<17x17xf32> -> vector<17x17xf32>
    %cst_46 = arith.constant 0.353553385 : f32
    %79 = vector.broadcast %cst_46 : f32 to vector<17x17xf32>
    %80 = arith.mulf %78, %79 : vector<17x17xf32>
    %cst_47 = arith.constant dense<0xFF800000> : vector<17xf32>
    %81 = vector.multi_reduction <maximumf>, %80, %cst_47 [1] : vector<17x17xf32> to vector<17xf32>
    %82 = vector.shape_cast %81 : vector<17xf32> to vector<17x1xf32>
    %83 = vector.broadcast %82 : vector<17x1xf32> to vector<17x17xf32>
    %84 = arith.subf %80, %83 : vector<17x17xf32>
    %85 = math.exp %84 : vector<17x17xf32>
    %cst_48 = arith.constant dense<0.000000e+00> : vector<17xf32>
    %86 = vector.multi_reduction <add>, %85, %cst_48 [1] : vector<17x17xf32> to vector<17xf32>
    %87 = vector.shape_cast %86 : vector<17xf32> to vector<17x1xf32>
    %88 = tpu.reciprocal %87 {approx = true} : vector<17x1xf32> -> vector<17x1xf32>
    %89 = vector.broadcast %88 : vector<17x1xf32> to vector<17x17xf32>
    %90 = arith.mulf %85, %89 : vector<17x17xf32>
    %cst_49 = arith.constant dense<0.000000e+00> : vector<17x8xf32>
    %91 = tpu.matmul %90, %77, %cst_49 {dimension_numbers = #tpu.dot_dimension_numbers<[1], [0], [0], [1], [0, 0, 1, 1], [], []>} : vector<17x17xf32>, vector<17x8xf32>, vector<17x8xf32> -> vector<17x8xf32>
    %92 = tpu.concatenate %74, %91 in 0 : vector<17x8xf32>, vector<17x8xf32> -> vector<34x8xf32>
    %93 = arith.truncf %92 : vector<34x8xf32> to vector<34x8xbf16>
    %c0_50 = arith.constant 0 : index
    %c0_51 = arith.constant 0 : index
    %c0_52 = arith.constant 0 : index
    %94 = vector.load %arg13[%c0_50, %c0_51, %c0_52] : memref<8x8x32xbf16, #tpu.memory_space<vmem>>, vector<1x8x32xbf16>
    %95 = vector.shape_cast %94 : vector<1x8x32xbf16> to vector<8x32xbf16>
    %cst_53 = arith.constant dense<0.000000e+00> : vector<34x32xf32>
    %96 = tpu.matmul %93, %95, %cst_53 {dimension_numbers = #tpu.dot_dimension_numbers<[1], [0], [0], [1], [0, 0, 1, 1], [], []>} : vector<34x8xbf16>, vector<8x32xbf16>, vector<34x32xf32> -> vector<34x32xf32>
    %97 = arith.addf %36, %96 : vector<34x32xf32>
    %c1 = arith.constant 1 : index
    %c0_54 = arith.constant 0 : index
    %c0_55 = arith.constant 0 : index
    %98 = vector.load %arg7[%c1, %c0_54, %c0_55] : memref<8x32x8xbf16, #tpu.memory_space<vmem>>, vector<1x32x8xbf16>
    %99 = vector.shape_cast %98 : vector<1x32x8xbf16> to vector<32x8xbf16>
    %cst_56 = arith.constant dense<0.000000e+00> : vector<34x8xf32>
    %100 = tpu.matmul %35, %99, %cst_56 {dimension_numbers = #tpu.dot_dimension_numbers<[1], [0], [0], [1], [0, 0, 1, 1], [], []>} : vector<34x32xbf16>, vector<32x8xbf16>, vector<34x8xf32> -> vector<34x8xf32>
    %c1_57 = arith.constant 1 : index
    %c0_58 = arith.constant 0 : index
    %c0_59 = arith.constant 0 : index
    %101 = vector.load %arg10[%c1_57, %c0_58, %c0_59] : memref<8x1x8xf32, #tpu.memory_space<vmem>>, vector<1x1x8xf32>
    %102 = vector.shape_cast %101 : vector<1x1x8xf32> to vector<1x8xf32>
    %103 = vector.broadcast %102 : vector<1x8xf32> to vector<34x8xf32>
    %104 = arith.addf %100, %103 : vector<34x8xf32>
    %c1_60 = arith.constant 1 : index
    %c0_61 = arith.constant 0 : index
    %c0_62 = arith.constant 0 : index
    %105 = vector.load %arg8[%c1_60, %c0_61, %c0_62] : memref<8x32x8xbf16, #tpu.memory_space<vmem>>, vector<1x32x8xbf16>
    %106 = vector.shape_cast %105 : vector<1x32x8xbf16> to vector<32x8xbf16>
    %cst_63 = arith.constant dense<0.000000e+00> : vector<34x8xf32>
    %107 = tpu.matmul %35, %106, %cst_63 {dimension_numbers = #tpu.dot_dimension_numbers<[1], [0], [0], [1], [0, 0, 1, 1], [], []>} : vector<34x32xbf16>, vector<32x8xbf16>, vector<34x8xf32> -> vector<34x8xf32>
    %c1_64 = arith.constant 1 : index
    %c0_65 = arith.constant 0 : index
    %c0_66 = arith.constant 0 : index
    %108 = vector.load %arg11[%c1_64, %c0_65, %c0_66] : memref<8x1x8xf32, #tpu.memory_space<vmem>>, vector<1x1x8xf32>
    %109 = vector.shape_cast %108 : vector<1x1x8xf32> to vector<1x8xf32>
    %110 = vector.broadcast %109 : vector<1x8xf32> to vector<34x8xf32>
    %111 = arith.addf %107, %110 : vector<34x8xf32>
    %c1_67 = arith.constant 1 : index
    %c0_68 = arith.constant 0 : index
    %c0_69 = arith.constant 0 : index
    %112 = vector.load %arg9[%c1_67, %c0_68, %c0_69] : memref<8x32x8xbf16, #tpu.memory_space<vmem>>, vector<1x32x8xbf16>
    %113 = vector.shape_cast %112 : vector<1x32x8xbf16> to vector<32x8xbf16>
    %cst_70 = arith.constant dense<0.000000e+00> : vector<34x8xf32>
    %114 = tpu.matmul %35, %113, %cst_70 {dimension_numbers = #tpu.dot_dimension_numbers<[1], [0], [0], [1], [0, 0, 1, 1], [], []>} : vector<34x32xbf16>, vector<32x8xbf16>, vector<34x8xf32> -> vector<34x8xf32>
    %c1_71 = arith.constant 1 : index
    %c0_72 = arith.constant 0 : index
    %c0_73 = arith.constant 0 : index
    %115 = vector.load %arg12[%c1_71, %c0_72, %c0_73] : memref<8x1x8xf32, #tpu.memory_space<vmem>>, vector<1x1x8xf32>
    %116 = vector.shape_cast %115 : vector<1x1x8xf32> to vector<1x8xf32>
    %117 = vector.broadcast %116 : vector<1x8xf32> to vector<34x8xf32>
    %118 = arith.addf %114, %117 : vector<34x8xf32>
    %119 = vector.extract_strided_slice %104 {offsets = [0, 0], sizes = [17, 8], strides = [1, 1]} : vector<34x8xf32> to vector<17x8xf32>
    %120 = vector.extract_strided_slice %111 {offsets = [0, 0], sizes = [17, 8], strides = [1, 1]} : vector<34x8xf32> to vector<17x8xf32>
    %121 = vector.extract_strided_slice %118 {offsets = [0, 0], sizes = [17, 8], strides = [1, 1]} : vector<34x8xf32> to vector<17x8xf32>
    %cst_74 = arith.constant dense<0.000000e+00> : vector<17x17xf32>
    %122 = tpu.matmul %119, %120, %cst_74 {dimension_numbers = #tpu.dot_dimension_numbers<[1], [1], [0], [0], [0, 0, 1, 0], [], []>} : vector<17x8xf32>, vector<17x8xf32>, vector<17x17xf32> -> vector<17x17xf32>
    %cst_75 = arith.constant 0.353553385 : f32
    %123 = vector.broadcast %cst_75 : f32 to vector<17x17xf32>
    %124 = arith.mulf %122, %123 : vector<17x17xf32>
    %cst_76 = arith.constant dense<0xFF800000> : vector<17xf32>
    %125 = vector.multi_reduction <maximumf>, %124, %cst_76 [1] : vector<17x17xf32> to vector<17xf32>
    %126 = vector.shape_cast %125 : vector<17xf32> to vector<17x1xf32>
    %127 = vector.broadcast %126 : vector<17x1xf32> to vector<17x17xf32>
    %128 = arith.subf %124, %127 : vector<17x17xf32>
    %129 = math.exp %128 : vector<17x17xf32>
    %cst_77 = arith.constant dense<0.000000e+00> : vector<17xf32>
    %130 = vector.multi_reduction <add>, %129, %cst_77 [1] : vector<17x17xf32> to vector<17xf32>
    %131 = vector.shape_cast %130 : vector<17xf32> to vector<17x1xf32>
    %132 = tpu.reciprocal %131 {approx = true} : vector<17x1xf32> -> vector<17x1xf32>
    %133 = vector.broadcast %132 : vector<17x1xf32> to vector<17x17xf32>
    %134 = arith.mulf %129, %133 : vector<17x17xf32>
    %cst_78 = arith.constant dense<0.000000e+00> : vector<17x8xf32>
    %135 = tpu.matmul %134, %121, %cst_78 {dimension_numbers = #tpu.dot_dimension_numbers<[1], [0], [0], [1], [0, 0, 1, 1], [], []>} : vector<17x17xf32>, vector<17x8xf32>, vector<17x8xf32> -> vector<17x8xf32>
    %136 = vector.extract_strided_slice %104 {offsets = [17, 0], sizes = [17, 8], strides = [1, 1]} : vector<34x8xf32> to vector<17x8xf32>
    %137 = vector.extract_strided_slice %111 {offsets = [17, 0], sizes = [17, 8], strides = [1, 1]} : vector<34x8xf32> to vector<17x8xf32>
    %138 = vector.extract_strided_slice %118 {offsets = [17, 0], sizes = [17, 8], strides = [1, 1]} : vector<34x8xf32> to vector<17x8xf32>
    %cst_79 = arith.constant dense<0.000000e+00> : vector<17x17xf32>
    %139 = tpu.matmul %136, %137, %cst_79 {dimension_numbers = #tpu.dot_dimension_numbers<[1], [1], [0], [0], [0, 0, 1, 0], [], []>} : vector<17x8xf32>, vector<17x8xf32>, vector<17x17xf32> -> vector<17x17xf32>
    %cst_80 = arith.constant 0.353553385 : f32
    %140 = vector.broadcast %cst_80 : f32 to vector<17x17xf32>
    %141 = arith.mulf %139, %140 : vector<17x17xf32>
    %cst_81 = arith.constant dense<0xFF800000> : vector<17xf32>
    %142 = vector.multi_reduction <maximumf>, %141, %cst_81 [1] : vector<17x17xf32> to vector<17xf32>
    %143 = vector.shape_cast %142 : vector<17xf32> to vector<17x1xf32>
    %144 = vector.broadcast %143 : vector<17x1xf32> to vector<17x17xf32>
    %145 = arith.subf %141, %144 : vector<17x17xf32>
    %146 = math.exp %145 : vector<17x17xf32>
    %cst_82 = arith.constant dense<0.000000e+00> : vector<17xf32>
    %147 = vector.multi_reduction <add>, %146, %cst_82 [1] : vector<17x17xf32> to vector<17xf32>
    %148 = vector.shape_cast %147 : vector<17xf32> to vector<17x1xf32>
    %149 = tpu.reciprocal %148 {approx = true} : vector<17x1xf32> -> vector<17x1xf32>
    %150 = vector.broadcast %149 : vector<17x1xf32> to vector<17x17xf32>
    %151 = arith.mulf %146, %150 : vector<17x17xf32>
    %cst_83 = arith.constant dense<0.000000e+00> : vector<17x8xf32>
    %152 = tpu.matmul %151, %138, %cst_83 {dimension_numbers = #tpu.dot_dimension_numbers<[1], [0], [0], [1], [0, 0, 1, 1], [], []>} : vector<17x17xf32>, vector<17x8xf32>, vector<17x8xf32> -> vector<17x8xf32>
    %153 = tpu.concatenate %135, %152 in 0 : vector<17x8xf32>, vector<17x8xf32> -> vector<34x8xf32>
    %154 = arith.truncf %153 : vector<34x8xf32> to vector<34x8xbf16>
    %c1_84 = arith.constant 1 : index
    %c0_85 = arith.constant 0 : index
    %c0_86 = arith.constant 0 : index
    %155 = vector.load %arg13[%c1_84, %c0_85, %c0_86] : memref<8x8x32xbf16, #tpu.memory_space<vmem>>, vector<1x8x32xbf16>
    %156 = vector.shape_cast %155 : vector<1x8x32xbf16> to vector<8x32xbf16>
    %cst_87 = arith.constant dense<0.000000e+00> : vector<34x32xf32>
    %157 = tpu.matmul %154, %156, %cst_87 {dimension_numbers = #tpu.dot_dimension_numbers<[1], [0], [0], [1], [0, 0, 1, 1], [], []>} : vector<34x8xbf16>, vector<8x32xbf16>, vector<34x32xf32> -> vector<34x32xf32>
    %158 = arith.addf %97, %157 : vector<34x32xf32>
    %c2 = arith.constant 2 : index
    %c0_88 = arith.constant 0 : index
    %c0_89 = arith.constant 0 : index
    %159 = vector.load %arg7[%c2, %c0_88, %c0_89] : memref<8x32x8xbf16, #tpu.memory_space<vmem>>, vector<1x32x8xbf16>
    %160 = vector.shape_cast %159 : vector<1x32x8xbf16> to vector<32x8xbf16>
    %cst_90 = arith.constant dense<0.000000e+00> : vector<34x8xf32>
    %161 = tpu.matmul %35, %160, %cst_90 {dimension_numbers = #tpu.dot_dimension_numbers<[1], [0], [0], [1], [0, 0, 1, 1], [], []>} : vector<34x32xbf16>, vector<32x8xbf16>, vector<34x8xf32> -> vector<34x8xf32>
    %c2_91 = arith.constant 2 : index
    %c0_92 = arith.constant 0 : index
    %c0_93 = arith.constant 0 : index
    %162 = vector.load %arg10[%c2_91, %c0_92, %c0_93] : memref<8x1x8xf32, #tpu.memory_space<vmem>>, vector<1x1x8xf32>
    %163 = vector.shape_cast %162 : vector<1x1x8xf32> to vector<1x8xf32>
    %164 = vector.broadcast %163 : vector<1x8xf32> to vector<34x8xf32>
    %165 = arith.addf %161, %164 : vector<34x8xf32>
    %c2_94 = arith.constant 2 : index
    %c0_95 = arith.constant 0 : index
    %c0_96 = arith.constant 0 : index
    %166 = vector.load %arg8[%c2_94, %c0_95, %c0_96] : memref<8x32x8xbf16, #tpu.memory_space<vmem>>, vector<1x32x8xbf16>
    %167 = vector.shape_cast %166 : vector<1x32x8xbf16> to vector<32x8xbf16>
    %cst_97 = arith.constant dense<0.000000e+00> : vector<34x8xf32>
    %168 = tpu.matmul %35, %167, %cst_97 {dimension_numbers = #tpu.dot_dimension_numbers<[1], [0], [0], [1], [0, 0, 1, 1], [], []>} : vector<34x32xbf16>, vector<32x8xbf16>, vector<34x8xf32> -> vector<34x8xf32>
    %c2_98 = arith.constant 2 : index
    %c0_99 = arith.constant 0 : index
    %c0_100 = arith.constant 0 : index
    %169 = vector.load %arg11[%c2_98, %c0_99, %c0_100] : memref<8x1x8xf32, #tpu.memory_space<vmem>>, vector<1x1x8xf32>
    %170 = vector.shape_cast %169 : vector<1x1x8xf32> to vector<1x8xf32>
    %171 = vector.broadcast %170 : vector<1x8xf32> to vector<34x8xf32>
    %172 = arith.addf %168, %171 : vector<34x8xf32>
    %c2_101 = arith.constant 2 : index
    %c0_102 = arith.constant 0 : index
    %c0_103 = arith.constant 0 : index
    %173 = vector.load %arg9[%c2_101, %c0_102, %c0_103] : memref<8x32x8xbf16, #tpu.memory_space<vmem>>, vector<1x32x8xbf16>
    %174 = vector.shape_cast %173 : vector<1x32x8xbf16> to vector<32x8xbf16>
    %cst_104 = arith.constant dense<0.000000e+00> : vector<34x8xf32>
    %175 = tpu.matmul %35, %174, %cst_104 {dimension_numbers = #tpu.dot_dimension_numbers<[1], [0], [0], [1], [0, 0, 1, 1], [], []>} : vector<34x32xbf16>, vector<32x8xbf16>, vector<34x8xf32> -> vector<34x8xf32>
    %c2_105 = arith.constant 2 : index
    %c0_106 = arith.constant 0 : index
    %c0_107 = arith.constant 0 : index
    %176 = vector.load %arg12[%c2_105, %c0_106, %c0_107] : memref<8x1x8xf32, #tpu.memory_space<vmem>>, vector<1x1x8xf32>
    %177 = vector.shape_cast %176 : vector<1x1x8xf32> to vector<1x8xf32>
    %178 = vector.broadcast %177 : vector<1x8xf32> to vector<34x8xf32>
    %179 = arith.addf %175, %178 : vector<34x8xf32>
    %180 = vector.extract_strided_slice %165 {offsets = [0, 0], sizes = [17, 8], strides = [1, 1]} : vector<34x8xf32> to vector<17x8xf32>
    %181 = vector.extract_strided_slice %172 {offsets = [0, 0], sizes = [17, 8], strides = [1, 1]} : vector<34x8xf32> to vector<17x8xf32>
    %182 = vector.extract_strided_slice %179 {offsets = [0, 0], sizes = [17, 8], strides = [1, 1]} : vector<34x8xf32> to vector<17x8xf32>
    %cst_108 = arith.constant dense<0.000000e+00> : vector<17x17xf32>
    %183 = tpu.matmul %180, %181, %cst_108 {dimension_numbers = #tpu.dot_dimension_numbers<[1], [1], [0], [0], [0, 0, 1, 0], [], []>} : vector<17x8xf32>, vector<17x8xf32>, vector<17x17xf32> -> vector<17x17xf32>
    %cst_109 = arith.constant 0.353553385 : f32
    %184 = vector.broadcast %cst_109 : f32 to vector<17x17xf32>
    %185 = arith.mulf %183, %184 : vector<17x17xf32>
    %cst_110 = arith.constant dense<0xFF800000> : vector<17xf32>
    %186 = vector.multi_reduction <maximumf>, %185, %cst_110 [1] : vector<17x17xf32> to vector<17xf32>
    %187 = vector.shape_cast %186 : vector<17xf32> to vector<17x1xf32>
    %188 = vector.broadcast %187 : vector<17x1xf32> to vector<17x17xf32>
    %189 = arith.subf %185, %188 : vector<17x17xf32>
    %190 = math.exp %189 : vector<17x17xf32>
    %cst_111 = arith.constant dense<0.000000e+00> : vector<17xf32>
    %191 = vector.multi_reduction <add>, %190, %cst_111 [1] : vector<17x17xf32> to vector<17xf32>
    %192 = vector.shape_cast %191 : vector<17xf32> to vector<17x1xf32>
    %193 = tpu.reciprocal %192 {approx = true} : vector<17x1xf32> -> vector<17x1xf32>
    %194 = vector.broadcast %193 : vector<17x1xf32> to vector<17x17xf32>
    %195 = arith.mulf %190, %194 : vector<17x17xf32>
    %cst_112 = arith.constant dense<0.000000e+00> : vector<17x8xf32>
    %196 = tpu.matmul %195, %182, %cst_112 {dimension_numbers = #tpu.dot_dimension_numbers<[1], [0], [0], [1], [0, 0, 1, 1], [], []>} : vector<17x17xf32>, vector<17x8xf32>, vector<17x8xf32> -> vector<17x8xf32>
    %197 = vector.extract_strided_slice %165 {offsets = [17, 0], sizes = [17, 8], strides = [1, 1]} : vector<34x8xf32> to vector<17x8xf32>
    %198 = vector.extract_strided_slice %172 {offsets = [17, 0], sizes = [17, 8], strides = [1, 1]} : vector<34x8xf32> to vector<17x8xf32>
    %199 = vector.extract_strided_slice %179 {offsets = [17, 0], sizes = [17, 8], strides = [1, 1]} : vector<34x8xf32> to vector<17x8xf32>
    %cst_113 = arith.constant dense<0.000000e+00> : vector<17x17xf32>
    %200 = tpu.matmul %197, %198, %cst_113 {dimension_numbers = #tpu.dot_dimension_numbers<[1], [1], [0], [0], [0, 0, 1, 0], [], []>} : vector<17x8xf32>, vector<17x8xf32>, vector<17x17xf32> -> vector<17x17xf32>
    %cst_114 = arith.constant 0.353553385 : f32
    %201 = vector.broadcast %cst_114 : f32 to vector<17x17xf32>
    %202 = arith.mulf %200, %201 : vector<17x17xf32>
    %cst_115 = arith.constant dense<0xFF800000> : vector<17xf32>
    %203 = vector.multi_reduction <maximumf>, %202, %cst_115 [1] : vector<17x17xf32> to vector<17xf32>
    %204 = vector.shape_cast %203 : vector<17xf32> to vector<17x1xf32>
    %205 = vector.broadcast %204 : vector<17x1xf32> to vector<17x17xf32>
    %206 = arith.subf %202, %205 : vector<17x17xf32>
    %207 = math.exp %206 : vector<17x17xf32>
    %cst_116 = arith.constant dense<0.000000e+00> : vector<17xf32>
    %208 = vector.multi_reduction <add>, %207, %cst_116 [1] : vector<17x17xf32> to vector<17xf32>
    %209 = vector.shape_cast %208 : vector<17xf32> to vector<17x1xf32>
    %210 = tpu.reciprocal %209 {approx = true} : vector<17x1xf32> -> vector<17x1xf32>
    %211 = vector.broadcast %210 : vector<17x1xf32> to vector<17x17xf32>
    %212 = arith.mulf %207, %211 : vector<17x17xf32>
    %cst_117 = arith.constant dense<0.000000e+00> : vector<17x8xf32>
    %213 = tpu.matmul %212, %199, %cst_117 {dimension_numbers = #tpu.dot_dimension_numbers<[1], [0], [0], [1], [0, 0, 1, 1], [], []>} : vector<17x17xf32>, vector<17x8xf32>, vector<17x8xf32> -> vector<17x8xf32>
    %214 = tpu.concatenate %196, %213 in 0 : vector<17x8xf32>, vector<17x8xf32> -> vector<34x8xf32>
    %215 = arith.truncf %214 : vector<34x8xf32> to vector<34x8xbf16>
    %c2_118 = arith.constant 2 : index
    %c0_119 = arith.constant 0 : index
    %c0_120 = arith.constant 0 : index
    %216 = vector.load %arg13[%c2_118, %c0_119, %c0_120] : memref<8x8x32xbf16, #tpu.memory_space<vmem>>, vector<1x8x32xbf16>
    %217 = vector.shape_cast %216 : vector<1x8x32xbf16> to vector<8x32xbf16>
    %cst_121 = arith.constant dense<0.000000e+00> : vector<34x32xf32>
    %218 = tpu.matmul %215, %217, %cst_121 {dimension_numbers = #tpu.dot_dimension_numbers<[1], [0], [0], [1], [0, 0, 1, 1], [], []>} : vector<34x8xbf16>, vector<8x32xbf16>, vector<34x32xf32> -> vector<34x32xf32>
    %219 = arith.addf %158, %218 : vector<34x32xf32>
    %c3 = arith.constant 3 : index
    %c0_122 = arith.constant 0 : index
    %c0_123 = arith.constant 0 : index
    %220 = vector.load %arg7[%c3, %c0_122, %c0_123] : memref<8x32x8xbf16, #tpu.memory_space<vmem>>, vector<1x32x8xbf16>
    %221 = vector.shape_cast %220 : vector<1x32x8xbf16> to vector<32x8xbf16>
    %cst_124 = arith.constant dense<0.000000e+00> : vector<34x8xf32>
    %222 = tpu.matmul %35, %221, %cst_124 {dimension_numbers = #tpu.dot_dimension_numbers<[1], [0], [0], [1], [0, 0, 1, 1], [], []>} : vector<34x32xbf16>, vector<32x8xbf16>, vector<34x8xf32> -> vector<34x8xf32>
    %c3_125 = arith.constant 3 : index
    %c0_126 = arith.constant 0 : index
    %c0_127 = arith.constant 0 : index
    %223 = vector.load %arg10[%c3_125, %c0_126, %c0_127] : memref<8x1x8xf32, #tpu.memory_space<vmem>>, vector<1x1x8xf32>
    %224 = vector.shape_cast %223 : vector<1x1x8xf32> to vector<1x8xf32>
    %225 = vector.broadcast %224 : vector<1x8xf32> to vector<34x8xf32>
    %226 = arith.addf %222, %225 : vector<34x8xf32>
    %c3_128 = arith.constant 3 : index
    %c0_129 = arith.constant 0 : index
    %c0_130 = arith.constant 0 : index
    %227 = vector.load %arg8[%c3_128, %c0_129, %c0_130] : memref<8x32x8xbf16, #tpu.memory_space<vmem>>, vector<1x32x8xbf16>
    %228 = vector.shape_cast %227 : vector<1x32x8xbf16> to vector<32x8xbf16>
    %cst_131 = arith.constant dense<0.000000e+00> : vector<34x8xf32>
    %229 = tpu.matmul %35, %228, %cst_131 {dimension_numbers = #tpu.dot_dimension_numbers<[1], [0], [0], [1], [0, 0, 1, 1], [], []>} : vector<34x32xbf16>, vector<32x8xbf16>, vector<34x8xf32> -> vector<34x8xf32>
    %c3_132 = arith.constant 3 : index
    %c0_133 = arith.constant 0 : index
    %c0_134 = arith.constant 0 : index
    %230 = vector.load %arg11[%c3_132, %c0_133, %c0_134] : memref<8x1x8xf32, #tpu.memory_space<vmem>>, vector<1x1x8xf32>
    %231 = vector.shape_cast %230 : vector<1x1x8xf32> to vector<1x8xf32>
    %232 = vector.broadcast %231 : vector<1x8xf32> to vector<34x8xf32>
    %233 = arith.addf %229, %232 : vector<34x8xf32>
    %c3_135 = arith.constant 3 : index
    %c0_136 = arith.constant 0 : index
    %c0_137 = arith.constant 0 : index
    %234 = vector.load %arg9[%c3_135, %c0_136, %c0_137] : memref<8x32x8xbf16, #tpu.memory_space<vmem>>, vector<1x32x8xbf16>
    %235 = vector.shape_cast %234 : vector<1x32x8xbf16> to vector<32x8xbf16>
    %cst_138 = arith.constant dense<0.000000e+00> : vector<34x8xf32>
    %236 = tpu.matmul %35, %235, %cst_138 {dimension_numbers = #tpu.dot_dimension_numbers<[1], [0], [0], [1], [0, 0, 1, 1], [], []>} : vector<34x32xbf16>, vector<32x8xbf16>, vector<34x8xf32> -> vector<34x8xf32>
    %c3_139 = arith.constant 3 : index
    %c0_140 = arith.constant 0 : index
    %c0_141 = arith.constant 0 : index
    %237 = vector.load %arg12[%c3_139, %c0_140, %c0_141] : memref<8x1x8xf32, #tpu.memory_space<vmem>>, vector<1x1x8xf32>
    %238 = vector.shape_cast %237 : vector<1x1x8xf32> to vector<1x8xf32>
    %239 = vector.broadcast %238 : vector<1x8xf32> to vector<34x8xf32>
    %240 = arith.addf %236, %239 : vector<34x8xf32>
    %241 = vector.extract_strided_slice %226 {offsets = [0, 0], sizes = [17, 8], strides = [1, 1]} : vector<34x8xf32> to vector<17x8xf32>
    %242 = vector.extract_strided_slice %233 {offsets = [0, 0], sizes = [17, 8], strides = [1, 1]} : vector<34x8xf32> to vector<17x8xf32>
    %243 = vector.extract_strided_slice %240 {offsets = [0, 0], sizes = [17, 8], strides = [1, 1]} : vector<34x8xf32> to vector<17x8xf32>
    %cst_142 = arith.constant dense<0.000000e+00> : vector<17x17xf32>
    %244 = tpu.matmul %241, %242, %cst_142 {dimension_numbers = #tpu.dot_dimension_numbers<[1], [1], [0], [0], [0, 0, 1, 0], [], []>} : vector<17x8xf32>, vector<17x8xf32>, vector<17x17xf32> -> vector<17x17xf32>
    %cst_143 = arith.constant 0.353553385 : f32
    %245 = vector.broadcast %cst_143 : f32 to vector<17x17xf32>
    %246 = arith.mulf %244, %245 : vector<17x17xf32>
    %cst_144 = arith.constant dense<0xFF800000> : vector<17xf32>
    %247 = vector.multi_reduction <maximumf>, %246, %cst_144 [1] : vector<17x17xf32> to vector<17xf32>
    %248 = vector.shape_cast %247 : vector<17xf32> to vector<17x1xf32>
    %249 = vector.broadcast %248 : vector<17x1xf32> to vector<17x17xf32>
    %250 = arith.subf %246, %249 : vector<17x17xf32>
    %251 = math.exp %250 : vector<17x17xf32>
    %cst_145 = arith.constant dense<0.000000e+00> : vector<17xf32>
    %252 = vector.multi_reduction <add>, %251, %cst_145 [1] : vector<17x17xf32> to vector<17xf32>
    %253 = vector.shape_cast %252 : vector<17xf32> to vector<17x1xf32>
    %254 = tpu.reciprocal %253 {approx = true} : vector<17x1xf32> -> vector<17x1xf32>
    %255 = vector.broadcast %254 : vector<17x1xf32> to vector<17x17xf32>
    %256 = arith.mulf %251, %255 : vector<17x17xf32>
    %cst_146 = arith.constant dense<0.000000e+00> : vector<17x8xf32>
    %257 = tpu.matmul %256, %243, %cst_146 {dimension_numbers = #tpu.dot_dimension_numbers<[1], [0], [0], [1], [0, 0, 1, 1], [], []>} : vector<17x17xf32>, vector<17x8xf32>, vector<17x8xf32> -> vector<17x8xf32>
    %258 = vector.extract_strided_slice %226 {offsets = [17, 0], sizes = [17, 8], strides = [1, 1]} : vector<34x8xf32> to vector<17x8xf32>
    %259 = vector.extract_strided_slice %233 {offsets = [17, 0], sizes = [17, 8], strides = [1, 1]} : vector<34x8xf32> to vector<17x8xf32>
    %260 = vector.extract_strided_slice %240 {offsets = [17, 0], sizes = [17, 8], strides = [1, 1]} : vector<34x8xf32> to vector<17x8xf32>
    %cst_147 = arith.constant dense<0.000000e+00> : vector<17x17xf32>
    %261 = tpu.matmul %258, %259, %cst_147 {dimension_numbers = #tpu.dot_dimension_numbers<[1], [1], [0], [0], [0, 0, 1, 0], [], []>} : vector<17x8xf32>, vector<17x8xf32>, vector<17x17xf32> -> vector<17x17xf32>
    %cst_148 = arith.constant 0.353553385 : f32
    %262 = vector.broadcast %cst_148 : f32 to vector<17x17xf32>
    %263 = arith.mulf %261, %262 : vector<17x17xf32>
    %cst_149 = arith.constant dense<0xFF800000> : vector<17xf32>
    %264 = vector.multi_reduction <maximumf>, %263, %cst_149 [1] : vector<17x17xf32> to vector<17xf32>
    %265 = vector.shape_cast %264 : vector<17xf32> to vector<17x1xf32>
    %266 = vector.broadcast %265 : vector<17x1xf32> to vector<17x17xf32>
    %267 = arith.subf %263, %266 : vector<17x17xf32>
    %268 = math.exp %267 : vector<17x17xf32>
    %cst_150 = arith.constant dense<0.000000e+00> : vector<17xf32>
    %269 = vector.multi_reduction <add>, %268, %cst_150 [1] : vector<17x17xf32> to vector<17xf32>
    %270 = vector.shape_cast %269 : vector<17xf32> to vector<17x1xf32>
    %271 = tpu.reciprocal %270 {approx = true} : vector<17x1xf32> -> vector<17x1xf32>
    %272 = vector.broadcast %271 : vector<17x1xf32> to vector<17x17xf32>
    %273 = arith.mulf %268, %272 : vector<17x17xf32>
    %cst_151 = arith.constant dense<0.000000e+00> : vector<17x8xf32>
    %274 = tpu.matmul %273, %260, %cst_151 {dimension_numbers = #tpu.dot_dimension_numbers<[1], [0], [0], [1], [0, 0, 1, 1], [], []>} : vector<17x17xf32>, vector<17x8xf32>, vector<17x8xf32> -> vector<17x8xf32>
    %275 = tpu.concatenate %257, %274 in 0 : vector<17x8xf32>, vector<17x8xf32> -> vector<34x8xf32>
    %276 = arith.truncf %275 : vector<34x8xf32> to vector<34x8xbf16>
    %c3_152 = arith.constant 3 : index
    %c0_153 = arith.constant 0 : index
    %c0_154 = arith.constant 0 : index
    %277 = vector.load %arg13[%c3_152, %c0_153, %c0_154] : memref<8x8x32xbf16, #tpu.memory_space<vmem>>, vector<1x8x32xbf16>
    %278 = vector.shape_cast %277 : vector<1x8x32xbf16> to vector<8x32xbf16>
    %cst_155 = arith.constant dense<0.000000e+00> : vector<34x32xf32>
    %279 = tpu.matmul %276, %278, %cst_155 {dimension_numbers = #tpu.dot_dimension_numbers<[1], [0], [0], [1], [0, 0, 1, 1], [], []>} : vector<34x8xbf16>, vector<8x32xbf16>, vector<34x32xf32> -> vector<34x32xf32>
    %280 = arith.addf %219, %279 : vector<34x32xf32>
    %281 = arith.addf %8, %280 : vector<34x32xf32>
    %c0_156 = arith.constant 0 : index
    %c0_157 = arith.constant 0 : index
    %c0_158 = arith.constant 0 : index
    %282 = vector.load %arg14[%c0_156, %c0_157, %c0_158] : memref<2x1x32xf32, #tpu.memory_space<vmem>>, vector<1x1x32xf32>
    %283 = vector.shape_cast %282 : vector<1x1x32xf32> to vector<1x32xf32>
    %284 = vector.broadcast %283 : vector<1x32xf32> to vector<34x32xf32>
    %285 = arith.addf %281, %284 : vector<34x32xf32>
    %c0_159 = arith.constant 0 : index
    %c0_160 = arith.constant 0 : index
    %c0_161 = arith.constant 0 : index
    %286 = vector.load %arg15[%c0_159, %c0_160, %c0_161] : memref<2x1x32xf32, #tpu.memory_space<vmem>>, vector<1x1x32xf32>
    %287 = vector.shape_cast %286 : vector<1x1x32xf32> to vector<1x32xf32>
    %c0_162 = arith.constant 0 : index
    %c0_163 = arith.constant 0 : index
    %c0_164 = arith.constant 0 : index
    %288 = vector.load %arg16[%c0_162, %c0_163, %c0_164] : memref<2x1x32xf32, #tpu.memory_space<vmem>>, vector<1x1x32xf32>
    %289 = vector.shape_cast %288 : vector<1x1x32xf32> to vector<1x32xf32>
    %cst_165 = arith.constant dense<0.000000e+00> : vector<34xf32>
    %290 = vector.multi_reduction <add>, %285, %cst_165 [1] : vector<34x32xf32> to vector<34xf32>
    %291 = vector.shape_cast %290 : vector<34xf32> to vector<34x1xf32>
    %cst_166 = arith.constant 3.200000e+01 : f32
    %292 = vector.broadcast %cst_166 : f32 to vector<34x1xf32>
    %293 = arith.divf %291, %292 : vector<34x1xf32>
    %294 = vector.broadcast %293 : vector<34x1xf32> to vector<34x32xf32>
    %295 = arith.subf %285, %294 : vector<34x32xf32>
    %296 = arith.mulf %295, %295 : vector<34x32xf32>
    %cst_167 = arith.constant dense<0.000000e+00> : vector<34xf32>
    %297 = vector.multi_reduction <add>, %296, %cst_167 [1] : vector<34x32xf32> to vector<34xf32>
    %298 = vector.shape_cast %297 : vector<34xf32> to vector<34x1xf32>
    %cst_168 = arith.constant 3.200000e+01 : f32
    %299 = vector.broadcast %cst_168 : f32 to vector<34x1xf32>
    %300 = arith.divf %298, %299 : vector<34x1xf32>
    %301 = vector.broadcast %293 : vector<34x1xf32> to vector<34x32xf32>
    %302 = arith.subf %285, %301 : vector<34x32xf32>
    %cst_169 = arith.constant 9.99999974E-6 : f32
    %303 = vector.broadcast %cst_169 : f32 to vector<34x1xf32>
    %304 = arith.addf %300, %303 : vector<34x1xf32>
    %305 = math.rsqrt %304 : vector<34x1xf32>
    %306 = vector.broadcast %305 : vector<34x1xf32> to vector<34x32xf32>
    %307 = arith.mulf %302, %306 : vector<34x32xf32>
    %308 = vector.broadcast %287 : vector<1x32xf32> to vector<34x32xf32>
    %309 = arith.mulf %307, %308 : vector<34x32xf32>
    %310 = vector.broadcast %289 : vector<1x32xf32> to vector<34x32xf32>
    %311 = arith.addf %309, %310 : vector<34x32xf32>
    %312 = arith.truncf %311 : vector<34x32xf32> to vector<34x32xbf16>
    %cst_170 = arith.constant 0.000000e+00 : f32
    %313 = vector.broadcast %cst_170 : f32 to vector<34x32xf32>
    %c0_171 = arith.constant 0 : index
    %c0_172 = arith.constant 0 : index
    %c0_173 = arith.constant 0 : index
    %314 = vector.load %arg17[%c0_171, %c0_172, %c0_173] : memref<8x32x512xbf16, #tpu.memory_space<vmem>>, vector<1x32x512xbf16>
    %315 = vector.shape_cast %314 : vector<1x32x512xbf16> to vector<32x512xbf16>
    %cst_174 = arith.constant dense<0.000000e+00> : vector<34x512xf32>
    %316 = tpu.matmul %312, %315, %cst_174 {dimension_numbers = #tpu.dot_dimension_numbers<[1], [0], [0], [1], [0, 0, 1, 1], [], []>} : vector<34x32xbf16>, vector<32x512xbf16>, vector<34x512xf32> -> vector<34x512xf32>
    %c0_175 = arith.constant 0 : index
    %c0_176 = arith.constant 0 : index
    %c0_177 = arith.constant 0 : index
    %317 = vector.load %arg18[%c0_175, %c0_176, %c0_177] : memref<8x1x512xf32, #tpu.memory_space<vmem>>, vector<1x1x512xf32>
    %318 = vector.shape_cast %317 : vector<1x1x512xf32> to vector<1x512xf32>
    %319 = vector.broadcast %318 : vector<1x512xf32> to vector<34x512xf32>
    %320 = arith.addf %316, %319 : vector<34x512xf32>
    %cst_178 = arith.constant 0.000000e+00 : f32
    %321 = vector.broadcast %cst_178 : f32 to vector<34x512xf32>
    %322 = arith.maximumf %320, %321 : vector<34x512xf32>
    %323 = arith.truncf %322 : vector<34x512xf32> to vector<34x512xbf16>
    %c0_179 = arith.constant 0 : index
    %c0_180 = arith.constant 0 : index
    %c0_181 = arith.constant 0 : index
    %324 = vector.load %arg19[%c0_179, %c0_180, %c0_181] : memref<8x512x32xbf16, #tpu.memory_space<vmem>>, vector<1x512x32xbf16>
    %325 = vector.shape_cast %324 : vector<1x512x32xbf16> to vector<512x32xbf16>
    %cst_182 = arith.constant dense<0.000000e+00> : vector<34x32xf32>
    %326 = tpu.matmul %323, %325, %cst_182 {dimension_numbers = #tpu.dot_dimension_numbers<[1], [0], [0], [1], [0, 0, 1, 1], [], []>} : vector<34x512xbf16>, vector<512x32xbf16>, vector<34x32xf32> -> vector<34x32xf32>
    %327 = arith.addf %313, %326 : vector<34x32xf32>
    %c1_183 = arith.constant 1 : index
    %c0_184 = arith.constant 0 : index
    %c0_185 = arith.constant 0 : index
    %328 = vector.load %arg17[%c1_183, %c0_184, %c0_185] : memref<8x32x512xbf16, #tpu.memory_space<vmem>>, vector<1x32x512xbf16>
    %329 = vector.shape_cast %328 : vector<1x32x512xbf16> to vector<32x512xbf16>
    %cst_186 = arith.constant dense<0.000000e+00> : vector<34x512xf32>
    %330 = tpu.matmul %312, %329, %cst_186 {dimension_numbers = #tpu.dot_dimension_numbers<[1], [0], [0], [1], [0, 0, 1, 1], [], []>} : vector<34x32xbf16>, vector<32x512xbf16>, vector<34x512xf32> -> vector<34x512xf32>
    %c1_187 = arith.constant 1 : index
    %c0_188 = arith.constant 0 : index
    %c0_189 = arith.constant 0 : index
    %331 = vector.load %arg18[%c1_187, %c0_188, %c0_189] : memref<8x1x512xf32, #tpu.memory_space<vmem>>, vector<1x1x512xf32>
    %332 = vector.shape_cast %331 : vector<1x1x512xf32> to vector<1x512xf32>
    %333 = vector.broadcast %332 : vector<1x512xf32> to vector<34x512xf32>
    %334 = arith.addf %330, %333 : vector<34x512xf32>
    %cst_190 = arith.constant 0.000000e+00 : f32
    %335 = vector.broadcast %cst_190 : f32 to vector<34x512xf32>
    %336 = arith.maximumf %334, %335 : vector<34x512xf32>
    %337 = arith.truncf %336 : vector<34x512xf32> to vector<34x512xbf16>
    %c1_191 = arith.constant 1 : index
    %c0_192 = arith.constant 0 : index
    %c0_193 = arith.constant 0 : index
    %338 = vector.load %arg19[%c1_191, %c0_192, %c0_193] : memref<8x512x32xbf16, #tpu.memory_space<vmem>>, vector<1x512x32xbf16>
    %339 = vector.shape_cast %338 : vector<1x512x32xbf16> to vector<512x32xbf16>
    %cst_194 = arith.constant dense<0.000000e+00> : vector<34x32xf32>
    %340 = tpu.matmul %337, %339, %cst_194 {dimension_numbers = #tpu.dot_dimension_numbers<[1], [0], [0], [1], [0, 0, 1, 1], [], []>} : vector<34x512xbf16>, vector<512x32xbf16>, vector<34x32xf32> -> vector<34x32xf32>
    %341 = arith.addf %327, %340 : vector<34x32xf32>
    %c2_195 = arith.constant 2 : index
    %c0_196 = arith.constant 0 : index
    %c0_197 = arith.constant 0 : index
    %342 = vector.load %arg17[%c2_195, %c0_196, %c0_197] : memref<8x32x512xbf16, #tpu.memory_space<vmem>>, vector<1x32x512xbf16>
    %343 = vector.shape_cast %342 : vector<1x32x512xbf16> to vector<32x512xbf16>
    %cst_198 = arith.constant dense<0.000000e+00> : vector<34x512xf32>
    %344 = tpu.matmul %312, %343, %cst_198 {dimension_numbers = #tpu.dot_dimension_numbers<[1], [0], [0], [1], [0, 0, 1, 1], [], []>} : vector<34x32xbf16>, vector<32x512xbf16>, vector<34x512xf32> -> vector<34x512xf32>
    %c2_199 = arith.constant 2 : index
    %c0_200 = arith.constant 0 : index
    %c0_201 = arith.constant 0 : index
    %345 = vector.load %arg18[%c2_199, %c0_200, %c0_201] : memref<8x1x512xf32, #tpu.memory_space<vmem>>, vector<1x1x512xf32>
    %346 = vector.shape_cast %345 : vector<1x1x512xf32> to vector<1x512xf32>
    %347 = vector.broadcast %346 : vector<1x512xf32> to vector<34x512xf32>
    %348 = arith.addf %344, %347 : vector<34x512xf32>
    %cst_202 = arith.constant 0.000000e+00 : f32
    %349 = vector.broadcast %cst_202 : f32 to vector<34x512xf32>
    %350 = arith.maximumf %348, %349 : vector<34x512xf32>
    %351 = arith.truncf %350 : vector<34x512xf32> to vector<34x512xbf16>
    %c2_203 = arith.constant 2 : index
    %c0_204 = arith.constant 0 : index
    %c0_205 = arith.constant 0 : index
    %352 = vector.load %arg19[%c2_203, %c0_204, %c0_205] : memref<8x512x32xbf16, #tpu.memory_space<vmem>>, vector<1x512x32xbf16>
    %353 = vector.shape_cast %352 : vector<1x512x32xbf16> to vector<512x32xbf16>
    %cst_206 = arith.constant dense<0.000000e+00> : vector<34x32xf32>
    %354 = tpu.matmul %351, %353, %cst_206 {dimension_numbers = #tpu.dot_dimension_numbers<[1], [0], [0], [1], [0, 0, 1, 1], [], []>} : vector<34x512xbf16>, vector<512x32xbf16>, vector<34x32xf32> -> vector<34x32xf32>
    %355 = arith.addf %341, %354 : vector<34x32xf32>
    %c3_207 = arith.constant 3 : index
    %c0_208 = arith.constant 0 : index
    %c0_209 = arith.constant 0 : index
    %356 = vector.load %arg17[%c3_207, %c0_208, %c0_209] : memref<8x32x512xbf16, #tpu.memory_space<vmem>>, vector<1x32x512xbf16>
    %357 = vector.shape_cast %356 : vector<1x32x512xbf16> to vector<32x512xbf16>
    %cst_210 = arith.constant dense<0.000000e+00> : vector<34x512xf32>
    %358 = tpu.matmul %312, %357, %cst_210 {dimension_numbers = #tpu.dot_dimension_numbers<[1], [0], [0], [1], [0, 0, 1, 1], [], []>} : vector<34x32xbf16>, vector<32x512xbf16>, vector<34x512xf32> -> vector<34x512xf32>
    %c3_211 = arith.constant 3 : index
    %c0_212 = arith.constant 0 : index
    %c0_213 = arith.constant 0 : index
    %359 = vector.load %arg18[%c3_211, %c0_212, %c0_213] : memref<8x1x512xf32, #tpu.memory_space<vmem>>, vector<1x1x512xf32>
    %360 = vector.shape_cast %359 : vector<1x1x512xf32> to vector<1x512xf32>
    %361 = vector.broadcast %360 : vector<1x512xf32> to vector<34x512xf32>
    %362 = arith.addf %358, %361 : vector<34x512xf32>
    %cst_214 = arith.constant 0.000000e+00 : f32
    %363 = vector.broadcast %cst_214 : f32 to vector<34x512xf32>
    %364 = arith.maximumf %362, %363 : vector<34x512xf32>
    %365 = arith.truncf %364 : vector<34x512xf32> to vector<34x512xbf16>
    %c3_215 = arith.constant 3 : index
    %c0_216 = arith.constant 0 : index
    %c0_217 = arith.constant 0 : index
    %366 = vector.load %arg19[%c3_215, %c0_216, %c0_217] : memref<8x512x32xbf16, #tpu.memory_space<vmem>>, vector<1x512x32xbf16>
    %367 = vector.shape_cast %366 : vector<1x512x32xbf16> to vector<512x32xbf16>
    %cst_218 = arith.constant dense<0.000000e+00> : vector<34x32xf32>
    %368 = tpu.matmul %365, %367, %cst_218 {dimension_numbers = #tpu.dot_dimension_numbers<[1], [0], [0], [1], [0, 0, 1, 1], [], []>} : vector<34x512xbf16>, vector<512x32xbf16>, vector<34x32xf32> -> vector<34x32xf32>
    %369 = arith.addf %355, %368 : vector<34x32xf32>
    %370 = arith.addf %285, %369 : vector<34x32xf32>
    %c0_219 = arith.constant 0 : index
    %c0_220 = arith.constant 0 : index
    %c0_221 = arith.constant 0 : index
    %371 = vector.load %arg20[%c0_219, %c0_220, %c0_221] : memref<2x1x32xf32, #tpu.memory_space<vmem>>, vector<1x1x32xf32>
    %372 = vector.shape_cast %371 : vector<1x1x32xf32> to vector<1x32xf32>
    %373 = vector.broadcast %372 : vector<1x32xf32> to vector<34x32xf32>
    %374 = arith.addf %370, %373 : vector<34x32xf32>
    %c1_222 = arith.constant 1 : index
    %c0_223 = arith.constant 0 : index
    %c0_224 = arith.constant 0 : index
    %375 = vector.load %arg5[%c1_222, %c0_223, %c0_224] : memref<2x1x32xf32, #tpu.memory_space<vmem>>, vector<1x1x32xf32>
    %376 = vector.shape_cast %375 : vector<1x1x32xf32> to vector<1x32xf32>
    %c1_225 = arith.constant 1 : index
    %c0_226 = arith.constant 0 : index
    %c0_227 = arith.constant 0 : index
    %377 = vector.load %arg6[%c1_225, %c0_226, %c0_227] : memref<2x1x32xf32, #tpu.memory_space<vmem>>, vector<1x1x32xf32>
    %378 = vector.shape_cast %377 : vector<1x1x32xf32> to vector<1x32xf32>
    %cst_228 = arith.constant dense<0.000000e+00> : vector<34xf32>
    %379 = vector.multi_reduction <add>, %374, %cst_228 [1] : vector<34x32xf32> to vector<34xf32>
    %380 = vector.shape_cast %379 : vector<34xf32> to vector<34x1xf32>
    %cst_229 = arith.constant 3.200000e+01 : f32
    %381 = vector.broadcast %cst_229 : f32 to vector<34x1xf32>
    %382 = arith.divf %380, %381 : vector<34x1xf32>
    %383 = vector.broadcast %382 : vector<34x1xf32> to vector<34x32xf32>
    %384 = arith.subf %374, %383 : vector<34x32xf32>
    %385 = arith.mulf %384, %384 : vector<34x32xf32>
    %cst_230 = arith.constant dense<0.000000e+00> : vector<34xf32>
    %386 = vector.multi_reduction <add>, %385, %cst_230 [1] : vector<34x32xf32> to vector<34xf32>
    %387 = vector.shape_cast %386 : vector<34xf32> to vector<34x1xf32>
    %cst_231 = arith.constant 3.200000e+01 : f32
    %388 = vector.broadcast %cst_231 : f32 to vector<34x1xf32>
    %389 = arith.divf %387, %388 : vector<34x1xf32>
    %390 = vector.broadcast %382 : vector<34x1xf32> to vector<34x32xf32>
    %391 = arith.subf %374, %390 : vector<34x32xf32>
    %cst_232 = arith.constant 9.99999974E-6 : f32
    %392 = vector.broadcast %cst_232 : f32 to vector<34x1xf32>
    %393 = arith.addf %389, %392 : vector<34x1xf32>
    %394 = math.rsqrt %393 : vector<34x1xf32>
    %395 = vector.broadcast %394 : vector<34x1xf32> to vector<34x32xf32>
    %396 = arith.mulf %391, %395 : vector<34x32xf32>
    %397 = vector.broadcast %376 : vector<1x32xf32> to vector<34x32xf32>
    %398 = arith.mulf %396, %397 : vector<34x32xf32>
    %399 = vector.broadcast %378 : vector<1x32xf32> to vector<34x32xf32>
    %400 = arith.addf %398, %399 : vector<34x32xf32>
    %401 = arith.truncf %400 : vector<34x32xf32> to vector<34x32xbf16>
    %cst_233 = arith.constant 0.000000e+00 : f32
    %402 = vector.broadcast %cst_233 : f32 to vector<34x32xf32>
    %c4 = arith.constant 4 : index
    %c0_234 = arith.constant 0 : index
    %c0_235 = arith.constant 0 : index
    %403 = vector.load %arg7[%c4, %c0_234, %c0_235] : memref<8x32x8xbf16, #tpu.memory_space<vmem>>, vector<1x32x8xbf16>
    %404 = vector.shape_cast %403 : vector<1x32x8xbf16> to vector<32x8xbf16>
    %cst_236 = arith.constant dense<0.000000e+00> : vector<34x8xf32>
    %405 = tpu.matmul %401, %404, %cst_236 {dimension_numbers = #tpu.dot_dimension_numbers<[1], [0], [0], [1], [0, 0, 1, 1], [], []>} : vector<34x32xbf16>, vector<32x8xbf16>, vector<34x8xf32> -> vector<34x8xf32>
    %c4_237 = arith.constant 4 : index
    %c0_238 = arith.constant 0 : index
    %c0_239 = arith.constant 0 : index
    %406 = vector.load %arg10[%c4_237, %c0_238, %c0_239] : memref<8x1x8xf32, #tpu.memory_space<vmem>>, vector<1x1x8xf32>
    %407 = vector.shape_cast %406 : vector<1x1x8xf32> to vector<1x8xf32>
    %408 = vector.broadcast %407 : vector<1x8xf32> to vector<34x8xf32>
    %409 = arith.addf %405, %408 : vector<34x8xf32>
    %c4_240 = arith.constant 4 : index
    %c0_241 = arith.constant 0 : index
    %c0_242 = arith.constant 0 : index
    %410 = vector.load %arg8[%c4_240, %c0_241, %c0_242] : memref<8x32x8xbf16, #tpu.memory_space<vmem>>, vector<1x32x8xbf16>
    %411 = vector.shape_cast %410 : vector<1x32x8xbf16> to vector<32x8xbf16>
    %cst_243 = arith.constant dense<0.000000e+00> : vector<34x8xf32>
    %412 = tpu.matmul %401, %411, %cst_243 {dimension_numbers = #tpu.dot_dimension_numbers<[1], [0], [0], [1], [0, 0, 1, 1], [], []>} : vector<34x32xbf16>, vector<32x8xbf16>, vector<34x8xf32> -> vector<34x8xf32>
    %c4_244 = arith.constant 4 : index
    %c0_245 = arith.constant 0 : index
    %c0_246 = arith.constant 0 : index
    %413 = vector.load %arg11[%c4_244, %c0_245, %c0_246] : memref<8x1x8xf32, #tpu.memory_space<vmem>>, vector<1x1x8xf32>
    %414 = vector.shape_cast %413 : vector<1x1x8xf32> to vector<1x8xf32>
    %415 = vector.broadcast %414 : vector<1x8xf32> to vector<34x8xf32>
    %416 = arith.addf %412, %415 : vector<34x8xf32>
    %c4_247 = arith.constant 4 : index
    %c0_248 = arith.constant 0 : index
    %c0_249 = arith.constant 0 : index
    %417 = vector.load %arg9[%c4_247, %c0_248, %c0_249] : memref<8x32x8xbf16, #tpu.memory_space<vmem>>, vector<1x32x8xbf16>
    %418 = vector.shape_cast %417 : vector<1x32x8xbf16> to vector<32x8xbf16>
    %cst_250 = arith.constant dense<0.000000e+00> : vector<34x8xf32>
    %419 = tpu.matmul %401, %418, %cst_250 {dimension_numbers = #tpu.dot_dimension_numbers<[1], [0], [0], [1], [0, 0, 1, 1], [], []>} : vector<34x32xbf16>, vector<32x8xbf16>, vector<34x8xf32> -> vector<34x8xf32>
    %c4_251 = arith.constant 4 : index
    %c0_252 = arith.constant 0 : index
    %c0_253 = arith.constant 0 : index
    %420 = vector.load %arg12[%c4_251, %c0_252, %c0_253] : memref<8x1x8xf32, #tpu.memory_space<vmem>>, vector<1x1x8xf32>
    %421 = vector.shape_cast %420 : vector<1x1x8xf32> to vector<1x8xf32>
    %422 = vector.broadcast %421 : vector<1x8xf32> to vector<34x8xf32>
    %423 = arith.addf %419, %422 : vector<34x8xf32>
    %424 = vector.extract_strided_slice %409 {offsets = [0, 0], sizes = [17, 8], strides = [1, 1]} : vector<34x8xf32> to vector<17x8xf32>
    %425 = vector.extract_strided_slice %416 {offsets = [0, 0], sizes = [17, 8], strides = [1, 1]} : vector<34x8xf32> to vector<17x8xf32>
    %426 = vector.extract_strided_slice %423 {offsets = [0, 0], sizes = [17, 8], strides = [1, 1]} : vector<34x8xf32> to vector<17x8xf32>
    %cst_254 = arith.constant dense<0.000000e+00> : vector<17x17xf32>
    %427 = tpu.matmul %424, %425, %cst_254 {dimension_numbers = #tpu.dot_dimension_numbers<[1], [1], [0], [0], [0, 0, 1, 0], [], []>} : vector<17x8xf32>, vector<17x8xf32>, vector<17x17xf32> -> vector<17x17xf32>
    %cst_255 = arith.constant 0.353553385 : f32
    %428 = vector.broadcast %cst_255 : f32 to vector<17x17xf32>
    %429 = arith.mulf %427, %428 : vector<17x17xf32>
    %cst_256 = arith.constant dense<0xFF800000> : vector<17xf32>
    %430 = vector.multi_reduction <maximumf>, %429, %cst_256 [1] : vector<17x17xf32> to vector<17xf32>
    %431 = vector.shape_cast %430 : vector<17xf32> to vector<17x1xf32>
    %432 = vector.broadcast %431 : vector<17x1xf32> to vector<17x17xf32>
    %433 = arith.subf %429, %432 : vector<17x17xf32>
    %434 = math.exp %433 : vector<17x17xf32>
    %cst_257 = arith.constant dense<0.000000e+00> : vector<17xf32>
    %435 = vector.multi_reduction <add>, %434, %cst_257 [1] : vector<17x17xf32> to vector<17xf32>
    %436 = vector.shape_cast %435 : vector<17xf32> to vector<17x1xf32>
    %437 = tpu.reciprocal %436 {approx = true} : vector<17x1xf32> -> vector<17x1xf32>
    %438 = vector.broadcast %437 : vector<17x1xf32> to vector<17x17xf32>
    %439 = arith.mulf %434, %438 : vector<17x17xf32>
    %cst_258 = arith.constant dense<0.000000e+00> : vector<17x8xf32>
    %440 = tpu.matmul %439, %426, %cst_258 {dimension_numbers = #tpu.dot_dimension_numbers<[1], [0], [0], [1], [0, 0, 1, 1], [], []>} : vector<17x17xf32>, vector<17x8xf32>, vector<17x8xf32> -> vector<17x8xf32>
    %441 = vector.extract_strided_slice %409 {offsets = [17, 0], sizes = [17, 8], strides = [1, 1]} : vector<34x8xf32> to vector<17x8xf32>
    %442 = vector.extract_strided_slice %416 {offsets = [17, 0], sizes = [17, 8], strides = [1, 1]} : vector<34x8xf32> to vector<17x8xf32>
    %443 = vector.extract_strided_slice %423 {offsets = [17, 0], sizes = [17, 8], strides = [1, 1]} : vector<34x8xf32> to vector<17x8xf32>
    %cst_259 = arith.constant dense<0.000000e+00> : vector<17x17xf32>
    %444 = tpu.matmul %441, %442, %cst_259 {dimension_numbers = #tpu.dot_dimension_numbers<[1], [1], [0], [0], [0, 0, 1, 0], [], []>} : vector<17x8xf32>, vector<17x8xf32>, vector<17x17xf32> -> vector<17x17xf32>
    %cst_260 = arith.constant 0.353553385 : f32
    %445 = vector.broadcast %cst_260 : f32 to vector<17x17xf32>
    %446 = arith.mulf %444, %445 : vector<17x17xf32>
    %cst_261 = arith.constant dense<0xFF800000> : vector<17xf32>
    %447 = vector.multi_reduction <maximumf>, %446, %cst_261 [1] : vector<17x17xf32> to vector<17xf32>
    %448 = vector.shape_cast %447 : vector<17xf32> to vector<17x1xf32>
    %449 = vector.broadcast %448 : vector<17x1xf32> to vector<17x17xf32>
    %450 = arith.subf %446, %449 : vector<17x17xf32>
    %451 = math.exp %450 : vector<17x17xf32>
    %cst_262 = arith.constant dense<0.000000e+00> : vector<17xf32>
    %452 = vector.multi_reduction <add>, %451, %cst_262 [1] : vector<17x17xf32> to vector<17xf32>
    %453 = vector.shape_cast %452 : vector<17xf32> to vector<17x1xf32>
    %454 = tpu.reciprocal %453 {approx = true} : vector<17x1xf32> -> vector<17x1xf32>
    %455 = vector.broadcast %454 : vector<17x1xf32> to vector<17x17xf32>
    %456 = arith.mulf %451, %455 : vector<17x17xf32>
    %cst_263 = arith.constant dense<0.000000e+00> : vector<17x8xf32>
    %457 = tpu.matmul %456, %443, %cst_263 {dimension_numbers = #tpu.dot_dimension_numbers<[1], [0], [0], [1], [0, 0, 1, 1], [], []>} : vector<17x17xf32>, vector<17x8xf32>, vector<17x8xf32> -> vector<17x8xf32>
    %458 = tpu.concatenate %440, %457 in 0 : vector<17x8xf32>, vector<17x8xf32> -> vector<34x8xf32>
    %459 = arith.truncf %458 : vector<34x8xf32> to vector<34x8xbf16>
    %c4_264 = arith.constant 4 : index
    %c0_265 = arith.constant 0 : index
    %c0_266 = arith.constant 0 : index
    %460 = vector.load %arg13[%c4_264, %c0_265, %c0_266] : memref<8x8x32xbf16, #tpu.memory_space<vmem>>, vector<1x8x32xbf16>
    %461 = vector.shape_cast %460 : vector<1x8x32xbf16> to vector<8x32xbf16>
    %cst_267 = arith.constant dense<0.000000e+00> : vector<34x32xf32>
    %462 = tpu.matmul %459, %461, %cst_267 {dimension_numbers = #tpu.dot_dimension_numbers<[1], [0], [0], [1], [0, 0, 1, 1], [], []>} : vector<34x8xbf16>, vector<8x32xbf16>, vector<34x32xf32> -> vector<34x32xf32>
    %463 = arith.addf %402, %462 : vector<34x32xf32>
    %c5 = arith.constant 5 : index
    %c0_268 = arith.constant 0 : index
    %c0_269 = arith.constant 0 : index
    %464 = vector.load %arg7[%c5, %c0_268, %c0_269] : memref<8x32x8xbf16, #tpu.memory_space<vmem>>, vector<1x32x8xbf16>
    %465 = vector.shape_cast %464 : vector<1x32x8xbf16> to vector<32x8xbf16>
    %cst_270 = arith.constant dense<0.000000e+00> : vector<34x8xf32>
    %466 = tpu.matmul %401, %465, %cst_270 {dimension_numbers = #tpu.dot_dimension_numbers<[1], [0], [0], [1], [0, 0, 1, 1], [], []>} : vector<34x32xbf16>, vector<32x8xbf16>, vector<34x8xf32> -> vector<34x8xf32>
    %c5_271 = arith.constant 5 : index
    %c0_272 = arith.constant 0 : index
    %c0_273 = arith.constant 0 : index
    %467 = vector.load %arg10[%c5_271, %c0_272, %c0_273] : memref<8x1x8xf32, #tpu.memory_space<vmem>>, vector<1x1x8xf32>
    %468 = vector.shape_cast %467 : vector<1x1x8xf32> to vector<1x8xf32>
    %469 = vector.broadcast %468 : vector<1x8xf32> to vector<34x8xf32>
    %470 = arith.addf %466, %469 : vector<34x8xf32>
    %c5_274 = arith.constant 5 : index
    %c0_275 = arith.constant 0 : index
    %c0_276 = arith.constant 0 : index
    %471 = vector.load %arg8[%c5_274, %c0_275, %c0_276] : memref<8x32x8xbf16, #tpu.memory_space<vmem>>, vector<1x32x8xbf16>
    %472 = vector.shape_cast %471 : vector<1x32x8xbf16> to vector<32x8xbf16>
    %cst_277 = arith.constant dense<0.000000e+00> : vector<34x8xf32>
    %473 = tpu.matmul %401, %472, %cst_277 {dimension_numbers = #tpu.dot_dimension_numbers<[1], [0], [0], [1], [0, 0, 1, 1], [], []>} : vector<34x32xbf16>, vector<32x8xbf16>, vector<34x8xf32> -> vector<34x8xf32>
    %c5_278 = arith.constant 5 : index
    %c0_279 = arith.constant 0 : index
    %c0_280 = arith.constant 0 : index
    %474 = vector.load %arg11[%c5_278, %c0_279, %c0_280] : memref<8x1x8xf32, #tpu.memory_space<vmem>>, vector<1x1x8xf32>
    %475 = vector.shape_cast %474 : vector<1x1x8xf32> to vector<1x8xf32>
    %476 = vector.broadcast %475 : vector<1x8xf32> to vector<34x8xf32>
    %477 = arith.addf %473, %476 : vector<34x8xf32>
    %c5_281 = arith.constant 5 : index
    %c0_282 = arith.constant 0 : index
    %c0_283 = arith.constant 0 : index
    %478 = vector.load %arg9[%c5_281, %c0_282, %c0_283] : memref<8x32x8xbf16, #tpu.memory_space<vmem>>, vector<1x32x8xbf16>
    %479 = vector.shape_cast %478 : vector<1x32x8xbf16> to vector<32x8xbf16>
    %cst_284 = arith.constant dense<0.000000e+00> : vector<34x8xf32>
    %480 = tpu.matmul %401, %479, %cst_284 {dimension_numbers = #tpu.dot_dimension_numbers<[1], [0], [0], [1], [0, 0, 1, 1], [], []>} : vector<34x32xbf16>, vector<32x8xbf16>, vector<34x8xf32> -> vector<34x8xf32>
    %c5_285 = arith.constant 5 : index
    %c0_286 = arith.constant 0 : index
    %c0_287 = arith.constant 0 : index
    %481 = vector.load %arg12[%c5_285, %c0_286, %c0_287] : memref<8x1x8xf32, #tpu.memory_space<vmem>>, vector<1x1x8xf32>
    %482 = vector.shape_cast %481 : vector<1x1x8xf32> to vector<1x8xf32>
    %483 = vector.broadcast %482 : vector<1x8xf32> to vector<34x8xf32>
    %484 = arith.addf %480, %483 : vector<34x8xf32>
    %485 = vector.extract_strided_slice %470 {offsets = [0, 0], sizes = [17, 8], strides = [1, 1]} : vector<34x8xf32> to vector<17x8xf32>
    %486 = vector.extract_strided_slice %477 {offsets = [0, 0], sizes = [17, 8], strides = [1, 1]} : vector<34x8xf32> to vector<17x8xf32>
    %487 = vector.extract_strided_slice %484 {offsets = [0, 0], sizes = [17, 8], strides = [1, 1]} : vector<34x8xf32> to vector<17x8xf32>
    %cst_288 = arith.constant dense<0.000000e+00> : vector<17x17xf32>
    %488 = tpu.matmul %485, %486, %cst_288 {dimension_numbers = #tpu.dot_dimension_numbers<[1], [1], [0], [0], [0, 0, 1, 0], [], []>} : vector<17x8xf32>, vector<17x8xf32>, vector<17x17xf32> -> vector<17x17xf32>
    %cst_289 = arith.constant 0.353553385 : f32
    %489 = vector.broadcast %cst_289 : f32 to vector<17x17xf32>
    %490 = arith.mulf %488, %489 : vector<17x17xf32>
    %cst_290 = arith.constant dense<0xFF800000> : vector<17xf32>
    %491 = vector.multi_reduction <maximumf>, %490, %cst_290 [1] : vector<17x17xf32> to vector<17xf32>
    %492 = vector.shape_cast %491 : vector<17xf32> to vector<17x1xf32>
    %493 = vector.broadcast %492 : vector<17x1xf32> to vector<17x17xf32>
    %494 = arith.subf %490, %493 : vector<17x17xf32>
    %495 = math.exp %494 : vector<17x17xf32>
    %cst_291 = arith.constant dense<0.000000e+00> : vector<17xf32>
    %496 = vector.multi_reduction <add>, %495, %cst_291 [1] : vector<17x17xf32> to vector<17xf32>
    %497 = vector.shape_cast %496 : vector<17xf32> to vector<17x1xf32>
    %498 = tpu.reciprocal %497 {approx = true} : vector<17x1xf32> -> vector<17x1xf32>
    %499 = vector.broadcast %498 : vector<17x1xf32> to vector<17x17xf32>
    %500 = arith.mulf %495, %499 : vector<17x17xf32>
    %cst_292 = arith.constant dense<0.000000e+00> : vector<17x8xf32>
    %501 = tpu.matmul %500, %487, %cst_292 {dimension_numbers = #tpu.dot_dimension_numbers<[1], [0], [0], [1], [0, 0, 1, 1], [], []>} : vector<17x17xf32>, vector<17x8xf32>, vector<17x8xf32> -> vector<17x8xf32>
    %502 = vector.extract_strided_slice %470 {offsets = [17, 0], sizes = [17, 8], strides = [1, 1]} : vector<34x8xf32> to vector<17x8xf32>
    %503 = vector.extract_strided_slice %477 {offsets = [17, 0], sizes = [17, 8], strides = [1, 1]} : vector<34x8xf32> to vector<17x8xf32>
    %504 = vector.extract_strided_slice %484 {offsets = [17, 0], sizes = [17, 8], strides = [1, 1]} : vector<34x8xf32> to vector<17x8xf32>
    %cst_293 = arith.constant dense<0.000000e+00> : vector<17x17xf32>
    %505 = tpu.matmul %502, %503, %cst_293 {dimension_numbers = #tpu.dot_dimension_numbers<[1], [1], [0], [0], [0, 0, 1, 0], [], []>} : vector<17x8xf32>, vector<17x8xf32>, vector<17x17xf32> -> vector<17x17xf32>
    %cst_294 = arith.constant 0.353553385 : f32
    %506 = vector.broadcast %cst_294 : f32 to vector<17x17xf32>
    %507 = arith.mulf %505, %506 : vector<17x17xf32>
    %cst_295 = arith.constant dense<0xFF800000> : vector<17xf32>
    %508 = vector.multi_reduction <maximumf>, %507, %cst_295 [1] : vector<17x17xf32> to vector<17xf32>
    %509 = vector.shape_cast %508 : vector<17xf32> to vector<17x1xf32>
    %510 = vector.broadcast %509 : vector<17x1xf32> to vector<17x17xf32>
    %511 = arith.subf %507, %510 : vector<17x17xf32>
    %512 = math.exp %511 : vector<17x17xf32>
    %cst_296 = arith.constant dense<0.000000e+00> : vector<17xf32>
    %513 = vector.multi_reduction <add>, %512, %cst_296 [1] : vector<17x17xf32> to vector<17xf32>
    %514 = vector.shape_cast %513 : vector<17xf32> to vector<17x1xf32>
    %515 = tpu.reciprocal %514 {approx = true} : vector<17x1xf32> -> vector<17x1xf32>
    %516 = vector.broadcast %515 : vector<17x1xf32> to vector<17x17xf32>
    %517 = arith.mulf %512, %516 : vector<17x17xf32>
    %cst_297 = arith.constant dense<0.000000e+00> : vector<17x8xf32>
    %518 = tpu.matmul %517, %504, %cst_297 {dimension_numbers = #tpu.dot_dimension_numbers<[1], [0], [0], [1], [0, 0, 1, 1], [], []>} : vector<17x17xf32>, vector<17x8xf32>, vector<17x8xf32> -> vector<17x8xf32>
    %519 = tpu.concatenate %501, %518 in 0 : vector<17x8xf32>, vector<17x8xf32> -> vector<34x8xf32>
    %520 = arith.truncf %519 : vector<34x8xf32> to vector<34x8xbf16>
    %c5_298 = arith.constant 5 : index
    %c0_299 = arith.constant 0 : index
    %c0_300 = arith.constant 0 : index
    %521 = vector.load %arg13[%c5_298, %c0_299, %c0_300] : memref<8x8x32xbf16, #tpu.memory_space<vmem>>, vector<1x8x32xbf16>
    %522 = vector.shape_cast %521 : vector<1x8x32xbf16> to vector<8x32xbf16>
    %cst_301 = arith.constant dense<0.000000e+00> : vector<34x32xf32>
    %523 = tpu.matmul %520, %522, %cst_301 {dimension_numbers = #tpu.dot_dimension_numbers<[1], [0], [0], [1], [0, 0, 1, 1], [], []>} : vector<34x8xbf16>, vector<8x32xbf16>, vector<34x32xf32> -> vector<34x32xf32>
    %524 = arith.addf %463, %523 : vector<34x32xf32>
    %c6 = arith.constant 6 : index
    %c0_302 = arith.constant 0 : index
    %c0_303 = arith.constant 0 : index
    %525 = vector.load %arg7[%c6, %c0_302, %c0_303] : memref<8x32x8xbf16, #tpu.memory_space<vmem>>, vector<1x32x8xbf16>
    %526 = vector.shape_cast %525 : vector<1x32x8xbf16> to vector<32x8xbf16>
    %cst_304 = arith.constant dense<0.000000e+00> : vector<34x8xf32>
    %527 = tpu.matmul %401, %526, %cst_304 {dimension_numbers = #tpu.dot_dimension_numbers<[1], [0], [0], [1], [0, 0, 1, 1], [], []>} : vector<34x32xbf16>, vector<32x8xbf16>, vector<34x8xf32> -> vector<34x8xf32>
    %c6_305 = arith.constant 6 : index
    %c0_306 = arith.constant 0 : index
    %c0_307 = arith.constant 0 : index
    %528 = vector.load %arg10[%c6_305, %c0_306, %c0_307] : memref<8x1x8xf32, #tpu.memory_space<vmem>>, vector<1x1x8xf32>
    %529 = vector.shape_cast %528 : vector<1x1x8xf32> to vector<1x8xf32>
    %530 = vector.broadcast %529 : vector<1x8xf32> to vector<34x8xf32>
    %531 = arith.addf %527, %530 : vector<34x8xf32>
    %c6_308 = arith.constant 6 : index
    %c0_309 = arith.constant 0 : index
    %c0_310 = arith.constant 0 : index
    %532 = vector.load %arg8[%c6_308, %c0_309, %c0_310] : memref<8x32x8xbf16, #tpu.memory_space<vmem>>, vector<1x32x8xbf16>
    %533 = vector.shape_cast %532 : vector<1x32x8xbf16> to vector<32x8xbf16>
    %cst_311 = arith.constant dense<0.000000e+00> : vector<34x8xf32>
    %534 = tpu.matmul %401, %533, %cst_311 {dimension_numbers = #tpu.dot_dimension_numbers<[1], [0], [0], [1], [0, 0, 1, 1], [], []>} : vector<34x32xbf16>, vector<32x8xbf16>, vector<34x8xf32> -> vector<34x8xf32>
    %c6_312 = arith.constant 6 : index
    %c0_313 = arith.constant 0 : index
    %c0_314 = arith.constant 0 : index
    %535 = vector.load %arg11[%c6_312, %c0_313, %c0_314] : memref<8x1x8xf32, #tpu.memory_space<vmem>>, vector<1x1x8xf32>
    %536 = vector.shape_cast %535 : vector<1x1x8xf32> to vector<1x8xf32>
    %537 = vector.broadcast %536 : vector<1x8xf32> to vector<34x8xf32>
    %538 = arith.addf %534, %537 : vector<34x8xf32>
    %c6_315 = arith.constant 6 : index
    %c0_316 = arith.constant 0 : index
    %c0_317 = arith.constant 0 : index
    %539 = vector.load %arg9[%c6_315, %c0_316, %c0_317] : memref<8x32x8xbf16, #tpu.memory_space<vmem>>, vector<1x32x8xbf16>
    %540 = vector.shape_cast %539 : vector<1x32x8xbf16> to vector<32x8xbf16>
    %cst_318 = arith.constant dense<0.000000e+00> : vector<34x8xf32>
    %541 = tpu.matmul %401, %540, %cst_318 {dimension_numbers = #tpu.dot_dimension_numbers<[1], [0], [0], [1], [0, 0, 1, 1], [], []>} : vector<34x32xbf16>, vector<32x8xbf16>, vector<34x8xf32> -> vector<34x8xf32>
    %c6_319 = arith.constant 6 : index
    %c0_320 = arith.constant 0 : index
    %c0_321 = arith.constant 0 : index
    %542 = vector.load %arg12[%c6_319, %c0_320, %c0_321] : memref<8x1x8xf32, #tpu.memory_space<vmem>>, vector<1x1x8xf32>
    %543 = vector.shape_cast %542 : vector<1x1x8xf32> to vector<1x8xf32>
    %544 = vector.broadcast %543 : vector<1x8xf32> to vector<34x8xf32>
    %545 = arith.addf %541, %544 : vector<34x8xf32>
    %546 = vector.extract_strided_slice %531 {offsets = [0, 0], sizes = [17, 8], strides = [1, 1]} : vector<34x8xf32> to vector<17x8xf32>
    %547 = vector.extract_strided_slice %538 {offsets = [0, 0], sizes = [17, 8], strides = [1, 1]} : vector<34x8xf32> to vector<17x8xf32>
    %548 = vector.extract_strided_slice %545 {offsets = [0, 0], sizes = [17, 8], strides = [1, 1]} : vector<34x8xf32> to vector<17x8xf32>
    %cst_322 = arith.constant dense<0.000000e+00> : vector<17x17xf32>
    %549 = tpu.matmul %546, %547, %cst_322 {dimension_numbers = #tpu.dot_dimension_numbers<[1], [1], [0], [0], [0, 0, 1, 0], [], []>} : vector<17x8xf32>, vector<17x8xf32>, vector<17x17xf32> -> vector<17x17xf32>
    %cst_323 = arith.constant 0.353553385 : f32
    %550 = vector.broadcast %cst_323 : f32 to vector<17x17xf32>
    %551 = arith.mulf %549, %550 : vector<17x17xf32>
    %cst_324 = arith.constant dense<0xFF800000> : vector<17xf32>
    %552 = vector.multi_reduction <maximumf>, %551, %cst_324 [1] : vector<17x17xf32> to vector<17xf32>
    %553 = vector.shape_cast %552 : vector<17xf32> to vector<17x1xf32>
    %554 = vector.broadcast %553 : vector<17x1xf32> to vector<17x17xf32>
    %555 = arith.subf %551, %554 : vector<17x17xf32>
    %556 = math.exp %555 : vector<17x17xf32>
    %cst_325 = arith.constant dense<0.000000e+00> : vector<17xf32>
    %557 = vector.multi_reduction <add>, %556, %cst_325 [1] : vector<17x17xf32> to vector<17xf32>
    %558 = vector.shape_cast %557 : vector<17xf32> to vector<17x1xf32>
    %559 = tpu.reciprocal %558 {approx = true} : vector<17x1xf32> -> vector<17x1xf32>
    %560 = vector.broadcast %559 : vector<17x1xf32> to vector<17x17xf32>
    %561 = arith.mulf %556, %560 : vector<17x17xf32>
    %cst_326 = arith.constant dense<0.000000e+00> : vector<17x8xf32>
    %562 = tpu.matmul %561, %548, %cst_326 {dimension_numbers = #tpu.dot_dimension_numbers<[1], [0], [0], [1], [0, 0, 1, 1], [], []>} : vector<17x17xf32>, vector<17x8xf32>, vector<17x8xf32> -> vector<17x8xf32>
    %563 = vector.extract_strided_slice %531 {offsets = [17, 0], sizes = [17, 8], strides = [1, 1]} : vector<34x8xf32> to vector<17x8xf32>
    %564 = vector.extract_strided_slice %538 {offsets = [17, 0], sizes = [17, 8], strides = [1, 1]} : vector<34x8xf32> to vector<17x8xf32>
    %565 = vector.extract_strided_slice %545 {offsets = [17, 0], sizes = [17, 8], strides = [1, 1]} : vector<34x8xf32> to vector<17x8xf32>
    %cst_327 = arith.constant dense<0.000000e+00> : vector<17x17xf32>
    %566 = tpu.matmul %563, %564, %cst_327 {dimension_numbers = #tpu.dot_dimension_numbers<[1], [1], [0], [0], [0, 0, 1, 0], [], []>} : vector<17x8xf32>, vector<17x8xf32>, vector<17x17xf32> -> vector<17x17xf32>
    %cst_328 = arith.constant 0.353553385 : f32
    %567 = vector.broadcast %cst_328 : f32 to vector<17x17xf32>
    %568 = arith.mulf %566, %567 : vector<17x17xf32>
    %cst_329 = arith.constant dense<0xFF800000> : vector<17xf32>
    %569 = vector.multi_reduction <maximumf>, %568, %cst_329 [1] : vector<17x17xf32> to vector<17xf32>
    %570 = vector.shape_cast %569 : vector<17xf32> to vector<17x1xf32>
    %571 = vector.broadcast %570 : vector<17x1xf32> to vector<17x17xf32>
    %572 = arith.subf %568, %571 : vector<17x17xf32>
    %573 = math.exp %572 : vector<17x17xf32>
    %cst_330 = arith.constant dense<0.000000e+00> : vector<17xf32>
    %574 = vector.multi_reduction <add>, %573, %cst_330 [1] : vector<17x17xf32> to vector<17xf32>
    %575 = vector.shape_cast %574 : vector<17xf32> to vector<17x1xf32>
    %576 = tpu.reciprocal %575 {approx = true} : vector<17x1xf32> -> vector<17x1xf32>
    %577 = vector.broadcast %576 : vector<17x1xf32> to vector<17x17xf32>
    %578 = arith.mulf %573, %577 : vector<17x17xf32>
    %cst_331 = arith.constant dense<0.000000e+00> : vector<17x8xf32>
    %579 = tpu.matmul %578, %565, %cst_331 {dimension_numbers = #tpu.dot_dimension_numbers<[1], [0], [0], [1], [0, 0, 1, 1], [], []>} : vector<17x17xf32>, vector<17x8xf32>, vector<17x8xf32> -> vector<17x8xf32>
    %580 = tpu.concatenate %562, %579 in 0 : vector<17x8xf32>, vector<17x8xf32> -> vector<34x8xf32>
    %581 = arith.truncf %580 : vector<34x8xf32> to vector<34x8xbf16>
    %c6_332 = arith.constant 6 : index
    %c0_333 = arith.constant 0 : index
    %c0_334 = arith.constant 0 : index
    %582 = vector.load %arg13[%c6_332, %c0_333, %c0_334] : memref<8x8x32xbf16, #tpu.memory_space<vmem>>, vector<1x8x32xbf16>
    %583 = vector.shape_cast %582 : vector<1x8x32xbf16> to vector<8x32xbf16>
    %cst_335 = arith.constant dense<0.000000e+00> : vector<34x32xf32>
    %584 = tpu.matmul %581, %583, %cst_335 {dimension_numbers = #tpu.dot_dimension_numbers<[1], [0], [0], [1], [0, 0, 1, 1], [], []>} : vector<34x8xbf16>, vector<8x32xbf16>, vector<34x32xf32> -> vector<34x32xf32>
    %585 = arith.addf %524, %584 : vector<34x32xf32>
    %c7 = arith.constant 7 : index
    %c0_336 = arith.constant 0 : index
    %c0_337 = arith.constant 0 : index
    %586 = vector.load %arg7[%c7, %c0_336, %c0_337] : memref<8x32x8xbf16, #tpu.memory_space<vmem>>, vector<1x32x8xbf16>
    %587 = vector.shape_cast %586 : vector<1x32x8xbf16> to vector<32x8xbf16>
    %cst_338 = arith.constant dense<0.000000e+00> : vector<34x8xf32>
    %588 = tpu.matmul %401, %587, %cst_338 {dimension_numbers = #tpu.dot_dimension_numbers<[1], [0], [0], [1], [0, 0, 1, 1], [], []>} : vector<34x32xbf16>, vector<32x8xbf16>, vector<34x8xf32> -> vector<34x8xf32>
    %c7_339 = arith.constant 7 : index
    %c0_340 = arith.constant 0 : index
    %c0_341 = arith.constant 0 : index
    %589 = vector.load %arg10[%c7_339, %c0_340, %c0_341] : memref<8x1x8xf32, #tpu.memory_space<vmem>>, vector<1x1x8xf32>
    %590 = vector.shape_cast %589 : vector<1x1x8xf32> to vector<1x8xf32>
    %591 = vector.broadcast %590 : vector<1x8xf32> to vector<34x8xf32>
    %592 = arith.addf %588, %591 : vector<34x8xf32>
    %c7_342 = arith.constant 7 : index
    %c0_343 = arith.constant 0 : index
    %c0_344 = arith.constant 0 : index
    %593 = vector.load %arg8[%c7_342, %c0_343, %c0_344] : memref<8x32x8xbf16, #tpu.memory_space<vmem>>, vector<1x32x8xbf16>
    %594 = vector.shape_cast %593 : vector<1x32x8xbf16> to vector<32x8xbf16>
    %cst_345 = arith.constant dense<0.000000e+00> : vector<34x8xf32>
    %595 = tpu.matmul %401, %594, %cst_345 {dimension_numbers = #tpu.dot_dimension_numbers<[1], [0], [0], [1], [0, 0, 1, 1], [], []>} : vector<34x32xbf16>, vector<32x8xbf16>, vector<34x8xf32> -> vector<34x8xf32>
    %c7_346 = arith.constant 7 : index
    %c0_347 = arith.constant 0 : index
    %c0_348 = arith.constant 0 : index
    %596 = vector.load %arg11[%c7_346, %c0_347, %c0_348] : memref<8x1x8xf32, #tpu.memory_space<vmem>>, vector<1x1x8xf32>
    %597 = vector.shape_cast %596 : vector<1x1x8xf32> to vector<1x8xf32>
    %598 = vector.broadcast %597 : vector<1x8xf32> to vector<34x8xf32>
    %599 = arith.addf %595, %598 : vector<34x8xf32>
    %c7_349 = arith.constant 7 : index
    %c0_350 = arith.constant 0 : index
    %c0_351 = arith.constant 0 : index
    %600 = vector.load %arg9[%c7_349, %c0_350, %c0_351] : memref<8x32x8xbf16, #tpu.memory_space<vmem>>, vector<1x32x8xbf16>
    %601 = vector.shape_cast %600 : vector<1x32x8xbf16> to vector<32x8xbf16>
    %cst_352 = arith.constant dense<0.000000e+00> : vector<34x8xf32>
    %602 = tpu.matmul %401, %601, %cst_352 {dimension_numbers = #tpu.dot_dimension_numbers<[1], [0], [0], [1], [0, 0, 1, 1], [], []>} : vector<34x32xbf16>, vector<32x8xbf16>, vector<34x8xf32> -> vector<34x8xf32>
    %c7_353 = arith.constant 7 : index
    %c0_354 = arith.constant 0 : index
    %c0_355 = arith.constant 0 : index
    %603 = vector.load %arg12[%c7_353, %c0_354, %c0_355] : memref<8x1x8xf32, #tpu.memory_space<vmem>>, vector<1x1x8xf32>
    %604 = vector.shape_cast %603 : vector<1x1x8xf32> to vector<1x8xf32>
    %605 = vector.broadcast %604 : vector<1x8xf32> to vector<34x8xf32>
    %606 = arith.addf %602, %605 : vector<34x8xf32>
    %607 = vector.extract_strided_slice %592 {offsets = [0, 0], sizes = [17, 8], strides = [1, 1]} : vector<34x8xf32> to vector<17x8xf32>
    %608 = vector.extract_strided_slice %599 {offsets = [0, 0], sizes = [17, 8], strides = [1, 1]} : vector<34x8xf32> to vector<17x8xf32>
    %609 = vector.extract_strided_slice %606 {offsets = [0, 0], sizes = [17, 8], strides = [1, 1]} : vector<34x8xf32> to vector<17x8xf32>
    %cst_356 = arith.constant dense<0.000000e+00> : vector<17x17xf32>
    %610 = tpu.matmul %607, %608, %cst_356 {dimension_numbers = #tpu.dot_dimension_numbers<[1], [1], [0], [0], [0, 0, 1, 0], [], []>} : vector<17x8xf32>, vector<17x8xf32>, vector<17x17xf32> -> vector<17x17xf32>
    %cst_357 = arith.constant 0.353553385 : f32
    %611 = vector.broadcast %cst_357 : f32 to vector<17x17xf32>
    %612 = arith.mulf %610, %611 : vector<17x17xf32>
    %cst_358 = arith.constant dense<0xFF800000> : vector<17xf32>
    %613 = vector.multi_reduction <maximumf>, %612, %cst_358 [1] : vector<17x17xf32> to vector<17xf32>
    %614 = vector.shape_cast %613 : vector<17xf32> to vector<17x1xf32>
    %615 = vector.broadcast %614 : vector<17x1xf32> to vector<17x17xf32>
    %616 = arith.subf %612, %615 : vector<17x17xf32>
    %617 = math.exp %616 : vector<17x17xf32>
    %cst_359 = arith.constant dense<0.000000e+00> : vector<17xf32>
    %618 = vector.multi_reduction <add>, %617, %cst_359 [1] : vector<17x17xf32> to vector<17xf32>
    %619 = vector.shape_cast %618 : vector<17xf32> to vector<17x1xf32>
    %620 = tpu.reciprocal %619 {approx = true} : vector<17x1xf32> -> vector<17x1xf32>
    %621 = vector.broadcast %620 : vector<17x1xf32> to vector<17x17xf32>
    %622 = arith.mulf %617, %621 : vector<17x17xf32>
    %cst_360 = arith.constant dense<0.000000e+00> : vector<17x8xf32>
    %623 = tpu.matmul %622, %609, %cst_360 {dimension_numbers = #tpu.dot_dimension_numbers<[1], [0], [0], [1], [0, 0, 1, 1], [], []>} : vector<17x17xf32>, vector<17x8xf32>, vector<17x8xf32> -> vector<17x8xf32>
    %624 = vector.extract_strided_slice %592 {offsets = [17, 0], sizes = [17, 8], strides = [1, 1]} : vector<34x8xf32> to vector<17x8xf32>
    %625 = vector.extract_strided_slice %599 {offsets = [17, 0], sizes = [17, 8], strides = [1, 1]} : vector<34x8xf32> to vector<17x8xf32>
    %626 = vector.extract_strided_slice %606 {offsets = [17, 0], sizes = [17, 8], strides = [1, 1]} : vector<34x8xf32> to vector<17x8xf32>
    %cst_361 = arith.constant dense<0.000000e+00> : vector<17x17xf32>
    %627 = tpu.matmul %624, %625, %cst_361 {dimension_numbers = #tpu.dot_dimension_numbers<[1], [1], [0], [0], [0, 0, 1, 0], [], []>} : vector<17x8xf32>, vector<17x8xf32>, vector<17x17xf32> -> vector<17x17xf32>
    %cst_362 = arith.constant 0.353553385 : f32
    %628 = vector.broadcast %cst_362 : f32 to vector<17x17xf32>
    %629 = arith.mulf %627, %628 : vector<17x17xf32>
    %cst_363 = arith.constant dense<0xFF800000> : vector<17xf32>
    %630 = vector.multi_reduction <maximumf>, %629, %cst_363 [1] : vector<17x17xf32> to vector<17xf32>
    %631 = vector.shape_cast %630 : vector<17xf32> to vector<17x1xf32>
    %632 = vector.broadcast %631 : vector<17x1xf32> to vector<17x17xf32>
    %633 = arith.subf %629, %632 : vector<17x17xf32>
    %634 = math.exp %633 : vector<17x17xf32>
    %cst_364 = arith.constant dense<0.000000e+00> : vector<17xf32>
    %635 = vector.multi_reduction <add>, %634, %cst_364 [1] : vector<17x17xf32> to vector<17xf32>
    %636 = vector.shape_cast %635 : vector<17xf32> to vector<17x1xf32>
    %637 = tpu.reciprocal %636 {approx = true} : vector<17x1xf32> -> vector<17x1xf32>
    %638 = vector.broadcast %637 : vector<17x1xf32> to vector<17x17xf32>
    %639 = arith.mulf %634, %638 : vector<17x17xf32>
    %cst_365 = arith.constant dense<0.000000e+00> : vector<17x8xf32>
    %640 = tpu.matmul %639, %626, %cst_365 {dimension_numbers = #tpu.dot_dimension_numbers<[1], [0], [0], [1], [0, 0, 1, 1], [], []>} : vector<17x17xf32>, vector<17x8xf32>, vector<17x8xf32> -> vector<17x8xf32>
    %641 = tpu.concatenate %623, %640 in 0 : vector<17x8xf32>, vector<17x8xf32> -> vector<34x8xf32>
    %642 = arith.truncf %641 : vector<34x8xf32> to vector<34x8xbf16>
    %c7_366 = arith.constant 7 : index
    %c0_367 = arith.constant 0 : index
    %c0_368 = arith.constant 0 : index
    %643 = vector.load %arg13[%c7_366, %c0_367, %c0_368] : memref<8x8x32xbf16, #tpu.memory_space<vmem>>, vector<1x8x32xbf16>
    %644 = vector.shape_cast %643 : vector<1x8x32xbf16> to vector<8x32xbf16>
    %cst_369 = arith.constant dense<0.000000e+00> : vector<34x32xf32>
    %645 = tpu.matmul %642, %644, %cst_369 {dimension_numbers = #tpu.dot_dimension_numbers<[1], [0], [0], [1], [0, 0, 1, 1], [], []>} : vector<34x8xbf16>, vector<8x32xbf16>, vector<34x32xf32> -> vector<34x32xf32>
    %646 = arith.addf %585, %645 : vector<34x32xf32>
    %647 = arith.addf %374, %646 : vector<34x32xf32>
    %c1_370 = arith.constant 1 : index
    %c0_371 = arith.constant 0 : index
    %c0_372 = arith.constant 0 : index
    %648 = vector.load %arg14[%c1_370, %c0_371, %c0_372] : memref<2x1x32xf32, #tpu.memory_space<vmem>>, vector<1x1x32xf32>
    %649 = vector.shape_cast %648 : vector<1x1x32xf32> to vector<1x32xf32>
    %650 = vector.broadcast %649 : vector<1x32xf32> to vector<34x32xf32>
    %651 = arith.addf %647, %650 : vector<34x32xf32>
    %c1_373 = arith.constant 1 : index
    %c0_374 = arith.constant 0 : index
    %c0_375 = arith.constant 0 : index
    %652 = vector.load %arg15[%c1_373, %c0_374, %c0_375] : memref<2x1x32xf32, #tpu.memory_space<vmem>>, vector<1x1x32xf32>
    %653 = vector.shape_cast %652 : vector<1x1x32xf32> to vector<1x32xf32>
    %c1_376 = arith.constant 1 : index
    %c0_377 = arith.constant 0 : index
    %c0_378 = arith.constant 0 : index
    %654 = vector.load %arg16[%c1_376, %c0_377, %c0_378] : memref<2x1x32xf32, #tpu.memory_space<vmem>>, vector<1x1x32xf32>
    %655 = vector.shape_cast %654 : vector<1x1x32xf32> to vector<1x32xf32>
    %cst_379 = arith.constant dense<0.000000e+00> : vector<34xf32>
    %656 = vector.multi_reduction <add>, %651, %cst_379 [1] : vector<34x32xf32> to vector<34xf32>
    %657 = vector.shape_cast %656 : vector<34xf32> to vector<34x1xf32>
    %cst_380 = arith.constant 3.200000e+01 : f32
    %658 = vector.broadcast %cst_380 : f32 to vector<34x1xf32>
    %659 = arith.divf %657, %658 : vector<34x1xf32>
    %660 = vector.broadcast %659 : vector<34x1xf32> to vector<34x32xf32>
    %661 = arith.subf %651, %660 : vector<34x32xf32>
    %662 = arith.mulf %661, %661 : vector<34x32xf32>
    %cst_381 = arith.constant dense<0.000000e+00> : vector<34xf32>
    %663 = vector.multi_reduction <add>, %662, %cst_381 [1] : vector<34x32xf32> to vector<34xf32>
    %664 = vector.shape_cast %663 : vector<34xf32> to vector<34x1xf32>
    %cst_382 = arith.constant 3.200000e+01 : f32
    %665 = vector.broadcast %cst_382 : f32 to vector<34x1xf32>
    %666 = arith.divf %664, %665 : vector<34x1xf32>
    %667 = vector.broadcast %659 : vector<34x1xf32> to vector<34x32xf32>
    %668 = arith.subf %651, %667 : vector<34x32xf32>
    %cst_383 = arith.constant 9.99999974E-6 : f32
    %669 = vector.broadcast %cst_383 : f32 to vector<34x1xf32>
    %670 = arith.addf %666, %669 : vector<34x1xf32>
    %671 = math.rsqrt %670 : vector<34x1xf32>
    %672 = vector.broadcast %671 : vector<34x1xf32> to vector<34x32xf32>
    %673 = arith.mulf %668, %672 : vector<34x32xf32>
    %674 = vector.broadcast %653 : vector<1x32xf32> to vector<34x32xf32>
    %675 = arith.mulf %673, %674 : vector<34x32xf32>
    %676 = vector.broadcast %655 : vector<1x32xf32> to vector<34x32xf32>
    %677 = arith.addf %675, %676 : vector<34x32xf32>
    %678 = arith.truncf %677 : vector<34x32xf32> to vector<34x32xbf16>
    %cst_384 = arith.constant 0.000000e+00 : f32
    %679 = vector.broadcast %cst_384 : f32 to vector<34x32xf32>
    %c4_385 = arith.constant 4 : index
    %c0_386 = arith.constant 0 : index
    %c0_387 = arith.constant 0 : index
    %680 = vector.load %arg17[%c4_385, %c0_386, %c0_387] : memref<8x32x512xbf16, #tpu.memory_space<vmem>>, vector<1x32x512xbf16>
    %681 = vector.shape_cast %680 : vector<1x32x512xbf16> to vector<32x512xbf16>
    %cst_388 = arith.constant dense<0.000000e+00> : vector<34x512xf32>
    %682 = tpu.matmul %678, %681, %cst_388 {dimension_numbers = #tpu.dot_dimension_numbers<[1], [0], [0], [1], [0, 0, 1, 1], [], []>} : vector<34x32xbf16>, vector<32x512xbf16>, vector<34x512xf32> -> vector<34x512xf32>
    %c4_389 = arith.constant 4 : index
    %c0_390 = arith.constant 0 : index
    %c0_391 = arith.constant 0 : index
    %683 = vector.load %arg18[%c4_389, %c0_390, %c0_391] : memref<8x1x512xf32, #tpu.memory_space<vmem>>, vector<1x1x512xf32>
    %684 = vector.shape_cast %683 : vector<1x1x512xf32> to vector<1x512xf32>
    %685 = vector.broadcast %684 : vector<1x512xf32> to vector<34x512xf32>
    %686 = arith.addf %682, %685 : vector<34x512xf32>
    %cst_392 = arith.constant 0.000000e+00 : f32
    %687 = vector.broadcast %cst_392 : f32 to vector<34x512xf32>
    %688 = arith.maximumf %686, %687 : vector<34x512xf32>
    %689 = arith.truncf %688 : vector<34x512xf32> to vector<34x512xbf16>
    %c4_393 = arith.constant 4 : index
    %c0_394 = arith.constant 0 : index
    %c0_395 = arith.constant 0 : index
    %690 = vector.load %arg19[%c4_393, %c0_394, %c0_395] : memref<8x512x32xbf16, #tpu.memory_space<vmem>>, vector<1x512x32xbf16>
    %691 = vector.shape_cast %690 : vector<1x512x32xbf16> to vector<512x32xbf16>
    %cst_396 = arith.constant dense<0.000000e+00> : vector<34x32xf32>
    %692 = tpu.matmul %689, %691, %cst_396 {dimension_numbers = #tpu.dot_dimension_numbers<[1], [0], [0], [1], [0, 0, 1, 1], [], []>} : vector<34x512xbf16>, vector<512x32xbf16>, vector<34x32xf32> -> vector<34x32xf32>
    %693 = arith.addf %679, %692 : vector<34x32xf32>
    %c5_397 = arith.constant 5 : index
    %c0_398 = arith.constant 0 : index
    %c0_399 = arith.constant 0 : index
    %694 = vector.load %arg17[%c5_397, %c0_398, %c0_399] : memref<8x32x512xbf16, #tpu.memory_space<vmem>>, vector<1x32x512xbf16>
    %695 = vector.shape_cast %694 : vector<1x32x512xbf16> to vector<32x512xbf16>
    %cst_400 = arith.constant dense<0.000000e+00> : vector<34x512xf32>
    %696 = tpu.matmul %678, %695, %cst_400 {dimension_numbers = #tpu.dot_dimension_numbers<[1], [0], [0], [1], [0, 0, 1, 1], [], []>} : vector<34x32xbf16>, vector<32x512xbf16>, vector<34x512xf32> -> vector<34x512xf32>
    %c5_401 = arith.constant 5 : index
    %c0_402 = arith.constant 0 : index
    %c0_403 = arith.constant 0 : index
    %697 = vector.load %arg18[%c5_401, %c0_402, %c0_403] : memref<8x1x512xf32, #tpu.memory_space<vmem>>, vector<1x1x512xf32>
    %698 = vector.shape_cast %697 : vector<1x1x512xf32> to vector<1x512xf32>
    %699 = vector.broadcast %698 : vector<1x512xf32> to vector<34x512xf32>
    %700 = arith.addf %696, %699 : vector<34x512xf32>
    %cst_404 = arith.constant 0.000000e+00 : f32
    %701 = vector.broadcast %cst_404 : f32 to vector<34x512xf32>
    %702 = arith.maximumf %700, %701 : vector<34x512xf32>
    %703 = arith.truncf %702 : vector<34x512xf32> to vector<34x512xbf16>
    %c5_405 = arith.constant 5 : index
    %c0_406 = arith.constant 0 : index
    %c0_407 = arith.constant 0 : index
    %704 = vector.load %arg19[%c5_405, %c0_406, %c0_407] : memref<8x512x32xbf16, #tpu.memory_space<vmem>>, vector<1x512x32xbf16>
    %705 = vector.shape_cast %704 : vector<1x512x32xbf16> to vector<512x32xbf16>
    %cst_408 = arith.constant dense<0.000000e+00> : vector<34x32xf32>
    %706 = tpu.matmul %703, %705, %cst_408 {dimension_numbers = #tpu.dot_dimension_numbers<[1], [0], [0], [1], [0, 0, 1, 1], [], []>} : vector<34x512xbf16>, vector<512x32xbf16>, vector<34x32xf32> -> vector<34x32xf32>
    %707 = arith.addf %693, %706 : vector<34x32xf32>
    %c6_409 = arith.constant 6 : index
    %c0_410 = arith.constant 0 : index
    %c0_411 = arith.constant 0 : index
    %708 = vector.load %arg17[%c6_409, %c0_410, %c0_411] : memref<8x32x512xbf16, #tpu.memory_space<vmem>>, vector<1x32x512xbf16>
    %709 = vector.shape_cast %708 : vector<1x32x512xbf16> to vector<32x512xbf16>
    %cst_412 = arith.constant dense<0.000000e+00> : vector<34x512xf32>
    %710 = tpu.matmul %678, %709, %cst_412 {dimension_numbers = #tpu.dot_dimension_numbers<[1], [0], [0], [1], [0, 0, 1, 1], [], []>} : vector<34x32xbf16>, vector<32x512xbf16>, vector<34x512xf32> -> vector<34x512xf32>
    %c6_413 = arith.constant 6 : index
    %c0_414 = arith.constant 0 : index
    %c0_415 = arith.constant 0 : index
    %711 = vector.load %arg18[%c6_413, %c0_414, %c0_415] : memref<8x1x512xf32, #tpu.memory_space<vmem>>, vector<1x1x512xf32>
    %712 = vector.shape_cast %711 : vector<1x1x512xf32> to vector<1x512xf32>
    %713 = vector.broadcast %712 : vector<1x512xf32> to vector<34x512xf32>
    %714 = arith.addf %710, %713 : vector<34x512xf32>
    %cst_416 = arith.constant 0.000000e+00 : f32
    %715 = vector.broadcast %cst_416 : f32 to vector<34x512xf32>
    %716 = arith.maximumf %714, %715 : vector<34x512xf32>
    %717 = arith.truncf %716 : vector<34x512xf32> to vector<34x512xbf16>
    %c6_417 = arith.constant 6 : index
    %c0_418 = arith.constant 0 : index
    %c0_419 = arith.constant 0 : index
    %718 = vector.load %arg19[%c6_417, %c0_418, %c0_419] : memref<8x512x32xbf16, #tpu.memory_space<vmem>>, vector<1x512x32xbf16>
    %719 = vector.shape_cast %718 : vector<1x512x32xbf16> to vector<512x32xbf16>
    %cst_420 = arith.constant dense<0.000000e+00> : vector<34x32xf32>
    %720 = tpu.matmul %717, %719, %cst_420 {dimension_numbers = #tpu.dot_dimension_numbers<[1], [0], [0], [1], [0, 0, 1, 1], [], []>} : vector<34x512xbf16>, vector<512x32xbf16>, vector<34x32xf32> -> vector<34x32xf32>
    %721 = arith.addf %707, %720 : vector<34x32xf32>
    %c7_421 = arith.constant 7 : index
    %c0_422 = arith.constant 0 : index
    %c0_423 = arith.constant 0 : index
    %722 = vector.load %arg17[%c7_421, %c0_422, %c0_423] : memref<8x32x512xbf16, #tpu.memory_space<vmem>>, vector<1x32x512xbf16>
    %723 = vector.shape_cast %722 : vector<1x32x512xbf16> to vector<32x512xbf16>
    %cst_424 = arith.constant dense<0.000000e+00> : vector<34x512xf32>
    %724 = tpu.matmul %678, %723, %cst_424 {dimension_numbers = #tpu.dot_dimension_numbers<[1], [0], [0], [1], [0, 0, 1, 1], [], []>} : vector<34x32xbf16>, vector<32x512xbf16>, vector<34x512xf32> -> vector<34x512xf32>
    %c7_425 = arith.constant 7 : index
    %c0_426 = arith.constant 0 : index
    %c0_427 = arith.constant 0 : index
    %725 = vector.load %arg18[%c7_425, %c0_426, %c0_427] : memref<8x1x512xf32, #tpu.memory_space<vmem>>, vector<1x1x512xf32>
    %726 = vector.shape_cast %725 : vector<1x1x512xf32> to vector<1x512xf32>
    %727 = vector.broadcast %726 : vector<1x512xf32> to vector<34x512xf32>
    %728 = arith.addf %724, %727 : vector<34x512xf32>
    %cst_428 = arith.constant 0.000000e+00 : f32
    %729 = vector.broadcast %cst_428 : f32 to vector<34x512xf32>
    %730 = arith.maximumf %728, %729 : vector<34x512xf32>
    %731 = arith.truncf %730 : vector<34x512xf32> to vector<34x512xbf16>
    %c7_429 = arith.constant 7 : index
    %c0_430 = arith.constant 0 : index
    %c0_431 = arith.constant 0 : index
    %732 = vector.load %arg19[%c7_429, %c0_430, %c0_431] : memref<8x512x32xbf16, #tpu.memory_space<vmem>>, vector<1x512x32xbf16>
    %733 = vector.shape_cast %732 : vector<1x512x32xbf16> to vector<512x32xbf16>
    %cst_432 = arith.constant dense<0.000000e+00> : vector<34x32xf32>
    %734 = tpu.matmul %731, %733, %cst_432 {dimension_numbers = #tpu.dot_dimension_numbers<[1], [0], [0], [1], [0, 0, 1, 1], [], []>} : vector<34x512xbf16>, vector<512x32xbf16>, vector<34x32xf32> -> vector<34x32xf32>
    %735 = arith.addf %721, %734 : vector<34x32xf32>
    %736 = arith.addf %651, %735 : vector<34x32xf32>
    %c1_433 = arith.constant 1 : index
    %c0_434 = arith.constant 0 : index
    %c0_435 = arith.constant 0 : index
    %737 = vector.load %arg20[%c1_433, %c0_434, %c0_435] : memref<2x1x32xf32, #tpu.memory_space<vmem>>, vector<1x1x32xf32>
    %738 = vector.shape_cast %737 : vector<1x1x32xf32> to vector<1x32xf32>
    %739 = vector.broadcast %738 : vector<1x32xf32> to vector<34x32xf32>
    %740 = arith.addf %736, %739 : vector<34x32xf32>
    %741 = vector.extract_strided_slice %740 {offsets = [0, 0], sizes = [1, 32], strides = [1, 1]} : vector<34x32xf32> to vector<1x32xf32>
    %742 = vector.extract_strided_slice %740 {offsets = [17, 0], sizes = [1, 32], strides = [1, 1]} : vector<34x32xf32> to vector<1x32xf32>
    %743 = tpu.concatenate %741, %742 in 0 : vector<1x32xf32>, vector<1x32xf32> -> vector<2x32xf32>
    %c0_436 = arith.constant 0 : index
    %c0_437 = arith.constant 0 : index
    %744 = vector.load %arg21[%c0_436, %c0_437] : memref<32x3xf32, #tpu.memory_space<vmem>>, vector<32x3xf32>
    %cst_438 = arith.constant dense<0.000000e+00> : vector<2x3xf32>
    %745 = tpu.matmul %743, %744, %cst_438 {dimension_numbers = #tpu.dot_dimension_numbers<[1], [0], [0], [1], [0, 0, 1, 1], [], []>} : vector<2x32xf32>, vector<32x3xf32>, vector<2x3xf32> -> vector<2x3xf32>
    %c0_439 = arith.constant 0 : index
    %c0_440 = arith.constant 0 : index
    %746 = vector.load %arg22[%c0_439, %c0_440] : memref<1x3xf32, #tpu.memory_space<vmem>>, vector<1x3xf32>
    %747 = vector.broadcast %746 : vector<1x3xf32> to vector<2x3xf32>
    %748 = arith.addf %745, %747 : vector<2x3xf32>
    %c0_441 = arith.constant 0 : index
    %c0_442 = arith.constant 0 : index
    %749 = vector.load %arg24[%c0_441, %c0_442] : memref<2x3xf32, #tpu.memory_space<vmem>>, vector<2x3xf32>
    tpu.vector_store %arg24[%c0_441, %c0_442], %748 {strides = array<i32>} : memref<2x3xf32, #tpu.memory_space<vmem>>, vector<2x3xf32>,
    %cst_443 = arith.constant dense<0xFF800000> : vector<2xf32>
    %750 = vector.multi_reduction <maximumf>, %748, %cst_443 [1] : vector<2x3xf32> to vector<2xf32>
    %751 = vector.shape_cast %750 : vector<2xf32> to vector<2x1xf32>
    %752 = vector.broadcast %751 : vector<2x1xf32> to vector<2x3xf32>
    %753 = arith.subf %748, %752 : vector<2x3xf32>
    %754 = math.exp %753 : vector<2x3xf32>
    %cst_444 = arith.constant dense<0.000000e+00> : vector<2xf32>
    %755 = vector.multi_reduction <add>, %754, %cst_444 [1] : vector<2x3xf32> to vector<2xf32>
    %756 = vector.shape_cast %755 : vector<2xf32> to vector<2x1xf32>
    %757 = math.log %756 : vector<2x1xf32>
    %758 = arith.addf %757, %751 : vector<2x1xf32>
    %c0_445 = arith.constant 0 : index
    %c0_446 = arith.constant 0 : index
    %759 = vector.load %arg23[%c0_445, %c0_446] : memref<2x3xf32, #tpu.memory_space<vmem>>, vector<2x3xf32>
    %760 = arith.mulf %759, %748 : vector<2x3xf32>
    %cst_447 = arith.constant dense<0.000000e+00> : vector<2xf32>
    %761 = vector.multi_reduction <add>, %760, %cst_447 [1] : vector<2x3xf32> to vector<2xf32>
    %762 = vector.shape_cast %761 : vector<2xf32> to vector<2x1xf32>
    %763 = arith.subf %758, %762 : vector<2x1xf32>
    %cst_448 = arith.constant dense<0.000000e+00> : vector<1xf32>
    %764 = vector.multi_reduction <add>, %763, %cst_448 [0] : vector<2x1xf32> to vector<1xf32>
    %765 = vector.shape_cast %764 : vector<1xf32> to vector<1x1xf32>
    %cst_449 = arith.constant 2.000000e+00 : f32
    %766 = vector.broadcast %cst_449 : f32 to vector<1x1xf32>
    %767 = arith.divf %765, %766 : vector<1x1xf32>
    %c0_450 = arith.constant 0 : index
    %c0_451 = arith.constant 0 : index
    %768 = vector.load %arg25[%c0_450, %c0_451] : memref<1x1xf32, #tpu.memory_space<vmem>>, vector<1x1xf32>
    tpu.vector_store %arg25[%c0_450, %c0_451], %767 {strides = array<i32>} : memref<1x1xf32, #tpu.memory_space<vmem>>, vector<1x1xf32>,
    return
  }
  func.func @transform_0(%arg0: i32) -> (i32, i32) {
    %c0_i32 = arith.constant 0 : i32
    %c0_i32_0 = arith.constant 0 : i32
    %c0_i32_1 = arith.constant 0 : i32
    return %c0_i32, %c0_i32_0 : i32, i32
  }
  func.func @transform_1(%arg0: i32) -> (i32, i32) {
    %c0_i32 = arith.constant 0 : i32
    %c0_i32_0 = arith.constant 0 : i32
    %c0_i32_1 = arith.constant 0 : i32
    return %c0_i32, %c0_i32_0 : i32, i32
  }
  func.func @transform_2(%arg0: i32) -> (i32, i32) {
    %c0_i32 = arith.constant 0 : i32
    %c0_i32_0 = arith.constant 0 : i32
    %c0_i32_1 = arith.constant 0 : i32
    return %c0_i32, %c0_i32_0 : i32, i32
  }
  func.func @transform_3(%arg0: i32) -> (i32, i32) {
    %c0_i32 = arith.constant 0 : i32
    %c0_i32_0 = arith.constant 0 : i32
    %c0_i32_1 = arith.constant 0 : i32
    return %c0_i32, %c0_i32_0 : i32, i32
  }
  func.func @transform_4(%arg0: i32) -> (i32, i32, i32) {
    %c0_i32 = arith.constant 0 : i32
    %c0_i32_0 = arith.constant 0 : i32
    %c0_i32_1 = arith.constant 0 : i32
    %c0_i32_2 = arith.constant 0 : i32
    return %c0_i32, %c0_i32_0, %c0_i32_1 : i32, i32, i32
  }
  func.func @transform_5(%arg0: i32) -> (i32, i32, i32) {
    %c0_i32 = arith.constant 0 : i32
    %c0_i32_0 = arith.constant 0 : i32
    %c0_i32_1 = arith.constant 0 : i32
    %c0_i32_2 = arith.constant 0 : i32
    return %c0_i32, %c0_i32_0, %c0_i32_1 : i32, i32, i32
  }
  func.func @transform_6(%arg0: i32) -> (i32, i32, i32) {
    %c0_i32 = arith.constant 0 : i32
    %c0_i32_0 = arith.constant 0 : i32
    %c0_i32_1 = arith.constant 0 : i32
    %c0_i32_2 = arith.constant 0 : i32
    return %c0_i32, %c0_i32_0, %c0_i32_1 : i32, i32, i32
  }
  func.func @transform_7(%arg0: i32) -> (i32, i32, i32) {
    %c0_i32 = arith.constant 0 : i32
    %c0_i32_0 = arith.constant 0 : i32
    %c0_i32_1 = arith.constant 0 : i32
    %c0_i32_2 = arith.constant 0 : i32
    return %c0_i32, %c0_i32_0, %c0_i32_1 : i32, i32, i32
  }
  func.func @transform_8(%arg0: i32) -> (i32, i32, i32) {
    %c0_i32 = arith.constant 0 : i32
    %c0_i32_0 = arith.constant 0 : i32
    %c0_i32_1 = arith.constant 0 : i32
    %c0_i32_2 = arith.constant 0 : i32
    return %c0_i32, %c0_i32_0, %c0_i32_1 : i32, i32, i32
  }
  func.func @transform_9(%arg0: i32) -> (i32, i32, i32) {
    %c0_i32 = arith.constant 0 : i32
    %c0_i32_0 = arith.constant 0 : i32
    %c0_i32_1 = arith.constant 0 : i32
    %c0_i32_2 = arith.constant 0 : i32
    return %c0_i32, %c0_i32_0, %c0_i32_1 : i32, i32, i32
  }
  func.func @transform_10(%arg0: i32) -> (i32, i32, i32) {
    %c0_i32 = arith.constant 0 : i32
    %c0_i32_0 = arith.constant 0 : i32
    %c0_i32_1 = arith.constant 0 : i32
    %c0_i32_2 = arith.constant 0 : i32
    return %c0_i32, %c0_i32_0, %c0_i32_1 : i32, i32, i32
  }
  func.func @transform_11(%arg0: i32) -> (i32, i32, i32) {
    %c0_i32 = arith.constant 0 : i32
    %c0_i32_0 = arith.constant 0 : i32
    %c0_i32_1 = arith.constant 0 : i32
    %c0_i32_2 = arith.constant 0 : i32
    return %c0_i32, %c0_i32_0, %c0_i32_1 : i32, i32, i32
  }
  func.func @transform_12(%arg0: i32) -> (i32, i32, i32) {
    %c0_i32 = arith.constant 0 : i32
    %c0_i32_0 = arith.constant 0 : i32
    %c0_i32_1 = arith.constant 0 : i32
    %c0_i32_2 = arith.constant 0 : i32
    return %c0_i32, %c0_i32_0, %c0_i32_1 : i32, i32, i32
  }
  func.func @transform_13(%arg0: i32) -> (i32, i32, i32) {
    %c0_i32 = arith.constant 0 : i32
    %c0_i32_0 = arith.constant 0 : i32
    %c0_i32_1 = arith.constant 0 : i32
    %c0_i32_2 = arith.constant 0 : i32
    return %c0_i32, %c0_i32_0, %c0_i32_1 : i32, i32, i32
  }
  func.func @transform_14(%arg0: i32) -> (i32, i32, i32) {
    %c0_i32 = arith.constant 0 : i32
    %c0_i32_0 = arith.constant 0 : i32
    %c0_i32_1 = arith.constant 0 : i32
    %c0_i32_2 = arith.constant 0 : i32
    return %c0_i32, %c0_i32_0, %c0_i32_1 : i32, i32, i32
  }
  func.func @transform_15(%arg0: i32) -> (i32, i32, i32) {
    %c0_i32 = arith.constant 0 : i32
    %c0_i32_0 = arith.constant 0 : i32
    %c0_i32_1 = arith.constant 0 : i32
    %c0_i32_2 = arith.constant 0 : i32
    return %c0_i32, %c0_i32_0, %c0_i32_1 : i32, i32, i32
  }
  func.func @transform_16(%arg0: i32) -> (i32, i32, i32) {
    %c0_i32 = arith.constant 0 : i32
    %c0_i32_0 = arith.constant 0 : i32
    %c0_i32_1 = arith.constant 0 : i32
    %c0_i32_2 = arith.constant 0 : i32
    return %c0_i32, %c0_i32_0, %c0_i32_1 : i32, i32, i32
  }
  func.func @transform_17(%arg0: i32) -> (i32, i32, i32) {
    %c0_i32 = arith.constant 0 : i32
    %c0_i32_0 = arith.constant 0 : i32
    %c0_i32_1 = arith.constant 0 : i32
    %c0_i32_2 = arith.constant 0 : i32
    return %c0_i32, %c0_i32_0, %c0_i32_1 : i32, i32, i32
  }
  func.func @transform_18(%arg0: i32) -> (i32, i32, i32) {
    %c0_i32 = arith.constant 0 : i32
    %c0_i32_0 = arith.constant 0 : i32
    %c0_i32_1 = arith.constant 0 : i32
    %c0_i32_2 = arith.constant 0 : i32
    return %c0_i32, %c0_i32_0, %c0_i32_1 : i32, i32, i32
  }
  func.func @transform_19(%arg0: i32) -> (i32, i32, i32) {
    %c0_i32 = arith.constant 0 : i32
    %c0_i32_0 = arith.constant 0 : i32
    %c0_i32_1 = arith.constant 0 : i32
    %c0_i32_2 = arith.constant 0 : i32
    return %c0_i32, %c0_i32_0, %c0_i32_1 : i32, i32, i32
  }
  func.func @transform_20(%arg0: i32) -> (i32, i32) {
    %c0_i32 = arith.constant 0 : i32
    %c0_i32_0 = arith.constant 0 : i32
    %c0_i32_1 = arith.constant 0 : i32
    return %c0_i32, %c0_i32_0 : i32, i32
  }
  func.func @transform_21(%arg0: i32) -> (i32, i32) {
    %c0_i32 = arith.constant 0 : i32
    %c0_i32_0 = arith.constant 0 : i32
    %c0_i32_1 = arith.constant 0 : i32
    return %c0_i32, %c0_i32_0 : i32, i32
  }
  func.func @transform_22(%arg0: i32) -> (i32, i32) {
    %c0_i32 = arith.constant 0 : i32
    %c0_i32_0 = arith.constant 0 : i32
    %c0_i32_1 = arith.constant 0 : i32
    return %c0_i32, %c0_i32_0 : i32, i32
  }
  func.func @transform_23(%arg0: i32) -> (i32, i32) {
    %c0_i32 = arith.constant 0 : i32
    %c0_i32_0 = arith.constant 0 : i32
    %c0_i32_1 = arith.constant 0 : i32
    return %c0_i32, %c0_i32_0 : i32, i32
  }
  func.func @transform_24(%arg0: i32) -> (i32, i32) {
    %c0_i32 = arith.constant 0 : i32
    %c0_i32_0 = arith.constant 0 : i32
    %c0_i32_1 = arith.constant 0 : i32
    return %c0_i32, %c0_i32_0 : i32, i32
  }
}

</mosaic_0001>

<bundles_post_ra>
// kernel: forward.1
= control target key start
LH: loop header
LB: loop body
LE: loop exit
PB: predicated region body
PF: predicated region fallthrough
CT: control target
= control target key end

     0   :  { %s19658_s0 = inlined_call_operand.vmem [shape: f32[32,12], index: 0, kind: input, shape index: {}]   ;;  %s19659_s1 = inlined_call_operand.vmem [shape: f32[12,32], index: 1, kind: input, shape index: {}]   ;;  %s19660_s2 = inlined_call_operand.vmem [shape: f32[32,32], index: 2, kind: input, shape index: {}]   ;;  %s19661_s3 = inlined_call_operand.vmem [shape: f32[1,32], index: 3, kind: input, shape index: {}]   ;;  %s19662_s4 = inlined_call_operand.vmem [shape: f32[2,1,32], index: 4, kind: input, shape index: {}]   ;;  %s19663_s5 = inlined_call_operand.vmem [shape: f32[2,1,32], index: 5, kind: input, shape index: {}]   ;;  %s19664_s6 = inlined_call_operand.vmem [shape: bf16[8,32,8], index: 6, kind: input, shape index: {}]   ;;  %s19665_s7 = inlined_call_operand.vmem [shape: bf16[8,32,8], index: 7, kind: input, shape index: {}]   ;;  %s19666_s8 = inlined_call_operand.vmem [shape: bf16[8,32,8], index: 8, kind: input, shape index: {}]   ;;  %s19667_s9 = inlined_call_operand.vmem [shape: f32[8,1,8], index: 9, kind: input, shape index: {}]   ;;  %s19668_s10 = inlined_call_operand.vmem [shape: f32[8,1,8], index: 10, kind: input, shape index: {}]   ;;  %s19669_s11 = inlined_call_operand.vmem [shape: f32[8,1,8], index: 11, kind: input, shape index: {}]   ;;  %s19670_s12 = inlined_call_operand.vmem [shape: bf16[8,8,32], index: 12, kind: input, shape index: {}]   ;;  %s19671_s13 = inlined_call_operand.vmem [shape: f32[2,1,32], index: 13, kind: input, shape index: {}]   ;;  %s19672_s14 = inlined_call_operand.vmem [shape: f32[2,1,32], index: 14, kind: input, shape index: {}]   ;;  %s19673_s15 = inlined_call_operand.vmem [shape: f32[2,1,32], index: 15, kind: input, shape index: {}]   ;;  %s19674_s16 = inlined_call_operand.vmem [shape: bf16[8,32,512], index: 16, kind: input, shape index: {}]   ;;  %s19675_s17 = inlined_call_operand.vmem [shape: f32[8,1,512], index: 17, kind: input, shape index: {}]   ;;  %s19676_s18 = inlined_call_operand.vmem [shape: bf16[8,512,32], index: 18, kind: input, shape index: {}]   ;;  %s19677_s19 = inlined_call_operand.vmem [shape: f32[2,1,32], index: 19, kind: input, shape index: {}]   ;;  %s19678_s20 = inlined_call_operand.vmem [shape: f32[32,3], index: 20, kind: input, shape index: {}]   ;;  %s19679_s21 = inlined_call_operand.vmem [shape: f32[1,3], index: 21, kind: input, shape index: {}]   ;;  %s19680_s22 = inlined_call_operand.vmem [shape: f32[2,3], index: 22, kind: input, shape index: {}]   ;;  %s19681_s23 = inlined_call_operand.hbm [shape: f32[2,3], index: 23, kind: output, shape index: {0}]   ;;  %s19682_s24 = inlined_call_operand.hbm [shape: f32[1,1], index: 24, kind: output, shape index: {1}]  }
   0x1   :  { %19696 = sst [smem:[#allocation9_spill]] %s19658_s0 }
   0x2   :  { %19697 = sst [smem:[#allocation10_spill]] %s19659_s1 }
   0x3   :  { %19698 = sst [smem:[#allocation11_spill]] %s19660_s2 }
   0x4   :  { %19699 = sst [smem:[#allocation12_spill]] %s19661_s3 }
   0x5   :  { %19700 = sst [smem:[#allocation13_spill]] %s19662_s4 }
   0x6   :  { %19701 = sst [smem:[#allocation14_spill]] %s19663_s5 }
   0x7   :  { %19702 = sst [smem:[#allocation15_spill]] %s19664_s6 }
   0x8   :  { %19703 = sst [smem:[#allocation16_spill]] %s19665_s7 }
   0x9   :  { %19704 = sst [smem:[#allocation17_spill]] %s19666_s8 }
   0xa   :  { %30 = vsyncpa [#allocation3], 0  ;;  %s19705_s27 = sld [smem:[#allocation10_spill]]  ;;  %vm102_vm0 = vcmask 1043456   ;;  %vm89_vm1 = vcmask 97280   ;;  %v202_v6 = vlaneseq  ;;  %vm221_vm2 = vcmask 261120  }
   0xb   :  { %s19706_s0 = sld [smem:[#allocation9_spill]]  ;;  %vm194_vm3 = vcmask 1040384   ;;  %vm234_vm4 = vcmask 254976   ;;  %vm209_vm5 = vcmask 1041408  }
   0xc   :  { %v16049_v7 = vshrl.u32 %v202_v6, 7  ;;  %s19707_s26 = sld [smem:[#allocation11_spill]] }
   0xd   :  { %s19708_s7 = sld [smem:[#allocation12_spill]] }
   0xe   :  { %v16052_v8 = vsub.s32 0, %v16049_v7 }
  0x10   :  { %v84_v0 = vld [vmem:[%s19705_s27 + $0x8] sm:$0xf]  ;;  %v83_v1 = vld [vmem:[%s19705_s27] sm:$0xff] }
  0x11   :  { %v79_v2 = vld [vmem:[%s19706_s0] sm:$0xff]  ;;  %14213 = vmatprep.subr.msk.mxu0 %vm102_vm0, %v84_v0  ;;  %v80_v3 = vld [vmem:[%s19706_s0 + $0x8] sm:$0xff]  ;;  %v81_v4 = vld [vmem:[%s19706_s0 + $0x10] sm:$0xff] }
  0x12   :  { %14217 = vmatprep.mubr.msk.f32.mxu0 %vm89_vm1, %v79_v2  ;;  %14214 = vmatpush3.msk.msra.mxu0 %vm102_vm0, %v84_v0  ;;  %v82_v5 = vld [vmem:[%s19706_s0 + $0x18] sm:$0xff]  ;;  %v86_v9 = vld [vmem:[%s19707_s26 + $0x8] sm:$0xff]  ;;  %v85_v10 = vld [vmem:[%s19707_s26] sm:$0xff] }
  0x13   :  { %14215 = vmatprep.subr.mxu0 %v83_v1  ;;  %v88_v12 = vld [vmem:[%s19707_s26 + $0x18] sm:$0xff]  ;;  %v191_v14 = vld [vmem:[%s19708_s7] sm:$0x1]  ;;  %v87_v16 = vld [vmem:[%s19707_s26 + $0x10] sm:$0xff] }
  0x14   :  { %14216 = vmatpush3.msra.mxu0 %v83_v1  ;;  %v205_v23 = vrot.slane %v191_v14, %v16052_v8 }
  0x15   :  { %14218 = vmatmul.mubr.msk.f32.vlgmr.msra.gmra.mxu0 %vm89_vm1, %v80_v3 }
  0x16   :  { %14220 = vmatprep.mubr.msk.f32.mxu0 %vm89_vm1, %v81_v4 }
  0x19   :  { %14221 = vmatmul.mubr.msk.f32.gmra.mxu0 %vm89_vm1, %v82_v5 }
  0xd5   :  { %v14219_v11 = vpop.f32.mrf.mxu0 }
  0xd6   :  { %v178_v13 = vadd.f32 %v14219_v11, %v86_v9 }
  0xd7   :  { %v172_v15 = vpop.f32.mrf.mxu0 }
  0xd8   :  { %v196_v17 = vrot.slane %v178_v13, 7  ;;  %v173_v18 = vadd.f32 %v172_v15, %v85_v10 }
  0xd9   :  { %v14222_v19 = vpop.f32.mrf.mxu0 }
  0xda   :  { %v195_v20 = vrot.slane %v173_v18, 7  ;;  %v188_v21 = vadd.f32 %v14222_v19, %v88_v12  ;;  %v217_v32 = vsel %vm194_vm3, %v196_v17, %v205_v23 }
  0xdb   :  { %v182_v22 = vpop.f32.mrf.mxu0 }
  0xdc   :  { %v16070_v24 = vrot.slane %v188_v21, 6  ;;  %v183_v25 = vadd.f32 %v182_v22, %v87_v16  ;;  %v16073_v26 = vsel %vm194_vm3, %v191_v14, %v195_v20  ;;  %v16076_v27 = vsel %vm194_vm3, %v195_v20, %v196_v17 }
  0xdd   :  { %v222_v28 = vsel %vm221_vm2, %v16073_v26, 0.0  ;;  %v225_v30 = vsel %vm221_vm2, %v16076_v27, 0.0 }
  0xde   :  { %v210_v29 = vrot.slane %v183_v25, 6  ;;  %223 = vadd.xlane.f32.xlu0 %v222_v28  ;;  %v235_v31 = vsel %vm234_vm4, %v16070_v24, 0.0 }
  0xe0   :  { %v16086_v33 = vsel %vm209_vm5, %v217_v32, %v210_v29  ;;  %v16090_v34 = vsel %vm209_vm5, %v210_v29, %v16070_v24 }
  0xe1   :  { %v228_v35 = vsel %vm221_vm2, %v16086_v33, 0.0  ;;  %v231_v36 = vsel %vm221_vm2, %v16090_v34, 0.0 }
  0xe2   :  { %229 = vadd.xlane.f32.xlu1 %v228_v35  ;;  %226 = vadd.xlane.f32.xlu0 %v225_v30 }
  0xe6   :  { %232 = vadd.xlane.f32.xlu1 %v231_v36  ;;  %236 = vadd.xlane.f32.xlu0 %v235_v31 }
  0xe7   :  { %31 = vsyncpa [#allocation5], 0  ;;  %s19709_s4 = sld [smem:[#allocation15_spill]]  ;;  %v19691_v63 = vmov 0.0   ;;  %vm15900_vm6 = vmmov 0   ;;  %vm560_vm7 = vcmask 64512  }
  0xe8   :  { %14223 = vmatprep.subr.bf16.mxu0 %v19691_v63  ;;  %15210 = vmatprep.subr.bf16.mxu1 %v19691_v63  ;;  %s19710_s28 = sld [smem:[#allocation13_spill]]  ;;  %vm791_vm8 = vcmask 1046528   ;;  %vm662_vm9 = vcmask 138240   ;;  %vm669_vm10 = vcmask 131072   ;;  %vm11911_vm11 = vcmask 17408  }
  0xe9   :  { %14227 = vmatprep.mubr.msk.bf16.mxu0 %vm15900_vm6, %v19691_v63  ;;  %14231 = vmatprep.mubr.msk.bf16.mxu1 %vm15900_vm6, %v19691_v63  ;;  %s19711_s29 = sld [smem:[#allocation14_spill]] }
  0xea   :  { %s19712_s30 = sld [smem:[#allocation16_spill]] }
  0xeb   :  { %s19713_s5 = sld [smem:[#allocation17_spill]] }
  0xed   :  { %v15219_v62 = vld [vmem:[%s19709_s4 + $0x8] sm:$0xff]   ;;  %v15220_v0 = vld [vmem:[%s19709_s4] sm:$0xff]  }
  0xee   :  { %14224 = vmatpush3.bf16.msra.mxu0 %v15219_v62  ;;  %15212 = vmatpush3.bf16.msra.mxu1 %v15219_v62  ;;  %v11975_v20 = vld [vmem:[%s19710_s28] ss:$0 sm:$0xff] }
  0xef   :  { %14225 = vmatprep.subr.bf16.mxu0 %v19691_v63  ;;  %15211 = vmatprep.subr.bf16.mxu1 %v19691_v63  ;;  %v11976_v29 = vld [vmem:[%s19711_s29] ss:$0 sm:$0xff] }
  0xf2   :  { %14226 = vmatpush3.bf16.msra.mxu0 %v15220_v0  ;;  %15213 = vmatpush3.bf16.msra.mxu1 %v15220_v0 }
  0xf3   :  { %14239 = vmatprep.subr.bf16.mxu0 %v19691_v63  ;;  %14255 = vmatprep.subr.bf16.mxu1 %v19691_v63 }
 0x167   :  { %v224_v37 = vpop.xlane.xlu0 %223 }
 0x168   :  { %v239_v38 = vmul.f32 0.03125, %v224_v37 }
 0x16a   :  { %v16097_v39 = vsub.f32 %v16073_v26, %v239_v38 }
 0x16b   :  { %v230_v40 = vpop.xlane.xlu1 %229  ;;  %v227_v41 = vpop.xlane.xlu0 %226 }
 0x16c   :  { %v241_v42 = vmul.f32 0.03125, %v230_v40  ;;  %v240_v43 = vmul.f32 0.03125, %v227_v41  ;;  %v249_v44 = vmul.f32 %v16097_v39, %v16097_v39 }
 0x16e   :  { %v16102_v45 = vsub.f32 %v16086_v33, %v241_v42  ;;  %v16105_v46 = vsub.f32 %v16076_v27, %v240_v43  ;;  %v254_v47 = vsel %vm221_vm2, %v249_v44, 0.0 }
 0x16f   :  { %v233_v48 = vpop.xlane.xlu1 %232  ;;  %255 = vadd.xlane.f32.xlu1 %v254_v47  ;;  %v237_v49 = vpop.xlane.xlu0 %236 }
 0x170   :  { %v242_v50 = vmul.f32 0.03125, %v233_v48  ;;  %v243_v51 = vmul.f32 0.03125, %v237_v49  ;;  %v251_v52 = vmul.f32 %v16102_v45, %v16102_v45  ;;  %v250_v53 = vmul.f32 %v16105_v46, %v16105_v46  ;;  %v15223_v48 = vld [vmem:[%s19713_s5 + $0x8] sm:$0xff]  }
 0x172   :  { %v16113_v54 = vsub.f32 %v16090_v34, %v242_v50  ;;  %v16116_v55 = vsub.f32 %v16070_v24, %v243_v51  ;;  %v260_v56 = vsel %vm221_vm2, %v251_v52, 0.0  ;;  %v257_v57 = vsel %vm221_vm2, %v250_v53, 0.0  ;;  %v15224_v50 = vld [vmem:[%s19713_s5] sm:$0xff]  }
 0x173   :  { %261 = vadd.xlane.f32.xlu1 %v260_v56  ;;  %258 = vadd.xlane.f32.xlu0 %v257_v57 }
 0x174   :  { %v252_v58 = vmul.f32 %v16113_v54, %v16113_v54  ;;  %v253_v59 = vmul.f32 %v16116_v55, %v16116_v55 }
 0x176   :  { %v263_v60 = vsel %vm221_vm2, %v252_v58, 0.0  ;;  %v266_v61 = vsel %vm234_vm4, %v253_v59, 0.0 }
 0x177   :  { %264 = vadd.xlane.f32.xlu0 %v263_v60  ;;  %267 = vadd.xlane.f32.xlu1 %v266_v61 }
 0x1f8   :  { %v256_v1 = vpop.xlane.xlu1 %255 }
 0x1f9   :  { %v269_v2 = vmul.f32 0.03125, %v256_v1 }
 0x1fb   :  { %v274_v3 = vadd.f32 1e-05, %v269_v2 }
 0x1fc   :  { %v262_v4 = vpop.xlane.xlu1 %261  ;;  %v259_v5 = vpop.xlane.xlu0 %258 }
 0x1fd   :  { %15619 = vrsqrt.f32 %v274_v3  ;;  %v271_v6 = vmul.f32 0.03125, %v262_v4  ;;  %v270_v9 = vmul.f32 0.03125, %v259_v5  ;;  %v11983_v3 = vld [vmem:[%s19668_s10] ss:$0 sm:$0xff] }
 0x1ff   :  { %v276_v10 = vadd.f32 1e-05, %v271_v6  ;;  %v275_v11 = vadd.f32 1e-05, %v270_v9 }
 0x200   :  { %v268_v12 = vpop.xlane.xlu1 %267  ;;  %v265_v13 = vpop.xlane.xlu0 %264 }
 0x201   :  { %15621 = vrsqrt.f32 %v276_v10  ;;  %v273_v14 = vmul.f32 0.03125, %v268_v12  ;;  %v272_v15 = vmul.f32 0.03125, %v265_v13 }
 0x202   :  { %15623 = vrsqrt.f32 %v275_v11 }
 0x203   :  { %v278_v16 = vadd.f32 1e-05, %v273_v14  ;;  %v277_v17 = vadd.f32 1e-05, %v272_v15 }
 0x205   :  { %15625 = vrsqrt.f32 %v278_v16 }
 0x206   :  { %15627 = vrsqrt.f32 %v277_v17 }
 0x20a   :  { %v15620_v18 = vpop.eup %15619 }
 0x20b   :  { %v284_v19 = vmul.f32 %v15620_v18, %v16097_v39  ;;  %v15221_v39 = vld [vmem:[%s19712_s30 + $0x8] sm:$0xff]   ;;  %v11977_v18 = vld [vmem:[%s19667_s9] ss:$0 sm:$0xff] }
 0x20d   :  { %v295_v23 = vmul.f32 %v11975_v20, %v284_v19 }
 0x20e   :  { %v15622_v21 = vpop.eup %15621 }
 0x20f   :  { %v15624_v22 = vpop.eup %15623  ;;  %v286_v25 = vmul.f32 %v15622_v21, %v16102_v45  ;;  %v306_v35 = vadd.f32 %v11976_v29, %v295_v23  ;;  %v15222_v45 = vld [vmem:[%s19712_s30] sm:$0xff]  }
 0x210   :  { %v285_v28 = vmul.f32 %v15624_v22, %v16105_v46 }
 0x211   :  { %v297_v36 = vmul.f32 %v11975_v20, %v286_v25 }
 0x212   :  { %v15626_v30 = vpop.eup %15625  ;;  %v296_v31 = vmul.f32 %v11975_v20, %v285_v28 }
 0x213   :  { %v15628_v32 = vpop.eup %15627  ;;  %v288_v41 = vmul.f32 %v15626_v30, %v16116_v55  ;;  %v308_v43 = vadd.f32 %v11976_v29, %v297_v36 }
 0x214   :  { %v307_v37 = vadd.f32 %v11976_v29, %v296_v31  ;;  %v287_v38 = vmul.f32 %v15628_v32, %v16113_v54 }
 0x215   :  { %v299_v46 = vmul.f32 %v11975_v20, %v288_v41 }
 0x216   :  { %v16155_v40 = vpack.c.bf16 %v307_v37, %v306_v35  ;;  %v298_v42 = vmul.f32 %v11975_v20, %v287_v38 }
 0x217   :  { %v310_v49 = vadd.f32 %v11976_v29, %v299_v46 }
 0x218   :  { %v309_v44 = vadd.f32 %v11976_v29, %v298_v42  ;;  %14228 = vmatmul.mubr.msk.bf16.vlgmr.msra.gmra.mxu0 %vm221_vm2, %v16155_v40  ;;  %v11989_v29 = vld [vmem:[%s19669_s11] ss:$0 sm:$0xff] }
 0x219   :  { %14240 = vmatpush3.bf16.msra.mxu0 %v15221_v39  ;;  %14243 = vmatprep.mubr.msk.bf16.mxu0 %vm15900_vm6, %v19691_v63  ;;  %v16184_v51 = vpack.c.bf16 %v310_v49, %v310_v49 }
 0x21a   :  { %v16165_v47 = vpack.c.bf16 %v309_v44, %v308_v43  ;;  %14241 = vmatprep.subr.bf16.mxu0 %v19691_v63 }
 0x21c   :  { %14232 = vmatmul.mubr.msk.bf16.vlgmr.msra.gmra.mxu1 %vm221_vm2, %v16165_v47 }
 0x21d   :  { %14242 = vmatpush3.bf16.msra.mxu0 %v15222_v45  ;;  %14235 = vmatprep.mubr.msk.bf16.mxu1 %vm15900_vm6, %v19691_v63 }
 0x21e   :  { %14256 = vmatpush3.bf16.msra.mxu1 %v15223_v48  ;;  %14271 = vmatprep.subr.mxu0 %v19691_v63 }
 0x21f   :  { %14257 = vmatprep.subr.bf16.mxu1 %v19691_v63 }
 0x220   :  { %14244 = vmatmul.mubr.msk.bf16.vlgmr.msra.gmra.mxu0 %vm221_vm2, %v16155_v40 }
 0x221   :  { %14247 = vmatprep.mubr.msk.bf16.mxu0 %vm15900_vm6, %v19691_v63 }
 0x222   :  { %14258 = vmatpush3.bf16.msra.mxu1 %v15224_v50 }
 0x223   :  { %14301 = vmatprep.subr.mxu1 %v19691_v63 }
 0x224   :  { %14236 = vmatmul.mubr.msk.bf16.gmra.mxu1 %vm221_vm2, %v16184_v51 }
 0x225   :  { %14259 = vmatprep.mubr.msk.bf16.mxu1 %vm15900_vm6, %v19691_v63 }
 0x228   :  { %14248 = vmatmul.mubr.msk.bf16.gmra.mxu0 %vm221_vm2, %v16165_v47 }
 0x229   :  { %14251 = vmatprep.mubr.msk.bf16.mxu0 %vm15900_vm6, %v19691_v63 }
 0x22c   :  { %14260 = vmatmul.mubr.msk.bf16.vlgmr.msra.gmra.mxu1 %vm221_vm2, %v16155_v40 }
 0x22d   :  { %14263 = vmatprep.mubr.msk.bf16.mxu1 %vm15900_vm6, %v19691_v63 }
 0x230   :  { %14252 = vmatmul.mubr.msk.bf16.gmra.mxu0 %vm221_vm2, %v16184_v51 }
 0x231   :  { %14277 = vmatprep.mubr.msk.f32.mxu0 %vm15900_vm6, %v19691_v63 }
 0x234   :  { %14264 = vmatmul.mubr.msk.bf16.gmra.mxu1 %vm221_vm2, %v16165_v47 }
 0x235   :  { %14267 = vmatprep.mubr.msk.bf16.mxu1 %vm15900_vm6, %v19691_v63 }
 0x23c   :  { %14268 = vmatmul.mubr.msk.bf16.gmra.mxu1 %vm221_vm2, %v16184_v51 }
 0x23d   :  { %14307 = vmatprep.mubr.msk.f32.mxu1 %vm15900_vm6, %v19691_v63 }
 0x2d8   :  { %v380_v52 = vpop.f32.mrf.mxu0 }
 0x2d9   :  { %v381_v28 = vadd.f32 %v11977_v18, %v380_v52 }
 0x2da   :  { %v14229_v53 = vpop.f32.mrf.mxu0 }
 0x2dc   :  { %v383_v54 = vpop.f32.mrf.mxu0  ;;  %v388_v55 = vpop.f32.mrf.mxu1 }
 0x2dd   :  { %v384_v41 = vadd.f32 %v11977_v18, %v383_v54  ;;  %v389_v44 = vadd.f32 %v11977_v18, %v388_v55 }
 0x2de   :  { %v14230_v56 = vpop.f32.mrf.mxu0  ;;  %v14233_v57 = vpop.f32.mrf.mxu1 }
 0x2df   :  { %v792_v57 = vrot.slane %v389_v44, 1 }
 0x2e0   :  { %v391_v58 = vpop.f32.mrf.mxu1  ;;  %v459_v59 = vpop.f32.mrf.mxu0 }
 0x2e1   :  { %v460_v19 = vadd.f32 %v11983_v3, %v459_v59  ;;  %v392_v38 = vadd.f32 %v11977_v18, %v391_v58  ;;  %v15225_v59 = vld [vmem:[%s19709_s4 + $0x18] sm:$0xff]  }
 0x2e2   :  { %v14234_v60 = vpop.f32.mrf.mxu1  ;;  %v14245_v61 = vpop.f32.mrf.mxu0 }
 0x2e3   :  { %v793_v50 = vrot.slane %v392_v38, 1 }
 0x2e4   :  { %v396_v62 = vpop.f32.mrf.mxu1  ;;  %v462_v0 = vpop.f32.mrf.mxu0 }
 0x2e5   :  { %v463_v13 = vadd.f32 %v11983_v3, %v462_v0  ;;  %v397_v52 = vadd.f32 %v11977_v18, %v396_v62  ;;  %v794_v62 = vsel %vm791_vm8, %v792_v57, %v793_v50 }
 0x2e6   :  { %v14237_v1 = vpop.f32.mrf.mxu1  ;;  %v14246_v2 = vpop.f32.mrf.mxu0 }
 0x2e7   :  { %v795_v0 = vrot.slane %v397_v52, 1 }
 0x2e8   :  { %v399_v4 = vpop.f32.mrf.mxu1  ;;  %v467_v5 = vpop.f32.mrf.mxu0 }
 0x2e9   :  { %v468_v6 = vadd.f32 %v11983_v3, %v467_v5 }
 0x2ea   :  { %v14238_v9 = vpop.f32.mrf.mxu1  ;;  %v14249_v10 = vpop.f32.mrf.mxu0 }
 0x2eb   :  { %14272 = vmatpush3.xpose.msk.msra.mxu0 %vm560_vm7, %v468_v6  ;;  %v799_v48 = vrot.slane %v468_v6, 1  ;;  %v796_v6 = vsel %vm791_vm8, %v793_v50, %v795_v0  ;;  %v15227_v9 = vld [vmem:[%s19713_s5 + $0x18] sm:$0xff]   ;;  %v15228_v10 = vld [vmem:[%s19713_s5 + $0x10] sm:$0xff]  }
 0x2ec   :  { %v470_v11 = vpop.f32.mrf.mxu0  ;;  %v538_v12 = vpop.f32.mrf.mxu1  ;;  %14273 = vmatprep.subr.mxu0 %v19691_v63 }
 0x2ed   :  { %v471_v21 = vadd.f32 %v11983_v3, %v470_v11  ;;  %v539_v45 = vadd.f32 %v11989_v29, %v538_v12 }
 0x2ee   :  { %v14250_v14 = vpop.f32.mrf.mxu0  ;;  %v14261_v15 = vpop.f32.mrf.mxu1 }
 0x2ef   :  { %14274 = vmatpush3.xpose.msk.msra.mxu0 %vm560_vm7, %v463_v13  ;;  %v800_v35 = vrot.slane %v471_v21, 1 }
 0x2f0   :  { %v475_v16 = vpop.f32.mrf.mxu0  ;;  %v541_v17 = vpop.f32.mrf.mxu1  ;;  %14275 = vmatprep.subr.mxu0 %v19691_v63 }
 0x2f1   :  { %v476_v20 = vadd.f32 %v11983_v3, %v475_v16  ;;  %v542_v39 = vadd.f32 %v11989_v29, %v541_v17  ;;  %v801_v55 = vsel %vm791_vm8, %v799_v48, %v800_v35  ;;  %v15226_v3 = vld [vmem:[%s19709_s4 + $0x10] sm:$0xff]  }
 0x2f2   :  { %v14253_v22 = vpop.f32.mrf.mxu0  ;;  %v14262_v23 = vpop.f32.mrf.mxu1 }
 0x2f3   :  { %v802_v25 = vrot.slane %v476_v20, 1  ;;  %14276 = vmatpush3.xpose.msk.msra.mxu0 %vm560_vm7, %v460_v19 }
 0x2f4   :  { %v478_v30 = vpop.f32.mrf.mxu0  ;;  %v546_v31 = vpop.f32.mrf.mxu1  ;;  %14286 = vmatprep.subr.mxu0 %v19691_v63 }
 0x2f5   :  { %v547_v32 = vadd.f32 %v11989_v29, %v546_v31  ;;  %14302 = vmatpush3.xpose.msk.msra.mxu1 %vm560_vm7, %v802_v25  ;;  %v803_v42 = vsel %vm791_vm8, %v800_v35, %v802_v25 }
 0x2f6   :  { %v14254_v36 = vpop.f32.mrf.mxu0  ;;  %v14265_v37 = vpop.f32.mrf.mxu1  ;;  %14278 = vmatmul.mubr.msk.f32.vlgmr.msra.gmra.mxu0 %vm560_vm7, %v381_v28  ;;  %14303 = vmatprep.subr.mxu1 %v19691_v63 }
 0x2f7   :  { %14287 = vmatpush3.msk.msra.mxu0 %vm194_vm3, %v547_v32  ;;  %14280 = vmatprep.mubr.msk.f32.mxu0 %vm15900_vm6, %v19691_v63  ;;  %v934_v53 = vrot.slane %v547_v32, 1 }
 0x2f8   :  { %v549_v43 = vpop.f32.mrf.mxu1  ;;  %14288 = vmatprep.subr.mxu0 %v19691_v63 }
 0x2f9   :  { %v550_v46 = vadd.f32 %v11989_v29, %v549_v43  ;;  %14289 = vmatpush3.msra.mxu0 %v542_v39  ;;  %14304 = vmatpush3.xpose.msk.msra.mxu1 %vm560_vm7, %v803_v42 }
 0x2fa   :  { %v14266_v49 = vpop.f32.mrf.mxu1  ;;  %14281 = vmatmul.mubr.msk.f32.gmra.mxu0 %vm560_vm7, %v384_v41  ;;  %14290 = vmatprep.subr.mxu0 %v19691_v63 }
 0x2fb   :  { %v935_v54 = vrot.slane %v550_v46, 1  ;;  %14291 = vmatpush3.msra.mxu0 %v539_v45  ;;  %14305 = vmatprep.subr.mxu1 %v19691_v63  ;;  %v16340_v46 = vld [vmem:[%s19667_s9 + $0x1] ss:$0 sm:$0xff] }
 0x2fc   :  { %v554_v56 = vpop.f32.mrf.mxu1  ;;  %14283 = vmatprep.mubr.msk.f32.mxu0 %vm15900_vm6, %v19691_v63  ;;  %14316 = vmatprep.subr.mxu0 %v19691_v63 }
 0x2fd   :  { %v16242_v58 = vadd.f32 %v11989_v29, %v554_v56  ;;  %14306 = vmatpush3.xpose.msk.msra.mxu1 %vm560_vm7, %v801_v55  ;;  %v16249_v60 = vsel %vm791_vm8, %v934_v53, %v935_v54 }
 0x2fe   :  { %v14269_v61 = vpop.f32.mrf.mxu1  ;;  %14284 = vmatmul.mubr.msk.f32.gmra.mxu0 %vm560_vm7, %v389_v44  ;;  %14331 = vmatprep.subr.bf16.mxu1 %v19691_v63 }
 0x2ff   :  { %v937_v1 = vrot.slane %v16242_v58, 1  ;;  %14292 = vmatprep.mubr.msk.f32.mxu0 %vm15900_vm6, %v19691_v63 }
 0x300   :  { %v557_v2 = vpop.f32.mrf.mxu1  ;;  %14308 = vmatmul.mubr.msk.f32.vlgmr.msra.gmra.mxu1 %vm560_vm7, %v794_v62 }
 0x301   :  { %14310 = vmatprep.mubr.msk.f32.mxu1 %vm15900_vm6, %v19691_v63  ;;  %14332 = vmatpush3.bf16.msra.mxu1 %v15225_v59  ;;  %v16266_v4 = vsel %vm791_vm8, %v935_v54, %v937_v1 }
 0x302   :  { %v14270_v5 = vpop.f32.mrf.mxu1  ;;  %14333 = vmatprep.subr.bf16.mxu1 %v19691_v63 }
 0x304   :  { %14311 = vmatmul.mubr.msk.f32.gmra.mxu1 %vm560_vm7, %v796_v6 }
 0x305   :  { %14313 = vmatprep.mubr.msk.f32.mxu1 %vm15900_vm6, %v19691_v63  ;;  %14334 = vmatpush3.bf16.msra.mxu1 %v15226_v3 }
 0x306   :  { %14363 = vmatprep.subr.bf16.mxu1 %v19691_v63 }
 0x308   :  { %14314 = vmatmul.mubr.msk.f32.gmra.mxu1 %vm560_vm7, %v795_v0 }
 0x309   :  { %14335 = vmatprep.mubr.msk.bf16.mxu1 %vm15900_vm6, %v19691_v63 }
 0x30c   :  { %14336 = vmatmul.mubr.msk.bf16.vlgmr.msra.gmra.mxu1 %vm221_vm2, %v16155_v40 }
 0x30d   :  { %14339 = vmatprep.mubr.msk.bf16.mxu1 %vm15900_vm6, %v19691_v63  ;;  %14364 = vmatpush3.bf16.msra.mxu1 %v15227_v9 }
 0x30e   :  { %14365 = vmatprep.subr.bf16.mxu1 %v19691_v63 }
 0x311   :  { %14366 = vmatpush3.bf16.msra.mxu1 %v15228_v10 }
 0x312   :  { %14409 = vmatprep.subr.mxu1 %v19691_v63 }
 0x314   :  { %14340 = vmatmul.mubr.msk.bf16.gmra.mxu1 %vm221_vm2, %v16165_v47 }
 0x315   :  { %14343 = vmatprep.mubr.msk.bf16.mxu1 %vm15900_vm6, %v19691_v63 }
 0x31c   :  { %14344 = vmatmul.mubr.msk.bf16.gmra.mxu1 %vm221_vm2, %v16184_v51 }
 0x31d   :  { %14367 = vmatprep.mubr.msk.bf16.mxu1 %vm15900_vm6, %v19691_v63 }
 0x324   :  { %14368 = vmatmul.mubr.msk.bf16.vlgmr.msra.gmra.mxu1 %vm221_vm2, %v16155_v40 }
 0x325   :  { %14371 = vmatprep.mubr.msk.bf16.mxu1 %vm15900_vm6, %v19691_v63 }
 0x32c   :  { %14372 = vmatmul.mubr.msk.bf16.gmra.mxu1 %vm221_vm2, %v16165_v47 }
 0x32d   :  { %14375 = vmatprep.mubr.msk.bf16.mxu1 %vm15900_vm6, %v19691_v63 }
 0x334   :  { %14376 = vmatmul.mubr.msk.bf16.gmra.mxu1 %vm221_vm2, %v16184_v51 }
 0x335   :  { %14415 = vmatprep.mubr.msk.f32.mxu1 %vm15900_vm6, %v19691_v63 }
 0x3b6   :  { %v645_v11 = vpop.f32.mrf.mxu0 }
 0x3b7   :  { %v16309_v12 = vmul.f32 0.35355338, %v645_v11 }
 0x3b8   :  { %v14279_v13 = vpop.f32.mrf.mxu0 }
 0x3b9   :  { %v663_v14 = vsel %vm662_vm9, %v16309_v12, -inf }
 0x3ba   :  { %664 = vmax.xlane.f32.xlu0 %v663_v14  ;;  %v650_v15 = vpop.f32.mrf.mxu0  ;;  %v16368_v14 = vld [vmem:[%s19669_s11 + $0x1] ss:$0 sm:$0xff] }
 0x3bb   :  { %v16313_v16 = vmul.f32 0.35355338, %v650_v15 }
 0x3bc   :  { %v14282_v17 = vpop.f32.mrf.mxu0 }
 0x3bd   :  { %v666_v18 = vsel %vm662_vm9, %v16313_v16, -inf }
 0x3be   :  { %667 = vmax.xlane.f32.xlu1 %v666_v18  ;;  %v655_v19 = vpop.f32.mrf.mxu0 }
 0x3bf   :  { %v16317_v20 = vmul.f32 0.35355338, %v655_v19 }
 0x3c0   :  { %v14285_v21 = vpop.f32.mrf.mxu0  ;;  %v882_v22 = vpop.f32.mrf.mxu1 }
 0x3c1   :  { %v16319_v23 = vmul.f32 0.35355338, %v882_v22  ;;  %v670_v25 = vsel %vm669_vm10, %v16317_v20, -inf }
 0x3c2   :  { %671 = vmax.xlane.f32.xlu0 %v670_v25  ;;  %v14309_v28 = vpop.f32.mrf.mxu1 }
 0x3c3   :  { %v899_v29 = vsel %vm662_vm9, %v16319_v23, -inf }
 0x3c4   :  { %900 = vmax.xlane.f32.xlu1 %v899_v29  ;;  %v887_v30 = vpop.f32.mrf.mxu1 }
 0x3c5   :  { %v16325_v31 = vmul.f32 0.35355338, %v887_v30 }
 0x3c6   :  { %v14312_v32 = vpop.f32.mrf.mxu1 }
 0x3c7   :  { %v902_v35 = vsel %vm662_vm9, %v16325_v31, -inf }
 0x3c8   :  { %903 = vmax.xlane.f32.xlu0 %v902_v35  ;;  %v892_v36 = vpop.f32.mrf.mxu1 }
 0x3c9   :  { %v16329_v37 = vmul.f32 0.35355338, %v892_v36 }
 0x3ca   :  { %v14315_v38 = vpop.f32.mrf.mxu1 }
 0x3cb   :  { %v905_v39 = vsel %vm669_vm10, %v16329_v37, -inf }
 0x3cc   :  { %906 = vmax.xlane.f32.xlu1 %v905_v39  ;;  %v16333_v41 = vpop.f32.mrf.mxu1 }
 0x3ce   :  { %v14337_v42 = vpop.f32.mrf.mxu1 }
 0x3d0   :  { %v16335_v43 = vpop.f32.mrf.mxu1 }
 0x3d2   :  { %v14338_v44 = vpop.f32.mrf.mxu1 }
 0x3d4   :  { %v1115_v45 = vpop.f32.mrf.mxu1 }
 0x3d5   :  { %v16343_v49 = vadd.f32 %v16340_v46, %v1115_v45 }
 0x3d6   :  { %v14341_v48 = vpop.f32.mrf.mxu1 }
 0x3d7   :  { %v1519_v54 = vrot.slane %v16343_v49, 1 }
 0x3d8   :  { %v1118_v50 = vpop.f32.mrf.mxu1 }
 0x3d9   :  { %v1119_v52 = vadd.f32 %v16340_v46, %v1118_v50 }
 0x3da   :  { %v14342_v53 = vpop.f32.mrf.mxu1 }
 0x3db   :  { %v1520_v55 = vrot.slane %v1119_v52, 1 }
 0x3dc   :  { %v1123_v56 = vpop.f32.mrf.mxu1 }
 0x3dd   :  { %v16348_v57 = vsel %vm791_vm8, %v1519_v54, %v1520_v55  ;;  %v16351_v59 = vadd.f32 %v16340_v46, %v1123_v56 }
 0x3de   :  { %v14345_v61 = vpop.f32.mrf.mxu1 }
 0x3df   :  { %v1522_v62 = vrot.slane %v16351_v59, 1 }
 0x3e0   :  { %v1126_v0 = vpop.f32.mrf.mxu1 }
 0x3e1   :  { %v16357_v2 = vsel %vm791_vm8, %v1520_v55, %v1522_v62 }
 0x3e2   :  { %v14346_v3 = vpop.f32.mrf.mxu1 }
 0x3e4   :  { %v16359_v5 = vpop.f32.mrf.mxu1 }
 0x3e6   :  { %v14369_v6 = vpop.f32.mrf.mxu1 }
 0x3e8   :  { %v16361_v9 = vpop.f32.mrf.mxu1 }
 0x3ea   :  { %v14370_v10 = vpop.f32.mrf.mxu1 }
 0x3ec   :  { %v16363_v11 = vpop.f32.mrf.mxu1 }
 0x3ee   :  { %v14373_v13 = vpop.f32.mrf.mxu1 }
 0x3f0   :  { %v1280_v15 = vpop.f32.mrf.mxu1 }
 0x3f1   :  { %v16371_v17 = vadd.f32 %v16368_v14, %v1280_v15 }
 0x3f2   :  { %v14374_v18 = vpop.f32.mrf.mxu1 }
 0x3f3   :  { %v1662_v25 = vrot.slane %v16371_v17, 1 }
 0x3f4   :  { %v1285_v19 = vpop.f32.mrf.mxu1 }
 0x3f5   :  { %v16374_v21 = vadd.f32 %v16368_v14, %v1285_v19 }
 0x3f6   :  { %v14377_v22 = vpop.f32.mrf.mxu1 }
 0x3f7   :  { %v1664_v28 = vrot.slane %v16374_v21, 1 }
 0x3f8   :  { %v1288_v29 = vpop.f32.mrf.mxu1 }
 0x3f9   :  { %v16383_v30 = vsel %vm791_vm8, %v1662_v25, %v1664_v28 }
 0x3fa   :  { %v14378_v32 = vpop.f32.mrf.mxu1 }
 0x443   :  { %v665_v35 = vpop.xlane.xlu0 %664 }
 0x444   :  { %v673_v36 = vsub.f32 %v16309_v12, %v665_v35 }
 0x446   :  { %v676_v38 = vmul.f32 1.442695, %v673_v36 }
 0x447   :  { %v668_v39 = vpop.xlane.xlu1 %667 }
 0x448   :  { %15629 = vpow2.f32 %v676_v38  ;;  %v674_v42 = vsub.f32 %v16313_v16, %v668_v39 }
 0x44a   :  { %v678_v44 = vmul.f32 1.442695, %v674_v42 }
 0x44b   :  { %v672_v45 = vpop.xlane.xlu0 %671 }
 0x44c   :  { %15631 = vpow2.f32 %v678_v44  ;;  %v675_v48 = vsub.f32 %v16317_v20, %v672_v45 }
 0x44d   :  { %v901_v50 = vpop.xlane.xlu1 %900 }
 0x44e   :  { %v680_v52 = vmul.f32 1.442695, %v675_v48  ;;  %v908_v53 = vsub.f32 %v16319_v23, %v901_v50 }
 0x450   :  { %15633 = vpow2.f32 %v680_v52  ;;  %v911_v54 = vmul.f32 1.442695, %v908_v53 }
 0x451   :  { %v904_v55 = vpop.xlane.xlu0 %903 }
 0x452   :  { %15635 = vpow2.f32 %v911_v54  ;;  %v909_v12 = vsub.f32 %v16325_v31, %v904_v55 }
 0x454   :  { %v913_v56 = vmul.f32 1.442695, %v909_v12 }
 0x455   :  { %v15630_v61 = vpop.eup %15629  ;;  %v907_v0 = vpop.xlane.xlu1 %906 }
 0x456   :  { %15637 = vpow2.f32 %v913_v56  ;;  %v910_v16 = vsub.f32 %v16329_v37, %v907_v0  ;;  %v682_v3 = vsel %vm662_vm9, %v15630_v61, 0.0 }
 0x457   :  { %683 = vadd.xlane.f32.xlu0 %v682_v3 }
 0x458   :  { %v915_v20 = vmul.f32 1.442695, %v910_v16 }
 0x459   :  { %v15632_v6 = vpop.eup %15631 }
 0x45a   :  { %15639 = vpow2.f32 %v915_v20  ;;  %v685_v23 = vsel %vm662_vm9, %v15632_v6, 0.0 }
 0x45b   :  { %686 = vadd.xlane.f32.xlu1 %v685_v23 }
 0x45d   :  { %v15634_v10 = vpop.eup %15633 }
 0x45e   :  { %v688_v13 = vsel %vm669_vm10, %v15634_v10, 0.0 }
 0x45f   :  { %v15636_v15 = vpop.eup %15635  ;;  %689 = vadd.xlane.f32.xlu0 %v688_v13 }
 0x460   :  { %v917_v31 = vsel %vm662_vm9, %v15636_v15, 0.0 }
 0x461   :  { %918 = vadd.xlane.f32.xlu1 %v917_v31 }
 0x463   :  { %v15638_v18 = vpop.eup %15637 }
 0x464   :  { %v920_v37 = vsel %vm662_vm9, %v15638_v18, 0.0 }
 0x465   :  { %921 = vadd.xlane.f32.xlu0 %v920_v37 }
 0x467   :  { %v15640_v19 = vpop.eup %15639 }
 0x468   :  { %v923_v22 = vsel %vm669_vm10, %v15640_v19, 0.0 }
 0x469   :  { %924 = vadd.xlane.f32.xlu1 %v923_v22 }
 0x4e0   :  { %v684_v29 = vpop.xlane.xlu0 %683 }
 0x4e1   :  { %15641 = vrcp.f32 %v684_v29 }
 0x4e4   :  { %v687_v32 = vpop.xlane.xlu1 %686 }
 0x4e5   :  { %15643 = vrcp.f32 %v687_v32 }
 0x4e8   :  { %v690_v35 = vpop.xlane.xlu0 %689 }
 0x4e9   :  { %15645 = vrcp.f32 %v690_v35 }
 0x4ea   :  { %v919_v36 = vpop.xlane.xlu1 %918 }
 0x4eb   :  { %15647 = vrcp.f32 %v919_v36 }
 0x4ee   :  { %v15642_v38 = vpop.eup %15641  ;;  %v922_v39 = vpop.xlane.xlu0 %921 }
 0x4ef   :  { %v694_v42 = vmul.f32 %v15642_v38, %v15630_v61  ;;  %15649 = vrcp.f32 %v922_v39 }
 0x4f1   :  { %14293 = vmatmul.mubr.msk.f32.vlgmr.msra.gmra.mxu0 %vm662_vm9, %v694_v42 }
 0x4f2   :  { %v15644_v44 = vpop.eup %15643  ;;  %14317 = vmatpush3.msk.msra.mxu0 %vm194_vm3, %v937_v1  ;;  %v925_v45 = vpop.xlane.xlu1 %924  ;;  %14295 = vmatprep.mubr.msk.f32.mxu0 %vm15900_vm6, %v19691_v63 }
 0x4f3   :  { %14318 = vmatprep.subr.mxu0 %v19691_v63  ;;  %15651 = vrcp.f32 %v925_v45  ;;  %v695_v48 = vmul.f32 %v15644_v44, %v15632_v6  ;;  %v12031_v45 = vld [vmem:[%s19668_s10 + $0x1] ss:$0 sm:$0xff] }
 0x4f4   :  { %14319 = vmatpush3.msra.mxu0 %v16266_v4  ;;  %v15229_v4 = vld [vmem:[%s19712_s30 + $0x18] sm:$0xff]  }
 0x4f5   :  { %14320 = vmatprep.subr.mxu0 %v19691_v63  ;;  %14296 = vmatmul.mubr.msk.f32.gmra.mxu0 %vm662_vm9, %v695_v48 }
 0x4f6   :  { %v15646_v50 = vpop.eup %15645  ;;  %14321 = vmatpush3.msra.mxu0 %v16249_v60  ;;  %14298 = vmatprep.mubr.msk.f32.mxu0 %vm15900_vm6, %v19691_v63  ;;  %v15230_v60 = vld [vmem:[%s19712_s30 + $0x10] sm:$0xff]  }
 0x4f7   :  { %v696_v58 = vmul.f32 %v15646_v50, %v15634_v10  ;;  %14347 = vmatprep.subr.bf16.mxu0 %v19691_v63 }
 0x4f8   :  { %v15648_v1 = vpop.eup %15647 }
 0x4f9   :  { %14299 = vmatmul.mubr.msk.f32.gmra.mxu0 %vm662_vm9, %v696_v58  ;;  %v929_v52 = vmul.f32 %v15648_v1, %v15636_v15 }
 0x4fa   :  { %14322 = vmatprep.mubr.msk.f32.mxu0 %vm15900_vm6, %v19691_v63 }
 0x4fc   :  { %v15650_v53 = vpop.eup %15649 }
 0x4fd   :  { %14323 = vmatmul.mubr.msk.f32.vlgmr.msra.gmra.mxu0 %vm662_vm9, %v929_v52  ;;  %v930_v54 = vmul.f32 %v15650_v53, %v15638_v18 }
 0x4fe   :  { %14325 = vmatprep.mubr.msk.f32.mxu0 %vm15900_vm6, %v19691_v63  ;;  %14348 = vmatpush3.bf16.msra.mxu0 %v15229_v4 }
 0x4ff   :  { %14349 = vmatprep.subr.bf16.mxu0 %v19691_v63 }
 0x500   :  { %v15652_v55 = vpop.eup %15651 }
 0x501   :  { %14326 = vmatmul.mubr.msk.f32.gmra.mxu0 %vm662_vm9, %v930_v54  ;;  %v931_v12 = vmul.f32 %v15652_v55, %v15640_v19 }
 0x502   :  { %14328 = vmatprep.mubr.msk.f32.mxu0 %vm15900_vm6, %v19691_v63  ;;  %14350 = vmatpush3.bf16.msra.mxu0 %v15230_v60 }
 0x503   :  { %14379 = vmatprep.subr.mxu0 %v19691_v63 }
 0x505   :  { %14329 = vmatmul.mubr.msk.f32.gmra.mxu0 %vm662_vm9, %v931_v12 }
 0x506   :  { %14351 = vmatprep.mubr.msk.bf16.mxu0 %vm15900_vm6, %v19691_v63 }
 0x509   :  { %14352 = vmatmul.mubr.msk.bf16.vlgmr.msra.gmra.mxu0 %vm221_vm2, %v16155_v40 }
 0x50a   :  { %14355 = vmatprep.mubr.msk.bf16.mxu0 %vm15900_vm6, %v19691_v63 }
 0x511   :  { %14356 = vmatmul.mubr.msk.bf16.gmra.mxu0 %vm221_vm2, %v16165_v47 }
 0x512   :  { %14359 = vmatprep.mubr.msk.bf16.mxu0 %vm15900_vm6, %v19691_v63 }
 0x519   :  { %14360 = vmatmul.mubr.msk.bf16.gmra.mxu0 %vm221_vm2, %v16184_v51 }
 0x51a   :  { %14385 = vmatprep.mubr.msk.f32.mxu0 %vm15900_vm6, %v19691_v63 }
 0x5b1   :  { %v16443_v56 = vpop.f32.mrf.mxu0 }
 0x5b3   :  { %v14294_v61 = vpop.f32.mrf.mxu0 }
 0x5b5   :  { %v16445_v0 = vpop.f32.mrf.mxu0 }
 0x5b6   :  { %v1044_v16 = vpack.c.bf16 %v16445_v0, %v16443_v56  ;;  %v12068_v0 = vld [vmem:[%s19670_s12 + $0x4] sm:$0xf] }
 0x5b7   :  { %v14297_v3 = vpop.f32.mrf.mxu0 }
 0x5b8   :  { %v1108_v3 = vadd.f32 %v16340_v46, %v16333_v41  ;;  %v1111_v41 = vadd.f32 %v16340_v46, %v16335_v43 }
 0x5b9   :  { %v785_v20 = vpop.f32.mrf.mxu0 }
 0x5bb   :  { %v14300_v6 = vpop.f32.mrf.mxu0 }
 0x5bc   :  { %v16473_v6 = vadd.f32 %v16368_v14, %v16363_v11 }
 0x5bd   :  { %v1018_v23 = vpop.f32.mrf.mxu0 }
 0x5be   :  { %v1035_v10 = vrot.slane %v1018_v23, 7 }
 0x5bf   :  { %v14324_v13 = vpop.f32.mrf.mxu0 }
 0x5c0   :  { %v16450_v15 = vsel %vm194_vm3, %v785_v20, %v1035_v10  ;;  %v1273_v13 = vadd.f32 %v16368_v14, %v16361_v9 }
 0x5c1   :  { %v1023_v31 = vpop.f32.mrf.mxu0 }
 0x5c2   :  { %v1036_v18 = vrot.slane %v1023_v31, 7  ;;  %v1270_v31 = vadd.f32 %v16368_v14, %v16359_v5 }
 0x5c3   :  { %v14327_v37 = vpop.f32.mrf.mxu0 }
 0x5c4   :  { %v16453_v19 = vsel %vm194_vm3, %v1035_v10, %v1036_v18 }
 0x5c5   :  { %v1045_v22 = vpack.c.bf16 %v16453_v19, %v16450_v15  ;;  %v1028_v29 = vpop.f32.mrf.mxu0 }
 0x5c6   :  { %v1038_v32 = vrot.slane %v1028_v29, 7 }
 0x5c7   :  { %v14330_v35 = vpop.f32.mrf.mxu0 }
 0x5c8   :  { %v16458_v36 = vsel %vm194_vm3, %v1036_v18, %v1038_v32 }
 0x5c9   :  { %v1188_v38 = vpop.f32.mrf.mxu0  ;;  %v1046_v56 = vpack.c.bf16 %v16458_v36, %v16458_v36  ;;  %v15233_v36 = vld [vmem:[%s19709_s4 + $0x28] sm:$0xff]  }
 0x5ca   :  { %v1189_v60 = vadd.f32 %v12031_v45, %v1188_v38 }
 0x5cb   :  { %v14353_v39 = vpop.f32.mrf.mxu0 }
 0x5cd   :  { %v1191_v42 = vpop.f32.mrf.mxu0 }
 0x5ce   :  { %v1192_v4 = vadd.f32 %v12031_v45, %v1191_v42 }
 0x5cf   :  { %v14354_v44 = vpop.f32.mrf.mxu0 }
 0x5d1   :  { %v1196_v48 = vpop.f32.mrf.mxu0 }
 0x5d2   :  { %v1197_v50 = vadd.f32 %v12031_v45, %v1196_v48 }
 0x5d3   :  { %v14357_v58 = vpop.f32.mrf.mxu0 }
 0x5d4   :  { %14380 = vmatpush3.xpose.msk.msra.mxu0 %vm560_vm7, %v1197_v50  ;;  %v1526_v9 = vrot.slane %v1197_v50, 1 }
 0x5d5   :  { %v1199_v1 = vpop.f32.mrf.mxu0  ;;  %14381 = vmatprep.subr.mxu0 %v19691_v63 }
 0x5d6   :  { %v1200_v55 = vadd.f32 %v12031_v45, %v1199_v1 }
 0x5d7   :  { %v14358_v52 = vpop.f32.mrf.mxu0 }
 0x5d8   :  { %14382 = vmatpush3.xpose.msk.msra.mxu0 %vm560_vm7, %v1192_v4  ;;  %v1527_v23 = vrot.slane %v1200_v55, 1 }
 0x5d9   :  { %v1204_v53 = vpop.f32.mrf.mxu0  ;;  %14383 = vmatprep.subr.mxu0 %v19691_v63 }
 0x5da   :  { %v1205_v54 = vadd.f32 %v12031_v45, %v1204_v53  ;;  %v1528_v43 = vsel %vm791_vm8, %v1526_v9, %v1527_v23 }
 0x5db   :  { %v14361_v12 = vpop.f32.mrf.mxu0 }
 0x5dc   :  { %v1529_v61 = vrot.slane %v1205_v54, 1  ;;  %14384 = vmatpush3.xpose.msk.msra.mxu0 %vm560_vm7, %v1189_v60 }
 0x5dd   :  { %v1207_v20 = vpop.f32.mrf.mxu0  ;;  %14394 = vmatprep.subr.mxu0 %v19691_v63 }
 0x5de   :  { %14410 = vmatpush3.xpose.msk.msra.mxu1 %vm560_vm7, %v1529_v61  ;;  %v1530_v11 = vsel %vm791_vm8, %v1527_v23, %v1529_v61 }
 0x5df   :  { %v14362_v10 = vpop.f32.mrf.mxu0  ;;  %14386 = vmatmul.mubr.msk.f32.vlgmr.msra.gmra.mxu0 %vm560_vm7, %v1108_v3  ;;  %14411 = vmatprep.subr.mxu1 %v19691_v63 }
 0x5e0   :  { %14395 = vmatpush3.msk.msra.mxu0 %vm194_vm3, %v16473_v6  ;;  %14388 = vmatprep.mubr.msk.f32.mxu0 %vm15900_vm6, %v19691_v63 }
 0x5e1   :  { %14396 = vmatprep.subr.mxu0 %v19691_v63 }
 0x5e2   :  { %14397 = vmatpush3.msra.mxu0 %v1273_v13  ;;  %14412 = vmatpush3.xpose.msk.msra.mxu1 %vm560_vm7, %v1530_v11 }
 0x5e3   :  { %14389 = vmatmul.mubr.msk.f32.gmra.mxu0 %vm560_vm7, %v1111_v41  ;;  %14398 = vmatprep.subr.mxu0 %v19691_v63 }
 0x5e4   :  { %14399 = vmatpush3.msra.mxu0 %v1270_v31  ;;  %14413 = vmatprep.subr.mxu1 %v19691_v63 }
 0x5e5   :  { %14391 = vmatprep.mubr.msk.f32.mxu0 %vm15900_vm6, %v19691_v63  ;;  %14424 = vmatprep.subr.mxu0 %v19691_v63 }
 0x5e6   :  { %14414 = vmatpush3.xpose.msk.msra.mxu1 %vm560_vm7, %v1528_v43 }
 0x5e7   :  { %14392 = vmatmul.mubr.msk.f32.gmra.mxu0 %vm560_vm7, %v16343_v49  ;;  %14439 = vmatprep.subr.bf16.mxu1 %v19691_v63 }
 0x5e8   :  { %14400 = vmatprep.mubr.msk.f32.mxu0 %vm15900_vm6, %v19691_v63 }
 0x5e9   :  { %14416 = vmatmul.mubr.msk.f32.vlgmr.msra.gmra.mxu1 %vm560_vm7, %v16348_v57 }
 0x5ea   :  { %14418 = vmatprep.mubr.msk.f32.mxu1 %vm15900_vm6, %v19691_v63 }
 0x5ed   :  { %14419 = vmatmul.mubr.msk.f32.gmra.mxu1 %vm560_vm7, %v16357_v2 }
 0x5ee   :  { %14421 = vmatprep.mubr.msk.f32.mxu1 %vm15900_vm6, %v19691_v63 }
 0x5f1   :  { %14422 = vmatmul.mubr.msk.f32.gmra.mxu1 %vm560_vm7, %v1522_v62 }
 0x5f2   :  { %14441 = vmatprep.mubr.msk.bf16.mxu1 %vm15900_vm6, %v19691_v63 }
 0x69f   :  { %v1375_v46 = vpop.f32.mrf.mxu0 }
 0x6a0   :  { %v1389_v49 = vmul.f32 0.35355338, %v1375_v46 }
 0x6a1   :  { %v14387_v5 = vpop.f32.mrf.mxu0 }
 0x6a2   :  { %v1392_v57 = vsel %vm662_vm9, %v1389_v49, -inf }
 0x6a3   :  { %1393 = vmax.xlane.f32.xlu0 %v1392_v57  ;;  %v1380_v14 = vpop.f32.mrf.mxu0 }
 0x6a4   :  { %v1390_v18 = vmul.f32 0.35355338, %v1380_v14 }
 0x6a5   :  { %v14390_v37 = vpop.f32.mrf.mxu0 }
 0x6a6   :  { %v1395_v2 = vsel %vm662_vm9, %v1390_v18, -inf }
 0x6a7   :  { %1396 = vmax.xlane.f32.xlu1 %v1395_v2  ;;  %v1385_v29 = vpop.f32.mrf.mxu0 }
 0x6a8   :  { %v1391_v32 = vmul.f32 0.35355338, %v1385_v29 }
 0x6a9   :  { %v14393_v59 = vpop.f32.mrf.mxu0  ;;  %v1609_v35 = vpop.f32.mrf.mxu1 }
 0x6aa   :  { %v1623_v62 = vmul.f32 0.35355338, %v1609_v35  ;;  %v1398_v38 = vsel %vm669_vm10, %v1391_v32, -inf }
 0x6ab   :  { %1399 = vmax.xlane.f32.xlu0 %v1398_v38  ;;  %v14417_v39 = vpop.f32.mrf.mxu1 }
 0x6ac   :  { %v1626_v42 = vsel %vm662_vm9, %v1623_v62, -inf }
 0x6ad   :  { %1627 = vmax.xlane.f32.xlu1 %v1626_v42  ;;  %v1614_v44 = vpop.f32.mrf.mxu1 }
 0x6ae   :  { %v1624_v45 = vmul.f32 0.35355338, %v1614_v44 }
 0x6af   :  { %v14420_v48 = vpop.f32.mrf.mxu1 }
 0x6b0   :  { %v1629_v50 = vsel %vm662_vm9, %v1624_v45, -inf }
 0x6b1   :  { %1630 = vmax.xlane.f32.xlu0 %v1629_v50  ;;  %v1619_v58 = vpop.f32.mrf.mxu1 }
 0x6b2   :  { %v1625_v1 = vmul.f32 0.35355338, %v1619_v58 }
 0x6b3   :  { %v14423_v4 = vpop.f32.mrf.mxu1 }
 0x6b4   :  { %v1632_v52 = vsel %vm669_vm10, %v1625_v1, -inf }
 0x6b5   :  { %1633 = vmax.xlane.f32.xlu1 %v1632_v52  ;;  %v1661_v52 = vrot.slane %v16473_v6, 1 }
 0x6b7   :  { %v1663_v21 = vsel %vm791_vm8, %v1661_v52, %v1662_v25 }
 0x72c   :  { %v1394_v53 = vpop.xlane.xlu0 %1393 }
 0x72d   :  { %v1401_v60 = vsub.f32 %v1389_v49, %v1394_v53 }
 0x72f   :  { %v1404_v54 = vmul.f32 1.442695, %v1401_v60 }
 0x730   :  { %v1397_v55 = vpop.xlane.xlu1 %1396 }
 0x731   :  { %15653 = vpow2.f32 %v1404_v54  ;;  %v1402_v12 = vsub.f32 %v1390_v18, %v1397_v55 }
 0x733   :  { %v1406_v61 = vmul.f32 1.442695, %v1402_v12 }
 0x734   :  { %v1400_v3 = vpop.xlane.xlu0 %1399 }
 0x735   :  { %15655 = vpow2.f32 %v1406_v61  ;;  %v1403_v20 = vsub.f32 %v1391_v32, %v1400_v3  ;;  %v15231_v3 = vld [vmem:[%s19712_s30 + $0x28] sm:$0xff]  }
 0x736   :  { %v1628_v23 = vpop.xlane.xlu1 %1627 }
 0x737   :  { %v1408_v10 = vmul.f32 1.442695, %v1403_v20  ;;  %v1635_v13 = vsub.f32 %v1623_v62, %v1628_v23  ;;  %v15232_v20 = vld [vmem:[%s19712_s30 + $0x20] sm:$0xff]  }
 0x739   :  { %15657 = vpow2.f32 %v1408_v10  ;;  %v1638_v41 = vmul.f32 1.442695, %v1635_v13 }
 0x73a   :  { %v1631_v11 = vpop.xlane.xlu0 %1630 }
 0x73b   :  { %15659 = vpow2.f32 %v1638_v41  ;;  %v1636_v31 = vsub.f32 %v1624_v45, %v1631_v11  ;;  %v15234_v41 = vld [vmem:[%s19709_s4 + $0x20] sm:$0xff]  }
 0x73d   :  { %v1640_v9 = vmul.f32 1.442695, %v1636_v31 }
 0x73e   :  { %v15654_v43 = vpop.eup %15653  ;;  %v1634_v46 = vpop.xlane.xlu1 %1633 }
 0x73f   :  { %15661 = vpow2.f32 %v1640_v9  ;;  %v1637_v49 = vsub.f32 %v1625_v1, %v1634_v46  ;;  %v1410_v5 = vsel %vm662_vm9, %v15654_v43, 0.0 }
 0x740   :  { %1411 = vadd.xlane.f32.xlu0 %v1410_v5 }
 0x741   :  { %v1642_v57 = vmul.f32 1.442695, %v1637_v49 }
 0x742   :  { %v15656_v14 = vpop.eup %15655 }
 0x743   :  { %15663 = vpow2.f32 %v1642_v57  ;;  %v1413_v18 = vsel %vm662_vm9, %v15656_v14, 0.0 }
 0x744   :  { %1414 = vadd.xlane.f32.xlu1 %v1413_v18 }
 0x746   :  { %v15658_v37 = vpop.eup %15657 }
 0x747   :  { %v1416_v2 = vsel %vm669_vm10, %v15658_v37, 0.0 }
 0x748   :  { %v15660_v29 = vpop.eup %15659  ;;  %1417 = vadd.xlane.f32.xlu0 %v1416_v2 }
 0x749   :  { %v1644_v32 = vsel %vm662_vm9, %v15660_v29, 0.0 }
 0x74a   :  { %1645 = vadd.xlane.f32.xlu1 %v1644_v32 }
 0x74c   :  { %v15662_v59 = vpop.eup %15661 }
 0x74d   :  { %v1647_v35 = vsel %vm662_vm9, %v15662_v59, 0.0 }
 0x74e   :  { %1648 = vadd.xlane.f32.xlu0 %v1647_v35 }
 0x750   :  { %v15664_v62 = vpop.eup %15663 }
 0x751   :  { %v1650_v38 = vsel %vm669_vm10, %v15664_v62, 0.0 }
 0x752   :  { %1651 = vadd.xlane.f32.xlu1 %v1650_v38 }
 0x7c9   :  { %v1412_v39 = vpop.xlane.xlu0 %1411 }
 0x7ca   :  { %15665 = vrcp.f32 %v1412_v39 }
 0x7cd   :  { %v1415_v42 = vpop.xlane.xlu1 %1414 }
 0x7ce   :  { %15667 = vrcp.f32 %v1415_v42 }
 0x7d1   :  { %v1418_v44 = vpop.xlane.xlu0 %1417 }
 0x7d2   :  { %15669 = vrcp.f32 %v1418_v44 }
 0x7d3   :  { %v1646_v45 = vpop.xlane.xlu1 %1645 }
 0x7d4   :  { %15671 = vrcp.f32 %v1646_v45  ;;  %v15235_v45 = vld [vmem:[%s19713_s5 + $0x28] sm:$0xff]  }
 0x7d7   :  { %v15666_v48 = vpop.eup %15665  ;;  %v1649_v50 = vpop.xlane.xlu0 %1648 }
 0x7d8   :  { %v1422_v58 = vmul.f32 %v15666_v48, %v15654_v43  ;;  %15673 = vrcp.f32 %v1649_v50 }
 0x7da   :  { %14401 = vmatmul.mubr.msk.f32.vlgmr.msra.gmra.mxu0 %vm662_vm9, %v1422_v58  ;;  %v15236_v58 = vld [vmem:[%s19713_s5 + $0x20] sm:$0xff]  }
 0x7db   :  { %v15668_v1 = vpop.eup %15667  ;;  %14425 = vmatpush3.msk.msra.mxu0 %vm194_vm3, %v1664_v28  ;;  %v1652_v4 = vpop.xlane.xlu1 %1651  ;;  %14403 = vmatprep.mubr.msk.f32.mxu0 %vm15900_vm6, %v19691_v63 }
 0x7dc   :  { %14426 = vmatprep.subr.mxu0 %v19691_v63  ;;  %15675 = vrcp.f32 %v1652_v4  ;;  %v1423_v53 = vmul.f32 %v15668_v1, %v15656_v14 }
 0x7dd   :  { %14427 = vmatpush3.msra.mxu0 %v16383_v30  ;;  %v1047_v30 = vld [vmem:[%s19670_s12] sm:$0xf] }
 0x7de   :  { %14428 = vmatprep.subr.mxu0 %v19691_v63  ;;  %14404 = vmatmul.mubr.msk.f32.gmra.mxu0 %vm662_vm9, %v1423_v53  ;;  %v1854_v25 = vsel %vm102_vm0, %v1047_v30, 0  ;;  %v12091_v30 = vld [vmem:[%s19668_s10 + $0x2] ss:$0 sm:$0xff] }
 0x7df   :  { %v15670_v28 = vpop.eup %15669  ;;  %14429 = vmatpush3.msra.mxu0 %v1663_v21  ;;  %14406 = vmatprep.mubr.msk.f32.mxu0 %vm15900_vm6, %v19691_v63 }
 0x7e0   :  { %v1424_v6 = vmul.f32 %v15670_v28, %v15658_v37  ;;  %14453 = vmatprep.subr.bf16.mxu0 %v19691_v63 }
 0x7e1   :  { %v15672_v60 = vpop.eup %15671 }
 0x7e2   :  { %14407 = vmatmul.mubr.msk.f32.gmra.mxu0 %vm662_vm9, %v1424_v6  ;;  %v1656_v17 = vmul.f32 %v15672_v60, %v15660_v29 }
 0x7e3   :  { %14430 = vmatprep.mubr.msk.f32.mxu0 %vm15900_vm6, %v19691_v63 }
 0x7e5   :  { %v15674_v54 = vpop.eup %15673 }
 0x7e6   :  { %14431 = vmatmul.mubr.msk.f32.vlgmr.msra.gmra.mxu0 %vm662_vm9, %v1656_v17  ;;  %v1657_v55 = vmul.f32 %v15674_v54, %v15662_v59 }
 0x7e7   :  { %14433 = vmatprep.mubr.msk.f32.mxu0 %vm15900_vm6, %v19691_v63  ;;  %14454 = vmatpush3.bf16.msra.mxu0 %v1854_v25 }
 0x7e8   :  { %14483 = vmatprep.subr.bf16.mxu0 %v19691_v63 }
 0x7e9   :  { %v15676_v12 = vpop.eup %15675 }
 0x7ea   :  { %14434 = vmatmul.mubr.msk.f32.gmra.mxu0 %vm662_vm9, %v1657_v55  ;;  %v1658_v61 = vmul.f32 %v15676_v12, %v15664_v62 }
 0x7eb   :  { %14436 = vmatprep.mubr.msk.f32.mxu0 %vm15900_vm6, %v19691_v63 }
 0x7ee   :  { %14437 = vmatmul.mubr.msk.f32.gmra.mxu0 %vm662_vm9, %v1658_v61 }
 0x7ef   :  { %14455 = vmatprep.mubr.msk.bf16.mxu0 %vm15900_vm6, %v19691_v63 }
 0x7f2   :  { %14456 = vmatmul.mubr.msk.bf16.vlgmr.msra.gmra.mxu0 %vm560_vm7, %v1044_v16  ;;  %v1786_v16 = vsel %vm102_vm0, %v12068_v0, 0 }
 0x7f3   :  { %14459 = vmatprep.mubr.msk.bf16.mxu0 %vm15900_vm6, %v19691_v63  ;;  %14484 = vmatpush3.bf16.msra.mxu0 %v15231_v3 }
 0x7f4   :  { %14485 = vmatprep.subr.bf16.mxu0 %v19691_v63  ;;  %14440 = vmatpush3.bf16.msra.mxu1 %v1786_v16 }
 0x7f5   :  { %14467 = vmatprep.subr.bf16.mxu1 %v19691_v63 }
 0x7f7   :  { %14486 = vmatpush3.bf16.msra.mxu0 %v15232_v20 }
 0x7f8   :  { %14515 = vmatprep.subr.mxu0 %v19691_v63 }
 0x7fa   :  { %14460 = vmatmul.mubr.msk.bf16.gmra.mxu0 %vm560_vm7, %v1045_v22 }
 0x7fb   :  { %14463 = vmatprep.mubr.msk.bf16.mxu0 %vm15900_vm6, %v19691_v63 }
 0x802   :  { %14464 = vmatmul.mubr.msk.bf16.gmra.mxu0 %vm560_vm7, %v1046_v56 }
 0x803   :  { %14487 = vmatprep.mubr.msk.bf16.mxu0 %vm15900_vm6, %v19691_v63 }
 0x80a   :  { %14488 = vmatmul.mubr.msk.bf16.vlgmr.msra.gmra.mxu0 %vm221_vm2, %v16155_v40 }
 0x80b   :  { %14491 = vmatprep.mubr.msk.bf16.mxu0 %vm15900_vm6, %v19691_v63 }
 0x812   :  { %14492 = vmatmul.mubr.msk.bf16.gmra.mxu0 %vm221_vm2, %v16165_v47 }
 0x813   :  { %14495 = vmatprep.mubr.msk.bf16.mxu0 %vm15900_vm6, %v19691_v63 }
 0x81a   :  { %14496 = vmatmul.mubr.msk.bf16.gmra.mxu0 %vm221_vm2, %v16184_v51 }
 0x81b   :  { %14521 = vmatprep.mubr.msk.f32.mxu0 %vm15900_vm6, %v19691_v63 }
 0x89a   :  { %v1503_v15 = vpop.f32.mrf.mxu0 }
 0x89c   :  { %v14402_v19 = vpop.f32.mrf.mxu0 }
 0x89e   :  { %v1508_v22 = vpop.f32.mrf.mxu0 }
 0x89f   :  { %v1771_v23 = vpack.c.bf16 %v1508_v22, %v1503_v15 }
 0x8a0   :  { %v14405_v10 = vpop.f32.mrf.mxu0 }
 0x8a1   :  { %14442 = vmatmul.mubr.msk.bf16.vlgmr.msra.gmra.mxu1 %vm560_vm7, %v1771_v23 }
 0x8a2   :  { %v1513_v13 = vpop.f32.mrf.mxu0  ;;  %14445 = vmatprep.mubr.msk.bf16.mxu1 %vm15900_vm6, %v19691_v63  ;;  %14468 = vmatpush3.bf16.msra.mxu1 %v15233_v36 }
 0x8a3   :  { %14469 = vmatprep.subr.bf16.mxu1 %v19691_v63 }
 0x8a4   :  { %v14408_v11 = vpop.f32.mrf.mxu0 }
 0x8a6   :  { %v1745_v31 = vpop.f32.mrf.mxu0  ;;  %14470 = vmatpush3.bf16.msra.mxu1 %v15234_v41 }
 0x8a7   :  { %14499 = vmatprep.subr.bf16.mxu1 %v19691_v63  ;;  %v1762_v43 = vrot.slane %v1745_v31, 7 }
 0x8a8   :  { %v14432_v9 = vpop.f32.mrf.mxu0 }
 0x8a9   :  { %v1770_v57 = vsel %vm194_vm3, %v1513_v13, %v1762_v43 }
 0x8aa   :  { %v1750_v46 = vpop.f32.mrf.mxu0 }
 0x8ab   :  { %v1763_v49 = vrot.slane %v1750_v46, 7 }
 0x8ac   :  { %v14435_v5 = vpop.f32.mrf.mxu0 }
 0x8ad   :  { %v1764_v14 = vsel %vm194_vm3, %v1762_v43, %v1763_v49 }
 0x8ae   :  { %v1772_v18 = vpack.c.bf16 %v1764_v14, %v1770_v57  ;;  %v1755_v37 = vpop.f32.mrf.mxu0 }
 0x8af   :  { %v1765_v2 = vrot.slane %v1755_v37, 7 }
 0x8b0   :  { %v14438_v29 = vpop.f32.mrf.mxu0  ;;  %14446 = vmatmul.mubr.msk.bf16.gmra.mxu1 %vm560_vm7, %v1772_v18 }
 0x8b1   :  { %14449 = vmatprep.mubr.msk.bf16.mxu1 %vm15900_vm6, %v19691_v63  ;;  %v1766_v59 = vsel %vm194_vm3, %v1763_v49, %v1765_v2  ;;  %v12080_v2 = vld [vmem:[%s19667_s9 + $0x2] ss:$0 sm:$0xff] }
 0x8b2   :  { %v16621_v32 = vpop.f32.mrf.mxu0  ;;  %v1773_v62 = vpack.c.bf16 %v1766_v59, %v1766_v59 }
 0x8b4   :  { %v14457_v35 = vpop.f32.mrf.mxu0 }
 0x8b6   :  { %v16624_v38 = vpop.f32.mrf.mxu0 }
 0x8b8   :  { %14450 = vmatmul.mubr.msk.bf16.gmra.mxu1 %vm560_vm7, %v1773_v62  ;;  %v14458_v39 = vpop.f32.mrf.mxu0 }
 0x8b9   :  { %14471 = vmatprep.mubr.msk.bf16.mxu1 %vm15900_vm6, %v19691_v63 }
 0x8ba   :  { %v16629_v42 = vpop.f32.mrf.mxu0 }
 0x8bc   :  { %v14461_v44 = vpop.f32.mrf.mxu0 }
 0x8be   :  { %v16634_v48 = vpop.f32.mrf.mxu0 }
 0x8c0   :  { %v14462_v50 = vpop.f32.mrf.mxu0  ;;  %14472 = vmatmul.mubr.msk.bf16.vlgmr.msra.gmra.mxu1 %vm221_vm2, %v16155_v40 }
 0x8c1   :  { %14475 = vmatprep.mubr.msk.bf16.mxu1 %vm15900_vm6, %v19691_v63  ;;  %14500 = vmatpush3.bf16.msra.mxu1 %v15235_v45 }
 0x8c2   :  { %v16643_v1 = vpop.f32.mrf.mxu0  ;;  %14501 = vmatprep.subr.bf16.mxu1 %v19691_v63 }
 0x8c4   :  { %v14465_v4 = vpop.f32.mrf.mxu0 }
 0x8c5   :  { %14502 = vmatpush3.bf16.msra.mxu1 %v15236_v58 }
 0x8c6   :  { %v1909_v52 = vpop.f32.mrf.mxu0  ;;  %14545 = vmatprep.subr.mxu1 %v19691_v63 }
 0x8c8   :  { %v14466_v53 = vpop.f32.mrf.mxu0  ;;  %14476 = vmatmul.mubr.msk.bf16.gmra.mxu1 %vm221_vm2, %v16165_v47 }
 0x8c9   :  { %14479 = vmatprep.mubr.msk.bf16.mxu1 %vm15900_vm6, %v19691_v63 }
 0x8ca   :  { %v2052_v21 = vpop.f32.mrf.mxu0 }
 0x8cb   :  { %v2053_v20 = vadd.f32 %v12091_v30, %v2052_v21 }
 0x8cc   :  { %v14489_v28 = vpop.f32.mrf.mxu0 }
 0x8ce   :  { %v2055_v6 = vpop.f32.mrf.mxu0 }
 0x8cf   :  { %v2056_v12 = vadd.f32 %v12091_v30, %v2055_v6 }
 0x8d0   :  { %14480 = vmatmul.mubr.msk.bf16.gmra.mxu1 %vm221_vm2, %v16184_v51  ;;  %v14490_v60 = vpop.f32.mrf.mxu0 }
 0x8d1   :  { %14503 = vmatprep.mubr.msk.bf16.mxu1 %vm15900_vm6, %v19691_v63 }
 0x8d2   :  { %v2060_v17 = vpop.f32.mrf.mxu0 }
 0x8d3   :  { %v2061_v25 = vadd.f32 %v12091_v30, %v2060_v17 }
 0x8d4   :  { %v14493_v54 = vpop.f32.mrf.mxu0 }
 0x8d5   :  { %14516 = vmatpush3.xpose.msk.msra.mxu0 %vm560_vm7, %v2061_v25  ;;  %v2390_v10 = vrot.slane %v2061_v25, 1 }
 0x8d6   :  { %v2063_v55 = vpop.f32.mrf.mxu0  ;;  %14517 = vmatprep.subr.mxu0 %v19691_v63 }
 0x8d7   :  { %v2064_v0 = vadd.f32 %v12091_v30, %v2063_v55 }
 0x8d8   :  { %v14494_v61 = vpop.f32.mrf.mxu0  ;;  %14504 = vmatmul.mubr.msk.bf16.vlgmr.msra.gmra.mxu1 %vm221_vm2, %v16155_v40 }
 0x8d9   :  { %14518 = vmatpush3.xpose.msk.msra.mxu0 %vm560_vm7, %v2056_v12  ;;  %14507 = vmatprep.mubr.msk.bf16.mxu1 %vm15900_vm6, %v19691_v63  ;;  %v2391_v22 = vrot.slane %v2064_v0, 1  ;;  %v12102_v0 = vld [vmem:[%s19669_s11 + $0x2] ss:$0 sm:$0xff] }
 0x8da   :  { %v2068_v3 = vpop.f32.mrf.mxu0  ;;  %14519 = vmatprep.subr.mxu0 %v19691_v63 }
 0x8db   :  { %v2069_v56 = vadd.f32 %v12091_v30, %v2068_v3  ;;  %v2392_v13 = vsel %vm791_vm8, %v2390_v10, %v2391_v22 }
 0x8dc   :  { %v14497_v16 = vpop.f32.mrf.mxu0 }
 0x8dd   :  { %v2393_v15 = vrot.slane %v2069_v56, 1  ;;  %14520 = vmatpush3.xpose.msk.msra.mxu0 %vm560_vm7, %v2053_v20 }
 0x8de   :  { %v2071_v19 = vpop.f32.mrf.mxu0  ;;  %14530 = vmatprep.subr.mxu0 %v19691_v63 }
 0x8df   :  { %14546 = vmatpush3.xpose.msk.msra.mxu1 %vm560_vm7, %v2393_v15  ;;  %v2394_v23 = vsel %vm791_vm8, %v2391_v22, %v2393_v15 }
 0x8e0   :  { %v14498_v36 = vpop.f32.mrf.mxu0  ;;  %14508 = vmatmul.mubr.msk.bf16.gmra.mxu1 %vm221_vm2, %v16165_v47  ;;  %14547 = vmatprep.subr.mxu1 %v19691_v63 }
 0x8e1   :  { %14511 = vmatprep.mubr.msk.bf16.mxu1 %vm15900_vm6, %v19691_v63 }
 0x8e3   :  { %14548 = vmatpush3.xpose.msk.msra.mxu1 %vm560_vm7, %v2394_v23 }
 0x8e4   :  { %14549 = vmatprep.subr.mxu1 %v19691_v63 }
 0x8e7   :  { %14550 = vmatpush3.xpose.msk.msra.mxu1 %vm560_vm7, %v2392_v13 }
 0x8e8   :  { %14512 = vmatmul.mubr.msk.bf16.gmra.mxu1 %vm221_vm2, %v16184_v51  ;;  %14575 = vmatprep.subr.bf16.mxu1 %v19691_v63 }
 0x8e9   :  { %14551 = vmatprep.mubr.msk.f32.mxu1 %vm15900_vm6, %v19691_v63 }
 0x961   :  { %v16684_v41 = vpop.f32.mrf.mxu1 }
 0x963   :  { %v14443_v11 = vpop.f32.mrf.mxu1 }
 0x965   :  { %v16686_v31 = vpop.f32.mrf.mxu1 }
 0x967   :  { %v14444_v9 = vpop.f32.mrf.mxu1 }
 0x970   :  { %v16688_v43 = vpop.f32.mrf.mxu1 }
 0x972   :  { %v14447_v46 = vpop.f32.mrf.mxu1 }
 0x974   :  { %v16690_v49 = vpop.f32.mrf.mxu1 }
 0x976   :  { %v14448_v5 = vpop.f32.mrf.mxu1 }
 0x978   :  { %v16692_v57 = vpop.f32.mrf.mxu1 }
 0x97a   :  { %v14451_v14 = vpop.f32.mrf.mxu1 }
 0x97c   :  { %v1841_v18 = vpop.f32.mrf.mxu1 }
 0x97e   :  { %v14452_v37 = vpop.f32.mrf.mxu1 }
 0x980   :  { %v1971_v29 = vpop.f32.mrf.mxu1 }
 0x981   :  { %v1972_v59 = vadd.f32 %v12080_v2, %v1971_v29 }
 0x982   :  { %v14473_v35 = vpop.f32.mrf.mxu1 }
 0x983   :  { %14522 = vmatmul.mubr.msk.f32.vlgmr.msra.gmra.mxu0 %vm560_vm7, %v1972_v59 }
 0x984   :  { %v1974_v62 = vpop.f32.mrf.mxu1  ;;  %14524 = vmatprep.mubr.msk.f32.mxu0 %vm15900_vm6, %v19691_v63 }
 0x985   :  { %v1975_v39 = vadd.f32 %v12080_v2, %v1974_v62 }
 0x986   :  { %v14474_v44 = vpop.f32.mrf.mxu1 }
 0x987   :  { %14525 = vmatmul.mubr.msk.f32.gmra.mxu0 %vm560_vm7, %v1975_v39 }
 0x988   :  { %v1979_v45 = vpop.f32.mrf.mxu1  ;;  %14527 = vmatprep.mubr.msk.f32.mxu0 %vm15900_vm6, %v19691_v63 }
 0x989   :  { %v1980_v50 = vadd.f32 %v12080_v2, %v1979_v45 }
 0x98a   :  { %v14477_v58 = vpop.f32.mrf.mxu1 }
 0x98b   :  { %14528 = vmatmul.mubr.msk.f32.gmra.mxu0 %vm560_vm7, %v1980_v50  ;;  %v2383_v21 = vrot.slane %v1980_v50, 1 }
 0x98c   :  { %v1982_v4 = vpop.f32.mrf.mxu1  ;;  %14536 = vmatprep.mubr.msk.f32.mxu0 %vm15900_vm6, %v19691_v63 }
 0x98d   :  { %v1983_v52 = vadd.f32 %v12080_v2, %v1982_v4 }
 0x98e   :  { %v14478_v53 = vpop.f32.mrf.mxu1 }
 0x98f   :  { %v2384_v28 = vrot.slane %v1983_v52, 1 }
 0x990   :  { %v1987_v6 = vpop.f32.mrf.mxu1 }
 0x991   :  { %v2385_v60 = vsel %vm791_vm8, %v2383_v21, %v2384_v28  ;;  %v1988_v30 = vadd.f32 %v12080_v2, %v1987_v6 }
 0x992   :  { %v14481_v17 = vpop.f32.mrf.mxu1  ;;  %14552 = vmatmul.mubr.msk.f32.vlgmr.msra.gmra.mxu1 %vm560_vm7, %v2385_v60 }
 0x993   :  { %v2386_v25 = vrot.slane %v1988_v30, 1  ;;  %14554 = vmatprep.mubr.msk.f32.mxu1 %vm15900_vm6, %v19691_v63 }
 0x994   :  { %v1990_v54 = vpop.f32.mrf.mxu1 }
 0x995   :  { %v2387_v55 = vsel %vm791_vm8, %v2384_v28, %v2386_v25 }
 0x996   :  { %v14482_v12 = vpop.f32.mrf.mxu1  ;;  %14555 = vmatmul.mubr.msk.f32.gmra.mxu1 %vm560_vm7, %v2387_v55 }
 0x997   :  { %14557 = vmatprep.mubr.msk.f32.mxu1 %vm15900_vm6, %v19691_v63 }
 0x998   :  { %v2133_v61 = vpop.f32.mrf.mxu1 }
 0x999   :  { %v2134_v23 = vadd.f32 %v12102_v0, %v2133_v61 }
 0x99a   :  { %v14505_v3 = vpop.f32.mrf.mxu1  ;;  %14558 = vmatmul.mubr.msk.f32.gmra.mxu1 %vm560_vm7, %v2386_v25 }
 0x99b   :  { %14577 = vmatprep.mubr.msk.bf16.mxu1 %vm15900_vm6, %v19691_v63 }
 0x99c   :  { %v2136_v20 = vpop.f32.mrf.mxu1 }
 0x99d   :  { %v2137_v22 = vadd.f32 %v12102_v0, %v2136_v20 }
 0x99e   :  { %v14506_v56 = vpop.f32.mrf.mxu1 }
 0x9a0   :  { %v2141_v16 = vpop.f32.mrf.mxu1 }
 0x9a1   :  { %v2142_v15 = vadd.f32 %v12102_v0, %v2141_v16 }
 0x9a2   :  { %v14509_v19 = vpop.f32.mrf.mxu1 }
 0x9a3   :  { %14531 = vmatpush3.msk.msra.mxu0 %vm194_vm3, %v2142_v15  ;;  %v2525_v11 = vrot.slane %v2142_v15, 1 }
 0x9a4   :  { %v2144_v36 = vpop.f32.mrf.mxu1  ;;  %14532 = vmatprep.subr.mxu0 %v19691_v63 }
 0x9a5   :  { %v2145_v10 = vadd.f32 %v12102_v0, %v2144_v36  ;;  %14533 = vmatpush3.msra.mxu0 %v2137_v22 }
 0x9a6   :  { %v14510_v13 = vpop.f32.mrf.mxu1  ;;  %14534 = vmatprep.subr.mxu0 %v19691_v63 }
 0x9a7   :  { %v2526_v9 = vrot.slane %v2145_v10, 1  ;;  %14535 = vmatpush3.msra.mxu0 %v2134_v23 }
 0x9a8   :  { %v2149_v46 = vpop.f32.mrf.mxu1  ;;  %14560 = vmatprep.subr.mxu0 %v19691_v63 }
 0x9a9   :  { %v16724_v5 = vadd.f32 %v12102_v0, %v2149_v46  ;;  %v16727_v14 = vsel %vm791_vm8, %v2525_v11, %v2526_v9 }
 0x9aa   :  { %v14513_v18 = vpop.f32.mrf.mxu1 }
 0x9ab   :  { %v2528_v37 = vrot.slane %v16724_v5, 1 }
 0x9ac   :  { %v2152_v2 = vpop.f32.mrf.mxu1 }
 0x9ad   :  { %v16733_v29 = vsel %vm791_vm8, %v2526_v9, %v2528_v37 }
 0x9ae   :  { %v14514_v59 = vpop.f32.mrf.mxu1 }
 0xa43   :  { %v2239_v35 = vpop.f32.mrf.mxu0 }
 0xa44   :  { %v2253_v62 = vmul.f32 0.35355338, %v2239_v35 }
 0xa45   :  { %v14523_v39 = vpop.f32.mrf.mxu0 }
 0xa46   :  { %v2256_v44 = vsel %vm662_vm9, %v2253_v62, -inf }
 0xa47   :  { %2257 = vmax.xlane.f32.xlu0 %v2256_v44  ;;  %v2244_v45 = vpop.f32.mrf.mxu0 }
 0xa48   :  { %v2254_v50 = vmul.f32 0.35355338, %v2244_v45 }
 0xa49   :  { %v14526_v58 = vpop.f32.mrf.mxu0 }
 0xa4a   :  { %v2259_v4 = vsel %vm662_vm9, %v2254_v50, -inf }
 0xa4b   :  { %2260 = vmax.xlane.f32.xlu1 %v2259_v4  ;;  %v2249_v52 = vpop.f32.mrf.mxu0 }
 0xa4c   :  { %v2255_v53 = vmul.f32 0.35355338, %v2249_v52 }
 0xa4d   :  { %v14529_v21 = vpop.f32.mrf.mxu0 }
 0xa4e   :  { %v2262_v28 = vsel %vm669_vm10, %v2255_v53, -inf }
 0xa4f   :  { %2263 = vmax.xlane.f32.xlu0 %v2262_v28 }
 0xa52   :  { %v2473_v6 = vpop.f32.mrf.mxu1 }
 0xa53   :  { %v2487_v60 = vmul.f32 0.35355338, %v2473_v6 }
 0xa54   :  { %v14553_v30 = vpop.f32.mrf.mxu1 }
 0xa55   :  { %v2490_v17 = vsel %vm662_vm9, %v2487_v60, -inf }
 0xa56   :  { %2491 = vmax.xlane.f32.xlu1 %v2490_v17  ;;  %v2478_v25 = vpop.f32.mrf.mxu1 }
 0xa57   :  { %v2488_v54 = vmul.f32 0.35355338, %v2478_v25 }
 0xa58   :  { %v14556_v55 = vpop.f32.mrf.mxu1 }
 0xa59   :  { %v2493_v12 = vsel %vm662_vm9, %v2488_v54, -inf }
 0xa5a   :  { %2494 = vmax.xlane.f32.xlu0 %v2493_v12  ;;  %v2483_v61 = vpop.f32.mrf.mxu1 }
 0xa5b   :  { %v2489_v3 = vmul.f32 0.35355338, %v2483_v61 }
 0xa5c   :  { %v14559_v20 = vpop.f32.mrf.mxu1 }
 0xa5d   :  { %v2496_v56 = vsel %vm669_vm10, %v2489_v3, -inf }
 0xa5e   :  { %2497 = vmax.xlane.f32.xlu1 %v2496_v56 }
 0xad0   :  { %v2258_v0 = vpop.xlane.xlu0 %2257 }
 0xad1   :  { %v2265_v16 = vsub.f32 %v2253_v62, %v2258_v0 }
 0xad3   :  { %v2268_v15 = vmul.f32 1.442695, %v2265_v16  ;;  %v15237_v16 = vld [vmem:[%s19709_s4 + $0x38] sm:$0xff]  }
 0xad4   :  { %v2261_v19 = vpop.xlane.xlu1 %2260 }
 0xad5   :  { %15677 = vpow2.f32 %v2268_v15  ;;  %v2266_v22 = vsub.f32 %v2254_v50, %v2261_v19  ;;  %v15238_v19 = vld [vmem:[%s19709_s4 + $0x30] sm:$0xff]  }
 0xad7   :  { %v2270_v36 = vmul.f32 1.442695, %v2266_v22 }
 0xad8   :  { %v2264_v23 = vpop.xlane.xlu0 %2263 }
 0xad9   :  { %15679 = vpow2.f32 %v2270_v36  ;;  %v2267_v10 = vsub.f32 %v2255_v53, %v2264_v23 }
 0xadb   :  { %v2272_v13 = vmul.f32 1.442695, %v2267_v10  ;;  %v15239_v10 = vld [vmem:[%s19713_s5 + $0x38] sm:$0xff]  }
 0xadd   :  { %15681 = vpow2.f32 %v2272_v13  ;;  %v15240_v13 = vld [vmem:[%s19713_s5 + $0x30] sm:$0xff]  }
 0xadf   :  { %v2492_v11 = vpop.xlane.xlu1 %2491 }
 0xae0   :  { %v2499_v9 = vsub.f32 %v2487_v60, %v2492_v11  ;;  %v12128_v11 = vld [vmem:[%s19670_s12 + $0x8] sm:$0xf] }
 0xae2   :  { %v15678_v46 = vpop.eup %15677  ;;  %v2502_v18 = vmul.f32 1.442695, %v2499_v9  ;;  %v2650_v9 = vsel %vm102_vm0, %v12128_v11, 0 }
 0xae3   :  { %v2495_v2 = vpop.xlane.xlu0 %2494  ;;  %v2274_v59 = vsel %vm662_vm9, %v15678_v46, 0.0  ;;  %14576 = vmatpush3.bf16.msra.mxu1 %v2650_v9 }
 0xae4   :  { %15683 = vpow2.f32 %v2502_v18  ;;  %v2500_v35 = vsub.f32 %v2488_v54, %v2495_v2  ;;  %2275 = vadd.xlane.f32.xlu0 %v2274_v59  ;;  %14605 = vmatprep.subr.bf16.mxu1 %v19691_v63  ;;  %v15241_v59 = vld [vmem:[%s19712_s30 + $0x38] sm:$0xff]  }
 0xae6   :  { %v15680_v62 = vpop.eup %15679  ;;  %v2504_v39 = vmul.f32 1.442695, %v2500_v35 }
 0xae7   :  { %v2498_v44 = vpop.xlane.xlu1 %2497  ;;  %v2277_v45 = vsel %vm662_vm9, %v15680_v62, 0.0 }
 0xae8   :  { %15685 = vpow2.f32 %v2504_v39  ;;  %v2501_v50 = vsub.f32 %v2489_v3, %v2498_v44  ;;  %2278 = vadd.xlane.f32.xlu1 %v2277_v45  ;;  %v15242_v44 = vld [vmem:[%s19712_s30 + $0x30] sm:$0xff]  }
 0xaea   :  { %v15682_v58 = vpop.eup %15681  ;;  %v2506_v4 = vmul.f32 1.442695, %v2501_v50 }
 0xaeb   :  { %v2280_v52 = vsel %vm669_vm10, %v15682_v58, 0.0 }
 0xaec   :  { %15687 = vpow2.f32 %v2506_v4  ;;  %2281 = vadd.xlane.f32.xlu0 %v2280_v52 }
 0xaf1   :  { %v15684_v53 = vpop.eup %15683 }
 0xaf2   :  { %v2508_v21 = vsel %vm662_vm9, %v15684_v53, 0.0 }
 0xaf3   :  { %2509 = vadd.xlane.f32.xlu1 %v2508_v21 }
 0xaf5   :  { %v15686_v28 = vpop.eup %15685 }
 0xaf6   :  { %v2511_v6 = vsel %vm662_vm9, %v15686_v28, 0.0 }
 0xaf7   :  { %2512 = vadd.xlane.f32.xlu0 %v2511_v6 }
 0xaf9   :  { %v15688_v60 = vpop.eup %15687 }
 0xafa   :  { %v2514_v30 = vsel %vm669_vm10, %v15688_v60, 0.0 }
 0xafb   :  { %2515 = vadd.xlane.f32.xlu1 %v2514_v30 }
 0xb6d   :  { %v2276_v17 = vpop.xlane.xlu0 %2275 }
 0xb6e   :  { %15689 = vrcp.f32 %v2276_v17 }
 0xb71   :  { %v2279_v25 = vpop.xlane.xlu1 %2278 }
 0xb72   :  { %15691 = vrcp.f32 %v2279_v25 }
 0xb75   :  { %v2282_v54 = vpop.xlane.xlu0 %2281 }
 0xb76   :  { %15693 = vrcp.f32 %v2282_v54 }
 0xb7b   :  { %v15690_v55 = vpop.eup %15689 }
 0xb7c   :  { %v2286_v12 = vmul.f32 %v15690_v55, %v15678_v46  ;;  %v2510_v61 = vpop.xlane.xlu1 %2509 }
 0xb7d   :  { %15695 = vrcp.f32 %v2510_v61 }
 0xb7e   :  { %14537 = vmatmul.mubr.msk.f32.vlgmr.msra.gmra.mxu0 %vm662_vm9, %v2286_v12 }
 0xb7f   :  { %v15692_v3 = vpop.eup %15691  ;;  %14561 = vmatpush3.msk.msra.mxu0 %vm194_vm3, %v2528_v37  ;;  %14539 = vmatprep.mubr.msk.f32.mxu0 %vm15900_vm6, %v19691_v63 }
 0xb80   :  { %14562 = vmatprep.subr.mxu0 %v19691_v63  ;;  %v2513_v20 = vpop.xlane.xlu0 %2512  ;;  %v2287_v56 = vmul.f32 %v15692_v3, %v15680_v62 }
 0xb81   :  { %14563 = vmatpush3.msra.mxu0 %v16733_v29  ;;  %15697 = vrcp.f32 %v2513_v20 }
 0xb82   :  { %14564 = vmatprep.subr.mxu0 %v19691_v63  ;;  %14540 = vmatmul.mubr.msk.f32.gmra.mxu0 %vm662_vm9, %v2287_v56 }
 0xb83   :  { %v15694_v0 = vpop.eup %15693  ;;  %14565 = vmatpush3.msra.mxu0 %v16727_v14  ;;  %14542 = vmatprep.mubr.msk.f32.mxu0 %vm15900_vm6, %v19691_v63 }
 0xb84   :  { %v2516_v5 = vpop.xlane.xlu1 %2515  ;;  %v2288_v37 = vmul.f32 %v15694_v0, %v15682_v58  ;;  %14589 = vmatprep.subr.bf16.mxu0 %v19691_v63  ;;  %v16845_v0 = vld [vmem:[%s19667_s9 + $0x3] ss:$0 sm:$0xff] }
 0xb85   :  { %15699 = vrcp.f32 %v2516_v5 }
 0xb86   :  { %14543 = vmatmul.mubr.msk.f32.gmra.mxu0 %vm662_vm9, %v2288_v37 }
 0xb87   :  { %14566 = vmatprep.mubr.msk.f32.mxu0 %vm15900_vm6, %v19691_v63 }
 0xb8a   :  { %v15696_v29 = vpop.eup %15695 }
 0xb8b   :  { %v2520_v15 = vmul.f32 %v15696_v29, %v15684_v53 }
 0xb8d   :  { %14567 = vmatmul.mubr.msk.f32.vlgmr.msra.gmra.mxu0 %vm662_vm9, %v2520_v15 }
 0xb8e   :  { %v15698_v14 = vpop.eup %15697  ;;  %14569 = vmatprep.mubr.msk.f32.mxu0 %vm15900_vm6, %v19691_v63  ;;  %14590 = vmatpush3.bf16.msra.mxu0 %v15237_v16 }
 0xb8f   :  { %v2521_v22 = vmul.f32 %v15698_v14, %v15686_v28  ;;  %14591 = vmatprep.subr.bf16.mxu0 %v19691_v63 }
 0xb91   :  { %14570 = vmatmul.mubr.msk.f32.gmra.mxu0 %vm662_vm9, %v2521_v22 }
 0xb92   :  { %v15700_v36 = vpop.eup %15699  ;;  %14572 = vmatprep.mubr.msk.f32.mxu0 %vm15900_vm6, %v19691_v63  ;;  %14592 = vmatpush3.bf16.msra.mxu0 %v15238_v19 }
 0xb93   :  { %v2522_v23 = vmul.f32 %v15700_v36, %v15688_v60  ;;  %14621 = vmatprep.subr.bf16.mxu0 %v19691_v63 }
 0xb95   :  { %14573 = vmatmul.mubr.msk.f32.gmra.mxu0 %vm662_vm9, %v2522_v23 }
 0xb96   :  { %14593 = vmatprep.mubr.msk.bf16.mxu0 %vm15900_vm6, %v19691_v63 }
 0xb99   :  { %14594 = vmatmul.mubr.msk.bf16.vlgmr.msra.gmra.mxu0 %vm221_vm2, %v16155_v40 }
 0xb9a   :  { %14597 = vmatprep.mubr.msk.bf16.mxu0 %vm15900_vm6, %v19691_v63  ;;  %14622 = vmatpush3.bf16.msra.mxu0 %v15239_v10 }
 0xb9b   :  { %14623 = vmatprep.subr.bf16.mxu0 %v19691_v63 }
 0xb9e   :  { %14624 = vmatpush3.bf16.msra.mxu0 %v15240_v13 }
 0xb9f   :  { %14652 = vmatprep.subr.mxu0 %v19691_v63 }
 0xba1   :  { %14598 = vmatmul.mubr.msk.bf16.gmra.mxu0 %vm221_vm2, %v16165_v47 }
 0xba2   :  { %14601 = vmatprep.mubr.msk.bf16.mxu0 %vm15900_vm6, %v19691_v63 }
 0xba9   :  { %14602 = vmatmul.mubr.msk.bf16.gmra.mxu0 %vm221_vm2, %v16184_v51 }
 0xbaa   :  { %14625 = vmatprep.mubr.msk.bf16.mxu0 %vm15900_vm6, %v19691_v63 }
 0xbb1   :  { %14626 = vmatmul.mubr.msk.bf16.vlgmr.msra.gmra.mxu0 %vm221_vm2, %v16155_v40 }
 0xbb2   :  { %14629 = vmatprep.mubr.msk.bf16.mxu0 %vm15900_vm6, %v19691_v63 }
 0xbb9   :  { %14630 = vmatmul.mubr.msk.bf16.gmra.mxu0 %vm221_vm2, %v16165_v47 }
 0xbba   :  { %14633 = vmatprep.mubr.msk.bf16.mxu0 %vm15900_vm6, %v19691_v63 }
 0xbc1   :  { %14634 = vmatmul.mubr.msk.bf16.gmra.mxu0 %vm221_vm2, %v16184_v51 }
 0xbc2   :  { %14658 = vmatprep.mubr.msk.f32.mxu0 %vm15900_vm6, %v19691_v63 }
 0xc3e   :  { %v2367_v46 = vpop.f32.mrf.mxu0 }
 0xc40   :  { %v14538_v18 = vpop.f32.mrf.mxu0 }
 0xc42   :  { %v2372_v2 = vpop.f32.mrf.mxu0 }
 0xc43   :  { %v2635_v35 = vpack.c.bf16 %v2372_v2, %v2367_v46 }
 0xc44   :  { %v14541_v62 = vpop.f32.mrf.mxu0 }
 0xc45   :  { %14578 = vmatmul.mubr.msk.bf16.vlgmr.msra.gmra.mxu1 %vm560_vm7, %v2635_v35  ;;  %v12159_v35 = vld [vmem:[%s19669_s11 + $0x3] ss:$0 sm:$0xff] }
 0xc46   :  { %v2377_v39 = vpop.f32.mrf.mxu0  ;;  %14581 = vmatprep.mubr.msk.bf16.mxu1 %vm15900_vm6, %v19691_v63  ;;  %14606 = vmatpush3.bf16.msra.mxu1 %v15241_v59 }
 0xc47   :  { %14607 = vmatprep.subr.bf16.mxu1 %v19691_v63 }
 0xc48   :  { %v14544_v45 = vpop.f32.mrf.mxu0 }
 0xc4a   :  { %14608 = vmatpush3.bf16.msra.mxu1 %v15242_v44 }
 0xc4b   :  { %14637 = vmatprep.subr.mxu1 %v19691_v63 }
 0xc4d   :  { %v2609_v50 = vpop.f32.mrf.mxu0 }
 0xc4e   :  { %v2626_v4 = vrot.slane %v2609_v50, 7 }
 0xc4f   :  { %v14568_v58 = vpop.f32.mrf.mxu0 }
 0xc50   :  { %v2634_v28 = vsel %vm194_vm3, %v2377_v39, %v2626_v4 }
 0xc51   :  { %v2614_v52 = vpop.f32.mrf.mxu0 }
 0xc52   :  { %v2627_v53 = vrot.slane %v2614_v52, 7 }
 0xc53   :  { %v14571_v21 = vpop.f32.mrf.mxu0 }
 0xc54   :  { %v2628_v6 = vsel %vm194_vm3, %v2626_v4, %v2627_v53 }
 0xc55   :  { %v2636_v60 = vpack.c.bf16 %v2628_v6, %v2634_v28  ;;  %v2619_v30 = vpop.f32.mrf.mxu0 }
 0xc56   :  { %v2629_v17 = vrot.slane %v2619_v30, 7 }
 0xc57   :  { %v14574_v25 = vpop.f32.mrf.mxu0  ;;  %14582 = vmatmul.mubr.msk.bf16.gmra.mxu1 %vm560_vm7, %v2636_v60 }
 0xc58   :  { %14585 = vmatprep.mubr.msk.bf16.mxu1 %vm15900_vm6, %v19691_v63  ;;  %v2630_v55 = vsel %vm194_vm3, %v2627_v53, %v2629_v17 }
 0xc59   :  { %v16834_v54 = vpop.f32.mrf.mxu0  ;;  %v2637_v61 = vpack.c.bf16 %v2630_v55, %v2630_v55  ;;  %v1891_v55 = vadd.f32 %v16621_v32, %v16684_v41  ;;  %v1902_v32 = vadd.f32 %v16634_v48, %v16690_v49  ;;  %v12148_v48 = vld [vmem:[%s19668_s10 + $0x3] ss:$0 sm:$0xff] }
 0xc5b   :  { %v14595_v12 = vpop.f32.mrf.mxu0 }
 0xc5d   :  { %v16837_v3 = vpop.f32.mrf.mxu0 }
 0xc5f   :  { %14586 = vmatmul.mubr.msk.bf16.gmra.mxu1 %vm560_vm7, %v2637_v61  ;;  %v14596_v20 = vpop.f32.mrf.mxu0 }
 0xc60   :  { %14609 = vmatprep.mubr.msk.bf16.mxu1 %vm15900_vm6, %v19691_v63 }
 0xc61   :  { %v2780_v56 = vpop.f32.mrf.mxu0 }
 0xc62   :  { %v16848_v37 = vadd.f32 %v16845_v0, %v2780_v56  ;;  %v1894_v56 = vadd.f32 %v16624_v38, %v16686_v31  ;;  %v1907_v38 = vadd.f32 %v16643_v1, %v16692_v57 }
 0xc63   :  { %v14599_v5 = vpop.f32.mrf.mxu0 }
 0xc64   :  { %v3184_v14 = vrot.slane %v16848_v37, 1 }
 0xc65   :  { %v2783_v29 = vpop.f32.mrf.mxu0 }
 0xc66   :  { %v2784_v16 = vadd.f32 %v16845_v0, %v2783_v29 }
 0xc67   :  { %v14600_v15 = vpop.f32.mrf.mxu0  ;;  %14610 = vmatmul.mubr.msk.bf16.vlgmr.msra.gmra.mxu1 %vm221_vm2, %v16155_v40 }
 0xc68   :  { %v3185_v19 = vrot.slane %v2784_v16, 1  ;;  %14613 = vmatprep.mubr.msk.bf16.mxu1 %vm15900_vm6, %v19691_v63  ;;  %v1899_v15 = vadd.f32 %v16629_v42, %v16688_v43 }
 0xc69   :  { %v2788_v22 = vpop.f32.mrf.mxu0 }
 0xc6a   :  { %v16857_v36 = vsel %vm791_vm8, %v3184_v14, %v3185_v19  ;;  %v16860_v23 = vadd.f32 %v16845_v0, %v2788_v22 }
 0xc6b   :  { %v14603_v10 = vpop.f32.mrf.mxu0 }
 0xc6c   :  { %v3187_v13 = vrot.slane %v16860_v23, 1 }
 0xc6d   :  { %v2791_v11 = vpop.f32.mrf.mxu0 }
 0xc6e   :  { %v16866_v40 = vsel %vm791_vm8, %v3185_v19, %v3187_v13 }
 0xc6f   :  { %v14604_v9 = vpop.f32.mrf.mxu0  ;;  %14614 = vmatmul.mubr.msk.bf16.gmra.mxu1 %vm221_vm2, %v16165_v47 }
 0xc70   :  { %14617 = vmatprep.mubr.msk.bf16.mxu1 %vm15900_vm6, %v19691_v63 }
 0xc71   :  { %v2934_v46 = vpop.f32.mrf.mxu0 }
 0xc72   :  { %v2935_v50 = vadd.f32 %v12159_v35, %v2934_v46 }
 0xc73   :  { %v14627_v18 = vpop.f32.mrf.mxu0 }
 0xc75   :  { %v2937_v2 = vpop.f32.mrf.mxu0 }
 0xc76   :  { %v2938_v44 = vadd.f32 %v12159_v35, %v2937_v2 }
 0xc77   :  { %14618 = vmatmul.mubr.msk.bf16.gmra.mxu1 %vm221_vm2, %v16184_v51  ;;  %v14628_v59 = vpop.f32.mrf.mxu0 }
 0xc78   :  { %14643 = vmatprep.mubr.msk.f32.mxu1 %vm15900_vm6, %v19691_v63 }
 0xc79   :  { %v2942_v62 = vpop.f32.mrf.mxu0 }
 0xc7a   :  { %v2943_v39 = vadd.f32 %v12159_v35, %v2942_v62 }
 0xc7b   :  { %v14631_v47 = vpop.f32.mrf.mxu0 }
 0xc7c   :  { %14653 = vmatpush3.msk.msra.mxu0 %vm194_vm3, %v2943_v39  ;;  %v3326_v4 = vrot.slane %v2943_v39, 1 }
 0xc7d   :  { %v2945_v45 = vpop.f32.mrf.mxu0  ;;  %14654 = vmatprep.subr.mxu0 %v19691_v63 }
 0xc7e   :  { %v2946_v58 = vadd.f32 %v12159_v35, %v2945_v45  ;;  %14655 = vmatpush3.msra.mxu0 %v2938_v44 }
 0xc7f   :  { %v14632_v51 = vpop.f32.mrf.mxu0  ;;  %14656 = vmatprep.subr.mxu0 %v19691_v63 }
 0xc80   :  { %v3327_v52 = vrot.slane %v2946_v58, 1  ;;  %14657 = vmatpush3.msra.mxu0 %v2935_v50  ;;  %v2773_v51 = vadd.f32 %v16845_v0, %v16834_v54 }
 0xc81   :  { %v2950_v53 = vpop.f32.mrf.mxu0  ;;  %14682 = vmatprep.subr.mxu0 %v19691_v63 }
 0xc82   :  { %v16883_v21 = vadd.f32 %v12159_v35, %v2950_v53  ;;  %v16886_v28 = vsel %vm791_vm8, %v3326_v4, %v3327_v52 }
 0xc83   :  { %v14635_v6 = vpop.f32.mrf.mxu0 }
 0xc84   :  { %v3329_v60 = vrot.slane %v16883_v21, 1 }
 0xc85   :  { %v2953_v30 = vpop.f32.mrf.mxu0 }
 0xc86   :  { %v16892_v17 = vsel %vm791_vm8, %v3327_v52, %v3329_v60  ;;  %v2776_v30 = vadd.f32 %v16845_v0, %v16837_v3 }
 0xc87   :  { %v14636_v25 = vpop.f32.mrf.mxu0 }
 0xd05   :  { %v2686_v12 = vpop.f32.mrf.mxu1 }
 0xd06   :  { %v16896_v61 = vadd.f32 %v2686_v12, %v1891_v55 }
 0xd07   :  { %v14579_v20 = vpop.f32.mrf.mxu1 }
 0xd09   :  { %v2689_v5 = vpop.f32.mrf.mxu1 }
 0xd0a   :  { %v16900_v29 = vadd.f32 %v2689_v5, %v1894_v56 }
 0xd0b   :  { %v14580_v16 = vpop.f32.mrf.mxu1 }
 0xd17   :  { %v2694_v14 = vpop.f32.mrf.mxu1 }
 0xd18   :  { %v16904_v19 = vadd.f32 %v2694_v14, %v1899_v15 }
 0xd19   :  { %v14583_v22 = vpop.f32.mrf.mxu1 }
 0xd1b   :  { %v2697_v41 = vpop.f32.mrf.mxu1 }
 0xd1c   :  { %v16908_v10 = vadd.f32 %v2697_v41, %v1902_v32 }
 0xd1d   :  { %v14584_v11 = vpop.f32.mrf.mxu1 }
 0xd1f   :  { %v2702_v31 = vpop.f32.mrf.mxu1 }
 0xd20   :  { %v16912_v9 = vadd.f32 %v2702_v31, %v1907_v38 }
 0xd21   :  { %v14587_v46 = vpop.f32.mrf.mxu1 }
 0xd23   :  { %v2705_v18 = vpop.f32.mrf.mxu1 }
 0xd25   :  { %v14588_v42 = vpop.f32.mrf.mxu1 }
 0xd27   :  { %v2853_v43 = vpop.f32.mrf.mxu1 }
 0xd28   :  { %v2854_v45 = vadd.f32 %v12148_v48, %v2853_v43 }
 0xd29   :  { %v14611_v2 = vpop.f32.mrf.mxu1 }
 0xd2b   :  { %v2856_v59 = vpop.f32.mrf.mxu1 }
 0xd2c   :  { %v2857_v57 = vadd.f32 %v12148_v48, %v2856_v59 }
 0xd2d   :  { %v14612_v35 = vpop.f32.mrf.mxu1 }
 0xd2f   :  { %v2861_v49 = vpop.f32.mrf.mxu1 }
 0xd30   :  { %v2862_v62 = vadd.f32 %v12148_v48, %v2861_v49 }
 0xd31   :  { %v14615_v39 = vpop.f32.mrf.mxu1 }
 0xd32   :  { %14638 = vmatpush3.xpose.msk.msra.mxu1 %vm560_vm7, %v2862_v62  ;;  %v3191_v55 = vrot.slane %v2862_v62, 1 }
 0xd33   :  { %v2864_v1 = vpop.f32.mrf.mxu1  ;;  %14639 = vmatprep.subr.mxu1 %v19691_v63 }
 0xd34   :  { %v2865_v4 = vadd.f32 %v12148_v48, %v2864_v1 }
 0xd35   :  { %v14616_v47 = vpop.f32.mrf.mxu1 }
 0xd36   :  { %14640 = vmatpush3.xpose.msk.msra.mxu1 %vm560_vm7, %v2857_v57  ;;  %v3192_v25 = vrot.slane %v2865_v4, 1 }
 0xd37   :  { %v2869_v44 = vpop.f32.mrf.mxu1  ;;  %14641 = vmatprep.subr.mxu1 %v19691_v63 }
 0xd38   :  { %v2870_v50 = vadd.f32 %v12148_v48, %v2869_v44  ;;  %v3193_v12 = vsel %vm791_vm8, %v3191_v55, %v3192_v25 }
 0xd39   :  { %v14619_v58 = vpop.f32.mrf.mxu1 }
 0xd3a   :  { %14642 = vmatpush3.xpose.msk.msra.mxu1 %vm560_vm7, %v2854_v45  ;;  %v3194_v53 = vrot.slane %v2870_v50, 1 }
 0xd3b   :  { %v2872_v52 = vpop.f32.mrf.mxu1  ;;  %14667 = vmatprep.subr.mxu1 %v19691_v63 }
 0xd3c   :  { %v3195_v54 = vsel %vm791_vm8, %v3192_v25, %v3194_v53 }
 0xd3d   :  { %v14620_v6 = vpop.f32.mrf.mxu1  ;;  %14644 = vmatmul.mubr.msk.f32.vlgmr.msra.gmra.mxu1 %vm560_vm7, %v2773_v51 }
 0xd3e   :  { %14668 = vmatpush3.xpose.msk.msra.mxu1 %vm560_vm7, %v3194_v53  ;;  %14646 = vmatprep.mubr.msk.f32.mxu1 %vm15900_vm6, %v19691_v63 }
 0xd3f   :  { %14669 = vmatprep.subr.mxu1 %v19691_v63 }
 0xd41   :  { %14647 = vmatmul.mubr.msk.f32.gmra.mxu1 %vm560_vm7, %v2776_v30 }
 0xd42   :  { %14670 = vmatpush3.xpose.msk.msra.mxu1 %vm560_vm7, %v3195_v54  ;;  %14649 = vmatprep.mubr.msk.f32.mxu1 %vm15900_vm6, %v19691_v63 }
 0xd43   :  { %14671 = vmatprep.subr.mxu1 %v19691_v63 }
 0xd45   :  { %14650 = vmatmul.mubr.msk.f32.gmra.mxu1 %vm560_vm7, %v16848_v37 }
 0xd46   :  { %14672 = vmatpush3.xpose.msk.msra.mxu1 %vm560_vm7, %v3193_v12  ;;  %14673 = vmatprep.mubr.msk.f32.mxu1 %vm15900_vm6, %v19691_v63 }
 0xd47   :  { %14697 = vmatprep.subr.bf16.mxu1 %v19691_v63 }
 0xd49   :  { %14674 = vmatmul.mubr.msk.f32.vlgmr.msra.gmra.mxu1 %vm560_vm7, %v16857_v36 }
 0xd4a   :  { %14676 = vmatprep.mubr.msk.f32.mxu1 %vm15900_vm6, %v19691_v63 }
 0xd4d   :  { %14677 = vmatmul.mubr.msk.f32.gmra.mxu1 %vm560_vm7, %v16866_v40 }
 0xd4e   :  { %14679 = vmatprep.mubr.msk.f32.mxu1 %vm15900_vm6, %v19691_v63 }
 0xd51   :  { %14680 = vmatmul.mubr.msk.f32.gmra.mxu1 %vm560_vm7, %v3187_v13 }
 0xd52   :  { %14699 = vmatprep.mubr.msk.bf16.mxu1 %vm15900_vm6, %v19691_v63 }
 0xdfd   :  { %v3040_v3 = vpop.f32.mrf.mxu1 }
 0xdfe   :  { %v3054_v0 = vmul.f32 0.35355338, %v3040_v3 }
 0xdff   :  { %v14645_v37 = vpop.f32.mrf.mxu1 }
 0xe00   :  { %v3057_v36 = vsel %vm662_vm9, %v3054_v0, -inf }
 0xe01   :  { %3058 = vmax.xlane.f32.xlu0 %v3057_v36  ;;  %v3045_v20 = vpop.f32.mrf.mxu1 }
 0xe02   :  { %v3055_v56 = vmul.f32 0.35355338, %v3045_v20 }
 0xe03   :  { %v14648_v5 = vpop.f32.mrf.mxu1 }
 0xe04   :  { %v3060_v40 = vsel %vm662_vm9, %v3055_v56, -inf }
 0xe05   :  { %3061 = vmax.xlane.f32.xlu1 %v3060_v40  ;;  %v3050_v16 = vpop.f32.mrf.mxu1 }
 0xe06   :  { %v3056_v15 = vmul.f32 0.35355338, %v3050_v16 }
 0xe07   :  { %v14651_v23 = vpop.f32.mrf.mxu1 }
 0xe08   :  { %v3063_v13 = vsel %vm669_vm10, %v3056_v15, -inf }
 0xe09   :  { %3064 = vmax.xlane.f32.xlu0 %v3063_v13  ;;  %v3274_v14 = vpop.f32.mrf.mxu1 }
 0xe0a   :  { %v3288_v22 = vmul.f32 0.35355338, %v3274_v14 }
 0xe0b   :  { %v14675_v32 = vpop.f32.mrf.mxu1 }
 0xe0c   :  { %v3291_v41 = vsel %vm662_vm9, %v3288_v22, -inf }
 0xe0d   :  { %3292 = vmax.xlane.f32.xlu1 %v3291_v41  ;;  %v3279_v11 = vpop.f32.mrf.mxu1 }
 0xe0e   :  { %v3289_v38 = vmul.f32 0.35355338, %v3279_v11 }
 0xe0f   :  { %v14678_v31 = vpop.f32.mrf.mxu1 }
 0xe10   :  { %v3294_v46 = vsel %vm662_vm9, %v3289_v38, -inf }
 0xe11   :  { %3295 = vmax.xlane.f32.xlu0 %v3294_v46  ;;  %v3284_v18 = vpop.f32.mrf.mxu1 }
 0xe12   :  { %v3290_v42 = vmul.f32 0.35355338, %v3284_v18 }
 0xe13   :  { %v14681_v43 = vpop.f32.mrf.mxu1 }
 0xe14   :  { %v3297_v2 = vsel %vm669_vm10, %v3290_v42, -inf }
 0xe15   :  { %3298 = vmax.xlane.f32.xlu1 %v3297_v2 }
 0xe8a   :  { %v3059_v59 = vpop.xlane.xlu0 %3058 }
 0xe8b   :  { %v3066_v35 = vsub.f32 %v3054_v0, %v3059_v59 }
 0xe8d   :  { %v3069_v48 = vmul.f32 1.442695, %v3066_v35 }
 0xe8e   :  { %v3062_v49 = vpop.xlane.xlu1 %3061 }
 0xe8f   :  { %15701 = vpow2.f32 %v3069_v48  ;;  %v3067_v62 = vsub.f32 %v3055_v56, %v3062_v49 }
 0xe91   :  { %v3071_v39 = vmul.f32 1.442695, %v3067_v62 }
 0xe92   :  { %v3065_v1 = vpop.xlane.xlu0 %3064 }
 0xe93   :  { %15703 = vpow2.f32 %v3071_v39  ;;  %v3068_v57 = vsub.f32 %v3056_v15, %v3065_v1 }
 0xe95   :  { %v3073_v47 = vmul.f32 1.442695, %v3068_v57 }
 0xe96   :  { %v3293_v44 = vpop.xlane.xlu1 %3292 }
 0xe97   :  { %15705 = vpow2.f32 %v3073_v47  ;;  %v3300_v45 = vsub.f32 %v3288_v22, %v3293_v44 }
 0xe99   :  { %v3303_v50 = vmul.f32 1.442695, %v3300_v45 }
 0xe9a   :  { %v3296_v58 = vpop.xlane.xlu0 %3295 }
 0xe9b   :  { %15707 = vpow2.f32 %v3303_v50  ;;  %v3301_v51 = vsub.f32 %v3289_v38, %v3296_v58 }
 0xe9c   :  { %v15702_v4 = vpop.eup %15701 }
 0xe9d   :  { %v3305_v52 = vmul.f32 1.442695, %v3301_v51  ;;  %v3075_v53 = vsel %vm662_vm9, %v15702_v4, 0.0 }
 0xe9e   :  { %3076 = vadd.xlane.f32.xlu0 %v3075_v53  ;;  %v3299_v6 = vpop.xlane.xlu1 %3298 }
 0xe9f   :  { %15709 = vpow2.f32 %v3305_v52  ;;  %v3302_v30 = vsub.f32 %v3290_v42, %v3299_v6  ;;  %v12185_v42 = vld [vmem:[%s19670_s12 + $0xc] sm:$0xf] }
 0xea0   :  { %v15704_v25 = vpop.eup %15703  ;;  %v3451_v43 = vsel %vm102_vm0, %v12185_v42, 0 }
 0xea1   :  { %v3307_v54 = vmul.f32 1.442695, %v3302_v30  ;;  %v3078_v55 = vsel %vm662_vm9, %v15704_v25, 0.0  ;;  %14698 = vmatpush3.bf16.msra.mxu1 %v3451_v43 }
 0xea2   :  { %3079 = vadd.xlane.f32.xlu1 %v3078_v55 }
 0xea3   :  { %15711 = vpow2.f32 %v3307_v54 }
 0xea4   :  { %v15706_v12 = vpop.eup %15705 }
 0xea5   :  { %v3081_v3 = vsel %vm669_vm10, %v15706_v12, 0.0 }
 0xea6   :  { %3082 = vadd.xlane.f32.xlu0 %v3081_v3 }
 0xea8   :  { %v15708_v0 = vpop.eup %15707 }
 0xea9   :  { %v3309_v37 = vsel %vm662_vm9, %v15708_v0, 0.0 }
 0xeaa   :  { %3310 = vadd.xlane.f32.xlu1 %v3309_v37 }
 0xeac   :  { %v15710_v36 = vpop.eup %15709 }
 0xead   :  { %v3312_v20 = vsel %vm662_vm9, %v15710_v36, 0.0 }
 0xeae   :  { %3313 = vadd.xlane.f32.xlu0 %v3312_v20 }
 0xeb0   :  { %v15712_v56 = vpop.eup %15711 }
 0xeb1   :  { %v3315_v5 = vsel %vm669_vm10, %v15712_v56, 0.0 }
 0xeb2   :  { %3316 = vadd.xlane.f32.xlu1 %v3315_v5 }
 0xf27   :  { %v3077_v40 = vpop.xlane.xlu0 %3076 }
 0xf28   :  { %15713 = vrcp.f32 %v3077_v40 }
 0xf2b   :  { %v3080_v16 = vpop.xlane.xlu1 %3079 }
 0xf2c   :  { %15715 = vrcp.f32 %v3080_v16 }
 0xf2f   :  { %v3083_v15 = vpop.xlane.xlu0 %3082 }
 0xf30   :  { %15717 = vrcp.f32 %v3083_v15 }
 0xf33   :  { %v3311_v23 = vpop.xlane.xlu1 %3310 }
 0xf34   :  { %15719 = vrcp.f32 %v3311_v23 }
 0xf35   :  { %v15714_v13 = vpop.eup %15713 }
 0xf36   :  { %v3087_v14 = vmul.f32 %v15714_v13, %v15702_v4 }
 0xf37   :  { %v3314_v22 = vpop.xlane.xlu0 %3313 }
 0xf38   :  { %15721 = vrcp.f32 %v3314_v22  ;;  %14659 = vmatmul.mubr.msk.f32.vlgmr.msra.gmra.mxu0 %vm662_vm9, %v3087_v14 }
 0xf39   :  { %v15716_v32 = vpop.eup %15715  ;;  %14683 = vmatpush3.msk.msra.mxu0 %vm194_vm3, %v3329_v60  ;;  %14661 = vmatprep.mubr.msk.f32.mxu0 %vm15900_vm6, %v19691_v63 }
 0xf3a   :  { %14684 = vmatprep.subr.mxu0 %v19691_v63  ;;  %v3088_v41 = vmul.f32 %v15716_v32, %v15704_v25 }
 0xf3b   :  { %14685 = vmatpush3.msra.mxu0 %v16892_v17  ;;  %v3317_v11 = vpop.xlane.xlu1 %3316 }
 0xf3c   :  { %14686 = vmatprep.subr.mxu0 %v19691_v63  ;;  %15723 = vrcp.f32 %v3317_v11  ;;  %14662 = vmatmul.mubr.msk.f32.gmra.mxu0 %vm662_vm9, %v3088_v41 }
 0xf3d   :  { %v15718_v38 = vpop.eup %15717  ;;  %14687 = vmatpush3.msra.mxu0 %v16886_v28  ;;  %14664 = vmatprep.mubr.msk.f32.mxu0 %vm15900_vm6, %v19691_v63 }
 0xf3e   :  { %v3089_v21 = vmul.f32 %v15718_v38, %v15706_v12  ;;  %v12189_v12 = vld [vmem:[%s19671_s13] ss:$0 sm:$0xff] }
 0xf40   :  { %14665 = vmatmul.mubr.msk.f32.gmra.mxu0 %vm662_vm9, %v3089_v21 }
 0xf41   :  { %v15720_v60 = vpop.eup %15719  ;;  %14688 = vmatprep.mubr.msk.f32.mxu0 %vm15900_vm6, %v19691_v63 }
 0xf42   :  { %v3321_v17 = vmul.f32 %v15720_v60, %v15708_v0 }
 0xf44   :  { %14689 = vmatmul.mubr.msk.f32.vlgmr.msra.gmra.mxu0 %vm662_vm9, %v3321_v17 }
 0xf45   :  { %v15722_v31 = vpop.eup %15721  ;;  %14691 = vmatprep.mubr.msk.f32.mxu0 %vm15900_vm6, %v19691_v63 }
 0xf46   :  { %v3322_v46 = vmul.f32 %v15722_v31, %v15710_v36 }
 0xf48   :  { %14692 = vmatmul.mubr.msk.f32.gmra.mxu0 %vm662_vm9, %v3322_v46 }
 0xf49   :  { %v15724_v28 = vpop.eup %15723  ;;  %14694 = vmatprep.mubr.msk.f32.mxu0 %vm15900_vm6, %v19691_v63 }
 0xf4a   :  { %v3323_v18 = vmul.f32 %v15724_v28, %v15712_v56 }
 0xf4c   :  { %14695 = vmatmul.mubr.msk.f32.gmra.mxu0 %vm662_vm9, %v3323_v18 }
 0xff8   :  { %v3168_v2 = vpop.f32.mrf.mxu0 }
 0xffa   :  { %v14660_v59 = vpop.f32.mrf.mxu0 }
 0xffc   :  { %v3173_v35 = vpop.f32.mrf.mxu0 }
 0xffd   :  { %v3436_v48 = vpack.c.bf16 %v3173_v35, %v3168_v2 }
 0xffe   :  { %v14663_v49 = vpop.f32.mrf.mxu0 }
 0xfff   :  { %14700 = vmatmul.mubr.msk.bf16.vlgmr.msra.gmra.mxu1 %vm560_vm7, %v3436_v48 }
0x1000   :  { %v3178_v62 = vpop.f32.mrf.mxu0  ;;  %14703 = vmatprep.mubr.msk.bf16.mxu1 %vm15900_vm6, %v19691_v63 }
0x1002   :  { %v14666_v39 = vpop.f32.mrf.mxu0 }
0x1004   :  { %v3410_v1 = vpop.f32.mrf.mxu0 }
0x1005   :  { %v3427_v47 = vrot.slane %v3410_v1, 7 }
0x1006   :  { %v14690_v57 = vpop.f32.mrf.mxu0 }
0x1007   :  { %v3435_v58 = vsel %vm194_vm3, %v3178_v62, %v3427_v47 }
0x1008   :  { %v3415_v44 = vpop.f32.mrf.mxu0 }
0x1009   :  { %v3428_v45 = vrot.slane %v3415_v44, 7 }
0x100a   :  { %v14693_v50 = vpop.f32.mrf.mxu0 }
0x100b   :  { %v3429_v51 = vsel %vm194_vm3, %v3427_v47, %v3428_v45 }
0x100c   :  { %v3437_v4 = vpack.c.bf16 %v3429_v51, %v3435_v58  ;;  %v3420_v52 = vpop.f32.mrf.mxu0 }
0x100d   :  { %v3430_v53 = vrot.slane %v3420_v52, 7 }
0x100e   :  { %v14696_v6 = vpop.f32.mrf.mxu0  ;;  %14704 = vmatmul.mubr.msk.bf16.gmra.mxu1 %vm560_vm7, %v3437_v4 }
0x100f   :  { %14707 = vmatprep.mubr.msk.bf16.mxu1 %vm15900_vm6, %v19691_v63  ;;  %v3431_v30 = vsel %vm194_vm3, %v3428_v45, %v3430_v53  ;;  %v15245_v6 = vld [vmem:[%s19674_s16 + $0x24] ss:$16 sps:$4 sm:$0xff]  }
0x1010   :  { %v3438_v25 = vpack.c.bf16 %v3431_v30, %v3431_v30  ;;  %v15248_v30 = vld [vmem:[%s19674_s16 + $0x2c] ss:$16 sps:$4 sm:$0xff]   ;;  %3714 = vmatprep.subr.bf16.mxu0 %v15245_v6 }
0x1011   :  { %3775 = vmatprep.subr.bf16.mxu1 %v15248_v30 }
0x1016   :  { %14708 = vmatmul.mubr.msk.bf16.gmra.mxu1 %vm560_vm7, %v3438_v25  ;;  %v15243_v25 = vld [vmem:[%s19674_s16 + $0x20] ss:$16 sps:$4 sm:$0xff]  }
0x1017   :  { %3715 = vmatpush1.bf16.msra.mxu0 %v15243_v25  ;;  %v15268_v25 = vld [vmem:[%s19676_s18 + $0x1f8] sm:$0xff]  }
0x10bf   :  { %v3487_v54 = vpop.f32.mrf.mxu1 }
0x10c0   :  { %v3509_v55 = vadd.f32 %v3487_v54, %v16896_v61  ;;  %v15246_v54 = vld [vmem:[%s19674_s16 + $0x28] ss:$16 sps:$4 sm:$0xff]  }
0x10c1   :  { %v14701_v3 = vpop.f32.mrf.mxu1  ;;  %3776 = vmatpush1.bf16.msra.mxu1 %v15246_v54  ;;  %v15269_v54 = vld [vmem:[%s19676_s18 + $0x138] sm:$0xff]  }
0x10c2   :  { %v3514_v0 = vadd.f32 %v3509_v55, %v16073_v26  ;;  %v15251_v55 = vld [vmem:[%s19674_s16 + $0x4] ss:$16 sps:$4 sm:$0xff]   ;;  %v15249_v3 = vld [vmem:[%s19674_s16] ss:$16 sps:$4 sm:$0xff]  }
0x10c3   :  { %v3490_v37 = vpop.f32.mrf.mxu1  ;;  %3716 = vmatprep.subr.bf16.mxu0 %v15251_v55  ;;  %v15270_v55 = vld [vmem:[%s19676_s18 + $0x1b8] sm:$0xff]  }
0x10c4   :  { %v17012_v36 = vadd.f32 %v12189_v12, %v3514_v0  ;;  %v3510_v20 = vadd.f32 %v3490_v37, %v16900_v29  ;;  %v15252_v0 = vld [vmem:[%s19674_s16 + $0x8] ss:$16 sps:$4 sm:$0xff]   ;;  %3717 = vmatpush1.bf16.msra.mxu0 %v15249_v3  ;;  %v19693_v37 = vmov 0   ;;  %v15272_v3 = vld [vmem:[%s19676_s18 + $0x1f0] sm:$0xff]  }
0x10c5   :  { %v14702_v56 = vpop.f32.mrf.mxu1  ;;  %3734 = vmatprep.mubr.bf16.mxu0 %v19693_v37  ;;  %3795 = vmatprep.mubr.bf16.mxu1 %v19693_v37 }
0x10c6   :  { %v3515_v5 = vadd.f32 %v3510_v20, %v16076_v27  ;;  %v3533_v40 = vsel %vm221_vm2, %v17012_v36, 0.0  ;;  %v15257_v20 = vld [vmem:[%s19674_s16 + $0x64] ss:$16 sps:$4 sm:$0xff]   ;;  %v15260_v56 = vld [vmem:[%s19674_s16 + $0x6c] ss:$16 sps:$4 sm:$0xff]  }
0x10c7   :  { %3534 = vadd.xlane.f32.xlu0 %v3533_v40  ;;  %4004 = vmatprep.subr.bf16.mxu0 %v15257_v20  ;;  %v15274_v20 = vld [vmem:[%s19676_s18 + $0x1b0] sm:$0xff]  }
0x10c8   :  { %v17018_v61 = vadd.f32 %v12189_v12, %v3515_v5 }
0x10ca   :  { %v3536_v16 = vsel %vm221_vm2, %v17018_v61, 0.0 }
0x10cb   :  { %3537 = vadd.xlane.f32.xlu1 %v3536_v16 }
0x10ce   :  { %v3495_v15 = vpop.f32.mrf.mxu1 }
0x10cf   :  { %v3511_v26 = vadd.f32 %v3495_v15, %v16904_v19 }
0x10d0   :  { %v14705_v23 = vpop.f32.mrf.mxu1 }
0x10d1   :  { %v3516_v13 = vadd.f32 %v3511_v26, %v16086_v33 }
0x10d2   :  { %v3498_v29 = vpop.f32.mrf.mxu1 }
0x10d3   :  { %v17024_v14 = vadd.f32 %v12189_v12, %v3516_v13  ;;  %v3512_v27 = vadd.f32 %v3498_v29, %v16908_v10 }
0x10d4   :  { %v14706_v22 = vpop.f32.mrf.mxu1 }
0x10d5   :  { %v3517_v32 = vadd.f32 %v3512_v27, %v16090_v34  ;;  %v3539_v41 = vsel %vm221_vm2, %v17024_v14, 0.0 }
0x10d6   :  { %3540 = vadd.xlane.f32.xlu0 %v3539_v41  ;;  %v3503_v11 = vpop.f32.mrf.mxu1 }
0x10d7   :  { %v17030_v38 = vadd.f32 %v12189_v12, %v3517_v32  ;;  %v3513_v19 = vadd.f32 %v3503_v11, %v16912_v9  ;;  %v12190_v11 = vld [vmem:[%s19672_s14] ss:$0 sm:$0xff] }
0x10d8   :  { %v14709_v21 = vpop.f32.mrf.mxu1 }
0x10d9   :  { %v3518_v33 = vadd.f32 %v3513_v19, %v16070_v24  ;;  %v3542_v60 = vsel %vm221_vm2, %v17030_v38, 0.0 }
0x10da   :  { %3543 = vadd.xlane.f32.xlu1 %v3542_v60  ;;  %v3506_v10 = vpop.f32.mrf.mxu1 }
0x10db   :  { %v17036_v17 = vadd.f32 %v12189_v12, %v3518_v33  ;;  %v15254_v12 = vld [vmem:[%s19674_s16 + $0xc] ss:$16 sps:$4 sm:$0xff]  }
0x10dc   :  { %v14710_v34 = vpop.f32.mrf.mxu1  ;;  %3777 = vmatprep.subr.bf16.mxu1 %v15254_v12  ;;  %v15271_v12 = vld [vmem:[%s19676_s18 + $0x170] sm:$0xff]  }
0x10dd   :  { %19714 = vst [vmem:[#allocation8_spill] sm:$0xff] %v17036_v17  ;;  %v3545_v31 = vsel %vm234_vm4, %v17036_v17, 0.0  ;;  %3778 = vmatpush1.bf16.msra.mxu1 %v15252_v0  ;;  %v15273_v0 = vld [vmem:[%s19676_s18 + $0x130] sm:$0xff]  }
0x10de   :  { %3546 = vadd.xlane.f32.xlu0 %v3545_v31  ;;  %4065 = vmatprep.subr.bf16.mxu1 %v15260_v56  ;;  %v12191_v31 = vld [vmem:[%s19673_s15] ss:$0 sm:$0xff]  ;;  %v15275_v56 = vld [vmem:[%s19676_s18 + $0x168] sm:$0xff]  }
0x1150   :  { %v3535_v46 = vpop.xlane.xlu0 %3534 }
0x1151   :  { %v3548_v28 = vmul.f32 0.03125, %v3535_v46 }
0x1153   :  { %v17041_v18 = vsub.f32 %v17012_v36, %v3548_v28 }
0x1154   :  { %v3538_v9 = vpop.xlane.xlu1 %3537 }
0x1155   :  { %v3549_v42 = vmul.f32 0.03125, %v3538_v9  ;;  %v3558_v24 = vmul.f32 %v17041_v18, %v17041_v18 }
0x1157   :  { %v17046_v43 = vsub.f32 %v17018_v61, %v3549_v42  ;;  %v3563_v2 = vsel %vm221_vm2, %v3558_v24, 0.0 }
0x1158   :  { %3564 = vadd.xlane.f32.xlu1 %v3563_v2  ;;  %v15255_v2 = vld [vmem:[%s19674_s16 + $0x60] ss:$16 sps:$4 sm:$0xff]  }
0x1159   :  { %v3559_v59 = vmul.f32 %v17046_v43, %v17046_v43 }
0x115b   :  { %v3566_v35 = vsel %vm221_vm2, %v3559_v59, 0.0  ;;  %v15263_v59 = vld [vmem:[%s19674_s16 + $0x44] ss:$16 sps:$4 sm:$0xff]  }
0x115c   :  { %3567 = vadd.xlane.f32.xlu0 %v3566_v35  ;;  %v15266_v35 = vld [vmem:[%s19674_s16 + $0x4c] ss:$16 sps:$4 sm:$0xff]  }
0x115f   :  { %v3541_v48 = vpop.xlane.xlu0 %3540 }
0x1160   :  { %v3550_v49 = vmul.f32 0.03125, %v3541_v48 }
0x1162   :  { %v17053_v62 = vsub.f32 %v17024_v14, %v3550_v49  ;;  %v15261_v49 = vld [vmem:[%s19674_s16 + $0x40] ss:$16 sps:$4 sm:$0xff]  }
0x1163   :  { %v3544_v39 = vpop.xlane.xlu1 %3543 }
0x1164   :  { %v3551_v1 = vmul.f32 0.03125, %v3544_v39  ;;  %v3560_v57 = vmul.f32 %v17053_v62, %v17053_v62  ;;  %v15264_v39 = vld [vmem:[%s19674_s16 + $0x48] ss:$16 sps:$4 sm:$0xff]  }
0x1166   :  { %v17058_v47 = vsub.f32 %v17030_v38, %v3551_v1  ;;  %v3569_v44 = vsel %vm221_vm2, %v3560_v57, 0.0 }
0x1167   :  { %3570 = vadd.xlane.f32.xlu1 %v3569_v44  ;;  %v3547_v45 = vpop.xlane.xlu0 %3546 }
0x1168   :  { %v3552_v50 = vmul.f32 0.03125, %v3547_v45  ;;  %v3561_v58 = vmul.f32 %v17058_v47, %v17058_v47 }
0x116a   :  { %v17064_v51 = vsub.f32 %v17036_v17, %v3552_v50  ;;  %v3572_v4 = vsel %vm221_vm2, %v3561_v58, 0.0 }
0x116b   :  { %3573 = vadd.xlane.f32.xlu0 %v3572_v4 }
0x116c   :  { %v3562_v52 = vmul.f32 %v17064_v51, %v17064_v51 }
0x116e   :  { %v3575_v53 = vsel %vm234_vm4, %v3562_v52, 0.0 }
0x116f   :  { %3576 = vadd.xlane.f32.xlu1 %v3575_v53 }
0x11e1   :  { %v3565_v5 = vpop.xlane.xlu1 %3564 }
0x11e2   :  { %v3578_v40 = vmul.f32 0.03125, %v3565_v5  ;;  %v15276_v5 = vld [vmem:[%s19676_s18 + $0x1e8] sm:$0xff]  }
0x11e4   :  { %v3583_v16 = vadd.f32 1e-05, %v3578_v40  ;;  %v15277_v40 = vld [vmem:[%s19676_s18 + $0x128] sm:$0xff]  }
0x11e5   :  { %v3568_v15 = vpop.xlane.xlu0 %3567 }
0x11e6   :  { %15725 = vrsqrt.f32 %v3583_v16  ;;  %v3579_v26 = vmul.f32 0.03125, %v3568_v15  ;;  %v15278_v16 = vld [vmem:[%s19676_s18 + $0x1a8] sm:$0xff]   ;;  %v15279_v15 = vld [vmem:[%s19676_s18 + $0x160] sm:$0xff]  }
0x11e8   :  { %v3584_v23 = vadd.f32 1e-05, %v3579_v26  ;;  %v15280_v26 = vld [vmem:[%s19676_s18 + $0x1e0] sm:$0xff]  }
0x11ea   :  { %15727 = vrsqrt.f32 %v3584_v23  ;;  %v15281_v23 = vld [vmem:[%s19676_s18 + $0x120] sm:$0xff]  }
0x11f0   :  { %v3571_v13 = vpop.xlane.xlu1 %3570 }
0x11f1   :  { %v3580_v29 = vmul.f32 0.03125, %v3571_v13  ;;  %v15282_v13 = vld [vmem:[%s19676_s18 + $0x1a0] sm:$0xff]  }
0x11f3   :  { %v15726_v27 = vpop.eup %15725  ;;  %v3585_v22 = vadd.f32 1e-05, %v3580_v29  ;;  %v15283_v29 = vld [vmem:[%s19676_s18 + $0x158] sm:$0xff]  }
0x11f4   :  { %v3593_v32 = vmul.f32 %v15726_v27, %v17041_v18  ;;  %v3574_v41 = vpop.xlane.xlu0 %3573  ;;  %v15284_v27 = vld [vmem:[%s19676_s18 + $0x1d8] sm:$0xff]  }
0x11f5   :  { %15729 = vrsqrt.f32 %v3585_v22  ;;  %v3581_v19 = vmul.f32 0.03125, %v3574_v41  ;;  %v15285_v22 = vld [vmem:[%s19676_s18 + $0x118] sm:$0xff]   ;;  %v15287_v41 = vld [vmem:[%s19676_s18 + $0x150] sm:$0xff]  }
0x11f6   :  { %v3604_v60 = vmul.f32 %v12190_v11, %v3593_v32  ;;  %v15286_v32 = vld [vmem:[%s19676_s18 + $0x198] sm:$0xff]  }
0x11f7   :  { %v15728_v21 = vpop.eup %15727  ;;  %v3586_v33 = vadd.f32 1e-05, %v3581_v19  ;;  %v15289_v19 = vld [vmem:[%s19676_s18 + $0x110] sm:$0xff]  }
0x11f8   :  { %v3594_v10 = vmul.f32 %v15728_v21, %v17046_v43  ;;  %v3577_v34 = vpop.xlane.xlu1 %3576  ;;  %v3615_v9 = vadd.f32 %v12191_v31, %v3604_v60  ;;  %v15258_v43 = vld [vmem:[%s19674_s16 + $0x68] ss:$16 sps:$4 sm:$0xff]   ;;  %v15290_v21 = vld [vmem:[%s19676_s18 + $0x190] sm:$0xff]  }
0x11f9   :  { %15731 = vrsqrt.f32 %v3586_v33  ;;  %v3582_v46 = vmul.f32 0.03125, %v3577_v34  ;;  %v15291_v33 = vld [vmem:[%s19676_s18 + $0x148] sm:$0xff]  }
0x11fa   :  { %v3605_v28 = vmul.f32 %v12190_v11, %v3594_v10  ;;  %v15292_v60 = vld [vmem:[%s19676_s18 + $0x1c8] sm:$0xff]  }
0x11fb   :  { %v3587_v18 = vadd.f32 1e-05, %v3582_v46  ;;  %v15293_v10 = vld [vmem:[%s19676_s18 + $0x108] sm:$0xff]   ;;  %v15296_v46 = vld [vmem:[%s19676_s18 + $0x1c0] sm:$0xff]  }
0x11fc   :  { %v3616_v42 = vadd.f32 %v12191_v31, %v3605_v28  ;;  %v15294_v34 = vld [vmem:[%s19676_s18 + $0x188] sm:$0xff]   ;;  %v15297_v28 = vld [vmem:[%s19676_s18 + $0x100] sm:$0xff]  }
0x11fd   :  { %15733 = vrsqrt.f32 %v3587_v18  ;;  %v15298_v18 = vld [vmem:[%s19676_s18 + $0x180] sm:$0xff]  }
0x11fe   :  { %v17110_v24 = vpack.c.bf16 %v3616_v42, %v3615_v9  ;;  %v15299_v9 = vld [vmem:[%s19676_s18 + $0x78] sm:$0xff]  }
0x11ff   :  { %v15300_v42 = vld [vmem:[%s19676_s18 + $0xf8] sm:$0xff]  }
0x1200   :  { %12200 = vmatmul.mubr.msk.bf16.vlgmr.msra.gmra.mxu0 %vm221_vm2, %v17110_v24  ;;  %12203 = vmatmul.mubr.msk.bf16.vlgmr.msra.gmra.mxu1 %vm221_vm2, %v17110_v24 }
0x1201   :  { %3744 = vmatprep.mubr.bf16.mxu0 %v19693_v37  ;;  %3805 = vmatprep.mubr.bf16.mxu1 %v19693_v37 }
0x1202   :  { %v15730_v48 = vpop.eup %15729  ;;  %4005 = vmatpush1.bf16.msra.mxu0 %v15255_v2  ;;  %4066 = vmatpush1.bf16.msra.mxu1 %v15258_v43 }
0x1203   :  { %v3595_v1 = vmul.f32 %v15730_v48, %v17053_v62  ;;  %4006 = vmatprep.subr.bf16.mxu0 %v15263_v59  ;;  %4067 = vmatprep.subr.bf16.mxu1 %v15266_v35 }
0x1205   :  { %v3606_v44 = vmul.f32 %v12190_v11, %v3595_v1 }
0x1206   :  { %v15732_v57 = vpop.eup %15731  ;;  %4007 = vmatpush1.bf16.msra.mxu0 %v15261_v49  ;;  %4068 = vmatpush1.bf16.msra.mxu1 %v15264_v39 }
0x1207   :  { %v3596_v45 = vmul.f32 %v15732_v57, %v17058_v47  ;;  %v3617_v4 = vadd.f32 %v12191_v31, %v3606_v44  ;;  %13526 = vmatprep.subr.bf16.mxu1 %v15268_v25 }
0x1209   :  { %v3607_v50 = vmul.f32 %v12190_v11, %v3596_v45 }
0x120a   :  { %v15734_v58 = vpop.eup %15733 }
0x120b   :  { %v3618_v52 = vadd.f32 %v12191_v31, %v3607_v50  ;;  %v3597_v53 = vmul.f32 %v15734_v58, %v17064_v51  ;;  %v15267_v51 = vld [vmem:[%s19676_s18 + $0x178] sm:$0xff]  }
0x120c   :  { %13492 = vmatprep.subr.bf16.mxu0 %v15267_v51 }
0x120d   :  { %v17139_v6 = vpack.c.bf16 %v3618_v52, %v3617_v4  ;;  %v3608_v30 = vmul.f32 %v12190_v11, %v3597_v53  ;;  %v15288_v11 = vld [vmem:[%s19676_s18 + $0x1d0] sm:$0xff]  }
0x120f   :  { %12201 = vmatmul.mubr.msk.bf16.gmra.mxu0 %vm221_vm2, %v17139_v6  ;;  %12204 = vmatmul.mubr.msk.bf16.gmra.mxu1 %vm221_vm2, %v17139_v6  ;;  %v3619_v62 = vadd.f32 %v12191_v31, %v3608_v30  ;;  %v15295_v31 = vld [vmem:[%s19676_s18 + $0x140] sm:$0xff]  }
0x1210   :  { %3754 = vmatprep.mubr.bf16.mxu0 %v19693_v37  ;;  %3815 = vmatprep.mubr.bf16.mxu1 %v19693_v37 }
0x1211   :  { %v17147_v47 = vpack.c.bf16 %v3619_v62, %v3619_v62 }
0x1217   :  { %12202 = vmatmul.mubr.msk.bf16.gmra.mxu0 %vm221_vm2, %v17147_v47  ;;  %12205 = vmatmul.mubr.msk.bf16.gmra.mxu1 %vm221_vm2, %v17147_v47 }
0x1218   :  { %4024 = vmatprep.mubr.bf16.mxu0 %v19693_v37  ;;  %4085 = vmatprep.mubr.bf16.mxu1 %v19693_v37 }
0x121f   :  { %12223 = vmatmul.mubr.msk.bf16.vlgmr.msra.gmra.mxu0 %vm221_vm2, %v17110_v24  ;;  %12226 = vmatmul.mubr.msk.bf16.vlgmr.msra.gmra.mxu1 %vm221_vm2, %v17110_v24 }
0x1220   :  { %4034 = vmatprep.mubr.bf16.mxu0 %v19693_v37  ;;  %4095 = vmatprep.mubr.bf16.mxu1 %v19693_v37 }
0x1221   :  { %13493 = vmatpush3.bf16.msra.mxu0 %v15269_v54  ;;  %13527 = vmatpush3.bf16.msra.mxu1 %v15270_v55 }
0x1222   :  { %13494 = vmatprep.subr.bf16.mxu0 %v15271_v12  ;;  %13528 = vmatprep.subr.bf16.mxu1 %v15272_v3 }
0x1225   :  { %13495 = vmatpush3.bf16.msra.mxu0 %v15273_v0  ;;  %13529 = vmatpush3.bf16.msra.mxu1 %v15274_v20  ;;  %v17314_v0 = vsub.s32 1, %v16049_v7  ;;  %v17317_v20 = vsub.s32 3, %v16049_v7 }
0x1226   :  { %13496 = vmatprep.subr.bf16.mxu0 %v15275_v56  ;;  %13530 = vmatprep.subr.bf16.mxu1 %v15276_v5  ;;  %v12214_v56 = vld [vmem:[%s19675_s17 + $0x4] sm:$0xf]  ;;  %v17323_v5 = vsub.s32 2, %v16049_v7 }
0x1227   :  { %12224 = vmatmul.mubr.msk.bf16.gmra.mxu0 %vm221_vm2, %v17139_v6  ;;  %12227 = vmatmul.mubr.msk.bf16.gmra.mxu1 %vm221_vm2, %v17139_v6 }
0x1228   :  { %4044 = vmatprep.mubr.bf16.mxu0 %v19693_v37  ;;  %4105 = vmatprep.mubr.bf16.mxu1 %v19693_v37 }
0x1229   :  { %13497 = vmatpush3.bf16.msra.mxu0 %v15277_v40  ;;  %13531 = vmatpush3.bf16.msra.mxu1 %v15278_v16 }
0x122a   :  { %13498 = vmatprep.subr.bf16.mxu0 %v15279_v15  ;;  %13532 = vmatprep.subr.bf16.mxu1 %v15280_v26  ;;  %v17326_v15 = vrot.slane %v12214_v56, %v17314_v0  ;;  %v17329_v26 = vrot.slane %v12214_v56, %v17317_v20 }
0x122d   :  { %13499 = vmatpush3.bf16.msra.mxu0 %v15281_v23  ;;  %13533 = vmatpush3.bf16.msra.mxu1 %v15282_v13  ;;  %v17332_v23 = vrot.slane %v12214_v56, %v16052_v8  ;;  %v17335_v13 = vrot.slane %v12214_v56, %v17323_v5 }
0x122e   :  { %13500 = vmatprep.subr.bf16.mxu0 %v15283_v29  ;;  %13534 = vmatprep.subr.bf16.mxu1 %v15284_v27 }
0x122f   :  { %12225 = vmatmul.mubr.msk.bf16.gmra.mxu0 %vm221_vm2, %v17147_v47  ;;  %12228 = vmatmul.mubr.msk.bf16.gmra.mxu1 %vm221_vm2, %v17147_v47 }
0x1231   :  { %13501 = vmatpush3.bf16.msra.mxu0 %v15285_v22  ;;  %13535 = vmatpush3.bf16.msra.mxu1 %v15286_v32 }
0x1232   :  { %13502 = vmatprep.subr.bf16.mxu0 %v15287_v41  ;;  %13536 = vmatprep.subr.bf16.mxu1 %v15288_v11 }
0x1235   :  { %13503 = vmatpush3.bf16.msra.mxu0 %v15289_v19  ;;  %13537 = vmatpush3.bf16.msra.mxu1 %v15290_v21 }
0x1236   :  { %13504 = vmatprep.subr.bf16.mxu0 %v15291_v33  ;;  %13538 = vmatprep.subr.bf16.mxu1 %v15292_v60 }
0x1239   :  { %13505 = vmatpush3.bf16.msra.mxu0 %v15293_v10  ;;  %13539 = vmatpush3.bf16.msra.mxu1 %v15294_v34 }
0x123a   :  { %13506 = vmatprep.subr.bf16.mxu0 %v15295_v31  ;;  %13540 = vmatprep.subr.bf16.mxu1 %v15296_v46 }
0x123d   :  { %13507 = vmatpush3.bf16.msra.mxu0 %v15297_v28  ;;  %13541 = vmatpush3.bf16.msra.mxu1 %v15298_v18 }
0x123e   :  { %13560 = vmatprep.subr.bf16.mxu0 %v15299_v9  ;;  %13594 = vmatprep.subr.bf16.mxu1 %v15300_v42 }
0x12c0   :  { %v17273_v2 = vpop.f32.mrf.mxu0  ;;  %v17275_v43 = vpop.f32.mrf.mxu1 }
0x12c2   :  { %v17277_v59 = vpop.f32.mrf.mxu0  ;;  %v17279_v35 = vpop.f32.mrf.mxu1 }
0x12c4   :  { %v17281_v48 = vpop.f32.mrf.mxu0  ;;  %v17283_v49 = vpop.f32.mrf.mxu1 }
0x12c6   :  { %v17285_v39 = vpop.f32.mrf.mxu0  ;;  %v17287_v1 = vpop.f32.mrf.mxu1 }
0x12cf   :  { %v17289_v57 = vpop.f32.mrf.mxu0  ;;  %v17291_v44 = vpop.f32.mrf.mxu1 }
0x12d1   :  { %v17293_v45 = vpop.f32.mrf.mxu0  ;;  %v17295_v50 = vpop.f32.mrf.mxu1 }
0x12d3   :  { %v17297_v58 = vpop.f32.mrf.mxu0  ;;  %v17299_v4 = vpop.f32.mrf.mxu1 }
0x12d5   :  { %v17301_v52 = vpop.f32.mrf.mxu0  ;;  %v17303_v53 = vpop.f32.mrf.mxu1 }
0x12d7   :  { %v17305_v30 = vpop.f32.mrf.mxu0  ;;  %v17307_v62 = vpop.f32.mrf.mxu1 }
0x12d9   :  { %v17309_v51 = vpop.f32.mrf.mxu0  ;;  %v17311_v25 = vpop.f32.mrf.mxu1 }
0x12db   :  { %v3760_v54 = vpop.f32.mrf.mxu0  ;;  %v3821_v55 = vpop.f32.mrf.mxu1 }
0x12dd   :  { %v3761_v12 = vpop.f32.mrf.mxu0  ;;  %v3822_v3 = vpop.f32.mrf.mxu1 }
0x12df   :  { %v4026_v40 = vpop.f32.mrf.mxu0  ;;  %v4087_v16 = vpop.f32.mrf.mxu1 }
0x12e0   :  { %v4027_v21 = vadd.f32 %v4026_v40, %v17332_v23  ;;  %v4088_v33 = vadd.f32 %v4087_v16, %v17335_v13 }
0x12e1   :  { %v4028_v29 = vpop.f32.mrf.mxu0  ;;  %v4089_v27 = vpop.f32.mrf.mxu1 }
0x12e2   :  { %v4029_v7 = vadd.f32 %v4028_v29, %v17326_v15  ;;  %v4090_v41 = vadd.f32 %v4089_v27, %v17329_v26  ;;  %v4114_v3 = vmax.f32 %v4027_v21, 0.0  ;;  %v4116_v56 = vmax.f32 %v4088_v33, 0.0  ;;  %v15303_v21 = vld [vmem:[%s19676_s18 + $0x70] sm:$0xff]  }
0x12e3   :  { %v4030_v22 = vpop.f32.mrf.mxu0  ;;  %v4091_v32 = vpop.f32.mrf.mxu1  ;;  %v15304_v33 = vld [vmem:[%s19676_s18 + $0xf0] sm:$0xff]  }
0x12e4   :  { %v4031_v11 = vadd.f32 %v4030_v22, %v17332_v23  ;;  %v4092_v19 = vadd.f32 %v4091_v32, %v17335_v13  ;;  %v4115_v42 = vmax.f32 %v4029_v7, 0.0  ;;  %v4117_v54 = vmax.f32 %v4090_v41, 0.0  ;;  %v15301_v22 = vld [vmem:[%s19676_s18 + $0x38] sm:$0xff]  }
0x12e5   :  { %v4032_v60 = vpop.f32.mrf.mxu0  ;;  %v4093_v10 = vpop.f32.mrf.mxu1  ;;  %v15302_v32 = vld [vmem:[%s19676_s18 + $0xb8] sm:$0xff]  }
0x12e6   :  { %v4033_v34 = vadd.f32 %v4032_v60, %v17326_v15  ;;  %v4094_v31 = vadd.f32 %v4093_v10, %v17329_v26  ;;  %v4118_v46 = vmax.f32 %v4031_v11, 0.0  ;;  %v4120_v28 = vmax.f32 %v4092_v19, 0.0 }
0x12e7   :  { %v4036_v18 = vpop.f32.mrf.mxu0  ;;  %v4097_v9 = vpop.f32.mrf.mxu1 }
0x12e8   :  { %v4119_v55 = vmax.f32 %v4033_v34, 0.0  ;;  %v4121_v12 = vmax.f32 %v4094_v31, 0.0  ;;  %v4134_v11 = vpack.c.bf16 %v4118_v46, %v4114_v3  ;;  %v4136_v19 = vpack.c.bf16 %v4120_v28, %v4116_v56  ;;  %v15305_v3 = vld [vmem:[%s19676_s18 + $0x30] sm:$0xff]  }
0x12e9   :  { %v4038_v29 = vpop.f32.mrf.mxu0  ;;  %v4099_v40 = vpop.f32.mrf.mxu1  ;;  %v4037_v31 = vadd.f32 %v4036_v18, %v17332_v23  ;;  %v15306_v18 = vld [vmem:[%s19676_s18 + $0xb0] sm:$0xff]  }
0x12ea   :  { %v4135_v27 = vpack.c.bf16 %v4119_v55, %v4115_v42  ;;  %v4137_v16 = vpack.c.bf16 %v4121_v12, %v4117_v54  ;;  %v4039_v60 = vadd.f32 %v4038_v29, %v17326_v15  ;;  %v4100_v46 = vadd.f32 %v4099_v40, %v17329_v26 }
0x12eb   :  { %v4040_v7 = vpop.f32.mrf.mxu0  ;;  %v4101_v41 = vpop.f32.mrf.mxu1  ;;  %v4098_v54 = vadd.f32 %v4097_v9, %v17335_v13  ;;  %v15307_v9 = vld [vmem:[%s19676_s18 + $0x68] sm:$0xff]  }
0x12ec   :  { %v4041_v10 = vadd.f32 %v4040_v7, %v17332_v23  ;;  %v4102_v34 = vadd.f32 %v4101_v41, %v17335_v13  ;;  %4435 = vmatprep.mubr.bf16.mxu0 %v4135_v27  ;;  %4491 = vmatprep.mubr.bf16.mxu1 %v4137_v16  ;;  %v15308_v27 = vld [vmem:[%s19676_s18 + $0xe8] sm:$0xff]   ;;  %v17380_v16 = vld [vmem:[%s19675_s17] sm:$0xf] }
0x12ed   :  { %v4042_v28 = vpop.f32.mrf.mxu0  ;;  %v4103_v42 = vpop.f32.mrf.mxu1  ;;  %4436 = vmatmul.mubr.bf16.vlgmr.msra.gmra.mxu0 %v4134_v11  ;;  %4492 = vmatmul.mubr.bf16.vlgmr.msra.gmra.mxu1 %v4136_v19  ;;  %v17384_v7 = vrot.slane %v17380_v16, %v17314_v0  ;;  %v17388_v41 = vrot.slane %v17380_v16, %v17317_v20 }
0x12ee   :  { %v4043_v55 = vadd.f32 %v4042_v28, %v17326_v15  ;;  %v4104_v12 = vadd.f32 %v4103_v42, %v17329_v26  ;;  %13561 = vmatpush3.bf16.msra.mxu0 %v15301_v22  ;;  %13595 = vmatpush3.bf16.msra.mxu1 %v15302_v32  ;;  %v4126_v56 = vmax.f32 %v4041_v10, 0.0  ;;  %v4123_v22 = vmax.f32 %v4039_v60, 0.0 }
0x12ef   :  { %v4046_v29 = vpop.f32.mrf.mxu0  ;;  %v4107_v40 = vpop.f32.mrf.mxu1  ;;  %13562 = vmatprep.subr.bf16.mxu0 %v15303_v21  ;;  %13596 = vmatprep.subr.bf16.mxu1 %v15304_v33  ;;  %v4128_v32 = vmax.f32 %v4102_v34, 0.0  ;;  %v4122_v21 = vmax.f32 %v4037_v31, 0.0  ;;  %v4125_v33 = vmax.f32 %v4100_v46, 0.0  ;;  %v4124_v42 = vmax.f32 %v4098_v54, 0.0 }
0x12f0   :  { %v4127_v11 = vmax.f32 %v4043_v55, 0.0  ;;  %v4129_v19 = vmax.f32 %v4104_v12, 0.0  ;;  %v15309_v55 = vld [vmem:[%s19676_s18 + $0x28] sm:$0xff]   ;;  %v4047_v37 = vadd.f32 %v4046_v29, %v17332_v23 }
0x12f1   :  { %v4048_v10 = vpop.f32.mrf.mxu0  ;;  %v4109_v28 = vpop.f32.mrf.mxu1  ;;  %v4138_v12 = vpack.c.bf16 %v4126_v56, %v4122_v21  ;;  %v4140_v54 = vpack.c.bf16 %v4128_v32, %v4124_v42 }
0x12f2   :  { %v4049_v63 = vadd.f32 %v4048_v10, %v17326_v15  ;;  %v4110_v60 = vadd.f32 %v4109_v28, %v17329_v26  ;;  %13563 = vmatpush3.bf16.msra.mxu0 %v15305_v3  ;;  %13597 = vmatpush3.bf16.msra.mxu1 %v15306_v18  ;;  %v4139_v34 = vpack.c.bf16 %v4127_v11, %v4123_v22  ;;  %v15310_v15 = vld [vmem:[%s19676_s18 + $0xa8] sm:$0xff]   ;;  %v15311_v26 = vld [vmem:[%s19676_s18 + $0x60] sm:$0xff]  }
0x12f3   :  { %v4050_v17 = vpop.f32.mrf.mxu0  ;;  %v4111_v31 = vpop.f32.mrf.mxu1  ;;  %v4141_v46 = vpack.c.bf16 %v4129_v19, %v4125_v33  ;;  %13564 = vmatprep.subr.bf16.mxu0 %v15307_v9  ;;  %13598 = vmatprep.subr.bf16.mxu1 %v15308_v27  ;;  %v4108_v3 = vadd.f32 %v4107_v40, %v17335_v13  ;;  %v15312_v9 = vld [vmem:[%s19676_s18 + $0xe0] sm:$0xff]   ;;  %v3804_v27 = vadd.f32 %v17287_v1, %v17388_v41  ;;  %v4130_v13 = vmax.f32 %v4047_v37, 0.0  ;;  %v15315_v1 = vld [vmem:[%s19676_s18 + $0x58] sm:$0xff]  }
0x12f4   :  { %v4131_v18 = vmax.f32 %v4049_v63, 0.0  ;;  %v4133_v56 = vmax.f32 %v4110_v60, 0.0  ;;  %4443 = vmatprep.mubr.bf16.mxu0 %v4139_v34  ;;  %v3743_v17 = vadd.f32 %v17285_v39, %v17384_v7  ;;  %v15313_v63 = vld [vmem:[%s19676_s18 + $0x20] sm:$0xff]   ;;  %v3739_v39 = vadd.f32 %v17277_v59, %v17384_v7  ;;  %v15316_v37 = vld [vmem:[%s19676_s18 + $0xd8] sm:$0xff]   ;;  %v15319_v34 = vld [vmem:[%s19676_s18 + $0x50] sm:$0xff]  }
0x12f5   :  { %4499 = vmatprep.mubr.bf16.mxu1 %v4141_v46  ;;  %v4051_v23 = vpop.f32.mrf.mxu0  ;;  %v4112_v29 = vpop.f32.mrf.mxu1  ;;  %4444 = vmatmul.mubr.bf16.gmra.mxu0 %v4138_v12  ;;  %v15314_v40 = vld [vmem:[%s19676_s18 + $0xa0] sm:$0xff]   ;;  %v3800_v11 = vadd.f32 %v17279_v35, %v17388_v41  ;;  %v4132_v19 = vmax.f32 %v4108_v3, 0.0  ;;  %v3831_v21 = vmax.f32 %v3804_v27, 0.0  ;;  %v15317_v33 = vld [vmem:[%s19676_s18 + $0x18] sm:$0xff]   ;;  %v4142_v28 = vpack.c.bf16 %v4130_v13, %v4130_v13  ;;  %v15320_v12 = vld [vmem:[%s19676_s18 + $0xd0] sm:$0xff]  }
0x12f6   :  { %v4143_v22 = vpack.c.bf16 %v4131_v18, %v4131_v18  ;;  %v4145_v32 = vpack.c.bf16 %v4133_v56, %v4133_v56  ;;  %4500 = vmatmul.mubr.bf16.gmra.mxu1 %v4140_v54  ;;  %13565 = vmatpush3.bf16.msra.mxu0 %v15309_v55  ;;  %v3829_v59 = vmax.f32 %v3743_v17, 0.0  ;;  %v3825_v10 = vmax.f32 %v3739_v39, 0.0  ;;  %v15318_v35 = vld [vmem:[%s19676_s18 + $0x98] sm:$0xff]   ;;  %v15321_v46 = vld [vmem:[%s19676_s18 + $0x10] sm:$0xff]   ;;  %v15324_v54 = vld [vmem:[%s19676_s18 + $0xc8] sm:$0xff]  }
0x12f7   :  { %13599 = vmatpush3.bf16.msra.mxu1 %v15310_v15  ;;  %13566 = vmatprep.subr.bf16.mxu0 %v15311_v26  ;;  %v3827_v42 = vmax.f32 %v3800_v11, 0.0  ;;  %v4144_v60 = vpack.c.bf16 %v4132_v19, %v4132_v19  ;;  %v15322_v15 = vld [vmem:[%s19676_s18 + $0x90] sm:$0xff]   ;;  %v15323_v26 = vld [vmem:[%s19676_s18 + $0x48] sm:$0xff]   ;;  %v17452_v3 = vrot.slane %v17380_v16, %v16052_v8  ;;  %v17456_v18 = vrot.slane %v17380_v16, %v17323_v5  ;;  %v15327_v29 = vld [vmem:[%s19676_s18 + $0x40] sm:$0xff]  }
0x12f8   :  { %4451 = vmatprep.mubr.bf16.mxu0 %v4143_v22  ;;  %4507 = vmatprep.mubr.bf16.mxu1 %v4145_v32  ;;  %v3845_v55 = vpack.c.bf16 %v3829_v59, %v3825_v10  ;;  %v15325_v56 = vld [vmem:[%s19676_s18 + $0x8] sm:$0xff]   ;;  %v3814_v22 = vadd.f32 %v17303_v53, %v17388_v41  ;;  %v3810_v39 = vadd.f32 %v17295_v50, %v17388_v41 }
0x12f9   :  { %13600 = vmatprep.subr.bf16.mxu1 %v15312_v9  ;;  %v3847_v31 = vpack.c.bf16 %v3831_v21, %v3827_v42  ;;  %v3741_v17 = vadd.f32 %v17281_v48, %v17452_v3  ;;  %v15326_v23 = vld [vmem:[%s19676_s18 + $0x88] sm:$0xff]   ;;  %v3802_v16 = vadd.f32 %v17283_v49, %v17456_v18  ;;  %v3753_v9 = vadd.f32 %v17301_v52, %v17384_v7  ;;  %v15328_v48 = vld [vmem:[%s19676_s18 + $0xc0] sm:$0xff]  }
0x12fa   :  { %13567 = vmatpush3.bf16.msra.mxu0 %v15313_v63  ;;  %v3737_v27 = vadd.f32 %v17273_v2, %v17452_v3  ;;  %v3798_v32 = vadd.f32 %v17275_v43, %v17456_v18  ;;  %v3749_v49 = vadd.f32 %v17293_v45, %v17384_v7  ;;  %v15329_v52 = vld [vmem:[%s19676_s18] sm:$0xff]   ;;  %v15336_v13 = vld [vmem:[%s19674_s16 + $0xac] ss:$16 sps:$4 sm:$0xff]   ;;  %v3751_v59 = vadd.f32 %v17297_v58, %v17452_v3  ;;  %v15334_v42 = vld [vmem:[%s19674_s16 + $0xa8] ss:$16 sps:$4 sm:$0xff]  }
0x12fb   :  { %13601 = vmatpush3.bf16.msra.mxu1 %v15314_v40  ;;  %13568 = vmatprep.subr.bf16.mxu0 %v15315_v1  ;;  %v3828_v63 = vmax.f32 %v3741_v17, 0.0  ;;  %v15330_v2 = vld [vmem:[%s19676_s18 + $0x80] sm:$0xff]   ;;  %v3830_v45 = vmax.f32 %v3802_v16, 0.0  ;;  %v3837_v53 = vmax.f32 %v3753_v9, 0.0  ;;  %v3839_v1 = vmax.f32 %v3814_v22, 0.0  ;;  %v15347_v22 = vld [vmem:[%s19676_s18 + $0x270] sm:$0xff]  }
0x12fc   :  { %13602 = vmatprep.subr.bf16.mxu1 %v15316_v37  ;;  %v15333_v43 = vld [vmem:[%s19674_s16 + $0xa4] ss:$16 sps:$4 sm:$0xff]   ;;  %v3824_v40 = vmax.f32 %v3737_v27, 0.0  ;;  %v3826_v50 = vmax.f32 %v3798_v32, 0.0  ;;  %v3833_v11 = vmax.f32 %v3749_v49, 0.0  ;;  %v3835_v37 = vmax.f32 %v3810_v39, 0.0 }
0x12fd   :  { %4452 = vmatmul.mubr.bf16.gmra.mxu0 %v4142_v28  ;;  %v15331_v21 = vld [vmem:[%s19674_s16 + $0xa0] ss:$16 sps:$4 sm:$0xff]   ;;  %v3812_v10 = vadd.f32 %v17299_v4, %v17456_v18  ;;  %v3759_v28 = vadd.f32 %v17309_v51, %v17384_v7  ;;  %v15339_v58 = vld [vmem:[%s19674_s16 + $0x84] ss:$16 sps:$4 sm:$0xff]   ;;  %v15342_v51 = vld [vmem:[%s19674_s16 + $0x8c] ss:$16 sps:$4 sm:$0xff]   ;;  %v3808_v7 = vadd.f32 %v17291_v44, %v17456_v18 }
0x12fe   :  { %4508 = vmatmul.mubr.bf16.gmra.mxu1 %v4144_v60  ;;  %13569 = vmatpush3.bf16.msra.mxu0 %v15317_v33  ;;  %v3844_v19 = vpack.c.bf16 %v3828_v63, %v3824_v40  ;;  %v3846_v33 = vpack.c.bf16 %v3830_v45, %v3826_v50  ;;  %v3747_v60 = vadd.f32 %v17289_v57, %v17452_v3  ;;  %v15337_v57 = vld [vmem:[%s19674_s16 + $0x80] ss:$16 sps:$4 sm:$0xff]   ;;  %v19715_v27 = vmov 0   ;;  %v15351_v63 = vld [vmem:[%s19676_s18 + $0x268] sm:$0xff]   ;;  %v15360_v50 = vld [vmem:[%s19676_s18 + $0x2d8] sm:$0xff]  }
0x12ff   :  { %13603 = vmatpush3.bf16.msra.mxu1 %v15318_v35  ;;  %4739 = vmatprep.mubr.bf16.mxu0 %v3845_v55  ;;  %v3849_v35 = vpack.c.bf16 %v3837_v53, %v3833_v11  ;;  %v3851_v4 = vpack.c.bf16 %v3839_v1, %v3835_v37  ;;  %v3836_v55 = vmax.f32 %v3751_v59, 0.0  ;;  %v3834_v44 = vmax.f32 %v3808_v7, 0.0  ;;  %v15348_v32 = vld [vmem:[%s19676_s18 + $0x2f0] sm:$0xff]   ;;  %v15352_v39 = vld [vmem:[%s19676_s18 + $0x2e8] sm:$0xff]   ;;  %v15355_v45 = vld [vmem:[%s19676_s18 + $0x260] sm:$0xff]  }
0x1300   :  { %4795 = vmatprep.mubr.bf16.mxu1 %v3847_v31  ;;  %13570 = vmatprep.subr.bf16.mxu0 %v15319_v34  ;;  %v3820_v34 = vadd.f32 %v17311_v25, %v17388_v41  ;;  %v3841_v25 = vmax.f32 %v3759_v28, 0.0  ;;  %v15340_v41 = vld [vmem:[%s19674_s16 + $0x88] ss:$16 sps:$4 sm:$0xff]   ;;  %v3832_v31 = vmax.f32 %v3747_v60, 0.0  ;;  %v15349_v49 = vld [vmem:[%s19676_s18 + $0x230] sm:$0xff]   ;;  %v15356_v53 = vld [vmem:[%s19676_s18 + $0x2e0] sm:$0xff]  }
0x1301   :  { %13604 = vmatprep.subr.bf16.mxu1 %v15320_v12  ;;  %v3838_v12 = vmax.f32 %v3812_v10, 0.0  ;;  %v15358_v40 = vld [vmem:[%s19676_s18 + $0x2a0] sm:$0xff]   ;;  %v15359_v1 = vld [vmem:[%s19676_s18 + $0x258] sm:$0xff]   ;;  %v15363_v37 = vld [vmem:[%s19676_s18 + $0x250] sm:$0xff]  }
0x1302   :  { %13571 = vmatpush3.bf16.msra.mxu0 %v15321_v46  ;;  %v3843_v46 = vmax.f32 %v3820_v34, 0.0  ;;  %v3853_v17 = vpack.c.bf16 %v3841_v25, %v3841_v25  ;;  %v15361_v11 = vld [vmem:[%s19676_s18 + $0x218] sm:$0xff]   ;;  %v15364_v59 = vld [vmem:[%s19676_s18 + $0x2d0] sm:$0xff]   ;;  %v15367_v10 = vld [vmem:[%s19676_s18 + $0x248] sm:$0xff]  }
0x1303   :  { %13605 = vmatpush3.bf16.msra.mxu1 %v15322_v15  ;;  %13572 = vmatprep.subr.bf16.mxu0 %v15323_v26  ;;  %v3848_v15 = vpack.c.bf16 %v3836_v55, %v3832_v31  ;;  %v3757_v26 = vadd.f32 %v17305_v30, %v17452_v3  ;;  %v15343_v30 = vld [vmem:[%s19676_s18 + $0x278] sm:$0xff]   ;;  %v15368_v28 = vld [vmem:[%s19676_s18 + $0x2c8] sm:$0xff]   ;;  %v15372_v60 = vld [vmem:[%s19676_s18 + $0x2c0] sm:$0xff]  }
0x1304   :  { %13606 = vmatprep.subr.bf16.mxu1 %v15324_v54  ;;  %v3850_v54 = vpack.c.bf16 %v3838_v12, %v3834_v44  ;;  %v15345_v3 = vld [vmem:[%s19676_s18 + $0x238] sm:$0xff]   ;;  %v15373_v34 = vld [vmem:[%s19676_s18 + $0x200] sm:$0xff]  }
0x1305   :  { %v15380_v7 = vld [vmem:[%s19674_s16 + $0xec] ss:$16 sps:$4 sm:$0xff]  }
0x1306   :  { %13573 = vmatpush3.bf16.msra.mxu0 %v15325_v56  ;;  %v3818_v56 = vadd.f32 %v17307_v62, %v17456_v18  ;;  %v15344_v62 = vld [vmem:[%s19676_s18 + $0x2f8] sm:$0xff]  }
0x1307   :  { %13607 = vmatpush3.bf16.msra.mxu1 %v15326_v23  ;;  %13574 = vmatprep.subr.bf16.mxu0 %v15327_v29  ;;  %v3855_v23 = vpack.c.bf16 %v3843_v46, %v3843_v46  ;;  %v3840_v29 = vmax.f32 %v3757_v26, 0.0  ;;  %v15346_v18 = vld [vmem:[%s19676_s18 + $0x2b8] sm:$0xff]  }
0x1308   :  { %13608 = vmatprep.subr.bf16.mxu1 %v15328_v48  ;;  %v3842_v16 = vmax.f32 %v3818_v56, 0.0 }
0x1309   :  { %v3852_v9 = vpack.c.bf16 %v3840_v29, %v3840_v29 }
0x130a   :  { %13575 = vmatpush3.bf16.msra.mxu0 %v15329_v52  ;;  %v3854_v48 = vpack.c.bf16 %v3842_v16, %v3842_v16  ;;  %v15350_v52 = vld [vmem:[%s19676_s18 + $0x2b0] sm:$0xff]  }
0x130b   :  { %13609 = vmatpush3.bf16.msra.mxu1 %v15330_v2  ;;  %4903 = vmatprep.subr.bf16.mxu0 %v15333_v43  ;;  %v15353_v2 = vld [vmem:[%s19676_s18 + $0x228] sm:$0xff]  }
0x130c   :  { %4964 = vmatprep.subr.bf16.mxu1 %v15336_v13  ;;  %v15354_v43 = vld [vmem:[%s19676_s18 + $0x2a8] sm:$0xff]   ;;  %v15357_v13 = vld [vmem:[%s19676_s18 + $0x220] sm:$0xff]  }
0x130d   :  { %4740 = vmatmul.mubr.bf16.vlgmr.msra.gmra.mxu0 %v3844_v19  ;;  %v15362_v19 = vld [vmem:[%s19676_s18 + $0x298] sm:$0xff]  }
0x130e   :  { %4796 = vmatmul.mubr.bf16.vlgmr.msra.gmra.mxu1 %v3846_v33  ;;  %4747 = vmatprep.mubr.bf16.mxu0 %v3849_v35  ;;  %v15366_v33 = vld [vmem:[%s19676_s18 + $0x290] sm:$0xff]   ;;  %v15369_v35 = vld [vmem:[%s19676_s18 + $0x208] sm:$0xff]  }
0x130f   :  { %4803 = vmatprep.mubr.bf16.mxu1 %v3851_v4  ;;  %4904 = vmatpush1.bf16.msra.mxu0 %v15331_v21  ;;  %v15365_v21 = vld [vmem:[%s19676_s18 + $0x210] sm:$0xff]   ;;  %v15374_v4 = vld [vmem:[%s19676_s18 + $0x280] sm:$0xff]  }
0x1310   :  { %4965 = vmatpush1.bf16.msra.mxu1 %v15334_v42  ;;  %4905 = vmatprep.subr.bf16.mxu0 %v15339_v58  ;;  %v15370_v42 = vld [vmem:[%s19676_s18 + $0x288] sm:$0xff]   ;;  %v15371_v58 = vld [vmem:[%s19676_s18 + $0x240] sm:$0xff]  }
0x1311   :  { %4966 = vmatprep.subr.bf16.mxu1 %v15342_v51  ;;  %v15377_v51 = vld [vmem:[%s19674_s16 + $0xe4] ss:$16 sps:$4 sm:$0xff]  }
0x1313   :  { %4906 = vmatpush1.bf16.msra.mxu0 %v15337_v57 }
0x1314   :  { %4967 = vmatpush1.bf16.msra.mxu1 %v15340_v41  ;;  %13628 = vmatprep.subr.bf16.mxu0 %v15343_v30 }
0x1315   :  { %4748 = vmatmul.mubr.bf16.gmra.mxu0 %v3848_v15  ;;  %13662 = vmatprep.subr.bf16.mxu1 %v15344_v62 }
0x1316   :  { %4804 = vmatmul.mubr.bf16.gmra.mxu1 %v3850_v54  ;;  %4755 = vmatprep.mubr.bf16.mxu0 %v3853_v17 }
0x1317   :  { %4811 = vmatprep.mubr.bf16.mxu1 %v3855_v23 }
0x131d   :  { %4756 = vmatmul.mubr.bf16.gmra.mxu0 %v3852_v9 }
0x131e   :  { %4812 = vmatmul.mubr.bf16.gmra.mxu1 %v3854_v48  ;;  %4923 = vmatprep.mubr.bf16.mxu0 %v19715_v27 }
0x131f   :  { %4984 = vmatprep.mubr.bf16.mxu1 %v19715_v27 }
0x1325   :  { %12374 = vmatmul.mubr.msk.bf16.vlgmr.msra.gmra.mxu0 %vm221_vm2, %v17110_v24 }
0x1326   :  { %12377 = vmatmul.mubr.msk.bf16.vlgmr.msra.gmra.mxu1 %vm221_vm2, %v17110_v24  ;;  %4933 = vmatprep.mubr.bf16.mxu0 %v19715_v27 }
0x1327   :  { %4994 = vmatprep.mubr.bf16.mxu1 %v19715_v27  ;;  %13629 = vmatpush3.bf16.msra.mxu0 %v15345_v3 }
0x1328   :  { %13663 = vmatpush3.bf16.msra.mxu1 %v15346_v18  ;;  %13630 = vmatprep.subr.bf16.mxu0 %v15347_v22 }
0x1329   :  { %13664 = vmatprep.subr.bf16.mxu1 %v15348_v32 }
0x132b   :  { %13631 = vmatpush3.bf16.msra.mxu0 %v15349_v49 }
0x132c   :  { %13665 = vmatpush3.bf16.msra.mxu1 %v15350_v52  ;;  %13632 = vmatprep.subr.bf16.mxu0 %v15351_v63 }
0x132d   :  { %12375 = vmatmul.mubr.msk.bf16.gmra.mxu0 %vm221_vm2, %v17139_v6  ;;  %13666 = vmatprep.subr.bf16.mxu1 %v15352_v39 }
0x132e   :  { %12378 = vmatmul.mubr.msk.bf16.gmra.mxu1 %vm221_vm2, %v17139_v6  ;;  %4943 = vmatprep.mubr.bf16.mxu0 %v19715_v27 }
0x132f   :  { %5004 = vmatprep.mubr.bf16.mxu1 %v19715_v27  ;;  %13633 = vmatpush3.bf16.msra.mxu0 %v15353_v2 }
0x1330   :  { %13667 = vmatpush3.bf16.msra.mxu1 %v15354_v43  ;;  %13634 = vmatprep.subr.bf16.mxu0 %v15355_v45 }
0x1331   :  { %13668 = vmatprep.subr.bf16.mxu1 %v15356_v53 }
0x1333   :  { %13635 = vmatpush3.bf16.msra.mxu0 %v15357_v13 }
0x1334   :  { %13669 = vmatpush3.bf16.msra.mxu1 %v15358_v40  ;;  %13636 = vmatprep.subr.bf16.mxu0 %v15359_v1 }
0x1335   :  { %12376 = vmatmul.mubr.msk.bf16.gmra.mxu0 %vm221_vm2, %v17147_v47  ;;  %13670 = vmatprep.subr.bf16.mxu1 %v15360_v50 }
0x1336   :  { %12379 = vmatmul.mubr.msk.bf16.gmra.mxu1 %vm221_vm2, %v17147_v47 }
0x1337   :  { %13637 = vmatpush3.bf16.msra.mxu0 %v15361_v11 }
0x1338   :  { %13671 = vmatpush3.bf16.msra.mxu1 %v15362_v19  ;;  %13638 = vmatprep.subr.bf16.mxu0 %v15363_v37 }
0x1339   :  { %13672 = vmatprep.subr.bf16.mxu1 %v15364_v59 }
0x133b   :  { %13639 = vmatpush3.bf16.msra.mxu0 %v15365_v21 }
0x133c   :  { %13673 = vmatpush3.bf16.msra.mxu1 %v15366_v33  ;;  %13640 = vmatprep.subr.bf16.mxu0 %v15367_v10 }
0x133d   :  { %13674 = vmatprep.subr.bf16.mxu1 %v15368_v28 }
0x133f   :  { %13641 = vmatpush3.bf16.msra.mxu0 %v15369_v35 }
0x1340   :  { %13675 = vmatpush3.bf16.msra.mxu1 %v15370_v42  ;;  %13642 = vmatprep.subr.bf16.mxu0 %v15371_v58 }
0x1341   :  { %13676 = vmatprep.subr.bf16.mxu1 %v15372_v60 }
0x1343   :  { %13643 = vmatpush3.bf16.msra.mxu0 %v15373_v34 }
0x1344   :  { %13677 = vmatpush3.bf16.msra.mxu1 %v15374_v4  ;;  %5503 = vmatprep.subr.bf16.mxu0 %v15377_v51 }
0x1345   :  { %5564 = vmatprep.subr.bf16.mxu1 %v15380_v7 }
0x13ad   :  { %v13508_v55 = vpop.f32.mrf.mxu0  ;;  %v13542_v57 = vpop.f32.mrf.mxu1 }
0x13af   :  { %v13509_v12 = vpop.f32.mrf.mxu0  ;;  %v13543_v25 = vpop.f32.mrf.mxu1 }
0x13b0   :  { %v13510_v41 = vadd.f32 %v13509_v12, %v13508_v55  ;;  %v13544_v31 = vadd.f32 %v13543_v25, %v13542_v57 }
0x13b1   :  { %v13511_v46 = vpop.f32.mrf.mxu0  ;;  %v13545_v44 = vpop.f32.mrf.mxu1 }
0x13b2   :  { %v4494_v15 = vadd.f32 %v13544_v31, %v13510_v41 }
0x13b3   :  { %v13512_v26 = vpop.f32.mrf.mxu0  ;;  %v13546_v54 = vpop.f32.mrf.mxu1 }
0x13b4   :  { %v13513_v56 = vadd.f32 %v13512_v26, %v13511_v46  ;;  %v13547_v17 = vadd.f32 %v13546_v54, %v13545_v44 }
0x13b5   :  { %v13514_v23 = vpop.f32.mrf.mxu0 }
0x13b6   :  { %v4497_v29 = vadd.f32 %v13547_v17, %v13513_v56  ;;  %v13548_v16 = vpop.f32.mrf.mxu1 }
0x13b7   :  { %v13515_v9 = vpop.f32.mrf.mxu0 }
0x13b8   :  { %v13516_v48 = vadd.f32 %v13515_v9, %v13514_v23  ;;  %v13549_v30 = vpop.f32.mrf.mxu1 }
0x13b9   :  { %v13550_v62 = vadd.f32 %v13549_v30, %v13548_v16  ;;  %v13517_v3 = vpop.f32.mrf.mxu0 }
0x13ba   :  { %v13551_v18 = vpop.f32.mrf.mxu1 }
0x13bb   :  { %v4502_v22 = vadd.f32 %v13550_v62, %v13516_v48  ;;  %v13518_v32 = vpop.f32.mrf.mxu0 }
0x13bc   :  { %v13519_v49 = vadd.f32 %v13518_v32, %v13517_v3  ;;  %v13552_v52 = vpop.f32.mrf.mxu1 }
0x13bd   :  { %v13553_v63 = vadd.f32 %v13552_v52, %v13551_v18  ;;  %v13520_v39 = vpop.f32.mrf.mxu0 }
0x13be   :  { %v13554_v2 = vpop.f32.mrf.mxu1 }
0x13bf   :  { %v4505_v43 = vadd.f32 %v13553_v63, %v13519_v49  ;;  %v13521_v45 = vpop.f32.mrf.mxu0 }
0x13c0   :  { %v13522_v53 = vadd.f32 %v13521_v45, %v13520_v39  ;;  %v13555_v13 = vpop.f32.mrf.mxu1 }
0x13c1   :  { %v13556_v40 = vadd.f32 %v13555_v13, %v13554_v2  ;;  %v13523_v1 = vpop.f32.mrf.mxu0  ;;  %v12365_v13 = vld [vmem:[%s19675_s17 + $0x8] sm:$0xf] }
0x13c2   :  { %v13557_v50 = vpop.f32.mrf.mxu1  ;;  %v17666_v1 = vrot.slane %v12365_v13, %v17314_v0 }
0x13c3   :  { %v4510_v11 = vadd.f32 %v13556_v40, %v13522_v53  ;;  %v13524_v19 = vpop.f32.mrf.mxu0  ;;  %v17669_v50 = vrot.slane %v12365_v13, %v16052_v8 }
0x13c4   :  { %v13558_v37 = vpop.f32.mrf.mxu1 }
0x13c5   :  { %v17675_v37 = vrot.slane %v12365_v13, %v17323_v5 }
0x13cd   :  { %v13576_v59 = vpop.f32.mrf.mxu0 }
0x13ce   :  { %v13610_v21 = vpop.f32.mrf.mxu1 }
0x13cf   :  { %v13577_v33 = vpop.f32.mrf.mxu0 }
0x13d0   :  { %v13578_v10 = vadd.f32 %v13577_v33, %v13576_v59  ;;  %v13611_v28 = vpop.f32.mrf.mxu1 }
0x13d1   :  { %v13579_v35 = vpop.f32.mrf.mxu0  ;;  %v13612_v58 = vadd.f32 %v13611_v28, %v13610_v21 }
0x13d2   :  { %v4742_v42 = vadd.f32 %v13578_v10, %v4494_v15  ;;  %v13613_v60 = vpop.f32.mrf.mxu1 }
0x13d3   :  { %v13580_v34 = vpop.f32.mrf.mxu0 }
0x13d4   :  { %v17652_v4 = vadd.f32 %v13612_v58, %v4742_v42  ;;  %v13581_v51 = vadd.f32 %v13580_v34, %v13579_v35  ;;  %v13614_v7 = vpop.f32.mrf.mxu1 }
0x13d5   :  { %v13615_v55 = vadd.f32 %v13614_v7, %v13613_v60  ;;  %v13582_v57 = vpop.f32.mrf.mxu0 }
0x13d6   :  { %v4745_v12 = vadd.f32 %v13581_v51, %v4497_v29  ;;  %v13616_v25 = vpop.f32.mrf.mxu1 }
0x13d7   :  { %v13583_v41 = vpop.f32.mrf.mxu0 }
0x13d8   :  { %v17654_v31 = vadd.f32 %v13615_v55, %v4745_v12  ;;  %v13584_v46 = vadd.f32 %v13583_v41, %v13582_v57  ;;  %v13617_v44 = vpop.f32.mrf.mxu1 }
0x13d9   :  { %v13585_v26 = vpop.f32.mrf.mxu0  ;;  %v13618_v56 = vadd.f32 %v13617_v44, %v13616_v25 }
0x13da   :  { %v4750_v54 = vadd.f32 %v13584_v46, %v4502_v22  ;;  %v13619_v15 = vpop.f32.mrf.mxu1 }
0x13db   :  { %v13586_v17 = vpop.f32.mrf.mxu0 }
0x13dc   :  { %v17656_v23 = vadd.f32 %v13618_v56, %v4750_v54  ;;  %v13587_v16 = vadd.f32 %v13586_v17, %v13585_v26  ;;  %v13620_v9 = vpop.f32.mrf.mxu1 }
0x13dd   :  { %v13621_v48 = vadd.f32 %v13620_v9, %v13619_v15  ;;  %v13588_v30 = vpop.f32.mrf.mxu0 }
0x13de   :  { %v4753_v62 = vadd.f32 %v13587_v16, %v4505_v43  ;;  %v13622_v3 = vpop.f32.mrf.mxu1 }
0x13df   :  { %v13589_v29 = vpop.f32.mrf.mxu0 }
0x13e0   :  { %v17658_v18 = vadd.f32 %v13621_v48, %v4753_v62  ;;  %v13590_v32 = vadd.f32 %v13589_v29, %v13588_v30  ;;  %v13623_v49 = vpop.f32.mrf.mxu1  ;;  %v15375_v48 = vld [vmem:[%s19674_s16 + $0xe0] ss:$16 sps:$4 sm:$0xff]   ;;  %v15378_v29 = vld [vmem:[%s19674_s16 + $0xe8] ss:$16 sps:$4 sm:$0xff]  }
0x13e1   :  { %v13591_v52 = vpop.f32.mrf.mxu0  ;;  %v13624_v39 = vadd.f32 %v13623_v49, %v13622_v3 }
0x13e2   :  { %v4758_v63 = vadd.f32 %v13590_v32, %v4510_v11  ;;  %v13625_v22 = vpop.f32.mrf.mxu1  ;;  %v17672_v11 = vrot.slane %v12365_v13, %v17317_v20  ;;  %v15383_v32 = vld [vmem:[%s19674_s16 + $0xc4] ss:$16 sps:$4 sm:$0xff]  }
0x13e3   :  { %v13592_v2 = vpop.f32.mrf.mxu0  ;;  %v15386_v22 = vld [vmem:[%s19674_s16 + $0xcc] ss:$16 sps:$4 sm:$0xff]  }
0x13e4   :  { %v17660_v45 = vadd.f32 %v13624_v39, %v4758_v63  ;;  %v13626_v53 = vpop.f32.mrf.mxu1 }
0x13e5   :  { %v4925_v40 = vpop.f32.mrf.mxu0 }
0x13e6   :  { %v4986_v43 = vpop.f32.mrf.mxu1  ;;  %v4926_v35 = vadd.f32 %v4925_v40, %v17669_v50 }
0x13e7   :  { %v4927_v19 = vpop.f32.mrf.mxu0  ;;  %v4987_v34 = vadd.f32 %v4986_v43, %v17675_v37 }
0x13e8   :  { %v4988_v59 = vpop.f32.mrf.mxu1  ;;  %v4928_v33 = vadd.f32 %v4927_v19, %v17666_v1  ;;  %v5013_v26 = vmax.f32 %v4926_v35, 0.0  ;;  %v15384_v35 = vld [vmem:[%s19674_s16 + $0xc8] ss:$16 sps:$4 sm:$0xff]  }
0x13e9   :  { %v4929_v21 = vpop.f32.mrf.mxu0  ;;  %v4989_v42 = vadd.f32 %v4988_v59, %v17672_v11  ;;  %v5015_v17 = vmax.f32 %v4987_v34, 0.0 }
0x13ea   :  { %v4930_v10 = vadd.f32 %v4929_v21, %v17669_v50  ;;  %v4990_v28 = vpop.f32.mrf.mxu1  ;;  %v5014_v25 = vmax.f32 %v4928_v33, 0.0  ;;  %v15381_v21 = vld [vmem:[%s19674_s16 + $0xc0] ss:$16 sps:$4 sm:$0xff]  }
0x13eb   :  { %v4991_v58 = vadd.f32 %v4990_v28, %v17675_v37  ;;  %v4931_v60 = vpop.f32.mrf.mxu0  ;;  %v5016_v54 = vmax.f32 %v4989_v42, 0.0 }
0x13ec   :  { %v4932_v51 = vadd.f32 %v4931_v60, %v17666_v1  ;;  %v4992_v7 = vpop.f32.mrf.mxu1  ;;  %v5017_v55 = vmax.f32 %v4930_v10, 0.0 }
0x13ed   :  { %v4993_v57 = vadd.f32 %v4992_v7, %v17672_v11  ;;  %v4935_v12 = vpop.f32.mrf.mxu0  ;;  %v5019_v41 = vmax.f32 %v4991_v58, 0.0 }
0x13ee   :  { %v5018_v46 = vmax.f32 %v4932_v51, 0.0  ;;  %v4996_v44 = vpop.f32.mrf.mxu1  ;;  %v5033_v30 = vpack.c.bf16 %v5017_v55, %v5013_v26  ;;  %v4936_v2 = vadd.f32 %v4935_v12, %v17669_v50 }
0x13ef   :  { %v5020_v56 = vmax.f32 %v4993_v57, 0.0  ;;  %v4937_v15 = vpop.f32.mrf.mxu0  ;;  %v5035_v49 = vpack.c.bf16 %v5019_v41, %v5015_v17  ;;  %v4997_v43 = vadd.f32 %v4996_v44, %v17675_v37 }
0x13f0   :  { %v5034_v16 = vpack.c.bf16 %v5018_v46, %v5014_v25  ;;  %v4998_v9 = vpop.f32.mrf.mxu1  ;;  %v4938_v52 = vadd.f32 %v4937_v15, %v17666_v1  ;;  %v5021_v51 = vmax.f32 %v4936_v2, 0.0  ;;  %v15395_v2 = vld [vmem:[%s19676_s18 + $0x368] sm:$0xff]  }
0x13f1   :  { %v5036_v62 = vpack.c.bf16 %v5020_v56, %v5016_v54  ;;  %v4939_v3 = vpop.f32.mrf.mxu0  ;;  %v4999_v53 = vadd.f32 %v4998_v9, %v17672_v11  ;;  %v5023_v12 = vmax.f32 %v4997_v43, 0.0  ;;  %v15399_v43 = vld [vmem:[%s19676_s18 + $0x360] sm:$0xff]  }
0x13f2   :  { %v4940_v63 = vadd.f32 %v4939_v3, %v17669_v50  ;;  %v5000_v39 = vpop.f32.mrf.mxu1  ;;  %5334 = vmatprep.mubr.bf16.mxu0 %v5034_v16  ;;  %v5022_v42 = vmax.f32 %v4938_v52, 0.0  ;;  %v15390_v52 = vld [vmem:[%s19676_s18 + $0x3b8] sm:$0xff]  }
0x13f3   :  { %v5001_v13 = vadd.f32 %v5000_v39, %v17675_v37  ;;  %5390 = vmatprep.mubr.bf16.mxu1 %v5036_v62  ;;  %v4941_v40 = vpop.f32.mrf.mxu0  ;;  %5335 = vmatmul.mubr.bf16.vlgmr.msra.gmra.mxu0 %v5033_v30  ;;  %v5024_v7 = vmax.f32 %v4999_v53, 0.0  ;;  %v15393_v39 = vld [vmem:[%s19676_s18 + $0x330] sm:$0xff]   ;;  %v15396_v53 = vld [vmem:[%s19676_s18 + $0x3e8] sm:$0xff]  }
0x13f4   :  { %v4942_v19 = vadd.f32 %v4941_v40, %v17666_v1  ;;  %v5002_v59 = vpop.f32.mrf.mxu1  ;;  %5391 = vmatmul.mubr.bf16.vlgmr.msra.gmra.mxu1 %v5035_v49  ;;  %5504 = vmatpush1.bf16.msra.mxu0 %v15375_v48  ;;  %v5025_v33 = vmax.f32 %v4940_v63, 0.0  ;;  %v15392_v63 = vld [vmem:[%s19676_s18 + $0x3f0] sm:$0xff]   ;;  %v15398_v40 = vld [vmem:[%s19676_s18 + $0x3a8] sm:$0xff]  }
0x13f5   :  { %v5003_v10 = vadd.f32 %v5002_v59, %v17672_v11  ;;  %v4945_v28 = vpop.f32.mrf.mxu0  ;;  %5565 = vmatpush1.bf16.msra.mxu1 %v15378_v29  ;;  %5505 = vmatprep.subr.bf16.mxu0 %v15383_v32  ;;  %v5027_v58 = vmax.f32 %v5001_v13, 0.0  ;;  %v15397_v13 = vld [vmem:[%s19676_s18 + $0x328] sm:$0xff]   ;;  %v15401_v59 = vld [vmem:[%s19676_s18 + $0x320] sm:$0xff]  }
0x13f6   :  { %v5026_v60 = vmax.f32 %v4942_v19, 0.0  ;;  %v5006_v34 = vpop.f32.mrf.mxu1  ;;  %5566 = vmatprep.subr.bf16.mxu1 %v15386_v22  ;;  %v5037_v44 = vpack.c.bf16 %v5025_v33, %v5021_v51  ;;  %v4946_v54 = vadd.f32 %v4945_v28, %v17669_v50  ;;  %v15394_v22 = vld [vmem:[%s19676_s18 + $0x3b0] sm:$0xff]   ;;  %v15400_v19 = vld [vmem:[%s19676_s18 + $0x3e0] sm:$0xff]   ;;  %v15403_v33 = vld [vmem:[%s19676_s18 + $0x358] sm:$0xff]  }
0x13f7   :  { %v5028_v55 = vmax.f32 %v5003_v10, 0.0  ;;  %v4947_v57 = vpop.f32.mrf.mxu0  ;;  %v5039_v17 = vpack.c.bf16 %v5027_v58, %v5023_v12  ;;  %v5007_v16 = vadd.f32 %v5006_v34, %v17675_v37  ;;  %v15388_v37 = vld [vmem:[%s19676_s18 + $0x3f8] sm:$0xff]   ;;  %v15408_v58 = vld [vmem:[%s19676_s18 + $0x3d0] sm:$0xff]   ;;  %v15411_v51 = vld [vmem:[%s19676_s18 + $0x348] sm:$0xff]  }
0x13f8   :  { %v5038_v25 = vpack.c.bf16 %v5026_v60, %v5022_v42  ;;  %v4948_v41 = vadd.f32 %v4947_v57, %v17666_v1  ;;  %v5008_v46 = vpop.f32.mrf.mxu1  ;;  %5506 = vmatpush1.bf16.msra.mxu0 %v15381_v21  ;;  %v5029_v29 = vmax.f32 %v4946_v54, 0.0  ;;  %v15402_v21 = vld [vmem:[%s19676_s18 + $0x3a0] sm:$0xff]   ;;  %v15404_v10 = vld [vmem:[%s19676_s18 + $0x3d8] sm:$0xff]   ;;  %v15407_v42 = vld [vmem:[%s19676_s18 + $0x350] sm:$0xff]  }
0x13f9   :  { %v5040_v26 = vpack.c.bf16 %v5028_v55, %v5024_v7  ;;  %v5009_v56 = vadd.f32 %v5008_v46, %v17672_v11  ;;  %v4949_v15 = vpop.f32.mrf.mxu0  ;;  %5567 = vmatpush1.bf16.msra.mxu1 %v15384_v35  ;;  %v5031_v50 = vmax.f32 %v5007_v16, 0.0  ;;  %v15405_v28 = vld [vmem:[%s19676_s18 + $0x318] sm:$0xff]   ;;  %v15409_v60 = vld [vmem:[%s19676_s18 + $0x310] sm:$0xff]   ;;  %v15412_v7 = vld [vmem:[%s19676_s18 + $0x3c8] sm:$0xff]  }
0x13fa   :  { %v5030_v9 = vmax.f32 %v4948_v41, 0.0  ;;  %v5010_v48 = vpop.f32.mrf.mxu1  ;;  %5342 = vmatprep.mubr.bf16.mxu0 %v5038_v25  ;;  %v5041_v11 = vpack.c.bf16 %v5029_v29, %v5029_v29  ;;  %13730 = vmatprep.subr.bf16.mxu1 %v15388_v37  ;;  %v15406_v35 = vld [vmem:[%s19676_s18 + $0x398] sm:$0xff]   ;;  %v15410_v34 = vld [vmem:[%s19676_s18 + $0x390] sm:$0xff]   ;;  %v15413_v55 = vld [vmem:[%s19676_s18 + $0x308] sm:$0xff]  }
0x13fb   :  { %v5032_v30 = vmax.f32 %v5009_v56, 0.0  ;;  %5398 = vmatprep.mubr.bf16.mxu1 %v5040_v26  ;;  %v4950_v62 = vpop.f32.mrf.mxu0  ;;  %5343 = vmatmul.mubr.bf16.gmra.mxu0 %v5037_v44  ;;  %v5043_v49 = vpack.c.bf16 %v5031_v50, %v5031_v50  ;;  %v15414_v57 = vld [vmem:[%s19676_s18 + $0x388] sm:$0xff]   ;;  %v15415_v12 = vld [vmem:[%s19676_s18 + $0x340] sm:$0xff]   ;;  %v19716_v44 = vmov 0.0  }
0x13fc   :  { %v5042_v1 = vpack.c.bf16 %v5030_v9, %v5030_v9  ;;  %v5011_v3 = vpop.f32.mrf.mxu1  ;;  %5399 = vmatmul.mubr.bf16.gmra.mxu1 %v5039_v17  ;;  %v15416_v25 = vld [vmem:[%s19676_s18 + $0x3c0] sm:$0xff]  }
0x13fd   :  { %v5044_v32 = vpack.c.bf16 %v5032_v30, %v5032_v30  ;;  %v15417_v41 = vld [vmem:[%s19676_s18 + $0x300] sm:$0xff]  }
0x13fe   :  { %5350 = vmatprep.mubr.bf16.mxu0 %v5042_v1  ;;  %v15418_v46 = vld [vmem:[%s19676_s18 + $0x380] sm:$0xff]  }
0x13ff   :  { %5406 = vmatprep.mubr.bf16.mxu1 %v5044_v32 }
0x1403   :  { %5351 = vmatmul.mubr.bf16.gmra.mxu0 %v5041_v11 }
0x1404   :  { %5407 = vmatmul.mubr.bf16.gmra.mxu1 %v5043_v49  ;;  %5523 = vmatprep.mubr.bf16.mxu0 %v19715_v27 }
0x1405   :  { %5584 = vmatprep.mubr.bf16.mxu1 %v19715_v27 }
0x140b   :  { %12493 = vmatmul.mubr.msk.bf16.vlgmr.msra.gmra.mxu0 %vm221_vm2, %v17110_v24 }
0x140c   :  { %12496 = vmatmul.mubr.msk.bf16.vlgmr.msra.gmra.mxu1 %vm221_vm2, %v17110_v24  ;;  %5533 = vmatprep.mubr.bf16.mxu0 %v19715_v27  ;;  %v15387_v24 = vld [vmem:[%s19676_s18 + $0x378] sm:$0xff]  }
0x140d   :  { %5594 = vmatprep.mubr.bf16.mxu1 %v19715_v27  ;;  %13696 = vmatprep.subr.bf16.mxu0 %v15387_v24 }
0x140e   :  { %13731 = vmatpush3.bf16.msra.mxu1 %v15390_v52 }
0x140f   :  { %13732 = vmatprep.subr.bf16.mxu1 %v15392_v63 }
0x1412   :  { %13733 = vmatpush3.bf16.msra.mxu1 %v15394_v22 }
0x1413   :  { %12494 = vmatmul.mubr.msk.bf16.gmra.mxu0 %vm221_vm2, %v17139_v6  ;;  %13734 = vmatprep.subr.bf16.mxu1 %v15396_v53 }
0x1414   :  { %12497 = vmatmul.mubr.msk.bf16.gmra.mxu1 %vm221_vm2, %v17139_v6  ;;  %5543 = vmatprep.mubr.bf16.mxu0 %v19715_v27  ;;  %v15389_v6 = vld [vmem:[%s19676_s18 + $0x338] sm:$0xff]  }
0x1415   :  { %5604 = vmatprep.mubr.bf16.mxu1 %v19715_v27  ;;  %13697 = vmatpush3.bf16.msra.mxu0 %v15389_v6 }
0x1416   :  { %13735 = vmatpush3.bf16.msra.mxu1 %v15398_v40 }
0x1417   :  { %13736 = vmatprep.subr.bf16.mxu1 %v15400_v19 }
0x141a   :  { %13737 = vmatpush3.bf16.msra.mxu1 %v15402_v21 }
0x141b   :  { %12495 = vmatmul.mubr.msk.bf16.gmra.mxu0 %vm221_vm2, %v17147_v47  ;;  %13738 = vmatprep.subr.bf16.mxu1 %v15404_v10 }
0x141c   :  { %12498 = vmatmul.mubr.msk.bf16.gmra.mxu1 %vm221_vm2, %v17147_v47  ;;  %v15391_v47 = vld [vmem:[%s19676_s18 + $0x370] sm:$0xff]  }
0x141d   :  { %13698 = vmatprep.subr.bf16.mxu0 %v15391_v47 }
0x141e   :  { %13699 = vmatpush3.bf16.msra.mxu0 %v15393_v39  ;;  %13739 = vmatpush3.bf16.msra.mxu1 %v15406_v35 }
0x141f   :  { %13700 = vmatprep.subr.bf16.mxu0 %v15395_v2  ;;  %13740 = vmatprep.subr.bf16.mxu1 %v15408_v58 }
0x1422   :  { %13701 = vmatpush3.bf16.msra.mxu0 %v15397_v13  ;;  %13741 = vmatpush3.bf16.msra.mxu1 %v15410_v34 }
0x1423   :  { %13702 = vmatprep.subr.bf16.mxu0 %v15399_v43  ;;  %13742 = vmatprep.subr.bf16.mxu1 %v15412_v7 }
0x1426   :  { %13703 = vmatpush3.bf16.msra.mxu0 %v15401_v59  ;;  %13743 = vmatpush3.bf16.msra.mxu1 %v15414_v57 }
0x1427   :  { %13704 = vmatprep.subr.bf16.mxu0 %v15403_v33  ;;  %13744 = vmatprep.subr.bf16.mxu1 %v15416_v25 }
0x142a   :  { %13705 = vmatpush3.bf16.msra.mxu0 %v15405_v28  ;;  %13745 = vmatpush3.bf16.msra.mxu1 %v15418_v46 }
0x142b   :  { %13706 = vmatprep.subr.bf16.mxu0 %v15407_v42  ;;  %14727 = vmatprep.subr.bf16.mxu1 %v19716_v44 }
0x142e   :  { %13707 = vmatpush3.bf16.msra.mxu0 %v15409_v60 }
0x142f   :  { %13708 = vmatprep.subr.bf16.mxu0 %v15411_v51 }
0x1432   :  { %13709 = vmatpush3.bf16.msra.mxu0 %v15413_v55 }
0x1433   :  { %13710 = vmatprep.subr.bf16.mxu0 %v15415_v12 }
0x1436   :  { %13711 = vmatpush3.bf16.msra.mxu0 %v15417_v41 }
0x1437   :  { %14711 = vmatprep.subr.bf16.mxu0 %v19716_v44 }
0x14b3   :  { %v13644_v26 = vpop.f32.mrf.mxu0 }
0x14b4   :  { %v13678_v54 = vpop.f32.mrf.mxu1 }
0x14b5   :  { %v13645_v56 = vpop.f32.mrf.mxu0 }
0x14b6   :  { %v13646_v15 = vadd.f32 %v13645_v56, %v13644_v26  ;;  %v13679_v17 = vpop.f32.mrf.mxu1 }
0x14b7   :  { %v13680_v16 = vadd.f32 %v13679_v17, %v13678_v54  ;;  %v13647_v9 = vpop.f32.mrf.mxu0 }
0x14b8   :  { %v13681_v48 = vpop.f32.mrf.mxu1 }
0x14b9   :  { %v5393_v30 = vadd.f32 %v13680_v16, %v13646_v15  ;;  %v13648_v62 = vpop.f32.mrf.mxu0 }
0x14ba   :  { %v13649_v1 = vadd.f32 %v13648_v62, %v13647_v9  ;;  %v13682_v3 = vpop.f32.mrf.mxu1 }
0x14bb   :  { %v17832_v29 = vadd.f32 %v5393_v30, %v17652_v4  ;;  %v13683_v32 = vadd.f32 %v13682_v3, %v13681_v48  ;;  %v13650_v50 = vpop.f32.mrf.mxu0 }
0x14bc   :  { %v13684_v11 = vpop.f32.mrf.mxu1 }
0x14bd   :  { %v5396_v49 = vadd.f32 %v13683_v32, %v13649_v1  ;;  %v13651_v24 = vpop.f32.mrf.mxu0 }
0x14be   :  { %v13652_v37 = vadd.f32 %v13651_v24, %v13650_v50  ;;  %v13685_v6 = vpop.f32.mrf.mxu1 }
0x14bf   :  { %v17835_v52 = vadd.f32 %v5396_v49, %v17654_v31  ;;  %v13686_v47 = vadd.f32 %v13685_v6, %v13684_v11  ;;  %v13653_v63 = vpop.f32.mrf.mxu0 }
0x14c0   :  { %v13687_v39 = vpop.f32.mrf.mxu1 }
0x14c1   :  { %v5401_v22 = vadd.f32 %v13686_v47, %v13652_v37  ;;  %v13654_v2 = vpop.f32.mrf.mxu0 }
0x14c2   :  { %v13655_v53 = vadd.f32 %v13654_v2, %v13653_v63  ;;  %v13688_v13 = vpop.f32.mrf.mxu1 }
0x14c3   :  { %v17838_v4 = vadd.f32 %v5401_v22, %v17656_v23  ;;  %v13689_v40 = vadd.f32 %v13688_v13, %v13687_v39  ;;  %v13656_v43 = vpop.f32.mrf.mxu0  ;;  %v12484_v23 = vld [vmem:[%s19675_s17 + $0xc] sm:$0xf] }
0x14c4   :  { %v13690_v19 = vpop.f32.mrf.mxu1  ;;  %v5438_v57 = vrot.slane %v12484_v23, %v17314_v0  ;;  %v17854_v25 = vrot.slane %v12484_v23, %v17317_v20  ;;  %v17857_v41 = vrot.slane %v12484_v23, %v17323_v5 }
0x14c5   :  { %v5404_v59 = vadd.f32 %v13689_v40, %v13655_v53  ;;  %v13657_v21 = vpop.f32.mrf.mxu0 }
0x14c6   :  { %v13658_v33 = vadd.f32 %v13657_v21, %v13656_v43  ;;  %v13691_v10 = vpop.f32.mrf.mxu1 }
0x14c7   :  { %v17841_v31 = vadd.f32 %v5404_v59, %v17658_v18  ;;  %v13692_v28 = vadd.f32 %v13691_v10, %v13690_v19  ;;  %v13659_v35 = vpop.f32.mrf.mxu0  ;;  %v17851_v18 = vrot.slane %v12484_v23, %v16052_v8 }
0x14c8   :  { %v13693_v42 = vpop.f32.mrf.mxu1 }
0x14c9   :  { %v5409_v58 = vadd.f32 %v13692_v28, %v13658_v33  ;;  %v13660_v60 = vpop.f32.mrf.mxu0 }
0x14ca   :  { %v13694_v34 = vpop.f32.mrf.mxu1 }
0x14cb   :  { %v17847_v51 = vadd.f32 %v5409_v58, %v17660_v45  ;;  %v5525_v7 = vpop.f32.mrf.mxu0 }
0x14cc   :  { %v5586_v55 = vpop.f32.mrf.mxu1  ;;  %v5526_v15 = vadd.f32 %v5525_v7, %v17851_v18 }
0x14cd   :  { %v5527_v12 = vpop.f32.mrf.mxu0  ;;  %v5587_v48 = vadd.f32 %v5586_v55, %v17857_v41 }
0x14ce   :  { %v5588_v46 = vpop.f32.mrf.mxu1  ;;  %v5528_v54 = vadd.f32 %v5527_v12, %v5438_v57  ;;  %v5613_v37 = vmax.f32 %v5526_v15, 0.0 }
0x14cf   :  { %v5529_v26 = vpop.f32.mrf.mxu0  ;;  %v5589_v17 = vadd.f32 %v5588_v46, %v17854_v25  ;;  %v5615_v39 = vmax.f32 %v5587_v48, 0.0 }
0x14d0   :  { %v5530_v45 = vadd.f32 %v5529_v26, %v17851_v18  ;;  %v5590_v56 = vpop.f32.mrf.mxu1  ;;  %v5614_v50 = vmax.f32 %v5528_v54, 0.0 }
0x14d1   :  { %v5591_v16 = vadd.f32 %v5590_v56, %v17857_v41  ;;  %v5531_v9 = vpop.f32.mrf.mxu0  ;;  %v5616_v6 = vmax.f32 %v5589_v17, 0.0 }
0x14d2   :  { %v5532_v30 = vadd.f32 %v5531_v9, %v5438_v57  ;;  %v5592_v62 = vpop.f32.mrf.mxu1  ;;  %v5617_v1 = vmax.f32 %v5530_v45, 0.0 }
0x14d3   :  { %v5593_v3 = vadd.f32 %v5592_v62, %v17854_v25  ;;  %v5535_v32 = vpop.f32.mrf.mxu0  ;;  %v5619_v11 = vmax.f32 %v5591_v16, 0.0 }
0x14d4   :  { %v5618_v49 = vmax.f32 %v5532_v30, 0.0  ;;  %v5596_v24 = vpop.f32.mrf.mxu1  ;;  %v5633_v53 = vpack.c.bf16 %v5617_v1, %v5613_v37  ;;  %v5536_v33 = vadd.f32 %v5535_v32, %v17851_v18 }
0x14d5   :  { %v5620_v47 = vmax.f32 %v5593_v3, 0.0  ;;  %v5537_v63 = vpop.f32.mrf.mxu0  ;;  %v5635_v43 = vpack.c.bf16 %v5619_v11, %v5615_v39  ;;  %v5597_v42 = vadd.f32 %v5596_v24, %v17857_v41 }
0x14d6   :  { %v5598_v22 = vpop.f32.mrf.mxu1  ;;  %v5634_v2 = vpack.c.bf16 %v5618_v49, %v5614_v50  ;;  %v5538_v19 = vadd.f32 %v5537_v63, %v5438_v57  ;;  %v5621_v54 = vmax.f32 %v5536_v33, 0.0 }
0x14d7   :  { %v5539_v13 = vpop.f32.mrf.mxu0  ;;  %v5636_v40 = vpack.c.bf16 %v5620_v47, %v5616_v6  ;;  %v5599_v10 = vadd.f32 %v5598_v22, %v17854_v25  ;;  %v5623_v17 = vmax.f32 %v5597_v42, 0.0 }
0x14d8   :  { %v5540_v59 = vadd.f32 %v5539_v13, %v17851_v18  ;;  %v5600_v21 = vpop.f32.mrf.mxu1  ;;  %5934 = vmatprep.mubr.bf16.mxu0 %v5634_v2  ;;  %v5622_v55 = vmax.f32 %v5538_v19, 0.0 }
0x14d9   :  { %v5601_v28 = vadd.f32 %v5600_v21, %v17857_v41  ;;  %5990 = vmatprep.mubr.bf16.mxu1 %v5636_v40  ;;  %v5541_v35 = vpop.f32.mrf.mxu0  ;;  %5935 = vmatmul.mubr.bf16.vlgmr.msra.gmra.mxu0 %v5633_v53  ;;  %v5624_v45 = vmax.f32 %v5599_v10, 0.0 }
0x14da   :  { %v5542_v58 = vadd.f32 %v5541_v35, %v5438_v57  ;;  %v5602_v60 = vpop.f32.mrf.mxu1  ;;  %5991 = vmatmul.mubr.bf16.vlgmr.msra.gmra.mxu1 %v5635_v43  ;;  %v5625_v34 = vmax.f32 %v5540_v59, 0.0 }
0x14db   :  { %v5603_v23 = vadd.f32 %v5602_v60, %v17854_v25  ;;  %v5545_v7 = vpop.f32.mrf.mxu0  ;;  %v5627_v12 = vmax.f32 %v5601_v28, 0.0 }
0x14dc   :  { %v5626_v46 = vmax.f32 %v5542_v58, 0.0  ;;  %v5606_v26 = vpop.f32.mrf.mxu1  ;;  %v5637_v30 = vpack.c.bf16 %v5625_v34, %v5621_v54  ;;  %v5546_v62 = vadd.f32 %v5545_v7, %v17851_v18  ;;  %v12595_v34 = vld [vmem:[%s19677_s19] ss:$0 sm:$0xff] }
0x14dd   :  { %v5628_v56 = vmax.f32 %v5603_v23, 0.0  ;;  %v5547_v15 = vpop.f32.mrf.mxu0  ;;  %v5639_v50 = vpack.c.bf16 %v5627_v12, %v5623_v17  ;;  %v5607_v11 = vadd.f32 %v5606_v26, %v17857_v41 }
0x14de   :  { %v5548_v16 = vadd.f32 %v5547_v15, %v5438_v57  ;;  %v5608_v9 = vpop.f32.mrf.mxu1  ;;  %v5638_v48 = vpack.c.bf16 %v5626_v46, %v5622_v55  ;;  %v5629_v63 = vmax.f32 %v5546_v62, 0.0 }
0x14df   :  { %v5609_v1 = vadd.f32 %v5608_v9, %v17854_v25  ;;  %v5549_v3 = vpop.f32.mrf.mxu0  ;;  %v5640_v32 = vpack.c.bf16 %v5628_v56, %v5624_v45  ;;  %v5631_v18 = vmax.f32 %v5607_v11, 0.0 }
0x14e0   :  { %v5630_v49 = vmax.f32 %v5548_v16, 0.0  ;;  %v5610_v24 = vpop.f32.mrf.mxu1  ;;  %5942 = vmatprep.mubr.bf16.mxu0 %v5638_v48  ;;  %v5641_v25 = vpack.c.bf16 %v5629_v63, %v5629_v63 }
0x14e1   :  { %v5632_v37 = vmax.f32 %v5609_v1, 0.0  ;;  %5998 = vmatprep.mubr.bf16.mxu1 %v5640_v32  ;;  %v5550_v6 = vpop.f32.mrf.mxu0  ;;  %5943 = vmatmul.mubr.bf16.gmra.mxu0 %v5637_v30  ;;  %v5643_v22 = vpack.c.bf16 %v5631_v18, %v5631_v18 }
0x14e2   :  { %v5642_v57 = vpack.c.bf16 %v5630_v49, %v5630_v49  ;;  %v5611_v47 = vpop.f32.mrf.mxu1  ;;  %5999 = vmatmul.mubr.bf16.gmra.mxu1 %v5639_v50 }
0x14e3   :  { %v5644_v39 = vpack.c.bf16 %v5632_v37, %v5632_v37 }
0x14e4   :  { %5950 = vmatprep.mubr.bf16.mxu0 %v5642_v57 }
0x14e5   :  { %6006 = vmatprep.mubr.bf16.mxu1 %v5644_v39 }
0x14e9   :  { %5951 = vmatmul.mubr.bf16.gmra.mxu0 %v5641_v25 }
0x14ea   :  { %6007 = vmatmul.mubr.bf16.gmra.mxu1 %v5643_v22  ;;  %14715 = vmatprep.mubr.msk.bf16.mxu0 %vm15900_vm6, %v19716_v44 }
0x14eb   :  { %14731 = vmatprep.mubr.msk.bf16.mxu1 %vm15900_vm6, %v19716_v44 }
0x1599   :  { %v13712_v41 = vpop.f32.mrf.mxu0 }
0x159a   :  { %v13746_v2 = vpop.f32.mrf.mxu1 }
0x159b   :  { %v13713_v53 = vpop.f32.mrf.mxu0 }
0x159c   :  { %v13714_v13 = vadd.f32 %v13713_v53, %v13712_v41  ;;  %v13747_v40 = vpop.f32.mrf.mxu1 }
0x159d   :  { %v13748_v43 = vadd.f32 %v13747_v40, %v13746_v2  ;;  %v13715_v19 = vpop.f32.mrf.mxu0  ;;  %v19717_v2 = vld [vmem:[#allocation8_spill] sm:$0xff] }
0x159e   :  { %v13749_v59 = vpop.f32.mrf.mxu1 }
0x159f   :  { %v5993_v21 = vadd.f32 %v13748_v43, %v13714_v13  ;;  %v13716_v33 = vpop.f32.mrf.mxu0 }
0x15a0   :  { %v13717_v10 = vadd.f32 %v13716_v33, %v13715_v19  ;;  %v13750_v28 = vpop.f32.mrf.mxu1 }
0x15a1   :  { %v6014_v35 = vadd.f32 %v5993_v21, %v17832_v29  ;;  %v13751_v42 = vadd.f32 %v13750_v28, %v13749_v59  ;;  %v13718_v58 = vpop.f32.mrf.mxu0 }
0x15a2   :  { %v13752_v60 = vpop.f32.mrf.mxu1 }
0x15a3   :  { %v6019_v23 = vadd.f32 %v6014_v35, %v17012_v36  ;;  %v5996_v7 = vadd.f32 %v13751_v42, %v13717_v10  ;;  %v13719_v55 = vpop.f32.mrf.mxu0 }
0x15a4   :  { %v13720_v12 = vadd.f32 %v13719_v55, %v13718_v58  ;;  %v13753_v46 = vpop.f32.mrf.mxu1 }
0x15a5   :  { %v6015_v26 = vadd.f32 %v5996_v7, %v17835_v52  ;;  %v13754_v54 = vadd.f32 %v13753_v46, %v13752_v60  ;;  %v13721_v45 = vpop.f32.mrf.mxu0  ;;  %v17884_v56 = vadd.f32 %v12595_v34, %v6019_v23 }
0x15a6   :  { %v13755_v29 = vpop.f32.mrf.mxu1 }
0x15a7   :  { %v6001_v15 = vadd.f32 %v13754_v54, %v13720_v12  ;;  %v13722_v17 = vpop.f32.mrf.mxu0  ;;  %v6040_v16 = vsel %vm221_vm2, %v17884_v56, 0.0  ;;  %v6020_v9 = vadd.f32 %v6015_v26, %v17018_v61 }
0x15a8   :  { %v13723_v48 = vadd.f32 %v13722_v17, %v13721_v45  ;;  %v13756_v36 = vpop.f32.mrf.mxu1  ;;  %6041 = vadd.xlane.f32.xlu0 %v6040_v16  ;;  %v15419_v16 = vld [vmem:[%s19712_s30 + $0x48] sm:$0xff]  }
0x15a9   :  { %v6016_v30 = vadd.f32 %v6001_v15, %v17838_v4  ;;  %v13757_v62 = vadd.f32 %v13756_v36, %v13755_v29  ;;  %v13724_v1 = vpop.f32.mrf.mxu0  ;;  %v17890_v52 = vadd.f32 %v12595_v34, %v6020_v9  ;;  %v15420_v9 = vld [vmem:[%s19709_s4 + $0x48] sm:$0xff]   ;;  %14728 = vmatpush3.bf16.msra.mxu1 %v15419_v16  ;;  %v15422_v36 = vld [vmem:[%s19712_s30 + $0x40] sm:$0xff]  }
0x15aa   :  { %v13758_v3 = vpop.f32.mrf.mxu1  ;;  %14712 = vmatpush3.bf16.msra.mxu0 %v15420_v9  ;;  %14729 = vmatprep.subr.bf16.mxu1 %v19716_v44  ;;  %v12616_v9 = vld [vmem:[%s19668_s10 + $0x4] ss:$0 sm:$0xff] }
0x15ab   :  { %v6021_v32 = vadd.f32 %v6016_v30, %v17024_v14  ;;  %v6004_v50 = vadd.f32 %v13757_v62, %v13723_v48  ;;  %v13725_v11 = vpop.f32.mrf.mxu0  ;;  %v6043_v49 = vsel %vm221_vm2, %v17890_v52, 0.0  ;;  %14713 = vmatprep.subr.bf16.mxu0 %v19716_v44  ;;  %v15421_v48 = vld [vmem:[%s19709_s4 + $0x40] sm:$0xff]  }
0x15ac   :  { %v13726_v24 = vadd.f32 %v13725_v11, %v13724_v1  ;;  %v13759_v37 = vpop.f32.mrf.mxu1  ;;  %6044 = vadd.xlane.f32.xlu1 %v6043_v49 }
0x15ad   :  { %v6017_v61 = vadd.f32 %v6004_v50, %v17841_v31  ;;  %v13760_v6 = vadd.f32 %v13759_v37, %v13758_v3  ;;  %v13727_v57 = vpop.f32.mrf.mxu0  ;;  %v17896_v4 = vadd.f32 %v12595_v34, %v6021_v32  ;;  %14730 = vmatpush3.bf16.msra.mxu1 %v15422_v36 }
0x15ae   :  { %v13761_v47 = vpop.f32.mrf.mxu1  ;;  %14714 = vmatpush3.bf16.msra.mxu0 %v15421_v48  ;;  %14759 = vmatprep.subr.mxu1 %v19716_v44 }
0x15af   :  { %v6009_v63 = vadd.f32 %v13760_v6, %v13726_v24  ;;  %v13728_v39 = vpop.f32.mrf.mxu0  ;;  %v6046_v14 = vsel %vm221_vm2, %v17896_v4, 0.0  ;;  %v6022_v18 = vadd.f32 %v6017_v61, %v17030_v38  ;;  %14743 = vmatprep.subr.bf16.mxu0 %v19716_v44 }
0x15b0   :  { %v13762_v25 = vpop.f32.mrf.mxu1  ;;  %6047 = vadd.xlane.f32.xlu0 %v6046_v14 }
0x15b1   :  { %v6018_v22 = vadd.f32 %v6009_v63, %v17847_v51  ;;  %v17902_v41 = vadd.f32 %v12595_v34, %v6022_v18  ;;  %v12598_v18 = vld [vmem:[%s19710_s28 + $0x1] ss:$0 sm:$0xff] }
0x15b3   :  { %v6023_v31 = vadd.f32 %v6018_v22, %v19717_v2  ;;  %v6049_v53 = vsel %vm221_vm2, %v17902_v41, 0.0 }
0x15b4   :  { %6050 = vadd.xlane.f32.xlu1 %v6049_v53 }
0x15b5   :  { %v17907_v13 = vadd.f32 %v12595_v34, %v6023_v31  ;;  %v12599_v31 = vld [vmem:[%s19711_s29 + $0x1] ss:$0 sm:$0xff] }
0x15b7   :  { %v6052_v40 = vsel %vm234_vm4, %v17907_v13, 0.0 }
0x15b8   :  { %6053 = vadd.xlane.f32.xlu0 %v6052_v40 }
0x1631   :  { %v6042_v43 = vpop.xlane.xlu0 %6041 }
0x1632   :  { %v6055_v38 = vmul.f32 0.03125, %v6042_v43 }
0x1634   :  { %v6060_v19 = vsub.f32 %v17884_v56, %v6055_v38 }
0x1635   :  { %v6045_v59 = vpop.xlane.xlu1 %6044 }
0x1636   :  { %v6056_v51 = vmul.f32 0.03125, %v6045_v59  ;;  %v6065_v21 = vmul.f32 %v6060_v19, %v6060_v19 }
0x1638   :  { %v6061_v33 = vsub.f32 %v17890_v52, %v6056_v51  ;;  %v6070_v10 = vsel %vm221_vm2, %v6065_v21, 0.0 }
0x1639   :  { %6071 = vadd.xlane.f32.xlu1 %v6070_v10  ;;  %v6048_v28 = vpop.xlane.xlu0 %6047 }
0x163a   :  { %v6057_v35 = vmul.f32 0.03125, %v6048_v28  ;;  %v6066_v42 = vmul.f32 %v6061_v33, %v6061_v33 }
0x163c   :  { %v6062_v58 = vsub.f32 %v17896_v4, %v6057_v35  ;;  %v6073_v60 = vsel %vm221_vm2, %v6066_v42, 0.0  ;;  %v15424_v35 = vld [vmem:[%s19713_s5 + $0x40] sm:$0xff]  }
0x163d   :  { %v6051_v34 = vpop.xlane.xlu1 %6050  ;;  %6074 = vadd.xlane.f32.xlu0 %v6073_v60 }
0x163e   :  { %v6058_v23 = vmul.f32 0.03125, %v6051_v34  ;;  %v6067_v7 = vmul.f32 %v6062_v58, %v6062_v58 }
0x1640   :  { %v6063_v55 = vsub.f32 %v17902_v41, %v6058_v23  ;;  %v6076_v12 = vsel %vm221_vm2, %v6067_v7, 0.0 }
0x1641   :  { %6077 = vadd.xlane.f32.xlu1 %v6076_v12  ;;  %v6054_v46 = vpop.xlane.xlu0 %6053 }
0x1642   :  { %v6059_v26 = vmul.f32 0.03125, %v6054_v46  ;;  %v6068_v54 = vmul.f32 %v6063_v55, %v6063_v55 }
0x1644   :  { %v17919_v45 = vsub.f32 %v17907_v13, %v6059_v26  ;;  %v6079_v29 = vsel %vm221_vm2, %v6068_v54, 0.0 }
0x1645   :  { %6080 = vadd.xlane.f32.xlu0 %v6079_v29 }
0x1646   :  { %v6069_v15 = vmul.f32 %v17919_v45, %v17919_v45 }
0x1648   :  { %v6082_v17 = vsel %vm234_vm4, %v6069_v15, 0.0 }
0x1649   :  { %6083 = vadd.xlane.f32.xlu1 %v6082_v17 }
0x16c2   :  { %v6072_v30 = vpop.xlane.xlu1 %6071 }
0x16c3   :  { %v6085_v62 = vmul.f32 0.03125, %v6072_v30 }
0x16c5   :  { %v6090_v1 = vadd.f32 1e-05, %v6085_v62 }
0x16c6   :  { %v6075_v3 = vpop.xlane.xlu0 %6074 }
0x16c7   :  { %15735 = vrsqrt.f32 %v6090_v1  ;;  %v6086_v32 = vmul.f32 0.03125, %v6075_v3 }
0x16c9   :  { %v6091_v50 = vadd.f32 1e-05, %v6086_v32 }
0x16ca   :  { %v6078_v11 = vpop.xlane.xlu1 %6077 }
0x16cb   :  { %15737 = vrsqrt.f32 %v6091_v50  ;;  %v6087_v49 = vmul.f32 0.03125, %v6078_v11 }
0x16cd   :  { %v6092_v24 = vadd.f32 1e-05, %v6087_v49 }
0x16ce   :  { %v6081_v37 = vpop.xlane.xlu0 %6080 }
0x16cf   :  { %15739 = vrsqrt.f32 %v6092_v24  ;;  %v6088_v61 = vmul.f32 0.03125, %v6081_v37 }
0x16d1   :  { %v6093_v6 = vadd.f32 1e-05, %v6088_v61  ;;  %v12605_v61 = vld [vmem:[%s19667_s9 + $0x4] ss:$0 sm:$0xff] }
0x16d2   :  { %v6084_v57 = vpop.xlane.xlu1 %6083 }
0x16d3   :  { %15741 = vrsqrt.f32 %v6093_v6  ;;  %v6089_v47 = vmul.f32 0.03125, %v6084_v57 }
0x16d4   :  { %v15736_v63 = vpop.eup %15735 }
0x16d5   :  { %v6100_v39 = vmul.f32 %v15736_v63, %v6060_v19  ;;  %v6094_v14 = vadd.f32 1e-05, %v6089_v47  ;;  %v15423_v19 = vld [vmem:[%s19713_s5 + $0x48] sm:$0xff]  }
0x16d7   :  { %15743 = vrsqrt.f32 %v6094_v14  ;;  %v6111_v22 = vmul.f32 %v12598_v18, %v6100_v39 }
0x16d8   :  { %v15738_v25 = vpop.eup %15737 }
0x16d9   :  { %v6101_v2 = vmul.f32 %v15738_v25, %v6061_v33  ;;  %v6122_v43 = vadd.f32 %v12599_v31, %v6111_v22 }
0x16db   :  { %v6112_v53 = vmul.f32 %v12598_v18, %v6101_v2 }
0x16dc   :  { %v15740_v40 = vpop.eup %15739 }
0x16dd   :  { %v6123_v38 = vadd.f32 %v12599_v31, %v6112_v53  ;;  %v6102_v59 = vmul.f32 %v15740_v40, %v6062_v58 }
0x16df   :  { %v17947_v51 = vpack.c.bf16 %v6123_v38, %v6122_v43  ;;  %v6113_v10 = vmul.f32 %v12598_v18, %v6102_v59 }
0x16e0   :  { %v15742_v21 = vpop.eup %15741 }
0x16e1   :  { %v6103_v28 = vmul.f32 %v15742_v21, %v6063_v55  ;;  %14716 = vmatmul.mubr.msk.bf16.vlgmr.msra.gmra.mxu0 %vm221_vm2, %v17947_v51  ;;  %14732 = vmatmul.mubr.msk.bf16.vlgmr.msra.gmra.mxu1 %vm221_vm2, %v17947_v51  ;;  %v6124_v58 = vadd.f32 %v12599_v31, %v6113_v10 }
0x16e2   :  { %14719 = vmatprep.mubr.msk.bf16.mxu0 %vm15900_vm6, %v19716_v44  ;;  %14735 = vmatprep.mubr.msk.bf16.mxu1 %vm15900_vm6, %v19716_v44 }
0x16e3   :  { %v6114_v33 = vmul.f32 %v12598_v18, %v6103_v28  ;;  %14744 = vmatpush3.bf16.msra.mxu0 %v15423_v19 }
0x16e4   :  { %v15744_v42 = vpop.eup %15743  ;;  %14745 = vmatprep.subr.bf16.mxu0 %v19716_v44 }
0x16e5   :  { %v6125_v60 = vadd.f32 %v12599_v31, %v6114_v33  ;;  %v6104_v34 = vmul.f32 %v15744_v42, %v17919_v45 }
0x16e7   :  { %v17965_v23 = vpack.c.bf16 %v6125_v60, %v6124_v58  ;;  %v6115_v7 = vmul.f32 %v12598_v18, %v6104_v34  ;;  %14746 = vmatpush3.bf16.msra.mxu0 %v15424_v35  ;;  %v12627_v34 = vld [vmem:[%s19669_s11 + $0x4] ss:$0 sm:$0xff] }
0x16e8   :  { %14774 = vmatprep.subr.mxu0 %v19716_v44 }
0x16e9   :  { %14720 = vmatmul.mubr.msk.bf16.gmra.mxu0 %vm221_vm2, %v17965_v23  ;;  %14736 = vmatmul.mubr.msk.bf16.gmra.mxu1 %vm221_vm2, %v17965_v23  ;;  %v6126_v55 = vadd.f32 %v12599_v31, %v6115_v7 }
0x16ea   :  { %14723 = vmatprep.mubr.msk.bf16.mxu0 %vm15900_vm6, %v19716_v44  ;;  %14739 = vmatprep.mubr.msk.bf16.mxu1 %vm15900_vm6, %v19716_v44 }
0x16eb   :  { %v17976_v12 = vpack.c.bf16 %v6126_v55, %v6126_v55  ;;  %v15425_v55 = vld [vmem:[%s19709_s4 + $0x58] sm:$0xff]  }
0x16f1   :  { %14724 = vmatmul.mubr.msk.bf16.gmra.mxu0 %vm221_vm2, %v17976_v12  ;;  %14740 = vmatmul.mubr.msk.bf16.gmra.mxu1 %vm221_vm2, %v17976_v12 }
0x16f2   :  { %14747 = vmatprep.mubr.msk.bf16.mxu0 %vm15900_vm6, %v19716_v44  ;;  %14765 = vmatprep.mubr.msk.f32.mxu1 %vm15900_vm6, %v19716_v44 }
0x16f9   :  { %14748 = vmatmul.mubr.msk.bf16.vlgmr.msra.gmra.mxu0 %vm221_vm2, %v17947_v51 }
0x16fa   :  { %14751 = vmatprep.mubr.msk.bf16.mxu0 %vm15900_vm6, %v19716_v44 }
0x1701   :  { %14752 = vmatmul.mubr.msk.bf16.gmra.mxu0 %vm221_vm2, %v17965_v23 }
0x1702   :  { %14755 = vmatprep.mubr.msk.bf16.mxu0 %vm15900_vm6, %v19716_v44 }
0x1709   :  { %14756 = vmatmul.mubr.msk.bf16.gmra.mxu0 %vm221_vm2, %v17976_v12 }
0x170a   :  { %14780 = vmatprep.mubr.msk.f32.mxu0 %vm15900_vm6, %v19716_v44 }
0x17a1   :  { %v6198_v46 = vpop.f32.mrf.mxu0  ;;  %v6279_v26 = vpop.f32.mrf.mxu1 }
0x17a2   :  { %v6280_v6 = vadd.f32 %v12616_v9, %v6279_v26  ;;  %v6199_v39 = vadd.f32 %v12605_v61, %v6198_v46 }
0x17a3   :  { %v14717_v54 = vpop.f32.mrf.mxu0  ;;  %v14733_v45 = vpop.f32.mrf.mxu1 }
0x17a5   :  { %v6201_v29 = vpop.f32.mrf.mxu0  ;;  %v6282_v15 = vpop.f32.mrf.mxu1 }
0x17a6   :  { %v6283_v50 = vadd.f32 %v12616_v9, %v6282_v15  ;;  %v6202_v53 = vadd.f32 %v12605_v61, %v6201_v29 }
0x17a7   :  { %v14718_v17 = vpop.f32.mrf.mxu0  ;;  %v14734_v16 = vpop.f32.mrf.mxu1 }
0x17a8   :  { %v15426_v17 = vld [vmem:[%s19709_s4 + $0x50] sm:$0xff]  }
0x17a9   :  { %v6206_v48 = vpop.f32.mrf.mxu0  ;;  %v6287_v36 = vpop.f32.mrf.mxu1 }
0x17aa   :  { %v6288_v30 = vadd.f32 %v12616_v9, %v6287_v36  ;;  %v6207_v21 = vadd.f32 %v12605_v61, %v6206_v48 }
0x17ab   :  { %v14721_v62 = vpop.f32.mrf.mxu0  ;;  %v14737_v1 = vpop.f32.mrf.mxu1 }
0x17ac   :  { %14760 = vmatpush3.xpose.msk.msra.mxu1 %vm560_vm7, %v6288_v30  ;;  %v6617_v10 = vrot.slane %v6288_v30, 1  ;;  %v6610_v60 = vrot.slane %v6207_v21, 1 }
0x17ad   :  { %v6209_v3 = vpop.f32.mrf.mxu0  ;;  %v6290_v32 = vpop.f32.mrf.mxu1  ;;  %14761 = vmatprep.subr.mxu1 %v19716_v44 }
0x17ae   :  { %v6291_v14 = vadd.f32 %v12616_v9, %v6290_v32  ;;  %v6210_v38 = vadd.f32 %v12605_v61, %v6209_v3 }
0x17af   :  { %v14722_v11 = vpop.f32.mrf.mxu0  ;;  %v14738_v49 = vpop.f32.mrf.mxu1 }
0x17b0   :  { %14762 = vmatpush3.xpose.msk.msra.mxu1 %vm560_vm7, %v6283_v50  ;;  %v6618_v40 = vrot.slane %v6291_v14, 1  ;;  %v6611_v33 = vrot.slane %v6210_v38, 1  ;;  %v15427_v49 = vld [vmem:[%s19713_s5 + $0x58] sm:$0xff]  }
0x17b1   :  { %v6214_v24 = vpop.f32.mrf.mxu0  ;;  %v6295_v37 = vpop.f32.mrf.mxu1  ;;  %14763 = vmatprep.subr.mxu1 %v19716_v44 }
0x17b2   :  { %v6296_v57 = vadd.f32 %v12616_v9, %v6295_v37  ;;  %v6215_v35 = vadd.f32 %v12605_v61, %v6214_v24  ;;  %v6619_v42 = vsel %vm791_vm8, %v6617_v10, %v6618_v40  ;;  %v6612_v46 = vsel %vm791_vm8, %v6610_v60, %v6611_v33 }
0x17b3   :  { %v14725_v47 = vpop.f32.mrf.mxu0  ;;  %v14741_v63 = vpop.f32.mrf.mxu1 }
0x17b4   :  { %14764 = vmatpush3.xpose.msk.msra.mxu1 %vm560_vm7, %v6280_v6  ;;  %v6620_v22 = vrot.slane %v6296_v57, 1  ;;  %v6613_v26 = vrot.slane %v6215_v35, 1  ;;  %v15428_v6 = vld [vmem:[%s19713_s5 + $0x50] sm:$0xff]  }
0x17b5   :  { %v6217_v18 = vpop.f32.mrf.mxu0  ;;  %v6298_v25 = vpop.f32.mrf.mxu1  ;;  %14789 = vmatprep.subr.mxu1 %v19716_v44 }
0x17b6   :  { %v6621_v59 = vsel %vm791_vm8, %v6618_v40, %v6620_v22  ;;  %v6614_v16 = vsel %vm791_vm8, %v6611_v33, %v6613_v26 }
0x17b7   :  { %v14726_v2 = vpop.f32.mrf.mxu0  ;;  %v14742_v31 = vpop.f32.mrf.mxu1  ;;  %14766 = vmatmul.mubr.msk.f32.vlgmr.msra.gmra.mxu1 %vm560_vm7, %v6199_v39 }
0x17b8   :  { %14790 = vmatpush3.xpose.msk.msra.mxu1 %vm560_vm7, %v6620_v22  ;;  %14768 = vmatprep.mubr.msk.f32.mxu1 %vm15900_vm6, %v19716_v44 }
0x17b9   :  { %v6360_v43 = vpop.f32.mrf.mxu0  ;;  %14791 = vmatprep.subr.mxu1 %v19716_v44 }
0x17ba   :  { %v6361_v9 = vadd.f32 %v12627_v34, %v6360_v43 }
0x17bb   :  { %v14749_v19 = vpop.f32.mrf.mxu0  ;;  %14769 = vmatmul.mubr.msk.f32.gmra.mxu1 %vm560_vm7, %v6202_v53 }
0x17bc   :  { %14792 = vmatpush3.xpose.msk.msra.mxu1 %vm560_vm7, %v6621_v59  ;;  %14771 = vmatprep.mubr.msk.f32.mxu1 %vm15900_vm6, %v19716_v44 }
0x17bd   :  { %v6363_v28 = vpop.f32.mrf.mxu0  ;;  %14793 = vmatprep.subr.mxu1 %v19716_v44 }
0x17be   :  { %v6364_v29 = vadd.f32 %v12627_v34, %v6363_v28 }
0x17bf   :  { %v14750_v58 = vpop.f32.mrf.mxu0  ;;  %14772 = vmatmul.mubr.msk.f32.gmra.mxu1 %vm560_vm7, %v6207_v21 }
0x17c0   :  { %14794 = vmatpush3.xpose.msk.msra.mxu1 %vm560_vm7, %v6619_v42  ;;  %14795 = vmatprep.mubr.msk.f32.mxu1 %vm15900_vm6, %v19716_v44 }
0x17c1   :  { %v6368_v7 = vpop.f32.mrf.mxu0  ;;  %14819 = vmatprep.subr.bf16.mxu1 %v19716_v44 }
0x17c2   :  { %v6369_v54 = vadd.f32 %v12627_v34, %v6368_v7 }
0x17c3   :  { %v14753_v45 = vpop.f32.mrf.mxu0  ;;  %14796 = vmatmul.mubr.msk.f32.vlgmr.msra.gmra.mxu1 %vm560_vm7, %v6612_v46 }
0x17c4   :  { %14775 = vmatpush3.msk.msra.mxu0 %vm194_vm3, %v6369_v54  ;;  %14798 = vmatprep.mubr.msk.f32.mxu1 %vm15900_vm6, %v19716_v44  ;;  %v6752_v30 = vrot.slane %v6369_v54, 1  ;;  %v18127_v54 = vld [vmem:[%s19667_s9 + $0x5] ss:$0 sm:$0xff] }
0x17c5   :  { %v6371_v15 = vpop.f32.mrf.mxu0  ;;  %14776 = vmatprep.subr.mxu0 %v19716_v44  ;;  %14820 = vmatpush3.bf16.msra.mxu1 %v15425_v55 }
0x17c6   :  { %v6372_v48 = vadd.f32 %v12627_v34, %v6371_v15  ;;  %14777 = vmatpush3.msra.mxu0 %v6364_v29  ;;  %14821 = vmatprep.subr.bf16.mxu1 %v19716_v44 }
0x17c7   :  { %v14754_v36 = vpop.f32.mrf.mxu0  ;;  %14778 = vmatprep.subr.mxu0 %v19716_v44  ;;  %14799 = vmatmul.mubr.msk.f32.gmra.mxu1 %vm560_vm7, %v6614_v16 }
0x17c8   :  { %v6753_v62 = vrot.slane %v6372_v48, 1  ;;  %14779 = vmatpush3.msra.mxu0 %v6361_v9  ;;  %14801 = vmatprep.mubr.msk.f32.mxu1 %vm15900_vm6, %v19716_v44 }
0x17c9   :  { %v6376_v1 = vpop.f32.mrf.mxu0  ;;  %14822 = vmatpush3.bf16.msra.mxu1 %v15426_v17  ;;  %14804 = vmatprep.subr.mxu0 %v19716_v44 }
0x17ca   :  { %v18049_v3 = vadd.f32 %v12627_v34, %v6376_v1  ;;  %14851 = vmatprep.subr.bf16.mxu1 %v19716_v44  ;;  %v18053_v32 = vsel %vm791_vm8, %v6752_v30, %v6753_v62 }
0x17cb   :  { %v14757_v50 = vpop.f32.mrf.mxu0  ;;  %14802 = vmatmul.mubr.msk.f32.gmra.mxu1 %vm560_vm7, %v6613_v26 }
0x17cc   :  { %v6755_v11 = vrot.slane %v18049_v3, 1  ;;  %14823 = vmatprep.mubr.msk.bf16.mxu1 %vm15900_vm6, %v19716_v44 }
0x17cd   :  { %v6379_v24 = vpop.f32.mrf.mxu0 }
0x17ce   :  { %v18065_v37 = vsel %vm791_vm8, %v6753_v62, %v6755_v11 }
0x17cf   :  { %v14758_v61 = vpop.f32.mrf.mxu0  ;;  %14824 = vmatmul.mubr.msk.bf16.vlgmr.msra.gmra.mxu1 %vm221_vm2, %v17947_v51 }
0x17d0   :  { %14827 = vmatprep.mubr.msk.bf16.mxu1 %vm15900_vm6, %v19716_v44  ;;  %14852 = vmatpush3.bf16.msra.mxu1 %v15427_v49 }
0x17d1   :  { %14853 = vmatprep.subr.bf16.mxu1 %v19716_v44 }
0x17d4   :  { %14854 = vmatpush3.bf16.msra.mxu1 %v15428_v6 }
0x17d5   :  { %14897 = vmatprep.subr.mxu1 %v19716_v44 }
0x17d7   :  { %14828 = vmatmul.mubr.msk.bf16.gmra.mxu1 %vm221_vm2, %v17965_v23 }
0x17d8   :  { %14831 = vmatprep.mubr.msk.bf16.mxu1 %vm15900_vm6, %v19716_v44 }
0x17df   :  { %14832 = vmatmul.mubr.msk.bf16.gmra.mxu1 %vm221_vm2, %v17976_v12 }
0x17e0   :  { %14855 = vmatprep.mubr.msk.bf16.mxu1 %vm15900_vm6, %v19716_v44 }
0x17e7   :  { %14856 = vmatmul.mubr.msk.bf16.vlgmr.msra.gmra.mxu1 %vm221_vm2, %v17947_v51 }
0x17e8   :  { %14859 = vmatprep.mubr.msk.bf16.mxu1 %vm15900_vm6, %v19716_v44 }
0x17ef   :  { %14860 = vmatmul.mubr.msk.bf16.gmra.mxu1 %vm221_vm2, %v17965_v23 }
0x17f0   :  { %14863 = vmatprep.mubr.msk.bf16.mxu1 %vm15900_vm6, %v19716_v44 }
0x17f7   :  { %14864 = vmatmul.mubr.msk.bf16.gmra.mxu1 %vm221_vm2, %v17976_v12 }
0x17f8   :  { %14903 = vmatprep.mubr.msk.f32.mxu1 %vm15900_vm6, %v19716_v44 }
0x1877   :  { %v6466_v57 = vpop.f32.mrf.mxu1 }
0x1878   :  { %v18096_v47 = vmul.f32 0.35355338, %v6466_v57 }
0x1879   :  { %v14767_v63 = vpop.f32.mrf.mxu1 }
0x187a   :  { %v6483_v39 = vsel %vm662_vm9, %v18096_v47, -inf }
0x187b   :  { %6484 = vmax.xlane.f32.xlu0 %v6483_v39  ;;  %v6471_v14 = vpop.f32.mrf.mxu1 }
0x187c   :  { %v18100_v18 = vmul.f32 0.35355338, %v6471_v14 }
0x187d   :  { %v14770_v25 = vpop.f32.mrf.mxu1 }
0x187e   :  { %v6486_v22 = vsel %vm662_vm9, %v18100_v18, -inf }
0x187f   :  { %6487 = vmax.xlane.f32.xlu1 %v6486_v22  ;;  %v6476_v2 = vpop.f32.mrf.mxu1  ;;  %v18155_v22 = vld [vmem:[%s19669_s11 + $0x5] ss:$0 sm:$0xff] }
0x1880   :  { %v18104_v31 = vmul.f32 0.35355338, %v6476_v2 }
0x1881   :  { %v14773_v53 = vpop.f32.mrf.mxu1 }
0x1882   :  { %v6489_v40 = vsel %vm669_vm10, %v18104_v31, -inf }
0x1883   :  { %6490 = vmax.xlane.f32.xlu0 %v6489_v40  ;;  %v6700_v43 = vpop.f32.mrf.mxu1 }
0x1884   :  { %v18108_v38 = vmul.f32 0.35355338, %v6700_v43 }
0x1885   :  { %v14797_v59 = vpop.f32.mrf.mxu1 }
0x1886   :  { %v6717_v19 = vsel %vm662_vm9, %v18108_v38, -inf }
0x1887   :  { %6718 = vmax.xlane.f32.xlu1 %v6717_v19  ;;  %v6705_v21 = vpop.f32.mrf.mxu1 }
0x1888   :  { %v18112_v10 = vmul.f32 0.35355338, %v6705_v21 }
0x1889   :  { %v14800_v28 = vpop.f32.mrf.mxu1 }
0x188a   :  { %v6720_v33 = vsel %vm662_vm9, %v18112_v10, -inf }
0x188b   :  { %6721 = vmax.xlane.f32.xlu0 %v6720_v33  ;;  %v6710_v35 = vpop.f32.mrf.mxu1 }
0x188c   :  { %v18116_v42 = vmul.f32 0.35355338, %v6710_v35 }
0x188d   :  { %v14803_v58 = vpop.f32.mrf.mxu1 }
0x188e   :  { %v6723_v60 = vsel %vm669_vm10, %v18116_v42, -inf }
0x188f   :  { %6724 = vmax.xlane.f32.xlu1 %v6723_v60  ;;  %v18120_v34 = vpop.f32.mrf.mxu1 }
0x1891   :  { %v14825_v7 = vpop.f32.mrf.mxu1 }
0x1893   :  { %v18122_v55 = vpop.f32.mrf.mxu1 }
0x1895   :  { %v14826_v46 = vpop.f32.mrf.mxu1 }
0x1897   :  { %v6934_v26 = vpop.f32.mrf.mxu1 }
0x1898   :  { %v18130_v29 = vadd.f32 %v18127_v54, %v6934_v26 }
0x1899   :  { %v14829_v45 = vpop.f32.mrf.mxu1 }
0x189a   :  { %v7338_v9 = vrot.slane %v18130_v29, 1 }
0x189b   :  { %v6937_v15 = vpop.f32.mrf.mxu1 }
0x189c   :  { %v6938_v17 = vadd.f32 %v18127_v54, %v6937_v15 }
0x189d   :  { %v14830_v16 = vpop.f32.mrf.mxu1 }
0x189e   :  { %v7339_v48 = vrot.slane %v6938_v17, 1 }
0x189f   :  { %v6942_v36 = vpop.f32.mrf.mxu1 }
0x18a0   :  { %v18135_v30 = vsel %vm791_vm8, %v7338_v9, %v7339_v48  ;;  %v18138_v62 = vadd.f32 %v18127_v54, %v6942_v36 }
0x18a1   :  { %v14833_v1 = vpop.f32.mrf.mxu1 }
0x18a2   :  { %v7341_v50 = vrot.slane %v18138_v62, 1 }
0x18a3   :  { %v6945_v49 = vpop.f32.mrf.mxu1 }
0x18a4   :  { %v18144_v24 = vsel %vm791_vm8, %v7339_v48, %v7341_v50 }
0x18a5   :  { %v14834_v61 = vpop.f32.mrf.mxu1 }
0x18a7   :  { %v18146_v6 = vpop.f32.mrf.mxu1 }
0x18a9   :  { %v14857_v57 = vpop.f32.mrf.mxu1 }
0x18ab   :  { %v18148_v63 = vpop.f32.mrf.mxu1 }
0x18ad   :  { %v14858_v39 = vpop.f32.mrf.mxu1 }
0x18af   :  { %v18150_v14 = vpop.f32.mrf.mxu1 }
0x18b1   :  { %v14861_v25 = vpop.f32.mrf.mxu1 }
0x18b3   :  { %v7099_v2 = vpop.f32.mrf.mxu1 }
0x18b4   :  { %v18158_v53 = vadd.f32 %v18155_v22, %v7099_v2 }
0x18b5   :  { %v14862_v40 = vpop.f32.mrf.mxu1 }
0x18b6   :  { %v7481_v21 = vrot.slane %v18158_v53, 1 }
0x18b7   :  { %v7104_v43 = vpop.f32.mrf.mxu1 }
0x18b8   :  { %v18161_v59 = vadd.f32 %v18155_v22, %v7104_v43 }
0x18b9   :  { %v14865_v19 = vpop.f32.mrf.mxu1 }
0x18ba   :  { %v7483_v28 = vrot.slane %v18161_v59, 1 }
0x18bb   :  { %v7107_v33 = vpop.f32.mrf.mxu1 }
0x18bc   :  { %v18170_v35 = vsel %vm791_vm8, %v7481_v21, %v7483_v28 }
0x18bd   :  { %v14866_v58 = vpop.f32.mrf.mxu1 }
0x1904   :  { %v6485_v60 = vpop.xlane.xlu0 %6484 }
0x1905   :  { %v6492_v7 = vsub.f32 %v18096_v47, %v6485_v60 }
0x1907   :  { %v6495_v46 = vmul.f32 1.442695, %v6492_v7 }
0x1908   :  { %v6488_v26 = vpop.xlane.xlu1 %6487 }
0x1909   :  { %15745 = vpow2.f32 %v6495_v46  ;;  %v6493_v45 = vsub.f32 %v18100_v18, %v6488_v26 }
0x190b   :  { %v6497_v15 = vmul.f32 1.442695, %v6493_v45 }
0x190c   :  { %v6491_v17 = vpop.xlane.xlu0 %6490 }
0x190d   :  { %15747 = vpow2.f32 %v6497_v15  ;;  %v6494_v16 = vsub.f32 %v18104_v31, %v6491_v17 }
0x190f   :  { %v6499_v9 = vmul.f32 1.442695, %v6494_v16 }
0x1910   :  { %v6719_v48 = vpop.xlane.xlu1 %6718 }
0x1911   :  { %15749 = vpow2.f32 %v6499_v9  ;;  %v6726_v36 = vsub.f32 %v18108_v38, %v6719_v48 }
0x1913   :  { %v6729_v1 = vmul.f32 1.442695, %v6726_v36 }
0x1914   :  { %v6722_v49 = vpop.xlane.xlu0 %6721 }
0x1915   :  { %15751 = vpow2.f32 %v6729_v1  ;;  %v6727_v47 = vsub.f32 %v18112_v10, %v6722_v49 }
0x1916   :  { %v15746_v61 = vpop.eup %15745 }
0x1917   :  { %v6731_v57 = vmul.f32 1.442695, %v6727_v47  ;;  %v6501_v39 = vsel %vm662_vm9, %v15746_v61, 0.0  ;;  %v15430_v47 = vld [vmem:[%s19712_s30 + $0x50] sm:$0xff]  }
0x1918   :  { %6502 = vadd.xlane.f32.xlu0 %v6501_v39  ;;  %v6725_v18 = vpop.xlane.xlu1 %6724 }
0x1919   :  { %15753 = vpow2.f32 %v6731_v57  ;;  %v6728_v25 = vsub.f32 %v18116_v42, %v6725_v18 }
0x191a   :  { %v15748_v31 = vpop.eup %15747 }
0x191b   :  { %v6733_v2 = vmul.f32 1.442695, %v6728_v25  ;;  %v6504_v40 = vsel %vm662_vm9, %v15748_v31, 0.0 }
0x191c   :  { %6505 = vadd.xlane.f32.xlu1 %v6504_v40 }
0x191d   :  { %15755 = vpow2.f32 %v6733_v2 }
0x191e   :  { %v15750_v38 = vpop.eup %15749 }
0x191f   :  { %v6507_v43 = vsel %vm669_vm10, %v15750_v38, 0.0 }
0x1920   :  { %6508 = vadd.xlane.f32.xlu0 %v6507_v43 }
0x1922   :  { %v15752_v10 = vpop.eup %15751 }
0x1923   :  { %v6735_v19 = vsel %vm662_vm9, %v15752_v10, 0.0 }
0x1924   :  { %6736 = vadd.xlane.f32.xlu1 %v6735_v19 }
0x1926   :  { %v15754_v33 = vpop.eup %15753 }
0x1927   :  { %v6738_v58 = vsel %vm662_vm9, %v15754_v33, 0.0 }
0x1928   :  { %6739 = vadd.xlane.f32.xlu0 %v6738_v58 }
0x192a   :  { %v15756_v60 = vpop.eup %15755 }
0x192b   :  { %v6741_v42 = vsel %vm669_vm10, %v15756_v60, 0.0 }
0x192c   :  { %6742 = vadd.xlane.f32.xlu1 %v6741_v42 }
0x19a1   :  { %v6503_v7 = vpop.xlane.xlu0 %6502 }
0x19a2   :  { %15757 = vrcp.f32 %v6503_v7 }
0x19a5   :  { %v6506_v46 = vpop.xlane.xlu1 %6505 }
0x19a6   :  { %15759 = vrcp.f32 %v6506_v46 }
0x19a9   :  { %v6509_v26 = vpop.xlane.xlu0 %6508 }
0x19aa   :  { %15761 = vrcp.f32 %v6509_v26 }
0x19ad   :  { %v6737_v45 = vpop.xlane.xlu1 %6736 }
0x19ae   :  { %15763 = vrcp.f32 %v6737_v45 }
0x19af   :  { %v15758_v15 = vpop.eup %15757 }
0x19b0   :  { %v6513_v17 = vmul.f32 %v15758_v15, %v15746_v61 }
0x19b1   :  { %v6740_v16 = vpop.xlane.xlu0 %6739 }
0x19b2   :  { %15765 = vrcp.f32 %v6740_v16  ;;  %14781 = vmatmul.mubr.msk.f32.vlgmr.msra.gmra.mxu0 %vm662_vm9, %v6513_v17 }
0x19b3   :  { %v15760_v9 = vpop.eup %15759  ;;  %14805 = vmatpush3.msk.msra.mxu0 %vm194_vm3, %v6755_v11  ;;  %14783 = vmatprep.mubr.msk.f32.mxu0 %vm15900_vm6, %v19716_v44 }
0x19b4   :  { %14806 = vmatprep.subr.mxu0 %v19716_v44  ;;  %v6514_v48 = vmul.f32 %v15760_v9, %v15748_v31 }
0x19b5   :  { %14807 = vmatpush3.msra.mxu0 %v18065_v37  ;;  %v6743_v36 = vpop.xlane.xlu1 %6742  ;;  %v15429_v37 = vld [vmem:[%s19712_s30 + $0x58] sm:$0xff]  }
0x19b6   :  { %15767 = vrcp.f32 %v6743_v36  ;;  %14808 = vmatprep.subr.mxu0 %v19716_v44  ;;  %14784 = vmatmul.mubr.msk.f32.gmra.mxu0 %vm662_vm9, %v6514_v48 }
0x19b7   :  { %v15762_v1 = vpop.eup %15761  ;;  %14809 = vmatpush3.msra.mxu0 %v18053_v32  ;;  %14786 = vmatprep.mubr.msk.f32.mxu0 %vm15900_vm6, %v19716_v44 }
0x19b8   :  { %v6515_v3 = vmul.f32 %v15762_v1, %v15750_v38  ;;  %14835 = vmatprep.subr.bf16.mxu0 %v19716_v44 }
0x19ba   :  { %14787 = vmatmul.mubr.msk.f32.gmra.mxu0 %vm662_vm9, %v6515_v3  ;;  %v12670_v3 = vld [vmem:[%s19668_s10 + $0x5] ss:$0 sm:$0xff] }
0x19bb   :  { %v15764_v11 = vpop.eup %15763  ;;  %14810 = vmatprep.mubr.msk.f32.mxu0 %vm15900_vm6, %v19716_v44 }
0x19bc   :  { %v6747_v49 = vmul.f32 %v15764_v11, %v15752_v10 }
0x19be   :  { %14811 = vmatmul.mubr.msk.f32.vlgmr.msra.gmra.mxu0 %vm662_vm9, %v6747_v49 }
0x19bf   :  { %v15766_v32 = vpop.eup %15765  ;;  %14813 = vmatprep.mubr.msk.f32.mxu0 %vm15900_vm6, %v19716_v44  ;;  %14836 = vmatpush3.bf16.msra.mxu0 %v15429_v37 }
0x19c0   :  { %v6748_v61 = vmul.f32 %v15766_v32, %v15754_v33  ;;  %14837 = vmatprep.subr.bf16.mxu0 %v19716_v44 }
0x19c2   :  { %14814 = vmatmul.mubr.msk.f32.gmra.mxu0 %vm662_vm9, %v6748_v61 }
0x19c3   :  { %v15768_v57 = vpop.eup %15767  ;;  %14816 = vmatprep.mubr.msk.f32.mxu0 %vm15900_vm6, %v19716_v44  ;;  %14838 = vmatpush3.bf16.msra.mxu0 %v15430_v47 }
0x19c4   :  { %v6749_v39 = vmul.f32 %v15768_v57, %v15756_v60  ;;  %14867 = vmatprep.subr.mxu0 %v19716_v44 }
0x19c6   :  { %14817 = vmatmul.mubr.msk.f32.gmra.mxu0 %vm662_vm9, %v6749_v39 }
0x19c7   :  { %14839 = vmatprep.mubr.msk.bf16.mxu0 %vm15900_vm6, %v19716_v44 }
0x19ca   :  { %14840 = vmatmul.mubr.msk.bf16.vlgmr.msra.gmra.mxu0 %vm221_vm2, %v17947_v51 }
0x19cb   :  { %14843 = vmatprep.mubr.msk.bf16.mxu0 %vm15900_vm6, %v19716_v44 }
0x19d2   :  { %14844 = vmatmul.mubr.msk.bf16.gmra.mxu0 %vm221_vm2, %v17965_v23 }
0x19d3   :  { %14847 = vmatprep.mubr.msk.bf16.mxu0 %vm15900_vm6, %v19716_v44 }
0x19da   :  { %14848 = vmatmul.mubr.msk.bf16.gmra.mxu0 %vm221_vm2, %v17976_v12 }
0x19db   :  { %14873 = vmatprep.mubr.msk.f32.mxu0 %vm15900_vm6, %v19716_v44 }
0x1a72   :  { %v18230_v18 = vpop.f32.mrf.mxu0 }
0x1a74   :  { %v14782_v25 = vpop.f32.mrf.mxu0 }
0x1a76   :  { %v18232_v31 = vpop.f32.mrf.mxu0 }
0x1a77   :  { %v6862_v2 = vpack.c.bf16 %v18232_v31, %v18230_v18  ;;  %v12707_v31 = vld [vmem:[%s19670_s12 + $0x14] sm:$0xf] }
0x1a78   :  { %v14785_v40 = vpop.f32.mrf.mxu0 }
0x1a7a   :  { %v6604_v38 = vpop.f32.mrf.mxu0 }
0x1a7c   :  { %v14788_v43 = vpop.f32.mrf.mxu0 }
0x1a7e   :  { %v6836_v10 = vpop.f32.mrf.mxu0 }
0x1a7f   :  { %v6853_v19 = vrot.slane %v6836_v10, 7  ;;  %v6927_v10 = vadd.f32 %v18127_v54, %v18120_v34  ;;  %v6930_v34 = vadd.f32 %v18127_v54, %v18122_v55 }
0x1a80   :  { %v14812_v33 = vpop.f32.mrf.mxu0 }
0x1a81   :  { %v18237_v58 = vsel %vm194_vm3, %v6604_v38, %v6853_v19  ;;  %v18260_v33 = vadd.f32 %v18155_v22, %v18150_v14 }
0x1a82   :  { %v6841_v60 = vpop.f32.mrf.mxu0 }
0x1a83   :  { %v6854_v42 = vrot.slane %v6841_v60, 7 }
0x1a84   :  { %v14815_v7 = vpop.f32.mrf.mxu0 }
0x1a85   :  { %v18240_v46 = vsel %vm194_vm3, %v6853_v19, %v6854_v42  ;;  %v7092_v7 = vadd.f32 %v18155_v22, %v18148_v63 }
0x1a86   :  { %v6863_v26 = vpack.c.bf16 %v18240_v46, %v18237_v58  ;;  %v6846_v45 = vpop.f32.mrf.mxu0 }
0x1a87   :  { %v6856_v15 = vrot.slane %v6846_v45, 7  ;;  %v7089_v45 = vadd.f32 %v18155_v22, %v18146_v6 }
0x1a88   :  { %v14818_v17 = vpop.f32.mrf.mxu0 }
0x1a89   :  { %v18245_v16 = vsel %vm194_vm3, %v6854_v42, %v6856_v15 }
0x1a8a   :  { %v7007_v9 = vpop.f32.mrf.mxu0  ;;  %v6864_v18 = vpack.c.bf16 %v18245_v16, %v18245_v16  ;;  %v15433_v16 = vld [vmem:[%s19709_s4 + $0x68] sm:$0xff]  }
0x1a8b   :  { %v7008_v39 = vadd.f32 %v12670_v3, %v7007_v9 }
0x1a8c   :  { %v14841_v48 = vpop.f32.mrf.mxu0 }
0x1a8e   :  { %v7010_v36 = vpop.f32.mrf.mxu0 }
0x1a8f   :  { %v7011_v47 = vadd.f32 %v12670_v3, %v7010_v36 }
0x1a90   :  { %v14842_v1 = vpop.f32.mrf.mxu0 }
0x1a92   :  { %v7015_v11 = vpop.f32.mrf.mxu0 }
0x1a93   :  { %v7016_v37 = vadd.f32 %v12670_v3, %v7015_v11 }
0x1a94   :  { %v14845_v49 = vpop.f32.mrf.mxu0 }
0x1a95   :  { %14868 = vmatpush3.xpose.msk.msra.mxu0 %vm560_vm7, %v7016_v37  ;;  %v7345_v63 = vrot.slane %v7016_v37, 1 }
0x1a96   :  { %v7018_v32 = vpop.f32.mrf.mxu0  ;;  %14869 = vmatprep.subr.mxu0 %v19716_v44 }
0x1a97   :  { %v7019_v40 = vadd.f32 %v12670_v3, %v7018_v32 }
0x1a98   :  { %v14846_v61 = vpop.f32.mrf.mxu0 }
0x1a99   :  { %14870 = vmatpush3.xpose.msk.msra.mxu0 %vm560_vm7, %v7011_v47  ;;  %v7346_v60 = vrot.slane %v7019_v40, 1 }
0x1a9a   :  { %v7023_v57 = vpop.f32.mrf.mxu0  ;;  %14871 = vmatprep.subr.mxu0 %v19716_v44 }
0x1a9b   :  { %v7024_v25 = vadd.f32 %v12670_v3, %v7023_v57  ;;  %v7347_v55 = vsel %vm791_vm8, %v7345_v63, %v7346_v60 }
0x1a9c   :  { %v14849_v38 = vpop.f32.mrf.mxu0 }
0x1a9d   :  { %v7348_v43 = vrot.slane %v7024_v25, 1  ;;  %14872 = vmatpush3.xpose.msk.msra.mxu0 %vm560_vm7, %v7008_v39 }
0x1a9e   :  { %v7026_v19 = vpop.f32.mrf.mxu0  ;;  %14882 = vmatprep.subr.mxu0 %v19716_v44 }
0x1a9f   :  { %14898 = vmatpush3.xpose.msk.msra.mxu1 %vm560_vm7, %v7348_v43  ;;  %v7349_v14 = vsel %vm791_vm8, %v7346_v60, %v7348_v43 }
0x1aa0   :  { %v14850_v42 = vpop.f32.mrf.mxu0  ;;  %14874 = vmatmul.mubr.msk.f32.vlgmr.msra.gmra.mxu0 %vm560_vm7, %v6927_v10  ;;  %14899 = vmatprep.subr.mxu1 %v19716_v44 }
0x1aa1   :  { %14883 = vmatpush3.msk.msra.mxu0 %vm194_vm3, %v18260_v33  ;;  %14876 = vmatprep.mubr.msk.f32.mxu0 %vm15900_vm6, %v19716_v44 }
0x1aa2   :  { %14884 = vmatprep.subr.mxu0 %v19716_v44 }
0x1aa3   :  { %14885 = vmatpush3.msra.mxu0 %v7092_v7  ;;  %14900 = vmatpush3.xpose.msk.msra.mxu1 %vm560_vm7, %v7349_v14 }
0x1aa4   :  { %14877 = vmatmul.mubr.msk.f32.gmra.mxu0 %vm560_vm7, %v6930_v34  ;;  %14886 = vmatprep.subr.mxu0 %v19716_v44 }
0x1aa5   :  { %14887 = vmatpush3.msra.mxu0 %v7089_v45  ;;  %14901 = vmatprep.subr.mxu1 %v19716_v44 }
0x1aa6   :  { %14879 = vmatprep.mubr.msk.f32.mxu0 %vm15900_vm6, %v19716_v44  ;;  %14912 = vmatprep.subr.mxu0 %v19716_v44 }
0x1aa7   :  { %14902 = vmatpush3.xpose.msk.msra.mxu1 %vm560_vm7, %v7347_v55 }
0x1aa8   :  { %14880 = vmatmul.mubr.msk.f32.gmra.mxu0 %vm560_vm7, %v18130_v29  ;;  %14927 = vmatprep.subr.bf16.mxu1 %v19716_v44 }
0x1aa9   :  { %14888 = vmatprep.mubr.msk.f32.mxu0 %vm15900_vm6, %v19716_v44 }
0x1aaa   :  { %14904 = vmatmul.mubr.msk.f32.vlgmr.msra.gmra.mxu1 %vm560_vm7, %v18135_v30 }
0x1aab   :  { %14906 = vmatprep.mubr.msk.f32.mxu1 %vm15900_vm6, %v19716_v44 }
0x1aae   :  { %14907 = vmatmul.mubr.msk.f32.gmra.mxu1 %vm560_vm7, %v18144_v24 }
0x1aaf   :  { %14909 = vmatprep.mubr.msk.f32.mxu1 %vm15900_vm6, %v19716_v44 }
0x1ab2   :  { %14910 = vmatmul.mubr.msk.f32.gmra.mxu1 %vm560_vm7, %v7341_v50 }
0x1ab3   :  { %14929 = vmatprep.mubr.msk.bf16.mxu1 %vm15900_vm6, %v19716_v44 }
0x1b60   :  { %v7194_v54 = vpop.f32.mrf.mxu0 }
0x1b61   :  { %v7208_v29 = vmul.f32 0.35355338, %v7194_v54 }
0x1b62   :  { %v14875_v6 = vpop.f32.mrf.mxu0 }
0x1b63   :  { %v7211_v30 = vsel %vm662_vm9, %v7208_v29, -inf }
0x1b64   :  { %7212 = vmax.xlane.f32.xlu0 %v7211_v30  ;;  %v7199_v22 = vpop.f32.mrf.mxu0 }
0x1b65   :  { %v7209_v15 = vmul.f32 0.35355338, %v7199_v22 }
0x1b66   :  { %v14878_v17 = vpop.f32.mrf.mxu0 }
0x1b67   :  { %v7214_v24 = vsel %vm662_vm9, %v7209_v15, -inf }
0x1b68   :  { %7215 = vmax.xlane.f32.xlu1 %v7214_v24  ;;  %v7204_v9 = vpop.f32.mrf.mxu0 }
0x1b69   :  { %v7210_v48 = vmul.f32 0.35355338, %v7204_v9 }
0x1b6a   :  { %v14881_v62 = vpop.f32.mrf.mxu0  ;;  %v7428_v36 = vpop.f32.mrf.mxu1 }
0x1b6b   :  { %v7442_v50 = vmul.f32 0.35355338, %v7428_v36  ;;  %v7217_v1 = vsel %vm669_vm10, %v7210_v48, -inf }
0x1b6c   :  { %v14905_v3 = vpop.f32.mrf.mxu1  ;;  %7218 = vmax.xlane.f32.xlu0 %v7217_v1 }
0x1b6d   :  { %v7445_v11 = vsel %vm662_vm9, %v7442_v50, -inf }
0x1b6e   :  { %v7433_v37 = vpop.f32.mrf.mxu1  ;;  %7446 = vmax.xlane.f32.xlu1 %v7445_v11 }
0x1b6f   :  { %v7443_v49 = vmul.f32 0.35355338, %v7433_v37 }
0x1b70   :  { %v14908_v32 = vpop.f32.mrf.mxu1 }
0x1b71   :  { %v7448_v47 = vsel %vm662_vm9, %v7443_v49, -inf }
0x1b72   :  { %v7438_v61 = vpop.f32.mrf.mxu1  ;;  %7449 = vmax.xlane.f32.xlu0 %v7448_v47 }
0x1b73   :  { %v7444_v57 = vmul.f32 0.35355338, %v7438_v61 }
0x1b74   :  { %v14911_v39 = vpop.f32.mrf.mxu1 }
0x1b75   :  { %v7451_v25 = vsel %vm669_vm10, %v7444_v57, -inf }
0x1b76   :  { %7452 = vmax.xlane.f32.xlu1 %v7451_v25 }
0x1bed   :  { %v7213_v40 = vpop.xlane.xlu0 %7212 }
0x1bee   :  { %v7220_v38 = vsub.f32 %v7208_v29, %v7213_v40 }
0x1bf0   :  { %v7223_v43 = vmul.f32 1.442695, %v7220_v38 }
0x1bf1   :  { %v7216_v10 = vpop.xlane.xlu1 %7215 }
0x1bf2   :  { %15769 = vpow2.f32 %v7223_v43  ;;  %v7221_v19 = vsub.f32 %v7209_v15, %v7216_v10  ;;  %v7480_v43 = vrot.slane %v18260_v33, 1 }
0x1bf4   :  { %v7225_v60 = vmul.f32 1.442695, %v7221_v19  ;;  %v7482_v59 = vsel %vm791_vm8, %v7480_v43, %v7481_v21  ;;  %v15436_v43 = vld [vmem:[%s19713_s5 + $0x60] sm:$0xff]  }
0x1bf5   :  { %v7219_v42 = vpop.xlane.xlu0 %7218 }
0x1bf6   :  { %15771 = vpow2.f32 %v7225_v60  ;;  %v7222_v7 = vsub.f32 %v7210_v48, %v7219_v42 }
0x1bf7   :  { %v7447_v34 = vpop.xlane.xlu1 %7446 }
0x1bf8   :  { %v7227_v14 = vmul.f32 1.442695, %v7222_v7  ;;  %v7454_v45 = vsub.f32 %v7442_v50, %v7447_v34 }
0x1bfa   :  { %15773 = vpow2.f32 %v7227_v14  ;;  %v7457_v63 = vmul.f32 1.442695, %v7454_v45  ;;  %v15431_v14 = vld [vmem:[%s19712_s30 + $0x68] sm:$0xff]   ;;  %v15432_v45 = vld [vmem:[%s19712_s30 + $0x60] sm:$0xff]  }
0x1bfb   :  { %v7450_v55 = vpop.xlane.xlu0 %7449 }
0x1bfc   :  { %15775 = vpow2.f32 %v7457_v63  ;;  %v7455_v54 = vsub.f32 %v7443_v49, %v7450_v55 }
0x1bfe   :  { %v7459_v6 = vmul.f32 1.442695, %v7455_v54 }
0x1bff   :  { %v15770_v30 = vpop.eup %15769  ;;  %v7453_v22 = vpop.xlane.xlu1 %7452 }
0x1c00   :  { %15777 = vpow2.f32 %v7459_v6  ;;  %v7456_v29 = vsub.f32 %v7444_v57, %v7453_v22  ;;  %v7229_v17 = vsel %vm662_vm9, %v15770_v30, 0.0  ;;  %v15434_v6 = vld [vmem:[%s19709_s4 + $0x60] sm:$0xff]  }
0x1c01   :  { %7230 = vadd.xlane.f32.xlu0 %v7229_v17 }
0x1c02   :  { %v7461_v15 = vmul.f32 1.442695, %v7456_v29 }
0x1c03   :  { %v15772_v24 = vpop.eup %15771 }
0x1c04   :  { %15779 = vpow2.f32 %v7461_v15  ;;  %v7232_v9 = vsel %vm662_vm9, %v15772_v24, 0.0 }
0x1c05   :  { %7233 = vadd.xlane.f32.xlu1 %v7232_v9 }
0x1c07   :  { %v15774_v48 = vpop.eup %15773 }
0x1c08   :  { %v7235_v62 = vsel %vm669_vm10, %v15774_v48, 0.0 }
0x1c09   :  { %v15776_v36 = vpop.eup %15775  ;;  %7236 = vadd.xlane.f32.xlu0 %v7235_v62 }
0x1c0a   :  { %v7463_v50 = vsel %vm662_vm9, %v15776_v36, 0.0 }
0x1c0b   :  { %7464 = vadd.xlane.f32.xlu1 %v7463_v50 }
0x1c0d   :  { %v15778_v1 = vpop.eup %15777 }
0x1c0e   :  { %v7466_v3 = vsel %vm662_vm9, %v15778_v1, 0.0 }
0x1c0f   :  { %7467 = vadd.xlane.f32.xlu0 %v7466_v3 }
0x1c11   :  { %v15780_v11 = vpop.eup %15779 }
0x1c12   :  { %v7469_v37 = vsel %vm669_vm10, %v15780_v11, 0.0 }
0x1c13   :  { %7470 = vadd.xlane.f32.xlu1 %v7469_v37 }
0x1c8a   :  { %v7231_v49 = vpop.xlane.xlu0 %7230 }
0x1c8b   :  { %15781 = vrcp.f32 %v7231_v49 }
0x1c8e   :  { %v7234_v32 = vpop.xlane.xlu1 %7233 }
0x1c8f   :  { %15783 = vrcp.f32 %v7234_v32 }
0x1c92   :  { %v7237_v47 = vpop.xlane.xlu0 %7236 }
0x1c93   :  { %15785 = vrcp.f32 %v7237_v47 }
0x1c94   :  { %v7465_v61 = vpop.xlane.xlu1 %7464 }
0x1c95   :  { %15787 = vrcp.f32 %v7465_v61 }
0x1c98   :  { %v15782_v57 = vpop.eup %15781  ;;  %v7468_v39 = vpop.xlane.xlu0 %7467 }
0x1c99   :  { %v7241_v25 = vmul.f32 %v15782_v57, %v15770_v30  ;;  %15789 = vrcp.f32 %v7468_v39 }
0x1c9b   :  { %14889 = vmatmul.mubr.msk.f32.vlgmr.msra.gmra.mxu0 %vm662_vm9, %v7241_v25  ;;  %v15435_v25 = vld [vmem:[%s19713_s5 + $0x68] sm:$0xff]  }
0x1c9c   :  { %v15784_v40 = vpop.eup %15783  ;;  %14913 = vmatpush3.msk.msra.mxu0 %vm194_vm3, %v7483_v28  ;;  %v7471_v38 = vpop.xlane.xlu1 %7470  ;;  %14891 = vmatprep.mubr.msk.f32.mxu0 %vm15900_vm6, %v19716_v44 }
0x1c9d   :  { %15791 = vrcp.f32 %v7471_v38  ;;  %14914 = vmatprep.subr.mxu0 %v19716_v44  ;;  %v7242_v10 = vmul.f32 %v15784_v40, %v15772_v24 }
0x1c9e   :  { %14915 = vmatpush3.msra.mxu0 %v18170_v35  ;;  %v12653_v35 = vld [vmem:[%s19670_s12 + $0x10] sm:$0xf] }
0x1c9f   :  { %14916 = vmatprep.subr.mxu0 %v19716_v44  ;;  %14892 = vmatmul.mubr.msk.f32.gmra.mxu0 %vm662_vm9, %v7242_v10  ;;  %v7673_v21 = vsel %vm102_vm0, %v12653_v35, 0 }
0x1ca0   :  { %v15786_v28 = vpop.eup %15785  ;;  %14917 = vmatpush3.msra.mxu0 %v7482_v59  ;;  %14894 = vmatprep.mubr.msk.f32.mxu0 %vm15900_vm6, %v19716_v44 }
0x1ca1   :  { %v7243_v33 = vmul.f32 %v15786_v28, %v15774_v48  ;;  %14941 = vmatprep.subr.bf16.mxu0 %v19716_v44 }
0x1ca2   :  { %v15788_v19 = vpop.eup %15787 }
0x1ca3   :  { %14895 = vmatmul.mubr.msk.f32.gmra.mxu0 %vm662_vm9, %v7243_v33  ;;  %v7475_v53 = vmul.f32 %v15788_v19, %v15776_v36 }
0x1ca4   :  { %14918 = vmatprep.mubr.msk.f32.mxu0 %vm15900_vm6, %v19716_v44 }
0x1ca6   :  { %v15790_v60 = vpop.eup %15789 }
0x1ca7   :  { %14919 = vmatmul.mubr.msk.f32.vlgmr.msra.gmra.mxu0 %vm662_vm9, %v7475_v53  ;;  %v7476_v42 = vmul.f32 %v15790_v60, %v15778_v1  ;;  %v12730_v60 = vld [vmem:[%s19668_s10 + $0x6] ss:$0 sm:$0xff] }
0x1ca8   :  { %14921 = vmatprep.mubr.msk.f32.mxu0 %vm15900_vm6, %v19716_v44  ;;  %14942 = vmatpush3.bf16.msra.mxu0 %v7673_v21 }
0x1ca9   :  { %14971 = vmatprep.subr.bf16.mxu0 %v19716_v44 }
0x1caa   :  { %v15792_v7 = vpop.eup %15791 }
0x1cab   :  { %14922 = vmatmul.mubr.msk.f32.gmra.mxu0 %vm662_vm9, %v7476_v42  ;;  %v7477_v34 = vmul.f32 %v15792_v7, %v15780_v11 }
0x1cac   :  { %14924 = vmatprep.mubr.msk.f32.mxu0 %vm15900_vm6, %v19716_v44 }
0x1caf   :  { %14925 = vmatmul.mubr.msk.f32.gmra.mxu0 %vm662_vm9, %v7477_v34 }
0x1cb0   :  { %14943 = vmatprep.mubr.msk.bf16.mxu0 %vm15900_vm6, %v19716_v44 }
0x1cb3   :  { %14944 = vmatmul.mubr.msk.bf16.vlgmr.msra.gmra.mxu0 %vm560_vm7, %v6862_v2  ;;  %v7605_v2 = vsel %vm102_vm0, %v12707_v31, 0 }
0x1cb4   :  { %14947 = vmatprep.mubr.msk.bf16.mxu0 %vm15900_vm6, %v19716_v44  ;;  %14972 = vmatpush3.bf16.msra.mxu0 %v15431_v14 }
0x1cb5   :  { %14973 = vmatprep.subr.bf16.mxu0 %v19716_v44  ;;  %14928 = vmatpush3.bf16.msra.mxu1 %v7605_v2 }
0x1cb6   :  { %14955 = vmatprep.subr.bf16.mxu1 %v19716_v44 }
0x1cb8   :  { %14974 = vmatpush3.bf16.msra.mxu0 %v15432_v45 }
0x1cb9   :  { %15003 = vmatprep.subr.mxu0 %v19716_v44 }
0x1cbb   :  { %14948 = vmatmul.mubr.msk.bf16.gmra.mxu0 %vm560_vm7, %v6863_v26 }
0x1cbc   :  { %14951 = vmatprep.mubr.msk.bf16.mxu0 %vm15900_vm6, %v19716_v44 }
0x1cc3   :  { %14952 = vmatmul.mubr.msk.bf16.gmra.mxu0 %vm560_vm7, %v6864_v18 }
0x1cc4   :  { %14975 = vmatprep.mubr.msk.bf16.mxu0 %vm15900_vm6, %v19716_v44 }
0x1ccb   :  { %14976 = vmatmul.mubr.msk.bf16.vlgmr.msra.gmra.mxu0 %vm221_vm2, %v17947_v51 }
0x1ccc   :  { %14979 = vmatprep.mubr.msk.bf16.mxu0 %vm15900_vm6, %v19716_v44 }
0x1cd3   :  { %14980 = vmatmul.mubr.msk.bf16.gmra.mxu0 %vm221_vm2, %v17965_v23 }
0x1cd4   :  { %14983 = vmatprep.mubr.msk.bf16.mxu0 %vm15900_vm6, %v19716_v44 }
0x1cdb   :  { %14984 = vmatmul.mubr.msk.bf16.gmra.mxu0 %vm221_vm2, %v17976_v12 }
0x1cdc   :  { %15009 = vmatprep.mubr.msk.f32.mxu0 %vm15900_vm6, %v19716_v44 }
0x1d5b   :  { %v7322_v58 = vpop.f32.mrf.mxu0 }
0x1d5d   :  { %v14890_v46 = vpop.f32.mrf.mxu0 }
0x1d5f   :  { %v7327_v26 = vpop.f32.mrf.mxu0 }
0x1d60   :  { %v7590_v63 = vpack.c.bf16 %v7327_v26, %v7322_v58 }
0x1d61   :  { %v14893_v55 = vpop.f32.mrf.mxu0 }
0x1d62   :  { %14930 = vmatmul.mubr.msk.bf16.vlgmr.msra.gmra.mxu1 %vm560_vm7, %v7590_v63 }
0x1d63   :  { %v7332_v54 = vpop.f32.mrf.mxu0  ;;  %14933 = vmatprep.mubr.msk.bf16.mxu1 %vm15900_vm6, %v19716_v44  ;;  %14956 = vmatpush3.bf16.msra.mxu1 %v15433_v16 }
0x1d64   :  { %14957 = vmatprep.subr.bf16.mxu1 %v19716_v44 }
0x1d65   :  { %v14896_v30 = vpop.f32.mrf.mxu0 }
0x1d67   :  { %v7564_v22 = vpop.f32.mrf.mxu0  ;;  %14958 = vmatpush3.bf16.msra.mxu1 %v15434_v6 }
0x1d68   :  { %14987 = vmatprep.subr.bf16.mxu1 %v19716_v44  ;;  %v7581_v17 = vrot.slane %v7564_v22, 7 }
0x1d69   :  { %v14920_v29 = vpop.f32.mrf.mxu0 }
0x1d6a   :  { %v7589_v48 = vsel %vm194_vm3, %v7332_v54, %v7581_v17 }
0x1d6b   :  { %v7569_v15 = vpop.f32.mrf.mxu0 }
0x1d6c   :  { %v7582_v24 = vrot.slane %v7569_v15, 7 }
0x1d6d   :  { %v14923_v9 = vpop.f32.mrf.mxu0 }
0x1d6e   :  { %v7583_v62 = vsel %vm194_vm3, %v7581_v17, %v7582_v24 }
0x1d6f   :  { %v7591_v36 = vpack.c.bf16 %v7583_v62, %v7589_v48  ;;  %v7574_v50 = vpop.f32.mrf.mxu0 }
0x1d70   :  { %v7584_v1 = vrot.slane %v7574_v50, 7 }
0x1d71   :  { %v14926_v3 = vpop.f32.mrf.mxu0  ;;  %14934 = vmatmul.mubr.msk.bf16.gmra.mxu1 %vm560_vm7, %v7591_v36 }
0x1d72   :  { %14937 = vmatprep.mubr.msk.bf16.mxu1 %vm15900_vm6, %v19716_v44  ;;  %v7585_v37 = vsel %vm194_vm3, %v7582_v24, %v7584_v1 }
0x1d73   :  { %v18408_v11 = vpop.f32.mrf.mxu0  ;;  %v7592_v32 = vpack.c.bf16 %v7585_v37, %v7585_v37 }
0x1d75   :  { %v14945_v49 = vpop.f32.mrf.mxu0 }
0x1d76   :  { %v12719_v49 = vld [vmem:[%s19667_s9 + $0x6] ss:$0 sm:$0xff] }
0x1d77   :  { %v18411_v47 = vpop.f32.mrf.mxu0 }
0x1d79   :  { %14938 = vmatmul.mubr.msk.bf16.gmra.mxu1 %vm560_vm7, %v7592_v32  ;;  %v14946_v61 = vpop.f32.mrf.mxu0 }
0x1d7a   :  { %14959 = vmatprep.mubr.msk.bf16.mxu1 %vm15900_vm6, %v19716_v44 }
0x1d7b   :  { %v18416_v57 = vpop.f32.mrf.mxu0 }
0x1d7d   :  { %v14949_v39 = vpop.f32.mrf.mxu0 }
0x1d7f   :  { %v18421_v40 = vpop.f32.mrf.mxu0 }
0x1d81   :  { %v14950_v38 = vpop.f32.mrf.mxu0  ;;  %14960 = vmatmul.mubr.msk.bf16.vlgmr.msra.gmra.mxu1 %vm221_vm2, %v17947_v51 }
0x1d82   :  { %14963 = vmatprep.mubr.msk.bf16.mxu1 %vm15900_vm6, %v19716_v44  ;;  %14988 = vmatpush3.bf16.msra.mxu1 %v15435_v25 }
0x1d83   :  { %v18430_v10 = vpop.f32.mrf.mxu0  ;;  %14989 = vmatprep.subr.bf16.mxu1 %v19716_v44 }
0x1d85   :  { %v14953_v59 = vpop.f32.mrf.mxu0 }
0x1d86   :  { %14990 = vmatpush3.bf16.msra.mxu1 %v15436_v43 }
0x1d87   :  { %v7728_v28 = vpop.f32.mrf.mxu0  ;;  %15033 = vmatprep.subr.mxu1 %v19716_v44 }
0x1d89   :  { %v14954_v33 = vpop.f32.mrf.mxu0  ;;  %14964 = vmatmul.mubr.msk.bf16.gmra.mxu1 %vm221_vm2, %v17965_v23 }
0x1d8a   :  { %14967 = vmatprep.mubr.msk.bf16.mxu1 %vm15900_vm6, %v19716_v44 }
0x1d8b   :  { %v7871_v19 = vpop.f32.mrf.mxu0 }
0x1d8c   :  { %v7872_v2 = vadd.f32 %v12730_v60, %v7871_v19 }
0x1d8d   :  { %v14977_v35 = vpop.f32.mrf.mxu0 }
0x1d8f   :  { %v7874_v53 = vpop.f32.mrf.mxu0 }
0x1d90   :  { %v7875_v45 = vadd.f32 %v12730_v60, %v7874_v53 }
0x1d91   :  { %14968 = vmatmul.mubr.msk.bf16.gmra.mxu1 %vm221_vm2, %v17976_v12  ;;  %v14978_v21 = vpop.f32.mrf.mxu0 }
0x1d92   :  { %14991 = vmatprep.mubr.msk.bf16.mxu1 %vm15900_vm6, %v19716_v44 }
0x1d93   :  { %v7879_v42 = vpop.f32.mrf.mxu0 }
0x1d94   :  { %v7880_v7 = vadd.f32 %v12730_v60, %v7879_v42 }
0x1d95   :  { %v14981_v34 = vpop.f32.mrf.mxu0 }
0x1d96   :  { %15004 = vmatpush3.xpose.msk.msra.mxu0 %vm560_vm7, %v7880_v7  ;;  %v8209_v30 = vrot.slane %v7880_v7, 1 }
0x1d97   :  { %v7882_v14 = vpop.f32.mrf.mxu0  ;;  %15005 = vmatprep.subr.mxu0 %v19716_v44 }
0x1d98   :  { %v7883_v46 = vadd.f32 %v12730_v60, %v7882_v14 }
0x1d99   :  { %v14982_v18 = vpop.f32.mrf.mxu0  ;;  %14992 = vmatmul.mubr.msk.bf16.vlgmr.msra.gmra.mxu1 %vm221_vm2, %v17947_v51 }
0x1d9a   :  { %15006 = vmatpush3.xpose.msk.msra.mxu0 %vm560_vm7, %v7875_v45  ;;  %14995 = vmatprep.mubr.msk.bf16.mxu1 %vm15900_vm6, %v19716_v44  ;;  %v8210_v55 = vrot.slane %v7883_v46, 1 }
0x1d9b   :  { %v7887_v31 = vpop.f32.mrf.mxu0  ;;  %15007 = vmatprep.subr.mxu0 %v19716_v44 }
0x1d9c   :  { %v7888_v58 = vadd.f32 %v12730_v60, %v7887_v31  ;;  %v8211_v22 = vsel %vm791_vm8, %v8209_v30, %v8210_v55 }
0x1d9d   :  { %v14985_v26 = vpop.f32.mrf.mxu0 }
0x1d9e   :  { %v8212_v16 = vrot.slane %v7888_v58, 1  ;;  %15008 = vmatpush3.xpose.msk.msra.mxu0 %vm560_vm7, %v7872_v2 }
0x1d9f   :  { %v7890_v63 = vpop.f32.mrf.mxu0  ;;  %15018 = vmatprep.subr.mxu0 %v19716_v44 }
0x1da0   :  { %15034 = vmatpush3.xpose.msk.msra.mxu1 %vm560_vm7, %v8212_v16  ;;  %v8213_v6 = vsel %vm791_vm8, %v8210_v55, %v8212_v16  ;;  %v12741_v63 = vld [vmem:[%s19669_s11 + $0x6] ss:$0 sm:$0xff] }
0x1da1   :  { %v14986_v54 = vpop.f32.mrf.mxu0  ;;  %14996 = vmatmul.mubr.msk.bf16.gmra.mxu1 %vm221_vm2, %v17965_v23  ;;  %15035 = vmatprep.subr.mxu1 %v19716_v44 }
0x1da2   :  { %14999 = vmatprep.mubr.msk.bf16.mxu1 %vm15900_vm6, %v19716_v44 }
0x1da4   :  { %15036 = vmatpush3.xpose.msk.msra.mxu1 %vm560_vm7, %v8213_v6 }
0x1da5   :  { %15037 = vmatprep.subr.mxu1 %v19716_v44 }
0x1da8   :  { %15038 = vmatpush3.xpose.msk.msra.mxu1 %vm560_vm7, %v8211_v22 }
0x1da9   :  { %15000 = vmatmul.mubr.msk.bf16.gmra.mxu1 %vm221_vm2, %v17976_v12  ;;  %15063 = vmatprep.subr.bf16.mxu1 %v19716_v44 }
0x1daa   :  { %15039 = vmatprep.mubr.msk.f32.mxu1 %vm15900_vm6, %v19716_v44 }
0x1e22   :  { %v18471_v29 = vpop.f32.mrf.mxu1 }
0x1e24   :  { %v14931_v17 = vpop.f32.mrf.mxu1 }
0x1e26   :  { %v18473_v15 = vpop.f32.mrf.mxu1 }
0x1e28   :  { %v14932_v24 = vpop.f32.mrf.mxu1 }
0x1e31   :  { %v18475_v9 = vpop.f32.mrf.mxu1 }
0x1e33   :  { %v14935_v48 = vpop.f32.mrf.mxu1 }
0x1e35   :  { %v18477_v62 = vpop.f32.mrf.mxu1 }
0x1e37   :  { %v14936_v36 = vpop.f32.mrf.mxu1 }
0x1e39   :  { %v18479_v50 = vpop.f32.mrf.mxu1 }
0x1e3b   :  { %v14939_v1 = vpop.f32.mrf.mxu1 }
0x1e3d   :  { %v7660_v3 = vpop.f32.mrf.mxu1 }
0x1e3f   :  { %v14940_v37 = vpop.f32.mrf.mxu1 }
0x1e41   :  { %v7790_v32 = vpop.f32.mrf.mxu1 }
0x1e42   :  { %v7791_v61 = vadd.f32 %v12719_v49, %v7790_v32 }
0x1e43   :  { %v14961_v39 = vpop.f32.mrf.mxu1 }
0x1e44   :  { %15010 = vmatmul.mubr.msk.f32.vlgmr.msra.gmra.mxu0 %vm560_vm7, %v7791_v61 }
0x1e45   :  { %v7793_v25 = vpop.f32.mrf.mxu1  ;;  %15012 = vmatprep.mubr.msk.f32.mxu0 %vm15900_vm6, %v19716_v44 }
0x1e46   :  { %v7794_v38 = vadd.f32 %v12719_v49, %v7793_v25 }
0x1e47   :  { %v14962_v43 = vpop.f32.mrf.mxu1 }
0x1e48   :  { %15013 = vmatmul.mubr.msk.f32.gmra.mxu0 %vm560_vm7, %v7794_v38 }
0x1e49   :  { %v7798_v59 = vpop.f32.mrf.mxu1  ;;  %15015 = vmatprep.mubr.msk.f32.mxu0 %vm15900_vm6, %v19716_v44 }
0x1e4a   :  { %v7799_v28 = vadd.f32 %v12719_v49, %v7798_v59 }
0x1e4b   :  { %v14965_v33 = vpop.f32.mrf.mxu1 }
0x1e4c   :  { %15016 = vmatmul.mubr.msk.f32.gmra.mxu0 %vm560_vm7, %v7799_v28  ;;  %v8202_v21 = vrot.slane %v7799_v28, 1 }
0x1e4d   :  { %v7801_v19 = vpop.f32.mrf.mxu1  ;;  %15024 = vmatprep.mubr.msk.f32.mxu0 %vm15900_vm6, %v19716_v44 }
0x1e4e   :  { %v7802_v35 = vadd.f32 %v12719_v49, %v7801_v19 }
0x1e4f   :  { %v14966_v53 = vpop.f32.mrf.mxu1 }
0x1e50   :  { %v8203_v60 = vrot.slane %v7802_v35, 1 }
0x1e51   :  { %v7806_v42 = vpop.f32.mrf.mxu1 }
0x1e52   :  { %v8204_v7 = vsel %vm791_vm8, %v8202_v21, %v8203_v60  ;;  %v7807_v34 = vadd.f32 %v12719_v49, %v7806_v42 }
0x1e53   :  { %v14969_v14 = vpop.f32.mrf.mxu1  ;;  %15040 = vmatmul.mubr.msk.f32.vlgmr.msra.gmra.mxu1 %vm560_vm7, %v8204_v7 }
0x1e54   :  { %v8205_v45 = vrot.slane %v7807_v34, 1  ;;  %15042 = vmatprep.mubr.msk.f32.mxu1 %vm15900_vm6, %v19716_v44 }
0x1e55   :  { %v7809_v18 = vpop.f32.mrf.mxu1 }
0x1e56   :  { %v8206_v31 = vsel %vm791_vm8, %v8203_v60, %v8205_v45 }
0x1e57   :  { %v14970_v2 = vpop.f32.mrf.mxu1  ;;  %15043 = vmatmul.mubr.msk.f32.gmra.mxu1 %vm560_vm7, %v8206_v31 }
0x1e58   :  { %15045 = vmatprep.mubr.msk.f32.mxu1 %vm15900_vm6, %v19716_v44 }
0x1e59   :  { %v7952_v58 = vpop.f32.mrf.mxu1 }
0x1e5a   :  { %v7953_v17 = vadd.f32 %v12741_v63, %v7952_v58 }
0x1e5b   :  { %v14993_v46 = vpop.f32.mrf.mxu1  ;;  %15046 = vmatmul.mubr.msk.f32.gmra.mxu1 %vm560_vm7, %v8205_v45 }
0x1e5c   :  { %15065 = vmatprep.mubr.msk.bf16.mxu1 %vm15900_vm6, %v19716_v44 }
0x1e5d   :  { %v7955_v26 = vpop.f32.mrf.mxu1 }
0x1e5e   :  { %v7956_v30 = vadd.f32 %v12741_v63, %v7955_v26 }
0x1e5f   :  { %v14994_v16 = vpop.f32.mrf.mxu1 }
0x1e61   :  { %v7960_v55 = vpop.f32.mrf.mxu1 }
0x1e62   :  { %v7961_v54 = vadd.f32 %v12741_v63, %v7960_v55 }
0x1e63   :  { %v14997_v6 = vpop.f32.mrf.mxu1 }
0x1e64   :  { %15019 = vmatpush3.msk.msra.mxu0 %vm194_vm3, %v7961_v54  ;;  %v8344_v36 = vrot.slane %v7961_v54, 1 }
0x1e65   :  { %v7963_v22 = vpop.f32.mrf.mxu1  ;;  %15020 = vmatprep.subr.mxu0 %v19716_v44 }
0x1e66   :  { %v7964_v24 = vadd.f32 %v12741_v63, %v7963_v22  ;;  %15021 = vmatpush3.msra.mxu0 %v7956_v30 }
0x1e67   :  { %v14998_v48 = vpop.f32.mrf.mxu1  ;;  %15022 = vmatprep.subr.mxu0 %v19716_v44 }
0x1e68   :  { %v8345_v1 = vrot.slane %v7964_v24, 1  ;;  %15023 = vmatpush3.msra.mxu0 %v7953_v17 }
0x1e69   :  { %v7968_v3 = vpop.f32.mrf.mxu1  ;;  %15048 = vmatprep.subr.mxu0 %v19716_v44 }
0x1e6a   :  { %v18511_v37 = vadd.f32 %v12741_v63, %v7968_v3  ;;  %v18514_v49 = vsel %vm791_vm8, %v8344_v36, %v8345_v1 }
0x1e6b   :  { %v15001_v32 = vpop.f32.mrf.mxu1 }
0x1e6c   :  { %v8347_v61 = vrot.slane %v18511_v37, 1 }
0x1e6d   :  { %v7971_v39 = vpop.f32.mrf.mxu1 }
0x1e6e   :  { %v18520_v25 = vsel %vm791_vm8, %v8345_v1, %v8347_v61 }
0x1e6f   :  { %v15002_v38 = vpop.f32.mrf.mxu1 }
0x1f04   :  { %v8058_v43 = vpop.f32.mrf.mxu0 }
0x1f05   :  { %v8072_v59 = vmul.f32 0.35355338, %v8058_v43 }
0x1f06   :  { %v15011_v28 = vpop.f32.mrf.mxu0 }
0x1f07   :  { %v8075_v33 = vsel %vm662_vm9, %v8072_v59, -inf }
0x1f08   :  { %8076 = vmax.xlane.f32.xlu0 %v8075_v33  ;;  %v8063_v19 = vpop.f32.mrf.mxu0 }
0x1f09   :  { %v8073_v35 = vmul.f32 0.35355338, %v8063_v19 }
0x1f0a   :  { %v15014_v53 = vpop.f32.mrf.mxu0 }
0x1f0b   :  { %v8078_v21 = vsel %vm662_vm9, %v8073_v35, -inf }
0x1f0c   :  { %8079 = vmax.xlane.f32.xlu1 %v8078_v21  ;;  %v8068_v60 = vpop.f32.mrf.mxu0 }
0x1f0d   :  { %v8074_v42 = vmul.f32 0.35355338, %v8068_v60 }
0x1f0e   :  { %v15017_v7 = vpop.f32.mrf.mxu0 }
0x1f0f   :  { %v8081_v34 = vsel %vm669_vm10, %v8074_v42, -inf }
0x1f10   :  { %8082 = vmax.xlane.f32.xlu0 %v8081_v34 }
0x1f13   :  { %v8292_v14 = vpop.f32.mrf.mxu1 }
0x1f14   :  { %v8306_v45 = vmul.f32 0.35355338, %v8292_v14 }
0x1f15   :  { %v15041_v18 = vpop.f32.mrf.mxu1 }
0x1f16   :  { %v8309_v31 = vsel %vm662_vm9, %v8306_v45, -inf }
0x1f17   :  { %v8297_v2 = vpop.f32.mrf.mxu1  ;;  %8310 = vmax.xlane.f32.xlu1 %v8309_v31 }
0x1f18   :  { %v8307_v58 = vmul.f32 0.35355338, %v8297_v2 }
0x1f19   :  { %v15044_v46 = vpop.f32.mrf.mxu1 }
0x1f1a   :  { %v8312_v26 = vsel %vm662_vm9, %v8307_v58, -inf }
0x1f1b   :  { %v8302_v16 = vpop.f32.mrf.mxu1  ;;  %8313 = vmax.xlane.f32.xlu0 %v8312_v26 }
0x1f1c   :  { %v8308_v63 = vmul.f32 0.35355338, %v8302_v16 }
0x1f1d   :  { %v15047_v55 = vpop.f32.mrf.mxu1 }
0x1f1e   :  { %v8315_v54 = vsel %vm669_vm10, %v8308_v63, -inf }
0x1f1f   :  { %8316 = vmax.xlane.f32.xlu1 %v8315_v54 }
0x1f91   :  { %v8077_v6 = vpop.xlane.xlu0 %8076 }
0x1f92   :  { %v8084_v30 = vsub.f32 %v8072_v59, %v8077_v6 }
0x1f94   :  { %v8087_v22 = vmul.f32 1.442695, %v8084_v30 }
0x1f95   :  { %v8080_v17 = vpop.xlane.xlu1 %8079 }
0x1f96   :  { %15793 = vpow2.f32 %v8087_v22  ;;  %v8085_v24 = vsub.f32 %v8073_v35, %v8080_v17 }
0x1f98   :  { %v8089_v48 = vmul.f32 1.442695, %v8085_v24  ;;  %v15437_v24 = vld [vmem:[%s19709_s4 + $0x78] sm:$0xff]  }
0x1f99   :  { %v8083_v36 = vpop.xlane.xlu0 %8082 }
0x1f9a   :  { %15795 = vpow2.f32 %v8089_v48  ;;  %v8086_v1 = vsub.f32 %v8074_v42, %v8083_v36  ;;  %v15438_v36 = vld [vmem:[%s19709_s4 + $0x70] sm:$0xff]  }
0x1f9c   :  { %v8091_v3 = vmul.f32 1.442695, %v8086_v1 }
0x1f9e   :  { %15797 = vpow2.f32 %v8091_v3 }
0x1fa0   :  { %v8311_v32 = vpop.xlane.xlu1 %8310 }
0x1fa1   :  { %v8318_v39 = vsub.f32 %v8306_v45, %v8311_v32 }
0x1fa3   :  { %v15794_v38 = vpop.eup %15793  ;;  %v8321_v43 = vmul.f32 1.442695, %v8318_v39  ;;  %v15439_v39 = vld [vmem:[%s19713_s5 + $0x78] sm:$0xff]  }
0x1fa4   :  { %v8314_v28 = vpop.xlane.xlu0 %8313  ;;  %v8093_v33 = vsel %vm662_vm9, %v15794_v38, 0.0 }
0x1fa5   :  { %15799 = vpow2.f32 %v8321_v43  ;;  %v8319_v19 = vsub.f32 %v8307_v58, %v8314_v28  ;;  %8094 = vadd.xlane.f32.xlu0 %v8093_v33  ;;  %v12767_v43 = vld [vmem:[%s19670_s12 + $0x18] sm:$0xf] }
0x1fa6   :  { %v8469_v28 = vsel %vm102_vm0, %v12767_v43, 0 }
0x1fa7   :  { %v15796_v59 = vpop.eup %15795  ;;  %v8323_v53 = vmul.f32 1.442695, %v8319_v19  ;;  %15064 = vmatpush3.bf16.msra.mxu1 %v8469_v28 }
0x1fa8   :  { %v8317_v21 = vpop.xlane.xlu1 %8316  ;;  %v8096_v35 = vsel %vm662_vm9, %v15796_v59, 0.0  ;;  %15093 = vmatprep.subr.bf16.mxu1 %v19716_v44 }
0x1fa9   :  { %15801 = vpow2.f32 %v8323_v53  ;;  %v8320_v60 = vsub.f32 %v8308_v63, %v8317_v21  ;;  %8097 = vadd.xlane.f32.xlu1 %v8096_v35  ;;  %v15441_v53 = vld [vmem:[%s19712_s30 + $0x78] sm:$0xff]  }
0x1fab   :  { %v15798_v42 = vpop.eup %15797  ;;  %v8325_v7 = vmul.f32 1.442695, %v8320_v60 }
0x1fac   :  { %v8099_v34 = vsel %vm669_vm10, %v15798_v42, 0.0 }
0x1fad   :  { %15803 = vpow2.f32 %v8325_v7  ;;  %8100 = vadd.xlane.f32.xlu0 %v8099_v34 }
0x1fb2   :  { %v15800_v14 = vpop.eup %15799 }
0x1fb3   :  { %v8327_v45 = vsel %vm662_vm9, %v15800_v14, 0.0 }
0x1fb4   :  { %8328 = vadd.xlane.f32.xlu1 %v8327_v45 }
0x1fb6   :  { %v15802_v18 = vpop.eup %15801 }
0x1fb7   :  { %v8330_v31 = vsel %vm662_vm9, %v15802_v18, 0.0 }
0x1fb8   :  { %8331 = vadd.xlane.f32.xlu0 %v8330_v31 }
0x1fba   :  { %v15804_v2 = vpop.eup %15803 }
0x1fbb   :  { %v8333_v58 = vsel %vm669_vm10, %v15804_v2, 0.0 }
0x1fbc   :  { %8334 = vadd.xlane.f32.xlu1 %v8333_v58 }
0x202e   :  { %v8095_v46 = vpop.xlane.xlu0 %8094 }
0x202f   :  { %15805 = vrcp.f32 %v8095_v46 }
0x2032   :  { %v8098_v26 = vpop.xlane.xlu1 %8097 }
0x2033   :  { %15807 = vrcp.f32 %v8098_v26 }
0x2036   :  { %v8101_v16 = vpop.xlane.xlu0 %8100 }
0x2037   :  { %15809 = vrcp.f32 %v8101_v16 }
0x203c   :  { %v15806_v63 = vpop.eup %15805 }
0x203d   :  { %v8105_v55 = vmul.f32 %v15806_v63, %v15794_v38  ;;  %v8329_v54 = vpop.xlane.xlu1 %8328  ;;  %v15440_v38 = vld [vmem:[%s19713_s5 + $0x70] sm:$0xff]  }
0x203e   :  { %15811 = vrcp.f32 %v8329_v54 }
0x203f   :  { %15025 = vmatmul.mubr.msk.f32.vlgmr.msra.gmra.mxu0 %vm662_vm9, %v8105_v55 }
0x2040   :  { %v15808_v6 = vpop.eup %15807  ;;  %15049 = vmatpush3.msk.msra.mxu0 %vm194_vm3, %v8347_v61  ;;  %15027 = vmatprep.mubr.msk.f32.mxu0 %vm15900_vm6, %v19716_v44 }
0x2041   :  { %15050 = vmatprep.subr.mxu0 %v19716_v44  ;;  %v8332_v30 = vpop.xlane.xlu0 %8331  ;;  %v8106_v22 = vmul.f32 %v15808_v6, %v15796_v59 }
0x2042   :  { %15051 = vmatpush3.msra.mxu0 %v18520_v25  ;;  %15813 = vrcp.f32 %v8332_v30 }
0x2043   :  { %15052 = vmatprep.subr.mxu0 %v19716_v44  ;;  %15028 = vmatmul.mubr.msk.f32.gmra.mxu0 %vm662_vm9, %v8106_v22 }
0x2044   :  { %v15810_v17 = vpop.eup %15809  ;;  %15053 = vmatpush3.msra.mxu0 %v18514_v49  ;;  %15030 = vmatprep.mubr.msk.f32.mxu0 %vm15900_vm6, %v19716_v44 }
0x2045   :  { %v8335_v37 = vpop.xlane.xlu1 %8334  ;;  %v8107_v61 = vmul.f32 %v15810_v17, %v15798_v42  ;;  %15077 = vmatprep.subr.bf16.mxu0 %v19716_v44  ;;  %v15442_v42 = vld [vmem:[%s19712_s30 + $0x70] sm:$0xff]  }
0x2046   :  { %15815 = vrcp.f32 %v8335_v37 }
0x2047   :  { %15031 = vmatmul.mubr.msk.f32.gmra.mxu0 %vm662_vm9, %v8107_v61 }
0x2048   :  { %15054 = vmatprep.mubr.msk.f32.mxu0 %vm15900_vm6, %v19716_v44 }
0x204b   :  { %v15812_v25 = vpop.eup %15811 }
0x204c   :  { %v8339_v48 = vmul.f32 %v15812_v25, %v15800_v14  ;;  %v18632_v25 = vld [vmem:[%s19667_s9 + $0x7] ss:$0 sm:$0xff] }
0x204e   :  { %15055 = vmatmul.mubr.msk.f32.vlgmr.msra.gmra.mxu0 %vm662_vm9, %v8339_v48 }
0x204f   :  { %v15814_v49 = vpop.eup %15813  ;;  %15057 = vmatprep.mubr.msk.f32.mxu0 %vm15900_vm6, %v19716_v44  ;;  %15078 = vmatpush3.bf16.msra.mxu0 %v15437_v24 }
0x2050   :  { %v8340_v1 = vmul.f32 %v15814_v49, %v15802_v18  ;;  %15079 = vmatprep.subr.bf16.mxu0 %v19716_v44 }
0x2052   :  { %15058 = vmatmul.mubr.msk.f32.gmra.mxu0 %vm662_vm9, %v8340_v1 }
0x2053   :  { %v15816_v3 = vpop.eup %15815  ;;  %15060 = vmatprep.mubr.msk.f32.mxu0 %vm15900_vm6, %v19716_v44  ;;  %15080 = vmatpush3.bf16.msra.mxu0 %v15438_v36 }
0x2054   :  { %v8341_v32 = vmul.f32 %v15816_v3, %v15804_v2  ;;  %15109 = vmatprep.subr.bf16.mxu0 %v19716_v44 }
0x2056   :  { %15061 = vmatmul.mubr.msk.f32.gmra.mxu0 %vm662_vm9, %v8341_v32 }
0x2057   :  { %15081 = vmatprep.mubr.msk.bf16.mxu0 %vm15900_vm6, %v19716_v44 }
0x205a   :  { %15082 = vmatmul.mubr.msk.bf16.vlgmr.msra.gmra.mxu0 %vm221_vm2, %v17947_v51 }
0x205b   :  { %15085 = vmatprep.mubr.msk.bf16.mxu0 %vm15900_vm6, %v19716_v44  ;;  %15110 = vmatpush3.bf16.msra.mxu0 %v15439_v39 }
0x205c   :  { %15111 = vmatprep.subr.bf16.mxu0 %v19716_v44 }
0x205f   :  { %15112 = vmatpush3.bf16.msra.mxu0 %v15440_v38 }
0x2060   :  { %15140 = vmatprep.subr.mxu0 %v19716_v44 }
0x2062   :  { %15086 = vmatmul.mubr.msk.bf16.gmra.mxu0 %vm221_vm2, %v17965_v23 }
0x2063   :  { %15089 = vmatprep.mubr.msk.bf16.mxu0 %vm15900_vm6, %v19716_v44 }
0x206a   :  { %15090 = vmatmul.mubr.msk.bf16.gmra.mxu0 %vm221_vm2, %v17976_v12 }
0x206b   :  { %15113 = vmatprep.mubr.msk.bf16.mxu0 %vm15900_vm6, %v19716_v44 }
0x2072   :  { %15114 = vmatmul.mubr.msk.bf16.vlgmr.msra.gmra.mxu0 %vm221_vm2, %v17947_v51 }
0x2073   :  { %15117 = vmatprep.mubr.msk.bf16.mxu0 %vm15900_vm6, %v19716_v44 }
0x207a   :  { %15118 = vmatmul.mubr.msk.bf16.gmra.mxu0 %vm221_vm2, %v17965_v23 }
0x207b   :  { %15121 = vmatprep.mubr.msk.bf16.mxu0 %vm15900_vm6, %v19716_v44 }
0x2082   :  { %15122 = vmatmul.mubr.msk.bf16.gmra.mxu0 %vm221_vm2, %v17976_v12 }
0x2083   :  { %15146 = vmatprep.mubr.msk.f32.mxu0 %vm15900_vm6, %v19716_v44 }
0x20ff   :  { %v8186_v33 = vpop.f32.mrf.mxu0 }
0x2101   :  { %v15026_v19 = vpop.f32.mrf.mxu0 }
0x2103   :  { %v8191_v59 = vpop.f32.mrf.mxu0 }
0x2104   :  { %v8454_v21 = vpack.c.bf16 %v8191_v59, %v8186_v33 }
0x2105   :  { %v15029_v35 = vpop.f32.mrf.mxu0 }
0x2106   :  { %15066 = vmatmul.mubr.msk.bf16.vlgmr.msra.gmra.mxu1 %vm560_vm7, %v8454_v21 }
0x2107   :  { %v8196_v60 = vpop.f32.mrf.mxu0  ;;  %15069 = vmatprep.mubr.msk.bf16.mxu1 %vm15900_vm6, %v19716_v44  ;;  %15094 = vmatpush3.bf16.msra.mxu1 %v15441_v53 }
0x2108   :  { %15095 = vmatprep.subr.bf16.mxu1 %v19716_v44 }
0x2109   :  { %v15032_v7 = vpop.f32.mrf.mxu0 }
0x210b   :  { %15096 = vmatpush3.bf16.msra.mxu1 %v15442_v42  ;;  %v12798_v42 = vld [vmem:[%s19669_s11 + $0x7] ss:$0 sm:$0xff] }
0x210c   :  { %15125 = vmatprep.subr.mxu1 %v19716_v44 }
0x210e   :  { %v8428_v34 = vpop.f32.mrf.mxu0 }
0x210f   :  { %v8445_v45 = vrot.slane %v8428_v34, 7 }
0x2110   :  { %v15056_v14 = vpop.f32.mrf.mxu0 }
0x2111   :  { %v8453_v58 = vsel %vm194_vm3, %v8196_v60, %v8445_v45 }
0x2112   :  { %v8433_v18 = vpop.f32.mrf.mxu0 }
0x2113   :  { %v8446_v31 = vrot.slane %v8433_v18, 7 }
0x2114   :  { %v15059_v2 = vpop.f32.mrf.mxu0 }
0x2115   :  { %v8447_v46 = vsel %vm194_vm3, %v8445_v45, %v8446_v31 }
0x2116   :  { %v8455_v26 = vpack.c.bf16 %v8447_v46, %v8453_v58  ;;  %v8438_v16 = vpop.f32.mrf.mxu0 }
0x2117   :  { %v8448_v63 = vrot.slane %v8438_v16, 7 }
0x2118   :  { %v15062_v55 = vpop.f32.mrf.mxu0  ;;  %15070 = vmatmul.mubr.msk.bf16.gmra.mxu1 %vm560_vm7, %v8455_v26 }
0x2119   :  { %15073 = vmatprep.mubr.msk.bf16.mxu1 %vm15900_vm6, %v19716_v44  ;;  %v8449_v6 = vsel %vm194_vm3, %v8446_v31, %v8448_v63 }
0x211a   :  { %v18621_v54 = vpop.f32.mrf.mxu0  ;;  %v8456_v22 = vpack.c.bf16 %v8449_v6, %v8449_v6 }
0x211c   :  { %v15083_v30 = vpop.f32.mrf.mxu0 }
0x211e   :  { %v18624_v17 = vpop.f32.mrf.mxu0 }
0x2120   :  { %15074 = vmatmul.mubr.msk.bf16.gmra.mxu1 %vm560_vm7, %v8456_v22  ;;  %v15084_v37 = vpop.f32.mrf.mxu0 }
0x2121   :  { %15097 = vmatprep.mubr.msk.bf16.mxu1 %vm15900_vm6, %v19716_v44  ;;  %v7710_v37 = vadd.f32 %v18408_v11, %v18471_v29  ;;  %v7721_v11 = vadd.f32 %v18421_v40, %v18477_v62  ;;  %v12787_v40 = vld [vmem:[%s19668_s10 + $0x7] ss:$0 sm:$0xff] }
0x2122   :  { %v8599_v61 = vpop.f32.mrf.mxu0 }
0x2123   :  { %v18635_v48 = vadd.f32 %v18632_v25, %v8599_v61 }
0x2124   :  { %v15087_v24 = vpop.f32.mrf.mxu0 }
0x2125   :  { %v9003_v3 = vrot.slane %v18635_v48, 1 }
0x2126   :  { %v8602_v49 = vpop.f32.mrf.mxu0 }
0x2127   :  { %v8603_v36 = vadd.f32 %v18632_v25, %v8602_v49 }
0x2128   :  { %v15088_v1 = vpop.f32.mrf.mxu0  ;;  %15098 = vmatmul.mubr.msk.bf16.vlgmr.msra.gmra.mxu1 %vm221_vm2, %v17947_v51 }
0x2129   :  { %v9004_v32 = vrot.slane %v8603_v36, 1  ;;  %15101 = vmatprep.mubr.msk.bf16.mxu1 %vm15900_vm6, %v19716_v44  ;;  %v7713_v36 = vadd.f32 %v18411_v47, %v18473_v15  ;;  %v7726_v47 = vadd.f32 %v18430_v10, %v18479_v50 }
0x212a   :  { %v8607_v39 = vpop.f32.mrf.mxu0 }
0x212b   :  { %v18644_v38 = vsel %vm791_vm8, %v9003_v3, %v9004_v32  ;;  %v18647_v43 = vadd.f32 %v18632_v25, %v8607_v39  ;;  %v7718_v39 = vadd.f32 %v18416_v57, %v18475_v9 }
0x212c   :  { %v15091_v28 = vpop.f32.mrf.mxu0 }
0x212d   :  { %v9006_v33 = vrot.slane %v18647_v43, 1 }
0x212e   :  { %v8610_v19 = vpop.f32.mrf.mxu0 }
0x212f   :  { %v18653_v51 = vsel %vm791_vm8, %v9004_v32, %v9006_v33 }
0x2130   :  { %v15092_v59 = vpop.f32.mrf.mxu0  ;;  %15102 = vmatmul.mubr.msk.bf16.gmra.mxu1 %vm221_vm2, %v17965_v23 }
0x2131   :  { %15105 = vmatprep.mubr.msk.bf16.mxu1 %vm15900_vm6, %v19716_v44 }
0x2132   :  { %v8753_v53 = vpop.f32.mrf.mxu0 }
0x2133   :  { %v8754_v18 = vadd.f32 %v12798_v42, %v8753_v53 }
0x2134   :  { %v15115_v21 = vpop.f32.mrf.mxu0 }
0x2136   :  { %v8756_v35 = vpop.f32.mrf.mxu0 }
0x2137   :  { %v8757_v14 = vadd.f32 %v12798_v42, %v8756_v35 }
0x2138   :  { %15106 = vmatmul.mubr.msk.bf16.gmra.mxu1 %vm221_vm2, %v17976_v12  ;;  %v15116_v60 = vpop.f32.mrf.mxu0 }
0x2139   :  { %15131 = vmatprep.mubr.msk.f32.mxu1 %vm15900_vm6, %v19716_v44 }
0x213a   :  { %v8761_v7 = vpop.f32.mrf.mxu0 }
0x213b   :  { %v8762_v34 = vadd.f32 %v12798_v42, %v8761_v7 }
0x213c   :  { %v15119_v23 = vpop.f32.mrf.mxu0 }
0x213d   :  { %15141 = vmatpush3.msk.msra.mxu0 %vm194_vm3, %v8762_v34  ;;  %v9145_v2 = vrot.slane %v8762_v34, 1 }
0x213e   :  { %v8764_v45 = vpop.f32.mrf.mxu0  ;;  %15142 = vmatprep.subr.mxu0 %v19716_v44 }
0x213f   :  { %v8765_v31 = vadd.f32 %v12798_v42, %v8764_v45  ;;  %15143 = vmatpush3.msra.mxu0 %v8757_v14 }
0x2140   :  { %v15120_v12 = vpop.f32.mrf.mxu0  ;;  %15144 = vmatprep.subr.mxu0 %v19716_v44 }
0x2141   :  { %v9146_v58 = vrot.slane %v8765_v31, 1  ;;  %15145 = vmatpush3.msra.mxu0 %v8754_v18 }
0x2142   :  { %v8769_v46 = vpop.f32.mrf.mxu0  ;;  %15170 = vmatprep.subr.mxu0 %v19716_v44 }
0x2143   :  { %v18670_v26 = vadd.f32 %v12798_v42, %v8769_v46  ;;  %v18673_v16 = vsel %vm791_vm8, %v9145_v2, %v9146_v58  ;;  %v8592_v46 = vadd.f32 %v18632_v25, %v18621_v54 }
0x2144   :  { %v15123_v63 = vpop.f32.mrf.mxu0 }
0x2145   :  { %v9148_v55 = vrot.slane %v18670_v26, 1 }
0x2146   :  { %v8772_v6 = vpop.f32.mrf.mxu0 }
0x2147   :  { %v18679_v30 = vsel %vm791_vm8, %v9146_v58, %v9148_v55 }
0x2148   :  { %v15124_v22 = vpop.f32.mrf.mxu0 }
0x21c6   :  { %v8505_v61 = vpop.f32.mrf.mxu1 }
0x21c7   :  { %v18683_v24 = vadd.f32 %v8505_v61, %v7710_v37  ;;  %v8595_v61 = vadd.f32 %v18632_v25, %v18624_v17 }
0x21c8   :  { %v15067_v49 = vpop.f32.mrf.mxu1 }
0x21ca   :  { %v8508_v1 = vpop.f32.mrf.mxu1 }
0x21cb   :  { %v18687_v3 = vadd.f32 %v8508_v1, %v7713_v36 }
0x21cc   :  { %v15068_v32 = vpop.f32.mrf.mxu1 }
0x21d8   :  { %v8513_v28 = vpop.f32.mrf.mxu1 }
0x21d9   :  { %v18691_v19 = vadd.f32 %v8513_v28, %v7718_v39 }
0x21da   :  { %v15071_v59 = vpop.f32.mrf.mxu1 }
0x21dc   :  { %v8516_v29 = vpop.f32.mrf.mxu1 }
0x21dd   :  { %v18695_v53 = vadd.f32 %v8516_v29, %v7721_v11 }
0x21de   :  { %v15072_v21 = vpop.f32.mrf.mxu1 }
0x21e0   :  { %v8521_v15 = vpop.f32.mrf.mxu1 }
0x21e1   :  { %v18699_v35 = vadd.f32 %v8521_v15, %v7726_v47 }
0x21e2   :  { %v15075_v60 = vpop.f32.mrf.mxu1 }
0x21e4   :  { %v8524_v42 = vpop.f32.mrf.mxu1 }
0x21e6   :  { %v15076_v57 = vpop.f32.mrf.mxu1 }
0x21e8   :  { %v8672_v9 = vpop.f32.mrf.mxu1 }
0x21e9   :  { %v8673_v12 = vadd.f32 %v12787_v40, %v8672_v9 }
0x21ea   :  { %v15099_v7 = vpop.f32.mrf.mxu1 }
0x21ec   :  { %v8675_v34 = vpop.f32.mrf.mxu1 }
0x21ed   :  { %v8676_v50 = vadd.f32 %v12787_v40, %v8675_v34 }
0x21ee   :  { %v15100_v23 = vpop.f32.mrf.mxu1 }
0x21f0   :  { %v8680_v62 = vpop.f32.mrf.mxu1 }
0x21f1   :  { %v8681_v14 = vadd.f32 %v12787_v40, %v8680_v62 }
0x21f2   :  { %v15103_v45 = vpop.f32.mrf.mxu1 }
0x21f3   :  { %15126 = vmatpush3.xpose.msk.msra.mxu1 %vm560_vm7, %v8681_v14  ;;  %v9010_v36 = vrot.slane %v8681_v14, 1 }
0x21f4   :  { %v8683_v10 = vpop.f32.mrf.mxu1  ;;  %15127 = vmatprep.subr.mxu1 %v19716_v44 }
0x21f5   :  { %v8684_v63 = vadd.f32 %v12787_v40, %v8683_v10 }
0x21f6   :  { %v15104_v18 = vpop.f32.mrf.mxu1 }
0x21f7   :  { %15128 = vmatpush3.xpose.msk.msra.mxu1 %vm560_vm7, %v8676_v50  ;;  %v9011_v49 = vrot.slane %v8684_v63, 1 }
0x21f8   :  { %v8688_v31 = vpop.f32.mrf.mxu1  ;;  %15129 = vmatprep.subr.mxu1 %v19716_v44 }
0x21f9   :  { %v8689_v2 = vadd.f32 %v12787_v40, %v8688_v31  ;;  %v9012_v1 = vsel %vm791_vm8, %v9010_v36, %v9011_v49 }
0x21fa   :  { %v15107_v58 = vpop.f32.mrf.mxu1 }
0x21fb   :  { %15130 = vmatpush3.xpose.msk.msra.mxu1 %vm560_vm7, %v8673_v12  ;;  %v9013_v22 = vrot.slane %v8689_v2, 1 }
0x21fc   :  { %v8691_v6 = vpop.f32.mrf.mxu1  ;;  %15155 = vmatprep.subr.mxu1 %v19716_v44 }
0x21fd   :  { %v9014_v54 = vsel %vm791_vm8, %v9011_v49, %v9013_v22 }
0x21fe   :  { %v15108_v37 = vpop.f32.mrf.mxu1  ;;  %15132 = vmatmul.mubr.msk.f32.vlgmr.msra.gmra.mxu1 %vm560_vm7, %v8592_v46 }
0x21ff   :  { %15156 = vmatpush3.xpose.msk.msra.mxu1 %vm560_vm7, %v9013_v22  ;;  %15134 = vmatprep.mubr.msk.f32.mxu1 %vm15900_vm6, %v19716_v44 }
0x2200   :  { %15157 = vmatprep.subr.mxu1 %v19716_v44 }
0x2202   :  { %15135 = vmatmul.mubr.msk.f32.gmra.mxu1 %vm560_vm7, %v8595_v61 }
0x2203   :  { %15158 = vmatpush3.xpose.msk.msra.mxu1 %vm560_vm7, %v9014_v54  ;;  %15137 = vmatprep.mubr.msk.f32.mxu1 %vm15900_vm6, %v19716_v44 }
0x2204   :  { %15159 = vmatprep.subr.mxu1 %v19716_v44 }
0x2206   :  { %15138 = vmatmul.mubr.msk.f32.gmra.mxu1 %vm560_vm7, %v18635_v48 }
0x2207   :  { %15160 = vmatpush3.xpose.msk.msra.mxu1 %vm560_vm7, %v9012_v1  ;;  %15161 = vmatprep.mubr.msk.f32.mxu1 %vm15900_vm6, %v19716_v44 }
0x2208   :  { %15185 = vmatprep.subr.bf16.mxu1 %v19716_v44 }
0x220a   :  { %15162 = vmatmul.mubr.msk.f32.vlgmr.msra.gmra.mxu1 %vm560_vm7, %v18644_v38 }
0x220b   :  { %15164 = vmatprep.mubr.msk.f32.mxu1 %vm15900_vm6, %v19716_v44 }
0x220e   :  { %15165 = vmatmul.mubr.msk.f32.gmra.mxu1 %vm560_vm7, %v18653_v51 }
0x220f   :  { %15167 = vmatprep.mubr.msk.f32.mxu1 %vm15900_vm6, %v19716_v44 }
0x2212   :  { %15168 = vmatmul.mubr.msk.f32.gmra.mxu1 %vm560_vm7, %v9006_v33 }
0x2213   :  { %15187 = vmatprep.mubr.msk.bf16.mxu1 %vm15900_vm6, %v19716_v44 }
0x22be   :  { %v8859_v17 = vpop.f32.mrf.mxu1 }
0x22bf   :  { %v8873_v25 = vmul.f32 0.35355338, %v8859_v17 }
0x22c0   :  { %v15133_v48 = vpop.f32.mrf.mxu1 }
0x22c1   :  { %v8876_v38 = vsel %vm662_vm9, %v8873_v25, -inf }
0x22c2   :  { %8877 = vmax.xlane.f32.xlu0 %v8876_v38  ;;  %v8864_v32 = vpop.f32.mrf.mxu1 }
0x22c3   :  { %v8874_v39 = vmul.f32 0.35355338, %v8864_v32 }
0x22c4   :  { %v15136_v28 = vpop.f32.mrf.mxu1 }
0x22c5   :  { %v8879_v51 = vsel %vm662_vm9, %v8874_v39, -inf }
0x22c6   :  { %8880 = vmax.xlane.f32.xlu1 %v8879_v51  ;;  %v8869_v59 = vpop.f32.mrf.mxu1 }
0x22c7   :  { %v8875_v11 = vmul.f32 0.35355338, %v8869_v59 }
0x22c8   :  { %v15139_v43 = vpop.f32.mrf.mxu1 }
0x22c9   :  { %v8882_v33 = vsel %vm669_vm10, %v8875_v11, -inf }
0x22ca   :  { %8883 = vmax.xlane.f32.xlu0 %v8882_v33  ;;  %v9093_v29 = vpop.f32.mrf.mxu1 }
0x22cb   :  { %v9107_v21 = vmul.f32 0.35355338, %v9093_v29 }
0x22cc   :  { %v15163_v47 = vpop.f32.mrf.mxu1 }
0x22cd   :  { %v9110_v15 = vsel %vm662_vm9, %v9107_v21, -inf }
0x22ce   :  { %9111 = vmax.xlane.f32.xlu1 %v9110_v15  ;;  %v9098_v60 = vpop.f32.mrf.mxu1 }
0x22cf   :  { %v9108_v42 = vmul.f32 0.35355338, %v9098_v60 }
0x22d0   :  { %v15166_v57 = vpop.f32.mrf.mxu1 }
0x22d1   :  { %v9113_v9 = vsel %vm662_vm9, %v9108_v42, -inf }
0x22d2   :  { %9114 = vmax.xlane.f32.xlu0 %v9113_v9  ;;  %v9103_v7 = vpop.f32.mrf.mxu1 }
0x22d3   :  { %v9109_v34 = vmul.f32 0.35355338, %v9103_v7 }
0x22d4   :  { %v15169_v23 = vpop.f32.mrf.mxu1 }
0x22d5   :  { %v9116_v40 = vsel %vm669_vm10, %v9109_v34, -inf }
0x22d6   :  { %9117 = vmax.xlane.f32.xlu1 %v9116_v40 }
0x234b   :  { %v8878_v62 = vpop.xlane.xlu0 %8877 }
0x234c   :  { %v8885_v14 = vsub.f32 %v8873_v25, %v8878_v62  ;;  %v12824_v62 = vld [vmem:[%s19670_s12 + $0x1c] sm:$0xf] }
0x234e   :  { %v8888_v45 = vmul.f32 1.442695, %v8885_v14  ;;  %v9270_v14 = vsel %vm102_vm0, %v12824_v62, 0 }
0x234f   :  { %v8881_v10 = vpop.xlane.xlu1 %8880  ;;  %15186 = vmatpush3.bf16.msra.mxu1 %v9270_v14 }
0x2350   :  { %15817 = vpow2.f32 %v8888_v45  ;;  %v8886_v50 = vsub.f32 %v8874_v39, %v8881_v10 }
0x2352   :  { %v8890_v18 = vmul.f32 1.442695, %v8886_v50 }
0x2353   :  { %v8884_v31 = vpop.xlane.xlu0 %8883 }
0x2354   :  { %15819 = vpow2.f32 %v8890_v18  ;;  %v8887_v12 = vsub.f32 %v8875_v11, %v8884_v31 }
0x2356   :  { %v8892_v2 = vmul.f32 1.442695, %v8887_v12 }
0x2357   :  { %v9112_v58 = vpop.xlane.xlu1 %9111 }
0x2358   :  { %15821 = vpow2.f32 %v8892_v2  ;;  %v9119_v46 = vsub.f32 %v9107_v21, %v9112_v58 }
0x235a   :  { %v9122_v63 = vmul.f32 1.442695, %v9119_v46 }
0x235b   :  { %v9115_v6 = vpop.xlane.xlu0 %9114 }
0x235c   :  { %15823 = vpow2.f32 %v9122_v63  ;;  %v9120_v22 = vsub.f32 %v9108_v42, %v9115_v6 }
0x235d   :  { %v15818_v37 = vpop.eup %15817 }
0x235e   :  { %v9124_v61 = vmul.f32 1.442695, %v9120_v22  ;;  %v8894_v49 = vsel %vm662_vm9, %v15818_v37, 0.0 }
0x235f   :  { %8895 = vadd.xlane.f32.xlu0 %v8894_v49  ;;  %v9118_v54 = vpop.xlane.xlu1 %9117 }
0x2360   :  { %15825 = vpow2.f32 %v9124_v61  ;;  %v9121_v36 = vsub.f32 %v9109_v34, %v9118_v54 }
0x2361   :  { %v15820_v1 = vpop.eup %15819 }
0x2362   :  { %v9126_v17 = vmul.f32 1.442695, %v9121_v36  ;;  %v8897_v25 = vsel %vm662_vm9, %v15820_v1, 0.0 }
0x2363   :  { %8898 = vadd.xlane.f32.xlu1 %v8897_v25 }
0x2364   :  { %15827 = vpow2.f32 %v9126_v17 }
0x2365   :  { %v15822_v48 = vpop.eup %15821 }
0x2366   :  { %v8900_v38 = vsel %vm669_vm10, %v15822_v48, 0.0 }
0x2367   :  { %8901 = vadd.xlane.f32.xlu0 %v8900_v38 }
0x2369   :  { %v15824_v32 = vpop.eup %15823 }
0x236a   :  { %v9128_v39 = vsel %vm662_vm9, %v15824_v32, 0.0 }
0x236b   :  { %9129 = vadd.xlane.f32.xlu1 %v9128_v39  ;;  %v12829_v39 = vld [vmem:[%s19671_s13 + $0x1] ss:$0 sm:$0xff] }
0x236d   :  { %v15826_v28 = vpop.eup %15825 }
0x236e   :  { %v9131_v51 = vsel %vm662_vm9, %v15826_v28, 0.0 }
0x236f   :  { %9132 = vadd.xlane.f32.xlu0 %v9131_v51 }
0x2371   :  { %v15828_v59 = vpop.eup %15827 }
0x2372   :  { %v9134_v11 = vsel %vm669_vm10, %v15828_v59, 0.0 }
0x2373   :  { %9135 = vadd.xlane.f32.xlu1 %v9134_v11 }
0x23e8   :  { %v8896_v43 = vpop.xlane.xlu0 %8895 }
0x23e9   :  { %15829 = vrcp.f32 %v8896_v43 }
0x23ec   :  { %v8899_v33 = vpop.xlane.xlu1 %8898 }
0x23ed   :  { %15831 = vrcp.f32 %v8899_v33 }
0x23f0   :  { %v8902_v29 = vpop.xlane.xlu0 %8901 }
0x23f1   :  { %15833 = vrcp.f32 %v8902_v29 }
0x23f4   :  { %v9130_v21 = vpop.xlane.xlu1 %9129 }
0x23f5   :  { %15835 = vrcp.f32 %v9130_v21 }
0x23f6   :  { %v15830_v47 = vpop.eup %15829 }
0x23f7   :  { %v8906_v15 = vmul.f32 %v15830_v47, %v15818_v37 }
0x23f8   :  { %v9133_v60 = vpop.xlane.xlu0 %9132 }
0x23f9   :  { %15837 = vrcp.f32 %v9133_v60  ;;  %15147 = vmatmul.mubr.msk.f32.vlgmr.msra.gmra.mxu0 %vm662_vm9, %v8906_v15 }
0x23fa   :  { %v15832_v42 = vpop.eup %15831  ;;  %15171 = vmatpush3.msk.msra.mxu0 %vm194_vm3, %v9148_v55  ;;  %15149 = vmatprep.mubr.msk.f32.mxu0 %vm15900_vm6, %v19716_v44 }
0x23fb   :  { %15172 = vmatprep.subr.mxu0 %v19716_v44  ;;  %v8907_v57 = vmul.f32 %v15832_v42, %v15820_v1 }
0x23fc   :  { %15173 = vmatpush3.msra.mxu0 %v18679_v30  ;;  %v9136_v9 = vpop.xlane.xlu1 %9135 }
0x23fd   :  { %15839 = vrcp.f32 %v9136_v9  ;;  %15174 = vmatprep.subr.mxu0 %v19716_v44  ;;  %15150 = vmatmul.mubr.msk.f32.gmra.mxu0 %vm662_vm9, %v8907_v57 }
0x23fe   :  { %v15834_v7 = vpop.eup %15833  ;;  %15175 = vmatpush3.msra.mxu0 %v18673_v16  ;;  %15152 = vmatprep.mubr.msk.f32.mxu0 %vm15900_vm6, %v19716_v44 }
0x23ff   :  { %v8908_v26 = vmul.f32 %v15834_v7, %v15822_v48 }
0x2401   :  { %15153 = vmatmul.mubr.msk.f32.gmra.mxu0 %vm662_vm9, %v8908_v26 }
0x2402   :  { %v15836_v55 = vpop.eup %15835  ;;  %15176 = vmatprep.mubr.msk.f32.mxu0 %vm15900_vm6, %v19716_v44 }
0x2403   :  { %v9140_v30 = vmul.f32 %v15836_v55, %v15824_v32 }
0x2405   :  { %15177 = vmatmul.mubr.msk.f32.vlgmr.msra.gmra.mxu0 %vm662_vm9, %v9140_v30 }
0x2406   :  { %v15838_v34 = vpop.eup %15837  ;;  %15179 = vmatprep.mubr.msk.f32.mxu0 %vm15900_vm6, %v19716_v44 }
0x2407   :  { %v9141_v23 = vmul.f32 %v15838_v34, %v15826_v28 }
0x2409   :  { %15180 = vmatmul.mubr.msk.f32.gmra.mxu0 %vm662_vm9, %v9141_v23 }
0x240a   :  { %v15840_v16 = vpop.eup %15839  ;;  %15182 = vmatprep.mubr.msk.f32.mxu0 %vm15900_vm6, %v19716_v44 }
0x240b   :  { %v9142_v40 = vmul.f32 %v15840_v16, %v15828_v59 }
0x240d   :  { %15183 = vmatmul.mubr.msk.f32.gmra.mxu0 %vm662_vm9, %v9142_v40 }
0x240e   :  { %9558 = vmatprep.mubr.bf16.mxu0 %v19715_v27 }
0x24b9   :  { %v8987_v45 = vpop.f32.mrf.mxu0 }
0x24bb   :  { %v15148_v10 = vpop.f32.mrf.mxu0 }
0x24bd   :  { %v8992_v50 = vpop.f32.mrf.mxu0 }
0x24be   :  { %v9255_v18 = vpack.c.bf16 %v8992_v50, %v8987_v45 }
0x24bf   :  { %v15151_v31 = vpop.f32.mrf.mxu0 }
0x24c0   :  { %15188 = vmatmul.mubr.msk.bf16.vlgmr.msra.gmra.mxu1 %vm560_vm7, %v9255_v18 }
0x24c1   :  { %v8997_v12 = vpop.f32.mrf.mxu0  ;;  %15191 = vmatprep.mubr.msk.bf16.mxu1 %vm15900_vm6, %v19716_v44 }
0x24c3   :  { %v15154_v2 = vpop.f32.mrf.mxu0 }
0x24c5   :  { %v9229_v58 = vpop.f32.mrf.mxu0 }
0x24c6   :  { %v9246_v63 = vrot.slane %v9229_v58, 7 }
0x24c7   :  { %v15178_v46 = vpop.f32.mrf.mxu0 }
0x24c8   :  { %v9254_v61 = vsel %vm194_vm3, %v8997_v12, %v9246_v63 }
0x24c9   :  { %v9234_v6 = vpop.f32.mrf.mxu0 }
0x24ca   :  { %v9247_v22 = vrot.slane %v9234_v6, 7 }
0x24cb   :  { %v15181_v37 = vpop.f32.mrf.mxu0 }
0x24cc   :  { %v9248_v49 = vsel %vm194_vm3, %v9246_v63, %v9247_v22 }
0x24cd   :  { %v9256_v54 = vpack.c.bf16 %v9248_v49, %v9254_v61  ;;  %v9239_v36 = vpop.f32.mrf.mxu0 }
0x24ce   :  { %v9249_v1 = vrot.slane %v9239_v36, 7 }
0x24cf   :  { %v15184_v17 = vpop.f32.mrf.mxu0  ;;  %15192 = vmatmul.mubr.msk.bf16.gmra.mxu1 %vm560_vm7, %v9256_v54 }
0x24d0   :  { %15195 = vmatprep.mubr.msk.bf16.mxu1 %vm15900_vm6, %v19716_v44  ;;  %v9250_v25 = vsel %vm194_vm3, %v9247_v22, %v9249_v1 }
0x24d1   :  { %v9257_v48 = vpack.c.bf16 %v9250_v25, %v9250_v25 }
0x24d7   :  { %15196 = vmatmul.mubr.msk.bf16.gmra.mxu1 %vm560_vm7, %v9257_v48 }
0x24d8   :  { %9619 = vmatprep.mubr.bf16.mxu1 %v19715_v27 }
0x2580   :  { %v9306_v38 = vpop.f32.mrf.mxu1 }
0x2581   :  { %v9328_v32 = vadd.f32 %v9306_v38, %v18683_v24  ;;  %v15445_v38 = vld [vmem:[%s19674_s16 + $0x124] ss:$16 sps:$4 sm:$0xff]  }
0x2582   :  { %v15189_v28 = vpop.f32.mrf.mxu1  ;;  %9538 = vmatprep.subr.bf16.mxu0 %v15445_v38 }
0x2583   :  { %v9333_v51 = vadd.f32 %v9328_v32, %v17884_v56  ;;  %v15448_v32 = vld [vmem:[%s19674_s16 + $0x12c] ss:$16 sps:$4 sm:$0xff]   ;;  %v15446_v28 = vld [vmem:[%s19674_s16 + $0x128] ss:$16 sps:$4 sm:$0xff]  }
0x2584   :  { %v9309_v59 = vpop.f32.mrf.mxu1  ;;  %9599 = vmatprep.subr.bf16.mxu1 %v15448_v32  ;;  %v15468_v32 = vld [vmem:[%s19676_s18 + $0x5f8] sm:$0xff]  }
0x2585   :  { %v18801_v11 = vadd.f32 %v12829_v39, %v9333_v51  ;;  %v9329_v43 = vadd.f32 %v9309_v59, %v18687_v3  ;;  %9600 = vmatpush1.bf16.msra.mxu1 %v15446_v28  ;;  %v15451_v51 = vld [vmem:[%s19674_s16 + $0x104] ss:$16 sps:$4 sm:$0xff]   ;;  %v15454_v59 = vld [vmem:[%s19674_s16 + $0x10c] ss:$16 sps:$4 sm:$0xff]  }
0x2586   :  { %v15190_v33 = vpop.f32.mrf.mxu1  ;;  %9601 = vmatprep.subr.bf16.mxu1 %v15454_v59  ;;  %v15470_v28 = vld [vmem:[%s19676_s18 + $0x5b8] sm:$0xff]   ;;  %v15472_v59 = vld [vmem:[%s19676_s18 + $0x5f0] sm:$0xff]  }
0x2587   :  { %v9334_v29 = vadd.f32 %v9329_v43, %v17890_v52  ;;  %v9355_v21 = vsel %vm221_vm2, %v18801_v11, 0.0  ;;  %v15449_v43 = vld [vmem:[%s19674_s16 + $0x100] ss:$16 sps:$4 sm:$0xff]   ;;  %v15452_v33 = vld [vmem:[%s19674_s16 + $0x108] ss:$16 sps:$4 sm:$0xff]  }
0x2588   :  { %9356 = vadd.xlane.f32.xlu0 %v9355_v21  ;;  %v15460_v21 = vld [vmem:[%s19674_s16 + $0x16c] ss:$16 sps:$4 sm:$0xff]  }
0x2589   :  { %v9347_v24 = vadd.f32 %v12829_v39, %v9334_v29  ;;  %9602 = vmatpush1.bf16.msra.mxu1 %v15452_v33  ;;  %v15457_v29 = vld [vmem:[%s19674_s16 + $0x164] ss:$16 sps:$4 sm:$0xff]  }
0x258a   :  { %9890 = vmatprep.subr.bf16.mxu1 %v15460_v21  ;;  %v15474_v33 = vld [vmem:[%s19676_s18 + $0x5b0] sm:$0xff]   ;;  %v15476_v21 = vld [vmem:[%s19676_s18 + $0x5e8] sm:$0xff]  }
0x258b   :  { %v9358_v47 = vsel %vm221_vm2, %v9347_v24, 0.0 }
0x258c   :  { %9359 = vadd.xlane.f32.xlu1 %v9358_v47 }
0x258f   :  { %v9314_v15 = vpop.f32.mrf.mxu1 }
0x2590   :  { %v9330_v60 = vadd.f32 %v9314_v15, %v18691_v19 }
0x2591   :  { %v15193_v56 = vpop.f32.mrf.mxu1 }
0x2592   :  { %v9335_v42 = vadd.f32 %v9330_v60, %v17896_v4 }
0x2593   :  { %v9317_v57 = vpop.f32.mrf.mxu1 }
0x2594   :  { %v18810_v9 = vadd.f32 %v12829_v39, %v9335_v42  ;;  %v9331_v3 = vadd.f32 %v9317_v57, %v18695_v53 }
0x2595   :  { %v15194_v52 = vpop.f32.mrf.mxu1 }
0x2596   :  { %v9336_v7 = vadd.f32 %v9331_v3, %v17902_v41  ;;  %v9361_v26 = vsel %vm221_vm2, %v18810_v9, 0.0 }
0x2597   :  { %9362 = vadd.xlane.f32.xlu0 %v9361_v26  ;;  %v9322_v55 = vpop.f32.mrf.mxu1 }
0x2598   :  { %v9332_v30 = vadd.f32 %v9322_v55, %v18699_v35  ;;  %v9349_v34 = vadd.f32 %v12829_v39, %v9336_v7 }
0x2599   :  { %v15197_v19 = vpop.f32.mrf.mxu1 }
0x259a   :  { %v9337_v23 = vadd.f32 %v9332_v30, %v17907_v13  ;;  %v9364_v4 = vsel %vm221_vm2, %v9349_v34, 0.0  ;;  %v12832_v30 = vld [vmem:[%s19672_s14 + $0x1] ss:$0 sm:$0xff] }
0x259b   :  { %9365 = vadd.xlane.f32.xlu1 %v9364_v4  ;;  %v9325_v16 = vpop.f32.mrf.mxu1 }
0x259c   :  { %v9350_v40 = vadd.f32 %v12829_v39, %v9337_v23  ;;  %v15443_v39 = vld [vmem:[%s19674_s16 + $0x120] ss:$16 sps:$4 sm:$0xff]  }
0x259d   :  { %v15198_v53 = vpop.f32.mrf.mxu1  ;;  %9539 = vmatpush1.bf16.msra.mxu0 %v15443_v39  ;;  %v15469_v39 = vld [vmem:[%s19676_s18 + $0x538] sm:$0xff]  }
0x259e   :  { %v9367_v62 = vsel %vm234_vm4, %v9350_v40, 0.0  ;;  %9540 = vmatprep.subr.bf16.mxu0 %v15451_v51  ;;  %v12833_v53 = vld [vmem:[%s19673_s15 + $0x1] ss:$0 sm:$0xff]  ;;  %v15471_v51 = vld [vmem:[%s19676_s18 + $0x570] sm:$0xff]  }
0x259f   :  { %9368 = vadd.xlane.f32.xlu0 %v9367_v62 }
0x25a1   :  { %9541 = vmatpush1.bf16.msra.mxu0 %v15449_v43  ;;  %v15473_v43 = vld [vmem:[%s19676_s18 + $0x530] sm:$0xff]  }
0x25a2   :  { %9829 = vmatprep.subr.bf16.mxu0 %v15457_v29  ;;  %v15475_v29 = vld [vmem:[%s19676_s18 + $0x568] sm:$0xff]  }
0x2611   :  { %v9357_v41 = vpop.xlane.xlu0 %9356 }
0x2612   :  { %v9370_v14 = vmul.f32 0.03125, %v9357_v41 }
0x2614   :  { %v9375_v45 = vsub.f32 %v18801_v11, %v9370_v14 }
0x2615   :  { %v9360_v10 = vpop.xlane.xlu1 %9359 }
0x2616   :  { %v9371_v50 = vmul.f32 0.03125, %v9360_v10  ;;  %v9380_v35 = vmul.f32 %v9375_v45, %v9375_v45 }
0x2618   :  { %v18821_v18 = vsub.f32 %v9347_v24, %v9371_v50  ;;  %v9385_v13 = vsel %vm221_vm2, %v9380_v35, 0.0  ;;  %v15455_v35 = vld [vmem:[%s19674_s16 + $0x160] ss:$16 sps:$4 sm:$0xff]  }
0x2619   :  { %9386 = vadd.xlane.f32.xlu1 %v9385_v13  ;;  %v15463_v13 = vld [vmem:[%s19674_s16 + $0x144] ss:$16 sps:$4 sm:$0xff]  }
0x261a   :  { %v9381_v31 = vmul.f32 %v18821_v18, %v18821_v18 }
0x261c   :  { %v9388_v12 = vsel %vm221_vm2, %v9381_v31, 0.0  ;;  %v15466_v31 = vld [vmem:[%s19674_s16 + $0x14c] ss:$16 sps:$4 sm:$0xff]  }
0x261d   :  { %9389 = vadd.xlane.f32.xlu0 %v9388_v12 }
0x2620   :  { %v9363_v2 = vpop.xlane.xlu0 %9362 }
0x2621   :  { %v9372_v58 = vmul.f32 0.03125, %v9363_v2  ;;  %v15461_v2 = vld [vmem:[%s19674_s16 + $0x140] ss:$16 sps:$4 sm:$0xff]  }
0x2623   :  { %v18828_v46 = vsub.f32 %v18810_v9, %v9372_v58  ;;  %v15464_v58 = vld [vmem:[%s19674_s16 + $0x148] ss:$16 sps:$4 sm:$0xff]  }
0x2624   :  { %v9366_v63 = vpop.xlane.xlu1 %9365 }
0x2625   :  { %v9373_v6 = vmul.f32 0.03125, %v9366_v63  ;;  %v9382_v22 = vmul.f32 %v18828_v46, %v18828_v46 }
0x2627   :  { %v18832_v37 = vsub.f32 %v9349_v34, %v9373_v6  ;;  %v9391_v61 = vsel %vm221_vm2, %v9382_v22, 0.0 }
0x2628   :  { %9392 = vadd.xlane.f32.xlu1 %v9391_v61  ;;  %v9369_v49 = vpop.xlane.xlu0 %9368 }
0x2629   :  { %v9374_v54 = vmul.f32 0.03125, %v9369_v49  ;;  %v9383_v36 = vmul.f32 %v18832_v37, %v18832_v37 }
0x262b   :  { %v18837_v1 = vsub.f32 %v9350_v40, %v9374_v54  ;;  %v9394_v17 = vsel %vm221_vm2, %v9383_v36, 0.0 }
0x262c   :  { %9395 = vadd.xlane.f32.xlu0 %v9394_v17 }
0x262d   :  { %v9384_v25 = vmul.f32 %v18837_v1, %v18837_v1 }
0x262f   :  { %v9397_v48 = vsel %vm234_vm4, %v9384_v25, 0.0 }
0x2630   :  { %9398 = vadd.xlane.f32.xlu1 %v9397_v48 }
0x26a2   :  { %v9387_v24 = vpop.xlane.xlu1 %9386 }
0x26a3   :  { %v9400_v47 = vmul.f32 0.03125, %v9387_v24  ;;  %v15477_v24 = vld [vmem:[%s19676_s18 + $0x528] sm:$0xff]  }
0x26a5   :  { %v9405_v15 = vadd.f32 1e-05, %v9400_v47  ;;  %v15478_v47 = vld [vmem:[%s19676_s18 + $0x5a8] sm:$0xff]  }
0x26a6   :  { %v9390_v60 = vpop.xlane.xlu0 %9389 }
0x26a7   :  { %15841 = vrsqrt.f32 %v9405_v15  ;;  %v9401_v56 = vmul.f32 0.03125, %v9390_v60  ;;  %v15479_v15 = vld [vmem:[%s19676_s18 + $0x560] sm:$0xff]  }
0x26a8   :  { %v15480_v60 = vld [vmem:[%s19676_s18 + $0x5e0] sm:$0xff]  }
0x26a9   :  { %v9406_v42 = vadd.f32 1e-05, %v9401_v56  ;;  %v15481_v56 = vld [vmem:[%s19676_s18 + $0x520] sm:$0xff]  }
0x26ab   :  { %15843 = vrsqrt.f32 %v9406_v42  ;;  %v15482_v42 = vld [vmem:[%s19676_s18 + $0x5a0] sm:$0xff]  }
0x26b1   :  { %v9393_v57 = vpop.xlane.xlu1 %9392 }
0x26b2   :  { %v9402_v3 = vmul.f32 0.03125, %v9393_v57  ;;  %v15483_v57 = vld [vmem:[%s19676_s18 + $0x558] sm:$0xff]  }
0x26b4   :  { %v15842_v52 = vpop.eup %15841  ;;  %v9407_v7 = vadd.f32 1e-05, %v9402_v3  ;;  %v15484_v3 = vld [vmem:[%s19676_s18 + $0x5d8] sm:$0xff]  }
0x26b5   :  { %v9415_v26 = vmul.f32 %v15842_v52, %v9375_v45  ;;  %v9396_v55 = vpop.xlane.xlu0 %9395  ;;  %v15485_v52 = vld [vmem:[%s19676_s18 + $0x518] sm:$0xff]  }
0x26b6   :  { %15845 = vrsqrt.f32 %v9407_v7  ;;  %v9403_v34 = vmul.f32 0.03125, %v9396_v55  ;;  %v15486_v7 = vld [vmem:[%s19676_s18 + $0x598] sm:$0xff]   ;;  %v15488_v55 = vld [vmem:[%s19676_s18 + $0x5d0] sm:$0xff]  }
0x26b7   :  { %v9426_v4 = vmul.f32 %v12832_v30, %v9415_v26  ;;  %v15487_v26 = vld [vmem:[%s19676_s18 + $0x550] sm:$0xff]  }
0x26b8   :  { %v15844_v19 = vpop.eup %15843  ;;  %v9408_v23 = vadd.f32 1e-05, %v9403_v34  ;;  %v15490_v34 = vld [vmem:[%s19676_s18 + $0x590] sm:$0xff]  }
0x26b9   :  { %v9416_v16 = vmul.f32 %v15844_v19, %v18821_v18  ;;  %v9399_v40 = vpop.xlane.xlu1 %9398  ;;  %v9437_v45 = vadd.f32 %v12833_v53, %v9426_v4  ;;  %v15458_v18 = vld [vmem:[%s19674_s16 + $0x168] ss:$16 sps:$4 sm:$0xff]  }
0x26ba   :  { %15847 = vrsqrt.f32 %v9408_v23  ;;  %v9404_v62 = vmul.f32 0.03125, %v9399_v40  ;;  %v15491_v19 = vld [vmem:[%s19676_s18 + $0x548] sm:$0xff]   ;;  %v15495_v40 = vld [vmem:[%s19676_s18 + $0x540] sm:$0xff]  }
0x26bb   :  { %v9427_v41 = vmul.f32 %v12832_v30, %v9416_v16  ;;  %v15492_v23 = vld [vmem:[%s19676_s18 + $0x5c8] sm:$0xff]  }
0x26bc   :  { %v9409_v14 = vadd.f32 1e-05, %v9404_v62  ;;  %v15493_v4 = vld [vmem:[%s19676_s18 + $0x508] sm:$0xff]   ;;  %v15497_v62 = vld [vmem:[%s19676_s18 + $0x500] sm:$0xff]  }
0x26bd   :  { %v9438_v10 = vadd.f32 %v12833_v53, %v9427_v41  ;;  %v15494_v16 = vld [vmem:[%s19676_s18 + $0x588] sm:$0xff]   ;;  %v15498_v41 = vld [vmem:[%s19676_s18 + $0x580] sm:$0xff]  }
0x26be   :  { %15849 = vrsqrt.f32 %v9409_v14  ;;  %v15499_v14 = vld [vmem:[%s19676_s18 + $0x478] sm:$0xff]  }
0x26bf   :  { %v18880_v50 = vpack.c.bf16 %v9438_v10, %v9437_v45  ;;  %v15500_v45 = vld [vmem:[%s19676_s18 + $0x4f8] sm:$0xff]  }
0x26c1   :  { %12851 = vmatmul.mubr.msk.bf16.vlgmr.msra.gmra.mxu0 %vm221_vm2, %v18880_v50  ;;  %12854 = vmatmul.mubr.msk.bf16.vlgmr.msra.gmra.mxu1 %vm221_vm2, %v18880_v50 }
0x26c2   :  { %9568 = vmatprep.mubr.bf16.mxu0 %v19715_v27  ;;  %9629 = vmatprep.mubr.bf16.mxu1 %v19715_v27 }
0x26c3   :  { %v15846_v12 = vpop.eup %15845  ;;  %9830 = vmatpush1.bf16.msra.mxu0 %v15455_v35  ;;  %9891 = vmatpush1.bf16.msra.mxu1 %v15458_v18 }
0x26c4   :  { %v9417_v63 = vmul.f32 %v15846_v12, %v18828_v46  ;;  %9831 = vmatprep.subr.bf16.mxu0 %v15463_v13  ;;  %9892 = vmatprep.subr.bf16.mxu1 %v15466_v31 }
0x26c6   :  { %v9428_v22 = vmul.f32 %v12832_v30, %v9417_v63 }
0x26c7   :  { %v15848_v6 = vpop.eup %15847  ;;  %9832 = vmatpush1.bf16.msra.mxu0 %v15461_v2  ;;  %9893 = vmatpush1.bf16.msra.mxu1 %v15464_v58 }
0x26c8   :  { %v9418_v61 = vmul.f32 %v15848_v6, %v18832_v37  ;;  %v9439_v36 = vadd.f32 %v12833_v53, %v9428_v22  ;;  %13970 = vmatprep.subr.bf16.mxu1 %v15468_v32 }
0x26ca   :  { %v9429_v49 = vmul.f32 %v12832_v30, %v9418_v61 }
0x26cb   :  { %v15850_v54 = vpop.eup %15849 }
0x26cc   :  { %v9440_v17 = vadd.f32 %v12833_v53, %v9429_v49  ;;  %v9419_v25 = vmul.f32 %v15850_v54, %v18837_v1  ;;  %v15467_v1 = vld [vmem:[%s19676_s18 + $0x578] sm:$0xff]  }
0x26cd   :  { %13936 = vmatprep.subr.bf16.mxu0 %v15467_v1 }
0x26ce   :  { %v18909_v48 = vpack.c.bf16 %v9440_v17, %v9439_v36  ;;  %v9430_v38 = vmul.f32 %v12832_v30, %v9419_v25  ;;  %v15489_v30 = vld [vmem:[%s19676_s18 + $0x510] sm:$0xff]  }
0x26d0   :  { %12852 = vmatmul.mubr.msk.bf16.gmra.mxu0 %vm221_vm2, %v18909_v48  ;;  %12855 = vmatmul.mubr.msk.bf16.gmra.mxu1 %vm221_vm2, %v18909_v48  ;;  %v9441_v46 = vadd.f32 %v12833_v53, %v9430_v38  ;;  %v15496_v53 = vld [vmem:[%s19676_s18 + $0x5c0] sm:$0xff]  }
0x26d1   :  { %9578 = vmatprep.mubr.bf16.mxu0 %v19715_v27  ;;  %9639 = vmatprep.mubr.bf16.mxu1 %v19715_v27 }
0x26d2   :  { %v18917_v37 = vpack.c.bf16 %v9441_v46, %v9441_v46 }
0x26d8   :  { %12853 = vmatmul.mubr.msk.bf16.gmra.mxu0 %vm221_vm2, %v18917_v37  ;;  %12856 = vmatmul.mubr.msk.bf16.gmra.mxu1 %vm221_vm2, %v18917_v37 }
0x26d9   :  { %9849 = vmatprep.mubr.bf16.mxu0 %v19715_v27  ;;  %9910 = vmatprep.mubr.bf16.mxu1 %v19715_v27 }
0x26e0   :  { %12938 = vmatmul.mubr.msk.bf16.vlgmr.msra.gmra.mxu0 %vm221_vm2, %v18880_v50  ;;  %12941 = vmatmul.mubr.msk.bf16.vlgmr.msra.gmra.mxu1 %vm221_vm2, %v18880_v50 }
0x26e1   :  { %9859 = vmatprep.mubr.bf16.mxu0 %v19715_v27  ;;  %9920 = vmatprep.mubr.bf16.mxu1 %v19715_v27 }
0x26e2   :  { %13937 = vmatpush3.bf16.msra.mxu0 %v15469_v39  ;;  %13971 = vmatpush3.bf16.msra.mxu1 %v15470_v28 }
0x26e3   :  { %13938 = vmatprep.subr.bf16.mxu0 %v15471_v51  ;;  %13972 = vmatprep.subr.bf16.mxu1 %v15472_v59  ;;  %v12929_v59 = vld [vmem:[%s19675_s17 + $0x14] sm:$0xf] }
0x26e6   :  { %13939 = vmatpush3.bf16.msra.mxu0 %v15473_v43  ;;  %13973 = vmatpush3.bf16.msra.mxu1 %v15474_v33 }
0x26e7   :  { %13940 = vmatprep.subr.bf16.mxu0 %v15475_v29  ;;  %13974 = vmatprep.subr.bf16.mxu1 %v15476_v21  ;;  %v19087_v29 = vrot.slane %v12929_v59, %v17314_v0  ;;  %v19090_v21 = vrot.slane %v12929_v59, %v17317_v20 }
0x26e8   :  { %12939 = vmatmul.mubr.msk.bf16.gmra.mxu0 %vm221_vm2, %v18909_v48  ;;  %12942 = vmatmul.mubr.msk.bf16.gmra.mxu1 %vm221_vm2, %v18909_v48 }
0x26e9   :  { %9869 = vmatprep.mubr.bf16.mxu0 %v19715_v27  ;;  %9930 = vmatprep.mubr.bf16.mxu1 %v19715_v27 }
0x26ea   :  { %13941 = vmatpush3.bf16.msra.mxu0 %v15477_v24  ;;  %13975 = vmatpush3.bf16.msra.mxu1 %v15478_v47  ;;  %v19093_v24 = vrot.slane %v12929_v59, %v16052_v8  ;;  %v19096_v47 = vrot.slane %v12929_v59, %v17323_v5 }
0x26eb   :  { %13942 = vmatprep.subr.bf16.mxu0 %v15479_v15  ;;  %13976 = vmatprep.subr.bf16.mxu1 %v15480_v60 }
0x26ee   :  { %13943 = vmatpush3.bf16.msra.mxu0 %v15481_v56  ;;  %13977 = vmatpush3.bf16.msra.mxu1 %v15482_v42 }
0x26ef   :  { %13944 = vmatprep.subr.bf16.mxu0 %v15483_v57  ;;  %13978 = vmatprep.subr.bf16.mxu1 %v15484_v3 }
0x26f0   :  { %12940 = vmatmul.mubr.msk.bf16.gmra.mxu0 %vm221_vm2, %v18917_v37  ;;  %12943 = vmatmul.mubr.msk.bf16.gmra.mxu1 %vm221_vm2, %v18917_v37 }
0x26f2   :  { %13945 = vmatpush3.bf16.msra.mxu0 %v15485_v52  ;;  %13979 = vmatpush3.bf16.msra.mxu1 %v15486_v7 }
0x26f3   :  { %13946 = vmatprep.subr.bf16.mxu0 %v15487_v26  ;;  %13980 = vmatprep.subr.bf16.mxu1 %v15488_v55 }
0x26f6   :  { %13947 = vmatpush3.bf16.msra.mxu0 %v15489_v30  ;;  %13981 = vmatpush3.bf16.msra.mxu1 %v15490_v34 }
0x26f7   :  { %13948 = vmatprep.subr.bf16.mxu0 %v15491_v19  ;;  %13982 = vmatprep.subr.bf16.mxu1 %v15492_v23 }
0x26fa   :  { %13949 = vmatpush3.bf16.msra.mxu0 %v15493_v4  ;;  %13983 = vmatpush3.bf16.msra.mxu1 %v15494_v16 }
0x26fb   :  { %13950 = vmatprep.subr.bf16.mxu0 %v15495_v40  ;;  %13984 = vmatprep.subr.bf16.mxu1 %v15496_v53 }
0x26fe   :  { %13951 = vmatpush3.bf16.msra.mxu0 %v15497_v62  ;;  %13985 = vmatpush3.bf16.msra.mxu1 %v15498_v41 }
0x26ff   :  { %14004 = vmatprep.subr.bf16.mxu0 %v15499_v14  ;;  %14038 = vmatprep.subr.bf16.mxu1 %v15500_v45 }
0x2781   :  { %v19043_v10 = vpop.f32.mrf.mxu0  ;;  %v19045_v35 = vpop.f32.mrf.mxu1 }
0x2783   :  { %v19047_v18 = vpop.f32.mrf.mxu0  ;;  %v19049_v13 = vpop.f32.mrf.mxu1 }
0x2785   :  { %v19051_v31 = vpop.f32.mrf.mxu0  ;;  %v19053_v12 = vpop.f32.mrf.mxu1 }
0x2787   :  { %v19055_v2 = vpop.f32.mrf.mxu0  ;;  %v19057_v58 = vpop.f32.mrf.mxu1 }
0x2790   :  { %v19059_v63 = vpop.f32.mrf.mxu0  ;;  %v19061_v6 = vpop.f32.mrf.mxu1 }
0x2792   :  { %v19063_v22 = vpop.f32.mrf.mxu0  ;;  %v19065_v61 = vpop.f32.mrf.mxu1 }
0x2794   :  { %v19067_v49 = vpop.f32.mrf.mxu0  ;;  %v19069_v54 = vpop.f32.mrf.mxu1 }
0x2796   :  { %v19071_v36 = vpop.f32.mrf.mxu0  ;;  %v19073_v17 = vpop.f32.mrf.mxu1 }
0x2798   :  { %v19075_v25 = vpop.f32.mrf.mxu0  ;;  %v19077_v38 = vpop.f32.mrf.mxu1 }
0x279a   :  { %v19079_v46 = vpop.f32.mrf.mxu0  ;;  %v19081_v1 = vpop.f32.mrf.mxu1 }
0x279c   :  { %v9584_v32 = vpop.f32.mrf.mxu0  ;;  %v9645_v39 = vpop.f32.mrf.mxu1 }
0x279e   :  { %v9585_v28 = vpop.f32.mrf.mxu0  ;;  %v9646_v51 = vpop.f32.mrf.mxu1 }
0x27a0   :  { %v9851_v43 = vpop.f32.mrf.mxu0  ;;  %v9912_v33 = vpop.f32.mrf.mxu1 }
0x27a1   :  { %v9852_v26 = vadd.f32 %v9851_v43, %v19093_v24  ;;  %v9913_v55 = vadd.f32 %v9912_v33, %v19096_v47  ;;  %v15501_v33 = vld [vmem:[%s19676_s18 + $0x438] sm:$0xff]  }
0x27a2   :  { %v9853_v15 = vpop.f32.mrf.mxu0  ;;  %v9914_v60 = vpop.f32.mrf.mxu1 }
0x27a3   :  { %v9854_v57 = vadd.f32 %v9853_v15, %v19087_v29  ;;  %v9915_v3 = vadd.f32 %v9914_v60, %v19090_v21  ;;  %v9939_v32 = vmax.f32 %v9852_v26, 0.0  ;;  %v9941_v39 = vmax.f32 %v9913_v55, 0.0  ;;  %v15502_v15 = vld [vmem:[%s19676_s18 + $0x4b8] sm:$0xff]  }
0x27a4   :  { %v9855_v56 = vpop.f32.mrf.mxu0  ;;  %v9916_v42 = vpop.f32.mrf.mxu1 }
0x27a5   :  { %v9856_v52 = vadd.f32 %v9855_v56, %v19093_v24  ;;  %v9917_v7 = vadd.f32 %v9916_v42, %v19096_v47  ;;  %v9940_v62 = vmax.f32 %v9854_v57, 0.0  ;;  %v9942_v41 = vmax.f32 %v9915_v3, 0.0 }
0x27a6   :  { %v9857_v30 = vpop.f32.mrf.mxu0  ;;  %v9918_v34 = vpop.f32.mrf.mxu1 }
0x27a7   :  { %v9858_v19 = vadd.f32 %v9857_v30, %v19087_v29  ;;  %v9919_v23 = vadd.f32 %v9918_v34, %v19090_v21  ;;  %v9943_v4 = vmax.f32 %v9856_v52, 0.0  ;;  %v9945_v16 = vmax.f32 %v9917_v7, 0.0  ;;  %v15503_v52 = vld [vmem:[%s19676_s18 + $0x470] sm:$0xff]  }
0x27a8   :  { %v9861_v40 = vpop.f32.mrf.mxu0  ;;  %v9922_v53 = vpop.f32.mrf.mxu1  ;;  %v15504_v7 = vld [vmem:[%s19676_s18 + $0x4f0] sm:$0xff]  }
0x27a9   :  { %v9944_v14 = vmax.f32 %v9858_v19, 0.0  ;;  %v9946_v45 = vmax.f32 %v9919_v23, 0.0  ;;  %v9959_v60 = vpack.c.bf16 %v9943_v4, %v9939_v32  ;;  %v9961_v56 = vpack.c.bf16 %v9945_v16, %v9941_v39  ;;  %v15507_v39 = vld [vmem:[%s19676_s18 + $0x468] sm:$0xff]  }
0x27aa   :  { %v9863_v28 = vpop.f32.mrf.mxu0  ;;  %v9924_v51 = vpop.f32.mrf.mxu1  ;;  %v9862_v34 = vadd.f32 %v9861_v40, %v19093_v24  ;;  %v9923_v19 = vadd.f32 %v9922_v53, %v19096_v47  ;;  %v15506_v53 = vld [vmem:[%s19676_s18 + $0x4b0] sm:$0xff]  }
0x27ab   :  { %v9960_v59 = vpack.c.bf16 %v9944_v14, %v9940_v62  ;;  %v9962_v43 = vpack.c.bf16 %v9946_v45, %v9942_v41  ;;  %v9864_v42 = vadd.f32 %v9863_v28, %v19087_v29  ;;  %v9925_v26 = vadd.f32 %v9924_v51, %v19090_v21  ;;  %v15505_v41 = vld [vmem:[%s19676_s18 + $0x430] sm:$0xff]  }
0x27ac   :  { %v9865_v57 = vpop.f32.mrf.mxu0  ;;  %v9926_v3 = vpop.f32.mrf.mxu1  ;;  %v19138_v28 = vld [vmem:[%s19675_s17 + $0x10] sm:$0xf] }
0x27ad   :  { %v9866_v55 = vadd.f32 %v9865_v57, %v19093_v24  ;;  %v9927_v30 = vadd.f32 %v9926_v3, %v19096_v47  ;;  %10260 = vmatprep.mubr.bf16.mxu0 %v9960_v59  ;;  %10313 = vmatprep.mubr.bf16.mxu1 %v9962_v43  ;;  %v9948_v14 = vmax.f32 %v9864_v42, 0.0  ;;  %v9950_v51 = vmax.f32 %v9925_v26, 0.0  ;;  %v15508_v3 = vld [vmem:[%s19676_s18 + $0x4e8] sm:$0xff]  }
0x27ae   :  { %v9867_v23 = vpop.f32.mrf.mxu0  ;;  %v9928_v4 = vpop.f32.mrf.mxu1  ;;  %10261 = vmatmul.mubr.bf16.vlgmr.msra.gmra.mxu0 %v9959_v60  ;;  %10314 = vmatmul.mubr.bf16.vlgmr.msra.gmra.mxu1 %v9961_v56  ;;  %v9947_v60 = vmax.f32 %v9862_v34, 0.0  ;;  %v9949_v56 = vmax.f32 %v9923_v19, 0.0  ;;  %v19154_v34 = vrot.slane %v19138_v28, %v17317_v20 }
0x27af   :  { %v9868_v16 = vadd.f32 %v9867_v23, %v19087_v29  ;;  %v9929_v62 = vadd.f32 %v9928_v4, %v19090_v21  ;;  %14005 = vmatpush3.bf16.msra.mxu0 %v15501_v33  ;;  %14039 = vmatpush3.bf16.msra.mxu1 %v15502_v15  ;;  %v9951_v45 = vmax.f32 %v9866_v55, 0.0  ;;  %v9953_v59 = vmax.f32 %v9927_v30, 0.0  ;;  %v15509_v30 = vld [vmem:[%s19676_s18 + $0x428] sm:$0xff]  }
0x27b0   :  { %v9871_v32 = vpop.f32.mrf.mxu0  ;;  %v9932_v40 = vpop.f32.mrf.mxu1  ;;  %14006 = vmatprep.subr.bf16.mxu0 %v15503_v52  ;;  %14040 = vmatprep.subr.bf16.mxu1 %v15504_v7  ;;  %v19142_v15 = vrot.slane %v19138_v28, %v17314_v0 }
0x27b1   :  { %v9952_v43 = vmax.f32 %v9868_v16, 0.0  ;;  %v9954_v33 = vmax.f32 %v9929_v62, 0.0  ;;  %v9963_v19 = vpack.c.bf16 %v9951_v45, %v9947_v60  ;;  %v9872_v23 = vadd.f32 %v9871_v32, %v19093_v24 }
0x27b2   :  { %v9873_v42 = vpop.f32.mrf.mxu0  ;;  %v9934_v57 = vpop.f32.mrf.mxu1  ;;  %v9965_v62 = vpack.c.bf16 %v9953_v59, %v9949_v56  ;;  %v9567_v24 = vadd.f32 %v19055_v2, %v19142_v15  ;;  %v9563_v2 = vadd.f32 %v19047_v18, %v19142_v15  ;;  %v9624_v60 = vadd.f32 %v19049_v13, %v19154_v34  ;;  %v15516_v18 = vld [vmem:[%s19676_s18 + $0x4d8] sm:$0xff]  }
0x27b3   :  { %v9964_v52 = vpack.c.bf16 %v9952_v43, %v9948_v14  ;;  %v9966_v7 = vpack.c.bf16 %v9954_v33, %v9950_v51  ;;  %v9874_v55 = vadd.f32 %v9873_v42, %v19087_v29  ;;  %v9935_v26 = vadd.f32 %v9934_v57, %v19090_v21  ;;  %14007 = vmatpush3.bf16.msra.mxu0 %v15505_v41  ;;  %v15510_v29 = vld [vmem:[%s19676_s18 + $0x4a8] sm:$0xff]   ;;  %v15511_v21 = vld [vmem:[%s19676_s18 + $0x460] sm:$0xff]   ;;  %v15518_v13 = vld [vmem:[%s19676_s18 + $0x498] sm:$0xff]  }
0x27b4   :  { %14041 = vmatpush3.bf16.msra.mxu1 %v15506_v53  ;;  %v9875_v4 = vpop.f32.mrf.mxu0  ;;  %v9936_v16 = vpop.f32.mrf.mxu1  ;;  %14008 = vmatprep.subr.bf16.mxu0 %v15507_v39  ;;  %v9933_v41 = vadd.f32 %v9932_v40, %v19096_v47  ;;  %v15512_v53 = vld [vmem:[%s19676_s18 + $0x4e0] sm:$0xff]   ;;  %v9628_v39 = vadd.f32 %v19057_v58, %v19154_v34  ;;  %v9955_v43 = vmax.f32 %v9872_v23, 0.0  ;;  %v15515_v58 = vld [vmem:[%s19676_s18 + $0x458] sm:$0xff]   ;;  %v9653_v42 = vmax.f32 %v9567_v24, 0.0  ;;  %v15520_v23 = vld [vmem:[%s19676_s18 + $0x4d0] sm:$0xff]  }
0x27b5   :  { %v9956_v14 = vmax.f32 %v9874_v55, 0.0  ;;  %v9958_v51 = vmax.f32 %v9935_v26, 0.0  ;;  %10267 = vmatprep.mubr.bf16.mxu0 %v9964_v52  ;;  %10320 = vmatprep.mubr.bf16.mxu1 %v9966_v7  ;;  %v15513_v40 = vld [vmem:[%s19676_s18 + $0x420] sm:$0xff]   ;;  %v9649_v52 = vmax.f32 %v9563_v2, 0.0  ;;  %v9651_v55 = vmax.f32 %v9624_v60, 0.0  ;;  %v15521_v16 = vld [vmem:[%s19676_s18 + $0x410] sm:$0xff]  }
0x27b6   :  { %14042 = vmatprep.subr.bf16.mxu1 %v15508_v3  ;;  %v9876_v45 = vpop.f32.mrf.mxu0  ;;  %v9937_v32 = vpop.f32.mrf.mxu1  ;;  %10268 = vmatmul.mubr.bf16.gmra.mxu0 %v9963_v19  ;;  %v15514_v33 = vld [vmem:[%s19676_s18 + $0x4a0] sm:$0xff]   ;;  %v9957_v56 = vmax.f32 %v9933_v41, 0.0  ;;  %v9655_v57 = vmax.f32 %v9628_v39, 0.0  ;;  %v15517_v3 = vld [vmem:[%s19676_s18 + $0x418] sm:$0xff]   ;;  %v9967_v7 = vpack.c.bf16 %v9955_v43, %v9955_v43  ;;  %v19213_v41 = vrot.slane %v19138_v28, %v16052_v8 }
0x27b7   :  { %v9968_v59 = vpack.c.bf16 %v9956_v14, %v9956_v14  ;;  %v9970_v47 = vpack.c.bf16 %v9958_v51, %v9958_v51  ;;  %10321 = vmatmul.mubr.bf16.gmra.mxu1 %v9965_v62  ;;  %14009 = vmatpush3.bf16.msra.mxu0 %v15509_v30  ;;  %v15519_v30 = vld [vmem:[%s19676_s18 + $0x450] sm:$0xff]   ;;  %v9669_v19 = vpack.c.bf16 %v9653_v42, %v9649_v52  ;;  %v15524_v62 = vld [vmem:[%s19676_s18 + $0x4c8] sm:$0xff]   ;;  %v15527_v32 = vld [vmem:[%s19676_s18 + $0x440] sm:$0xff]  }
0x27b8   :  { %14043 = vmatpush3.bf16.msra.mxu1 %v15510_v29  ;;  %14010 = vmatprep.subr.bf16.mxu0 %v15511_v21  ;;  %v9969_v26 = vpack.c.bf16 %v9957_v56, %v9957_v56  ;;  %v9671_v4 = vpack.c.bf16 %v9655_v57, %v9651_v55  ;;  %v15522_v29 = vld [vmem:[%s19676_s18 + $0x490] sm:$0xff]   ;;  %v15523_v21 = vld [vmem:[%s19676_s18 + $0x448] sm:$0xff]   ;;  %v19217_v14 = vrot.slane %v19138_v28, %v17323_v5 }
0x27b9   :  { %10274 = vmatprep.mubr.bf16.mxu0 %v9968_v59  ;;  %10327 = vmatprep.mubr.bf16.mxu1 %v9970_v47  ;;  %v15525_v51 = vld [vmem:[%s19676_s18 + $0x408] sm:$0xff]   ;;  %v9565_v24 = vadd.f32 %v19051_v31, %v19213_v41  ;;  %v15528_v31 = vld [vmem:[%s19676_s18 + $0x4c0] sm:$0xff]   ;;  %v9561_v39 = vadd.f32 %v19043_v10, %v19213_v41  ;;  %v9638_v59 = vadd.f32 %v19073_v17, %v19154_v34 }
0x27ba   :  { %14044 = vmatprep.subr.bf16.mxu1 %v15512_v53  ;;  %v15526_v45 = vld [vmem:[%s19676_s18 + $0x488] sm:$0xff]   ;;  %v9626_v28 = vadd.f32 %v19053_v12, %v19217_v14  ;;  %v9577_v53 = vadd.f32 %v19071_v36, %v19142_v15  ;;  %v9622_v47 = vadd.f32 %v19045_v35, %v19217_v14  ;;  %v9573_v12 = vadd.f32 %v19063_v22, %v19142_v15  ;;  %v15529_v36 = vld [vmem:[%s19676_s18 + $0x400] sm:$0xff]  }
0x27bb   :  { %14011 = vmatpush3.bf16.msra.mxu0 %v15513_v40  ;;  %v9652_v40 = vmax.f32 %v9565_v24, 0.0  ;;  %v9634_v2 = vadd.f32 %v19065_v61, %v19154_v34  ;;  %v15530_v10 = vld [vmem:[%s19676_s18 + $0x480] sm:$0xff]   ;;  %v15536_v43 = vld [vmem:[%s19674_s16 + $0x1ac] ss:$16 sps:$4 sm:$0xff]   ;;  %v9575_v42 = vadd.f32 %v19067_v49, %v19213_v41  ;;  %v9636_v52 = vadd.f32 %v19069_v54, %v19217_v14  ;;  %v15534_v55 = vld [vmem:[%s19674_s16 + $0x1a8] ss:$16 sps:$4 sm:$0xff]  }
0x27bc   :  { %14045 = vmatpush3.bf16.msra.mxu1 %v15514_v33  ;;  %14012 = vmatprep.subr.bf16.mxu0 %v15515_v58  ;;  %v15533_v35 = vld [vmem:[%s19674_s16 + $0x1a4] ss:$16 sps:$4 sm:$0xff]   ;;  %v9654_v22 = vmax.f32 %v9626_v28, 0.0  ;;  %v9661_v17 = vmax.f32 %v9577_v53, 0.0  ;;  %v9648_v33 = vmax.f32 %v9561_v39, 0.0  ;;  %v9663_v58 = vmax.f32 %v9638_v59, 0.0 }
0x27bd   :  { %14046 = vmatprep.subr.bf16.mxu1 %v15516_v18  ;;  %v9650_v61 = vmax.f32 %v9622_v47, 0.0  ;;  %v9657_v60 = vmax.f32 %v9573_v12, 0.0  ;;  %v9659_v18 = vmax.f32 %v9634_v2, 0.0  ;;  %v15531_v57 = vld [vmem:[%s19674_s16 + $0x1a0] ss:$16 sps:$4 sm:$0xff]   ;;  %v9644_v54 = vadd.f32 %v19081_v1, %v19154_v34  ;;  %v15553_v2 = vld [vmem:[%s19676_s18 + $0x628] sm:$0xff]  }
0x27be   :  { %10275 = vmatmul.mubr.bf16.gmra.mxu0 %v9967_v7  ;;  %v9668_v56 = vpack.c.bf16 %v9652_v40, %v9648_v33  ;;  %v15539_v49 = vld [vmem:[%s19674_s16 + $0x184] ss:$16 sps:$4 sm:$0xff]   ;;  %v15540_v1 = vld [vmem:[%s19674_s16 + $0x188] ss:$16 sps:$4 sm:$0xff]  }
0x27bf   :  { %10328 = vmatmul.mubr.bf16.gmra.mxu1 %v9969_v26  ;;  %14013 = vmatpush3.bf16.msra.mxu0 %v15517_v3  ;;  %v9670_v3 = vpack.c.bf16 %v9654_v22, %v9650_v61  ;;  %v9673_v7 = vpack.c.bf16 %v9661_v17, %v9657_v60  ;;  %v9571_v26 = vadd.f32 %v19059_v63, %v19213_v41  ;;  %v15537_v63 = vld [vmem:[%s19674_s16 + $0x180] ss:$16 sps:$4 sm:$0xff]   ;;  %v15552_v40 = vld [vmem:[%s19676_s18 + $0x6e8] sm:$0xff]   ;;  %v15559_v33 = vld [vmem:[%s19676_s18 + $0x658] sm:$0xff]  }
0x27c0   :  { %14047 = vmatpush3.bf16.msra.mxu1 %v15518_v13  ;;  %10558 = vmatprep.mubr.bf16.mxu0 %v9669_v19  ;;  %v9583_v13 = vadd.f32 %v19079_v46, %v19142_v15  ;;  %v15542_v46 = vld [vmem:[%s19674_s16 + $0x18c] ss:$16 sps:$4 sm:$0xff]   ;;  %v9632_v15 = vadd.f32 %v19061_v6, %v19217_v14  ;;  %v9660_v19 = vmax.f32 %v9575_v42, 0.0  ;;  %v15547_v39 = vld [vmem:[%s19676_s18 + $0x670] sm:$0xff]   ;;  %v15556_v22 = vld [vmem:[%s19676_s18 + $0x6e0] sm:$0xff]  }
0x27c1   :  { %10611 = vmatprep.mubr.bf16.mxu1 %v9671_v4  ;;  %14014 = vmatprep.subr.bf16.mxu0 %v15519_v30  ;;  %v9675_v30 = vpack.c.bf16 %v9663_v58, %v9659_v18  ;;  %v9656_v34 = vmax.f32 %v9571_v26, 0.0  ;;  %v15548_v59 = vld [vmem:[%s19676_s18 + $0x6f0] sm:$0xff]   ;;  %v15557_v17 = vld [vmem:[%s19676_s18 + $0x620] sm:$0xff]   ;;  %v15560_v58 = vld [vmem:[%s19676_s18 + $0x6d8] sm:$0xff]  }
0x27c2   :  { %14048 = vmatprep.subr.bf16.mxu1 %v15520_v23  ;;  %v9662_v23 = vmax.f32 %v9636_v52, 0.0  ;;  %v9665_v4 = vmax.f32 %v9583_v13, 0.0  ;;  %v9658_v6 = vmax.f32 %v9632_v15, 0.0  ;;  %v15549_v47 = vld [vmem:[%s19676_s18 + $0x630] sm:$0xff]   ;;  %v15561_v61 = vld [vmem:[%s19676_s18 + $0x618] sm:$0xff]   ;;  %v15568_v52 = vld [vmem:[%s19676_s18 + $0x6c8] sm:$0xff]  }
0x27c3   :  { %14015 = vmatpush3.bf16.msra.mxu0 %v15521_v16  ;;  %v9667_v16 = vmax.f32 %v9644_v54, 0.0  ;;  %v15550_v12 = vld [vmem:[%s19676_s18 + $0x6b0] sm:$0xff]   ;;  %v15562_v60 = vld [vmem:[%s19676_s18 + $0x698] sm:$0xff]   ;;  %v15570_v13 = vld [vmem:[%s19676_s18 + $0x688] sm:$0xff]  }
0x27c4   :  { %14049 = vmatpush3.bf16.msra.mxu1 %v15522_v29  ;;  %14016 = vmatprep.subr.bf16.mxu0 %v15523_v21  ;;  %v9672_v29 = vpack.c.bf16 %v9660_v19, %v9656_v34  ;;  %v9581_v21 = vadd.f32 %v19075_v25, %v19213_v41  ;;  %v9677_v24 = vpack.c.bf16 %v9665_v4, %v9665_v4  ;;  %v15543_v25 = vld [vmem:[%s19676_s18 + $0x678] sm:$0xff]   ;;  %v15564_v18 = vld [vmem:[%s19676_s18 + $0x6d0] sm:$0xff]   ;;  %v15573_v26 = vld [vmem:[%s19676_s18 + $0x600] sm:$0xff]  }
0x27c5   :  { %14050 = vmatprep.subr.bf16.mxu1 %v15524_v62  ;;  %v9674_v62 = vpack.c.bf16 %v9662_v23, %v9658_v6  ;;  %v15545_v41 = vld [vmem:[%s19676_s18 + $0x638] sm:$0xff]   ;;  %v15565_v42 = vld [vmem:[%s19676_s18 + $0x610] sm:$0xff]  }
0x27c6   :  { %v15577_v54 = vld [vmem:[%s19674_s16 + $0x1e4] ss:$16 sps:$4 sm:$0xff]  }
0x27c7   :  { %14017 = vmatpush3.bf16.msra.mxu0 %v15525_v51  ;;  %v9642_v51 = vadd.f32 %v19077_v38, %v19217_v14  ;;  %v15544_v38 = vld [vmem:[%s19676_s18 + $0x6f8] sm:$0xff]  }
0x27c8   :  { %14051 = vmatpush3.bf16.msra.mxu1 %v15526_v45  ;;  %14018 = vmatprep.subr.bf16.mxu0 %v15527_v32  ;;  %v9679_v45 = vpack.c.bf16 %v9667_v16, %v9667_v16  ;;  %v9664_v32 = vmax.f32 %v9581_v21, 0.0  ;;  %v15546_v14 = vld [vmem:[%s19676_s18 + $0x6b8] sm:$0xff]  }
0x27c9   :  { %14052 = vmatprep.subr.bf16.mxu1 %v15528_v31  ;;  %v9666_v28 = vmax.f32 %v9642_v51, 0.0 }
0x27ca   :  { %v9676_v53 = vpack.c.bf16 %v9664_v32, %v9664_v32 }
0x27cb   :  { %14019 = vmatpush3.bf16.msra.mxu0 %v15529_v36  ;;  %v9678_v31 = vpack.c.bf16 %v9666_v28, %v9666_v28  ;;  %v15551_v36 = vld [vmem:[%s19676_s18 + $0x668] sm:$0xff]  }
0x27cc   :  { %14053 = vmatpush3.bf16.msra.mxu1 %v15530_v10  ;;  %10716 = vmatprep.subr.bf16.mxu0 %v15533_v35  ;;  %v15554_v10 = vld [vmem:[%s19676_s18 + $0x6a8] sm:$0xff]   ;;  %v15555_v35 = vld [vmem:[%s19676_s18 + $0x660] sm:$0xff]  }
0x27cd   :  { %10777 = vmatprep.subr.bf16.mxu1 %v15536_v43  ;;  %v15558_v43 = vld [vmem:[%s19676_s18 + $0x6a0] sm:$0xff]  }
0x27ce   :  { %10559 = vmatmul.mubr.bf16.vlgmr.msra.gmra.mxu0 %v9668_v56  ;;  %v15563_v56 = vld [vmem:[%s19676_s18 + $0x650] sm:$0xff]  }
0x27cf   :  { %10612 = vmatmul.mubr.bf16.vlgmr.msra.gmra.mxu1 %v9670_v3  ;;  %10565 = vmatprep.mubr.bf16.mxu0 %v9673_v7  ;;  %v15567_v3 = vld [vmem:[%s19676_s18 + $0x648] sm:$0xff]  }
0x27d0   :  { %10618 = vmatprep.mubr.bf16.mxu1 %v9675_v30  ;;  %10717 = vmatpush1.bf16.msra.mxu0 %v15531_v57  ;;  %v15566_v57 = vld [vmem:[%s19676_s18 + $0x690] sm:$0xff]   ;;  %v15569_v7 = vld [vmem:[%s19676_s18 + $0x608] sm:$0xff]   ;;  %v15574_v30 = vld [vmem:[%s19676_s18 + $0x680] sm:$0xff]  }
0x27d1   :  { %10778 = vmatpush1.bf16.msra.mxu1 %v15534_v55  ;;  %10718 = vmatprep.subr.bf16.mxu0 %v15539_v49  ;;  %v15571_v55 = vld [vmem:[%s19676_s18 + $0x640] sm:$0xff]  }
0x27d2   :  { %10779 = vmatprep.subr.bf16.mxu1 %v15542_v46  ;;  %v15572_v49 = vld [vmem:[%s19676_s18 + $0x6c0] sm:$0xff]   ;;  %v15580_v46 = vld [vmem:[%s19674_s16 + $0x1ec] ss:$16 sps:$4 sm:$0xff]  }
0x27d4   :  { %10719 = vmatpush1.bf16.msra.mxu0 %v15537_v63 }
0x27d5   :  { %10780 = vmatpush1.bf16.msra.mxu1 %v15540_v1  ;;  %14072 = vmatprep.subr.bf16.mxu0 %v15543_v25 }
0x27d6   :  { %10566 = vmatmul.mubr.bf16.gmra.mxu0 %v9672_v29  ;;  %14106 = vmatprep.subr.bf16.mxu1 %v15544_v38 }
0x27d7   :  { %10619 = vmatmul.mubr.bf16.gmra.mxu1 %v9674_v62  ;;  %10572 = vmatprep.mubr.bf16.mxu0 %v9677_v24 }
0x27d8   :  { %10625 = vmatprep.mubr.bf16.mxu1 %v9679_v45 }
0x27de   :  { %10573 = vmatmul.mubr.bf16.gmra.mxu0 %v9676_v53 }
0x27df   :  { %10626 = vmatmul.mubr.bf16.gmra.mxu1 %v9678_v31  ;;  %10736 = vmatprep.mubr.bf16.mxu0 %v19715_v27 }
0x27e0   :  { %10797 = vmatprep.mubr.bf16.mxu1 %v19715_v27 }
0x27e6   :  { %13089 = vmatmul.mubr.msk.bf16.vlgmr.msra.gmra.mxu0 %vm221_vm2, %v18880_v50 }
0x27e7   :  { %13092 = vmatmul.mubr.msk.bf16.vlgmr.msra.gmra.mxu1 %vm221_vm2, %v18880_v50  ;;  %10746 = vmatprep.mubr.bf16.mxu0 %v19715_v27 }
0x27e8   :  { %10807 = vmatprep.mubr.bf16.mxu1 %v19715_v27  ;;  %14073 = vmatpush3.bf16.msra.mxu0 %v15545_v41 }
0x27e9   :  { %14107 = vmatpush3.bf16.msra.mxu1 %v15546_v14  ;;  %14074 = vmatprep.subr.bf16.mxu0 %v15547_v39 }
0x27ea   :  { %14108 = vmatprep.subr.bf16.mxu1 %v15548_v59 }
0x27ec   :  { %14075 = vmatpush3.bf16.msra.mxu0 %v15549_v47 }
0x27ed   :  { %14109 = vmatpush3.bf16.msra.mxu1 %v15550_v12  ;;  %14076 = vmatprep.subr.bf16.mxu0 %v15551_v36 }
0x27ee   :  { %13090 = vmatmul.mubr.msk.bf16.gmra.mxu0 %vm221_vm2, %v18909_v48  ;;  %14110 = vmatprep.subr.bf16.mxu1 %v15552_v40 }
0x27ef   :  { %13093 = vmatmul.mubr.msk.bf16.gmra.mxu1 %vm221_vm2, %v18909_v48  ;;  %10756 = vmatprep.mubr.bf16.mxu0 %v19715_v27 }
0x27f0   :  { %10817 = vmatprep.mubr.bf16.mxu1 %v19715_v27  ;;  %14077 = vmatpush3.bf16.msra.mxu0 %v15553_v2 }
0x27f1   :  { %14111 = vmatpush3.bf16.msra.mxu1 %v15554_v10  ;;  %14078 = vmatprep.subr.bf16.mxu0 %v15555_v35 }
0x27f2   :  { %14112 = vmatprep.subr.bf16.mxu1 %v15556_v22 }
0x27f4   :  { %14079 = vmatpush3.bf16.msra.mxu0 %v15557_v17 }
0x27f5   :  { %14113 = vmatpush3.bf16.msra.mxu1 %v15558_v43  ;;  %14080 = vmatprep.subr.bf16.mxu0 %v15559_v33 }
0x27f6   :  { %13091 = vmatmul.mubr.msk.bf16.gmra.mxu0 %vm221_vm2, %v18917_v37  ;;  %14114 = vmatprep.subr.bf16.mxu1 %v15560_v58 }
0x27f7   :  { %13094 = vmatmul.mubr.msk.bf16.gmra.mxu1 %vm221_vm2, %v18917_v37 }
0x27f8   :  { %14081 = vmatpush3.bf16.msra.mxu0 %v15561_v61 }
0x27f9   :  { %14115 = vmatpush3.bf16.msra.mxu1 %v15562_v60  ;;  %14082 = vmatprep.subr.bf16.mxu0 %v15563_v56 }
0x27fa   :  { %14116 = vmatprep.subr.bf16.mxu1 %v15564_v18 }
0x27fc   :  { %14083 = vmatpush3.bf16.msra.mxu0 %v15565_v42 }
0x27fd   :  { %14117 = vmatpush3.bf16.msra.mxu1 %v15566_v57  ;;  %14084 = vmatprep.subr.bf16.mxu0 %v15567_v3 }
0x27fe   :  { %14118 = vmatprep.subr.bf16.mxu1 %v15568_v52 }
0x2800   :  { %14085 = vmatpush3.bf16.msra.mxu0 %v15569_v7 }
0x2801   :  { %14119 = vmatpush3.bf16.msra.mxu1 %v15570_v13  ;;  %14086 = vmatprep.subr.bf16.mxu0 %v15571_v55 }
0x2802   :  { %14120 = vmatprep.subr.bf16.mxu1 %v15572_v49 }
0x2804   :  { %14087 = vmatpush3.bf16.msra.mxu0 %v15573_v26 }
0x2805   :  { %14121 = vmatpush3.bf16.msra.mxu1 %v15574_v30  ;;  %11307 = vmatprep.subr.bf16.mxu0 %v15577_v54 }
0x2806   :  { %11368 = vmatprep.subr.bf16.mxu1 %v15580_v46 }
0x286e   :  { %v13952_v15 = vpop.f32.mrf.mxu0  ;;  %v13986_v19 = vpop.f32.mrf.mxu1 }
0x2870   :  { %v13953_v63 = vpop.f32.mrf.mxu0  ;;  %v13987_v23 = vpop.f32.mrf.mxu1 }
0x2871   :  { %v13954_v4 = vadd.f32 %v13953_v63, %v13952_v15  ;;  %v13988_v1 = vadd.f32 %v13987_v23, %v13986_v19 }
0x2872   :  { %v13955_v34 = vpop.f32.mrf.mxu0  ;;  %v13989_v16 = vpop.f32.mrf.mxu1 }
0x2873   :  { %v10316_v6 = vadd.f32 %v13988_v1, %v13954_v4 }
0x2874   :  { %v13956_v29 = vpop.f32.mrf.mxu0  ;;  %v13990_v21 = vpop.f32.mrf.mxu1 }
0x2875   :  { %v13080_v29 = vld [vmem:[%s19675_s17 + $0x18] sm:$0xf] }
0x2876   :  { %v13958_v62 = vpop.f32.mrf.mxu0 }
0x2877   :  { %v13992_v51 = vpop.f32.mrf.mxu1 }
0x2878   :  { %v13959_v24 = vpop.f32.mrf.mxu0 }
0x2879   :  { %v13960_v45 = vadd.f32 %v13959_v24, %v13958_v62  ;;  %v13993_v32 = vpop.f32.mrf.mxu1  ;;  %v19424_v24 = vrot.slane %v13080_v29, %v16052_v8 }
0x287a   :  { %v13994_v28 = vadd.f32 %v13993_v32, %v13992_v51  ;;  %v13961_v53 = vpop.f32.mrf.mxu0  ;;  %v19421_v51 = vrot.slane %v13080_v29, %v17314_v0  ;;  %v19427_v32 = vrot.slane %v13080_v29, %v17317_v20 }
0x287b   :  { %v13995_v31 = vpop.f32.mrf.mxu1 }
0x287c   :  { %v10323_v25 = vadd.f32 %v13994_v28, %v13960_v45  ;;  %v13962_v38 = vpop.f32.mrf.mxu0  ;;  %v19430_v28 = vrot.slane %v13080_v29, %v17323_v5 }
0x287d   :  { %v13996_v41 = vpop.f32.mrf.mxu1 }
0x287e   :  { %v13964_v14 = vpop.f32.mrf.mxu0 }
0x287f   :  { %v13998_v39 = vpop.f32.mrf.mxu1 }
0x2880   :  { %v13965_v59 = vpop.f32.mrf.mxu0 }
0x2881   :  { %v13999_v47 = vpop.f32.mrf.mxu1 }
0x2882   :  { %v13967_v12 = vpop.f32.mrf.mxu0 }
0x2883   :  { %v14001_v36 = vpop.f32.mrf.mxu1 }
0x2884   :  { %v13968_v40 = vpop.f32.mrf.mxu0 }
0x2885   :  { %v14002_v2 = vpop.f32.mrf.mxu1 }
0x288e   :  { %v14020_v10 = vpop.f32.mrf.mxu0 }
0x288f   :  { %v14054_v35 = vpop.f32.mrf.mxu1 }
0x2890   :  { %v14021_v22 = vpop.f32.mrf.mxu0 }
0x2891   :  { %v14022_v17 = vadd.f32 %v14021_v22, %v14020_v10  ;;  %v14055_v43 = vpop.f32.mrf.mxu1 }
0x2892   :  { %v14056_v33 = vadd.f32 %v14055_v43, %v14054_v35  ;;  %v14023_v58 = vpop.f32.mrf.mxu0 }
0x2893   :  { %v10561_v61 = vadd.f32 %v14022_v17, %v10316_v6  ;;  %v14057_v60 = vpop.f32.mrf.mxu1 }
0x2894   :  { %v14024_v56 = vpop.f32.mrf.mxu0 }
0x2895   :  { %v19413_v18 = vadd.f32 %v14056_v33, %v10561_v61  ;;  %v14058_v42 = vpop.f32.mrf.mxu1 }
0x2896   :  { %v14026_v57 = vpop.f32.mrf.mxu0 }
0x2897   :  { %v14060_v3 = vpop.f32.mrf.mxu1 }
0x2898   :  { %v14027_v52 = vpop.f32.mrf.mxu0 }
0x2899   :  { %v14028_v7 = vadd.f32 %v14027_v52, %v14026_v57  ;;  %v14061_v13 = vpop.f32.mrf.mxu1  ;;  %v15575_v52 = vld [vmem:[%s19674_s16 + $0x1e0] ss:$16 sps:$4 sm:$0xff]  }
0x289a   :  { %v14062_v55 = vadd.f32 %v14061_v13, %v14060_v3  ;;  %v14029_v49 = vpop.f32.mrf.mxu0 }
0x289b   :  { %v10568_v26 = vadd.f32 %v14028_v7, %v10323_v25  ;;  %v14063_v30 = vpop.f32.mrf.mxu1  ;;  %v15578_v49 = vld [vmem:[%s19674_s16 + $0x1e8] ss:$16 sps:$4 sm:$0xff]  }
0x289c   :  { %v14030_v54 = vpop.f32.mrf.mxu0 }
0x289d   :  { %v19415_v46 = vadd.f32 %v14062_v55, %v10568_v26  ;;  %v14064_v15 = vpop.f32.mrf.mxu1  ;;  %v15583_v26 = vld [vmem:[%s19674_s16 + $0x1c4] ss:$16 sps:$4 sm:$0xff]  }
0x289e   :  { %v14032_v19 = vpop.f32.mrf.mxu0 }
0x289f   :  { %v14066_v63 = vpop.f32.mrf.mxu1 }
0x28a0   :  { %v14033_v23 = vpop.f32.mrf.mxu0  ;;  %v15586_v63 = vld [vmem:[%s19674_s16 + $0x1cc] ss:$16 sps:$4 sm:$0xff]  }
0x28a1   :  { %v14067_v4 = vpop.f32.mrf.mxu1 }
0x28a2   :  { %v14035_v1 = vpop.f32.mrf.mxu0 }
0x28a3   :  { %v14069_v34 = vpop.f32.mrf.mxu1 }
0x28a4   :  { %v14036_v16 = vpop.f32.mrf.mxu0 }
0x28a5   :  { %v14070_v6 = vpop.f32.mrf.mxu1 }
0x28a6   :  { %v10738_v21 = vpop.f32.mrf.mxu0 }
0x28a7   :  { %v10799_v62 = vpop.f32.mrf.mxu1  ;;  %v10739_v14 = vadd.f32 %v10738_v21, %v19424_v24  ;;  %v15581_v21 = vld [vmem:[%s19674_s16 + $0x1c0] ss:$16 sps:$4 sm:$0xff]  }
0x28a8   :  { %v10740_v45 = vpop.f32.mrf.mxu0  ;;  %v10800_v12 = vadd.f32 %v10799_v62, %v19430_v28 }
0x28a9   :  { %v10801_v53 = vpop.f32.mrf.mxu1  ;;  %v10741_v25 = vadd.f32 %v10740_v45, %v19421_v51  ;;  %v10826_v58 = vmax.f32 %v10739_v14, 0.0 }
0x28aa   :  { %v10742_v31 = vpop.f32.mrf.mxu0  ;;  %v10802_v39 = vadd.f32 %v10801_v53, %v19427_v32  ;;  %v10828_v42 = vmax.f32 %v10800_v12, 0.0 }
0x28ab   :  { %v10743_v38 = vadd.f32 %v10742_v31, %v19424_v24  ;;  %v10803_v41 = vpop.f32.mrf.mxu1  ;;  %v10827_v22 = vmax.f32 %v10741_v25, 0.0  ;;  %v15584_v31 = vld [vmem:[%s19674_s16 + $0x1c8] ss:$16 sps:$4 sm:$0xff]  }
0x28ac   :  { %v10804_v59 = vadd.f32 %v10803_v41, %v19430_v28  ;;  %v10744_v47 = vpop.f32.mrf.mxu0  ;;  %v10829_v61 = vmax.f32 %v10802_v39, 0.0 }
0x28ad   :  { %v10745_v36 = vadd.f32 %v10744_v47, %v19421_v51  ;;  %v10805_v40 = vpop.f32.mrf.mxu1  ;;  %v10830_v2 = vmax.f32 %v10743_v38, 0.0 }
0x28ae   :  { %v10806_v10 = vadd.f32 %v10805_v40, %v19427_v32  ;;  %v10748_v35 = vpop.f32.mrf.mxu0  ;;  %v10832_v17 = vmax.f32 %v10804_v59, 0.0 }
0x28af   :  { %v10831_v43 = vmax.f32 %v10745_v36, 0.0  ;;  %v10809_v33 = vpop.f32.mrf.mxu1  ;;  %v10846_v7 = vpack.c.bf16 %v10830_v2, %v10826_v58  ;;  %v10749_v23 = vadd.f32 %v10748_v35, %v19424_v24 }
0x28b0   :  { %v10833_v60 = vmax.f32 %v10806_v10, 0.0  ;;  %v10750_v56 = vpop.f32.mrf.mxu0  ;;  %v10848_v30 = vpack.c.bf16 %v10832_v17, %v10828_v42  ;;  %v10810_v16 = vadd.f32 %v10809_v33, %v19430_v28 }
0x28b1   :  { %v10847_v57 = vpack.c.bf16 %v10831_v43, %v10827_v22  ;;  %v10811_v3 = vpop.f32.mrf.mxu1  ;;  %v10751_v54 = vadd.f32 %v10750_v56, %v19421_v51  ;;  %v10834_v39 = vmax.f32 %v10749_v23, 0.0  ;;  %v15600_v23 = vld [vmem:[%s19676_s18 + $0x7e0] sm:$0xff]  }
0x28b2   :  { %v10849_v13 = vpack.c.bf16 %v10833_v60, %v10829_v61  ;;  %v10752_v55 = vpop.f32.mrf.mxu0  ;;  %v10812_v4 = vadd.f32 %v10811_v3, %v19427_v32  ;;  %v10836_v36 = vmax.f32 %v10810_v16, 0.0  ;;  %v15604_v16 = vld [vmem:[%s19676_s18 + $0x7d8] sm:$0xff]  }
0x28b3   :  { %v10753_v15 = vadd.f32 %v10752_v55, %v19424_v24  ;;  %v10813_v19 = vpop.f32.mrf.mxu1  ;;  %11147 = vmatprep.mubr.bf16.mxu0 %v10847_v57  ;;  %v10835_v25 = vmax.f32 %v10751_v54, 0.0  ;;  %v15592_v55 = vld [vmem:[%s19676_s18 + $0x7f0] sm:$0xff]   ;;  %v15596_v54 = vld [vmem:[%s19676_s18 + $0x7e8] sm:$0xff]  }
0x28b4   :  { %v10814_v1 = vadd.f32 %v10813_v19, %v19430_v28  ;;  %11200 = vmatprep.mubr.bf16.mxu1 %v10849_v13  ;;  %v10754_v34 = vpop.f32.mrf.mxu0  ;;  %11148 = vmatmul.mubr.bf16.vlgmr.msra.gmra.mxu0 %v10846_v7  ;;  %v10837_v59 = vmax.f32 %v10812_v4, 0.0  ;;  %v15598_v19 = vld [vmem:[%s19676_s18 + $0x7a8] sm:$0xff]   ;;  %v15601_v4 = vld [vmem:[%s19676_s18 + $0x720] sm:$0xff]  }
0x28b5   :  { %v10755_v6 = vadd.f32 %v10754_v34, %v19421_v51  ;;  %v10815_v29 = vpop.f32.mrf.mxu1  ;;  %11201 = vmatmul.mubr.bf16.vlgmr.msra.gmra.mxu1 %v10848_v30  ;;  %11308 = vmatpush1.bf16.msra.mxu0 %v15575_v52  ;;  %v10838_v62 = vmax.f32 %v10753_v15, 0.0  ;;  %v15595_v30 = vld [vmem:[%s19676_s18 + $0x768] sm:$0xff]   ;;  %v15603_v34 = vld [vmem:[%s19676_s18 + $0x758] sm:$0xff]  }
0x28b6   :  { %v10816_v45 = vadd.f32 %v10815_v29, %v19427_v32  ;;  %v10758_v53 = vpop.f32.mrf.mxu0  ;;  %11369 = vmatpush1.bf16.msra.mxu1 %v15578_v49  ;;  %11309 = vmatprep.subr.bf16.mxu0 %v15583_v26  ;;  %v10840_v38 = vmax.f32 %v10814_v1, 0.0  ;;  %v15593_v49 = vld [vmem:[%s19676_s18 + $0x730] sm:$0xff]   ;;  %v15597_v15 = vld [vmem:[%s19676_s18 + $0x728] sm:$0xff]   ;;  %v15602_v1 = vld [vmem:[%s19676_s18 + $0x7a0] sm:$0xff]  }
0x28b7   :  { %v10839_v41 = vmax.f32 %v10755_v6, 0.0  ;;  %v10819_v14 = vpop.f32.mrf.mxu1  ;;  %11370 = vmatprep.subr.bf16.mxu1 %v15586_v63  ;;  %v10850_v35 = vpack.c.bf16 %v10838_v62, %v10834_v39  ;;  %v10759_v17 = vadd.f32 %v10758_v53, %v19424_v24  ;;  %v15594_v26 = vld [vmem:[%s19676_s18 + $0x7b0] sm:$0xff]   ;;  %v15599_v63 = vld [vmem:[%s19676_s18 + $0x760] sm:$0xff]   ;;  %v15605_v6 = vld [vmem:[%s19676_s18 + $0x718] sm:$0xff]  }
0x28b8   :  { %v10841_v47 = vmax.f32 %v10816_v45, 0.0  ;;  %v10760_v12 = vpop.f32.mrf.mxu0  ;;  %v10852_v58 = vpack.c.bf16 %v10840_v38, %v10836_v36  ;;  %v10820_v61 = vadd.f32 %v10819_v14, %v19430_v28  ;;  %v15588_v28 = vld [vmem:[%s19676_s18 + $0x7f8] sm:$0xff]   ;;  %v15608_v62 = vld [vmem:[%s19676_s18 + $0x7d0] sm:$0xff]   ;;  %v15613_v38 = vld [vmem:[%s19676_s18 + $0x708] sm:$0xff]  }
0x28b9   :  { %v10851_v40 = vpack.c.bf16 %v10839_v41, %v10835_v25  ;;  %v10761_v2 = vadd.f32 %v10760_v12, %v19421_v51  ;;  %v10821_v10 = vpop.f32.mrf.mxu1  ;;  %11310 = vmatpush1.bf16.msra.mxu0 %v15581_v21  ;;  %v10842_v52 = vmax.f32 %v10759_v17, 0.0  ;;  %v15606_v29 = vld [vmem:[%s19676_s18 + $0x798] sm:$0xff]   ;;  %v15607_v21 = vld [vmem:[%s19676_s18 + $0x750] sm:$0xff]   ;;  %v15612_v25 = vld [vmem:[%s19676_s18 + $0x7c8] sm:$0xff]  }
0x28ba   :  { %v10853_v22 = vpack.c.bf16 %v10841_v47, %v10837_v59  ;;  %v10822_v43 = vadd.f32 %v10821_v10, %v19427_v32  ;;  %v10762_v33 = vpop.f32.mrf.mxu0  ;;  %11371 = vmatpush1.bf16.msra.mxu1 %v15584_v31  ;;  %v10844_v24 = vmax.f32 %v10820_v61, 0.0  ;;  %v15609_v45 = vld [vmem:[%s19676_s18 + $0x710] sm:$0xff]   ;;  %v15611_v31 = vld [vmem:[%s19676_s18 + $0x748] sm:$0xff]   ;;  %v15615_v14 = vld [vmem:[%s19676_s18 + $0x740] sm:$0xff]  }
0x28bb   :  { %v10843_v60 = vmax.f32 %v10761_v2, 0.0  ;;  %v10823_v56 = vpop.f32.mrf.mxu1  ;;  %11154 = vmatprep.mubr.bf16.mxu0 %v10851_v40  ;;  %v10854_v32 = vpack.c.bf16 %v10842_v52, %v10842_v52  ;;  %14174 = vmatprep.subr.bf16.mxu1 %v15588_v28  ;;  %v15610_v53 = vld [vmem:[%s19676_s18 + $0x790] sm:$0xff]   ;;  %v15614_v41 = vld [vmem:[%s19676_s18 + $0x788] sm:$0xff]   ;;  %v15616_v39 = vld [vmem:[%s19676_s18 + $0x7c0] sm:$0xff]  }
0x28bc   :  { %v10845_v42 = vmax.f32 %v10822_v43, 0.0  ;;  %11207 = vmatprep.mubr.bf16.mxu1 %v10853_v22  ;;  %v10763_v57 = vpop.f32.mrf.mxu0  ;;  %11155 = vmatmul.mubr.bf16.gmra.mxu0 %v10850_v35  ;;  %v10856_v13 = vpack.c.bf16 %v10844_v24, %v10844_v24  ;;  %v15617_v59 = vld [vmem:[%s19676_s18 + $0x700] sm:$0xff]  }
0x28bd   :  { %v10855_v51 = vpack.c.bf16 %v10843_v60, %v10843_v60  ;;  %v10824_v3 = vpop.f32.mrf.mxu1  ;;  %11208 = vmatmul.mubr.bf16.gmra.mxu1 %v10852_v58  ;;  %v15618_v47 = vld [vmem:[%s19676_s18 + $0x780] sm:$0xff]  }
0x28be   :  { %v10857_v7 = vpack.c.bf16 %v10845_v42, %v10845_v42 }
0x28bf   :  { %11161 = vmatprep.mubr.bf16.mxu0 %v10855_v51 }
0x28c0   :  { %11214 = vmatprep.mubr.bf16.mxu1 %v10857_v7 }
0x28c4   :  { %11162 = vmatmul.mubr.bf16.gmra.mxu0 %v10854_v32 }
0x28c5   :  { %11215 = vmatmul.mubr.bf16.gmra.mxu1 %v10856_v13  ;;  %11327 = vmatprep.mubr.bf16.mxu0 %v19715_v27 }
0x28c6   :  { %11388 = vmatprep.mubr.bf16.mxu1 %v19715_v27 }
0x28cc   :  { %13208 = vmatmul.mubr.msk.bf16.vlgmr.msra.gmra.mxu0 %vm221_vm2, %v18880_v50 }
0x28cd   :  { %13211 = vmatmul.mubr.msk.bf16.vlgmr.msra.gmra.mxu1 %vm221_vm2, %v18880_v50  ;;  %11337 = vmatprep.mubr.bf16.mxu0 %v19715_v27  ;;  %v15587_v50 = vld [vmem:[%s19676_s18 + $0x778] sm:$0xff]  }
0x28ce   :  { %11398 = vmatprep.mubr.bf16.mxu1 %v19715_v27  ;;  %14140 = vmatprep.subr.bf16.mxu0 %v15587_v50 }
0x28d4   :  { %13209 = vmatmul.mubr.msk.bf16.gmra.mxu0 %vm221_vm2, %v18909_v48 }
0x28d5   :  { %13212 = vmatmul.mubr.msk.bf16.gmra.mxu1 %vm221_vm2, %v18909_v48  ;;  %11347 = vmatprep.mubr.bf16.mxu0 %v19715_v27  ;;  %v15589_v48 = vld [vmem:[%s19676_s18 + $0x738] sm:$0xff]  }
0x28d6   :  { %11408 = vmatprep.mubr.bf16.mxu1 %v19715_v27  ;;  %v15590_v27 = vld [vmem:[%s19676_s18 + $0x7b8] sm:$0xff]   ;;  %14141 = vmatpush3.bf16.msra.mxu0 %v15589_v48 }
0x28d7   :  { %14175 = vmatpush3.bf16.msra.mxu1 %v15590_v27 }
0x28d8   :  { %14176 = vmatprep.subr.bf16.mxu1 %v15592_v55 }
0x28db   :  { %14177 = vmatpush3.bf16.msra.mxu1 %v15594_v26 }
0x28dc   :  { %13210 = vmatmul.mubr.msk.bf16.gmra.mxu0 %vm221_vm2, %v18917_v37  ;;  %14178 = vmatprep.subr.bf16.mxu1 %v15596_v54 }
0x28dd   :  { %13213 = vmatmul.mubr.msk.bf16.gmra.mxu1 %vm221_vm2, %v18917_v37  ;;  %v15591_v37 = vld [vmem:[%s19676_s18 + $0x770] sm:$0xff]  }
0x28de   :  { %14142 = vmatprep.subr.bf16.mxu0 %v15591_v37 }
0x28df   :  { %14143 = vmatpush3.bf16.msra.mxu0 %v15593_v49  ;;  %14179 = vmatpush3.bf16.msra.mxu1 %v15598_v19 }
0x28e0   :  { %14144 = vmatprep.subr.bf16.mxu0 %v15595_v30  ;;  %14180 = vmatprep.subr.bf16.mxu1 %v15600_v23  ;;  %v13199_v30 = vld [vmem:[%s19675_s17 + $0x1c] sm:$0xf] }
0x28e1   :  { %v11242_v19 = vrot.slane %v13199_v30, %v17314_v0  ;;  %v19599_v23 = vrot.slane %v13199_v30, %v17317_v20 }
0x28e3   :  { %14145 = vmatpush3.bf16.msra.mxu0 %v15597_v15  ;;  %14181 = vmatpush3.bf16.msra.mxu1 %v15602_v1 }
0x28e4   :  { %14146 = vmatprep.subr.bf16.mxu0 %v15599_v63  ;;  %14182 = vmatprep.subr.bf16.mxu1 %v15604_v16  ;;  %v19596_v63 = vrot.slane %v13199_v30, %v16052_v8 }
0x28e7   :  { %14147 = vmatpush3.bf16.msra.mxu0 %v15601_v4  ;;  %14183 = vmatpush3.bf16.msra.mxu1 %v15606_v29  ;;  %v19602_v4 = vrot.slane %v13199_v30, %v17323_v5 }
0x28e8   :  { %14148 = vmatprep.subr.bf16.mxu0 %v15603_v34  ;;  %14184 = vmatprep.subr.bf16.mxu1 %v15608_v62 }
0x28eb   :  { %14149 = vmatpush3.bf16.msra.mxu0 %v15605_v6  ;;  %14185 = vmatpush3.bf16.msra.mxu1 %v15610_v53 }
0x28ec   :  { %14150 = vmatprep.subr.bf16.mxu0 %v15607_v21  ;;  %14186 = vmatprep.subr.bf16.mxu1 %v15612_v25 }
0x28ef   :  { %14151 = vmatpush3.bf16.msra.mxu0 %v15609_v45  ;;  %14187 = vmatpush3.bf16.msra.mxu1 %v15614_v41 }
0x28f0   :  { %14152 = vmatprep.subr.bf16.mxu0 %v15611_v31  ;;  %14188 = vmatprep.subr.bf16.mxu1 %v15616_v39 }
0x28f3   :  { %14153 = vmatpush3.bf16.msra.mxu0 %v15613_v38  ;;  %14189 = vmatpush3.bf16.msra.mxu1 %v15618_v47 }
0x28f4   :  { %14154 = vmatprep.subr.bf16.mxu0 %v15615_v14 }
0x28f7   :  { %14155 = vmatpush3.bf16.msra.mxu0 %v15617_v59 }
0x28f8   :  { %15199 = vmatprep.subr.mxu0 %v19716_v44 }
0x2974   :  { %v14088_v12 = vpop.f32.mrf.mxu0 }
0x2975   :  { %v14122_v36 = vpop.f32.mrf.mxu1 }
0x2976   :  { %v14089_v40 = vpop.f32.mrf.mxu0 }
0x2977   :  { %v14090_v2 = vadd.f32 %v14089_v40, %v14088_v12  ;;  %v14123_v10 = vpop.f32.mrf.mxu1 }
0x2978   :  { %v14124_v35 = vadd.f32 %v14123_v10, %v14122_v36  ;;  %v14091_v22 = vpop.f32.mrf.mxu0 }
0x2979   :  { %v14125_v17 = vpop.f32.mrf.mxu1 }
0x297a   :  { %v11203_v43 = vadd.f32 %v14124_v35, %v14090_v2  ;;  %v14092_v33 = vpop.f32.mrf.mxu0 }
0x297b   :  { %v14126_v58 = vpop.f32.mrf.mxu1 }
0x297c   :  { %v19586_v61 = vadd.f32 %v11203_v43, %v19413_v18  ;;  %v14094_v60 = vpop.f32.mrf.mxu0 }
0x297d   :  { %v14128_v56 = vpop.f32.mrf.mxu1 }
0x297e   :  { %v14095_v42 = vpop.f32.mrf.mxu0 }
0x297f   :  { %v14096_v57 = vadd.f32 %v14095_v42, %v14094_v60  ;;  %v14129_v51 = vpop.f32.mrf.mxu1 }
0x2980   :  { %v14130_v3 = vadd.f32 %v14129_v51, %v14128_v56  ;;  %v14097_v52 = vpop.f32.mrf.mxu0 }
0x2981   :  { %v14131_v7 = vpop.f32.mrf.mxu1 }
0x2982   :  { %v11210_v24 = vadd.f32 %v14130_v3, %v14096_v57  ;;  %v14098_v32 = vpop.f32.mrf.mxu0 }
0x2983   :  { %v14132_v13 = vpop.f32.mrf.mxu1 }
0x2984   :  { %v19589_v50 = vadd.f32 %v11210_v24, %v19415_v46  ;;  %v14100_v28 = vpop.f32.mrf.mxu0 }
0x2985   :  { %v14134_v48 = vpop.f32.mrf.mxu1 }
0x2986   :  { %v14101_v27 = vpop.f32.mrf.mxu0 }
0x2987   :  { %v14135_v37 = vpop.f32.mrf.mxu1 }
0x2988   :  { %v14103_v18 = vpop.f32.mrf.mxu0 }
0x2989   :  { %v14137_v55 = vpop.f32.mrf.mxu1 }
0x298a   :  { %v14104_v49 = vpop.f32.mrf.mxu0 }
0x298b   :  { %v14138_v26 = vpop.f32.mrf.mxu1 }
0x298c   :  { %v11329_v54 = vpop.f32.mrf.mxu0 }
0x298d   :  { %v11390_v15 = vpop.f32.mrf.mxu1  ;;  %v11330_v21 = vadd.f32 %v11329_v54, %v19596_v63 }
0x298e   :  { %v11331_v46 = vpop.f32.mrf.mxu0  ;;  %v11391_v45 = vadd.f32 %v11390_v15, %v19602_v4 }
0x298f   :  { %v11392_v1 = vpop.f32.mrf.mxu1  ;;  %v11332_v16 = vadd.f32 %v11331_v46, %v11242_v19  ;;  %v11417_v59 = vmax.f32 %v11330_v21, 0.0 }
0x2990   :  { %v11333_v34 = vpop.f32.mrf.mxu0  ;;  %v11393_v0 = vadd.f32 %v11392_v1, %v19599_v23  ;;  %v11419_v40 = vmax.f32 %v11391_v45, 0.0 }
0x2991   :  { %v11334_v6 = vadd.f32 %v11333_v34, %v19596_v63  ;;  %v11394_v29 = vpop.f32.mrf.mxu1  ;;  %v11418_v38 = vmax.f32 %v11332_v16, 0.0 }
0x2992   :  { %v11395_v8 = vadd.f32 %v11394_v29, %v19602_v4  ;;  %v11335_v62 = vpop.f32.mrf.mxu0  ;;  %v11420_v47 = vmax.f32 %v11393_v0, 0.0 }
0x2993   :  { %v11336_v20 = vadd.f32 %v11335_v62, %v11242_v19  ;;  %v11396_v53 = vpop.f32.mrf.mxu1  ;;  %v11421_v31 = vmax.f32 %v11334_v6, 0.0 }
0x2994   :  { %v11397_v5 = vadd.f32 %v11396_v53, %v19599_v23  ;;  %v11339_v25 = vpop.f32.mrf.mxu0  ;;  %v11423_v41 = vmax.f32 %v11395_v8, 0.0 }
0x2995   :  { %v11422_v14 = vmax.f32 %v11336_v20, 0.0  ;;  %v11400_v39 = vpop.f32.mrf.mxu1  ;;  %v11437_v35 = vpack.c.bf16 %v11421_v31, %v11417_v59  ;;  %v11340_v56 = vadd.f32 %v11339_v25, %v19596_v63 }
0x2996   :  { %v11424_v12 = vmax.f32 %v11397_v5, 0.0  ;;  %v11341_v36 = vpop.f32.mrf.mxu0  ;;  %v11439_v43 = vpack.c.bf16 %v11423_v41, %v11419_v40  ;;  %v11401_v3 = vadd.f32 %v11400_v39, %v19602_v4  ;;  %v11828_v41 = vld [vmem:[%s19678_s20 + $0x8] sm:$0xff] }
0x2997   :  { %v11438_v2 = vpack.c.bf16 %v11422_v14, %v11418_v38  ;;  %v11402_v10 = vpop.f32.mrf.mxu1  ;;  %v11342_v33 = vadd.f32 %v11341_v36, %v11242_v19  ;;  %v11425_v18 = vmax.f32 %v11340_v56, 0.0  ;;  %v11829_v38 = vld [vmem:[%s19678_s20 + $0x10] sm:$0xff]  ;;  %v11827_v14 = vld [vmem:[%s19678_s20] sm:$0xff] }
0x2998   :  { %v11440_v22 = vpack.c.bf16 %v11424_v12, %v11420_v47  ;;  %v11343_v17 = vpop.f32.mrf.mxu0  ;;  %v11403_v42 = vadd.f32 %v11402_v10, %v19599_v23  ;;  %v11427_v30 = vmax.f32 %v11401_v3, 0.0 }
0x2999   :  { %v11344_v58 = vadd.f32 %v11343_v17, %v19596_v63  ;;  %v11404_v60 = vpop.f32.mrf.mxu1  ;;  %11738 = vmatprep.mubr.bf16.mxu0 %v11438_v2  ;;  %v11426_v28 = vmax.f32 %v11342_v33, 0.0 }
0x299a   :  { %v11405_v57 = vadd.f32 %v11404_v60, %v19602_v4  ;;  %11791 = vmatprep.mubr.bf16.mxu1 %v11440_v22  ;;  %v11345_v51 = vpop.f32.mrf.mxu0  ;;  %11739 = vmatmul.mubr.bf16.vlgmr.msra.gmra.mxu0 %v11437_v35  ;;  %v11428_v55 = vmax.f32 %v11403_v42, 0.0 }
0x299b   :  { %v11346_v52 = vadd.f32 %v11345_v51, %v11242_v19  ;;  %v11406_v7 = vpop.f32.mrf.mxu1  ;;  %11792 = vmatmul.mubr.bf16.vlgmr.msra.gmra.mxu1 %v11439_v43  ;;  %v11429_v24 = vmax.f32 %v11344_v58, 0.0 }
0x299c   :  { %v11407_v32 = vadd.f32 %v11406_v7, %v19599_v23  ;;  %v11349_v13 = vpop.f32.mrf.mxu0  ;;  %v11431_v48 = vmax.f32 %v11405_v57, 0.0 }
0x299d   :  { %v11430_v27 = vmax.f32 %v11346_v52, 0.0  ;;  %v11410_v37 = vpop.f32.mrf.mxu1  ;;  %v11441_v1 = vpack.c.bf16 %v11429_v24, %v11425_v18  ;;  %v11350_v16 = vadd.f32 %v11349_v13, %v19596_v63 }
0x299e   :  { %v11432_v49 = vmax.f32 %v11407_v32, 0.0  ;;  %v11351_v26 = vpop.f32.mrf.mxu0  ;;  %v11443_v21 = vpack.c.bf16 %v11431_v48, %v11427_v30  ;;  %v11411_v0 = vadd.f32 %v11410_v37, %v19602_v4  ;;  %v11830_v4 = vld [vmem:[%s19678_s20 + $0x18] sm:$0xff] }
0x299f   :  { %v11442_v54 = vpack.c.bf16 %v11430_v27, %v11426_v28  ;;  %v11352_v15 = vadd.f32 %v11351_v26, %v11242_v19  ;;  %v11412_v46 = vpop.f32.mrf.mxu1  ;;  %v11433_v31 = vmax.f32 %v11350_v16, 0.0  ;;  %15200 = vmatpush3.msra.mxu0 %v11830_v4  ;;  %v13311_v28 = vld [vmem:[%s19677_s19 + $0x1] ss:$0 sm:$0xff] }
0x29a0   :  { %v11444_v34 = vpack.c.bf16 %v11432_v49, %v11428_v55  ;;  %v11413_v6 = vadd.f32 %v11412_v46, %v19599_v23  ;;  %v11353_v29 = vpop.f32.mrf.mxu0  ;;  %v11435_v25 = vmax.f32 %v11411_v0, 0.0  ;;  %15201 = vmatprep.subr.mxu0 %v19716_v44 }
0x29a1   :  { %v11434_v8 = vmax.f32 %v11352_v15, 0.0  ;;  %v11414_v62 = vpop.f32.mrf.mxu1  ;;  %11745 = vmatprep.mubr.bf16.mxu0 %v11442_v54  ;;  %v11445_v63 = vpack.c.bf16 %v11433_v31, %v11433_v31  ;;  %15202 = vmatpush3.msra.mxu0 %v11829_v38 }
0x29a2   :  { %v11436_v45 = vmax.f32 %v11413_v6, 0.0  ;;  %11798 = vmatprep.mubr.bf16.mxu1 %v11444_v34  ;;  %v11354_v20 = vpop.f32.mrf.mxu0  ;;  %11746 = vmatmul.mubr.bf16.gmra.mxu0 %v11441_v1  ;;  %v11447_v23 = vpack.c.bf16 %v11435_v25, %v11435_v25 }
0x29a3   :  { %v11446_v53 = vpack.c.bf16 %v11434_v8, %v11434_v8  ;;  %v11415_v19 = vpop.f32.mrf.mxu1  ;;  %11799 = vmatmul.mubr.bf16.gmra.mxu1 %v11443_v21  ;;  %15203 = vmatprep.subr.mxu0 %v19716_v44 }
0x29a4   :  { %v11448_v5 = vpack.c.bf16 %v11436_v45, %v11436_v45  ;;  %15204 = vmatpush3.msra.mxu0 %v11828_v41 }
0x29a5   :  { %11752 = vmatprep.mubr.bf16.mxu0 %v11446_v53  ;;  %15205 = vmatprep.subr.mxu0 %v19716_v44 }
0x29a6   :  { %11805 = vmatprep.mubr.bf16.mxu1 %v11448_v5  ;;  %15206 = vmatpush3.msra.mxu0 %v11827_v14 }
0x29aa   :  { %11753 = vmatmul.mubr.bf16.gmra.mxu0 %v11445_v63 }
0x29ab   :  { %11806 = vmatmul.mubr.bf16.gmra.mxu1 %v11447_v23  ;;  %15207 = vmatprep.mubr.msk.f32.mxu0 %vm15900_vm6, %v19716_v44 }
0x2a5a   :  { %v14156_v39 = vpop.f32.mrf.mxu0 }
0x2a5b   :  { %v14190_v59 = vpop.f32.mrf.mxu1 }
0x2a5c   :  { %v14157_v47 = vpop.f32.mrf.mxu0 }
0x2a5d   :  { %v14191_v12 = vpop.f32.mrf.mxu1  ;;  %v14158_v36 = vadd.f32 %v14157_v47, %v14156_v39 }
0x2a5e   :  { %v14192_v40 = vadd.f32 %v14191_v12, %v14190_v59  ;;  %v14159_v2 = vpop.f32.mrf.mxu0 }
0x2a5f   :  { %v14193_v10 = vpop.f32.mrf.mxu1 }
0x2a60   :  { %v14160_v35 = vpop.f32.mrf.mxu0  ;;  %v11794_v17 = vadd.f32 %v14192_v40, %v14158_v36 }
0x2a61   :  { %v14194_v22 = vpop.f32.mrf.mxu1 }
0x2a62   :  { %v14162_v43 = vpop.f32.mrf.mxu0  ;;  %v11812_v56 = vadd.f32 %v11794_v17, %v19586_v61 }
0x2a63   :  { %v14196_v33 = vpop.f32.mrf.mxu1 }
0x2a64   :  { %v14163_v58 = vpop.f32.mrf.mxu0  ;;  %v11814_v24 = vadd.f32 %v11812_v56, %v18801_v11 }
0x2a65   :  { %v14164_v44 = vadd.f32 %v14163_v58, %v14162_v43  ;;  %v14197_v60 = vpop.f32.mrf.mxu1 }
0x2a66   :  { %v14198_v42 = vadd.f32 %v14197_v60, %v14196_v33  ;;  %v14165_v57 = vpop.f32.mrf.mxu0  ;;  %v11824_v18 = vadd.f32 %v13311_v28, %v11814_v24 }
0x2a67   :  { %v14199_v51 = vpop.f32.mrf.mxu1 }
0x2a68   :  { %v11801_v3 = vadd.f32 %v14198_v42, %v14164_v44  ;;  %v14166_v52 = vpop.f32.mrf.mxu0 }
0x2a69   :  { %v14200_v7 = vpop.f32.mrf.mxu1 }
0x2a6a   :  { %v11813_v32 = vadd.f32 %v11801_v3, %v19589_v50  ;;  %v14168_v13 = vpop.f32.mrf.mxu0  ;;  %v13312_v50 = vld [vmem:[%s19679_s21] ss:$0 sm:$0xff]  ;;  %s15902_s21 = smov [#allocation2]  }
0x2a6b   :  { %v14202_v48 = vpop.f32.mrf.mxu1  ;;  %s11948_s15 = sshll.u32 %s15902_s21, 4  ;;  %s11949_s15 = int_to_ptr.vmem [resolvable:$true] %s11948_s15 }
0x2a6c   :  { %v11815_v27 = vadd.f32 %v11813_v32, %v18810_v9  ;;  %v14169_v37 = vpop.f32.mrf.mxu0  ;;  %v11925_v9 = vld [vmem:[%s19680_s22] sm:$0x3]  ;;  %s15855_s1 = scalar_lea.vmem %s11949_s15, 32  ;;  %p15860_p1 = scmp.lt.s32.totalorder %s11949_s15, %s11949_s15 }
0x2a6d   :  { %v14203_v61 = vpop.f32.mrf.mxu1  ;;  %p15856_p0 = scmp.ne.s32.totalorder %s11949_s15, %s15855_s1  ;;  %p15861_p2 = scmp.lt.s32.totalorder %s15855_s1, %s15855_s1 }
0x2a6e   :  { %v11825_v55 = vadd.f32 %v13311_v28, %v11815_v27  ;;  %v14171_v49 = vpop.f32.mrf.mxu0 }
0x2a6f   :  { %v14205_v26 = vpop.f32.mrf.mxu1  ;;  %p15862_p3 = por %p15861_p2, %p15860_p1 }
0x2a70   :  { %v14172_v30 = vpop.f32.mrf.mxu0  ;;  %v11826_v54 = vsel %vm194_vm3, %v11824_v18, %v11825_v55 }
0x2a71   :  { %v14206_v11 = vpop.f32.mrf.mxu1  ;;  %15208 = vmatmul.mubr.msk.f32.vlgmr.msra.gmra.mxu0 %vm221_vm2, %v11826_v54  ;;  %p15863_p4 = pnand %p15862_p3, %p15856_p0 }
0x2b31   :  { %v11907_v15 = vpop.f32.mrf.mxu0 }
0x2b32   :  { %v11908_v46 = vadd.f32 %v13312_v50, %v11907_v15 }
0x2b33   :  { %v15209_v1 = vpop.f32.mrf.mxu0 }
0x2b34   :  { %v11913_v34 = vsel %vm11911_vm11, %v11908_v46, -inf  ;;  %11912 = vst.msk [vmem:[#allocation2] sm:$0x3] %vm11911_vm11, %v11908_v46  ;;  %v11926_v16 = vmul.f32 %v11925_v9, %v11908_v46 }
0x2b35   :  { %11914 = vmax.xlane.f32.xlu0 %v11913_v34 }
0x2b36   :  { %v11927_v6 = vsel %vm11911_vm11, %v11926_v16, 0.0 }
0x2b39   :  { %11928 = vadd.xlane.f32.xlu0 %v11927_v6 }
0x2bbe   :  { %v11915_v29 = vpop.xlane.xlu0 %11914 }
0x2bbf   :  { %v11916_v21 = vsub.f32 %v11908_v46, %v11915_v29 }
0x2bc1   :  { %v11917_v0 = vmul.f32 1.442695, %v11916_v21 }
0x2bc3   :  { %15851 = vpow2.f32 %v11917_v0 }
0x2bd0   :  { %v15852_v8 = vpop.eup %15851 }
0x2bd1   :  { %v11919_v62 = vsel %vm11911_vm11, %v15852_v8, 0.0 }
0x2bd2   :  { %11920 = vadd.xlane.f32.xlu1 %v11919_v62 }
0x2bd3   :  { %15866 = shalt.err (!%p15863_p4)
}
0x2bd4   :  { %11951 = dma.vmem_to_hbm [thread:$0]  %s11949_s15, 32, %s19681_s23, [#allocation3]   ;;  %v11929_v31 = vpop.xlane.xlu0 %11928  ;;  %vm11940_vm12 = vcmask 0  }
0x2bd5   :  { %s15903_s28 = smov [#allocation4]  }
0x2bd6   :  { %s11958_s9 = sshll.u32 %s15903_s28, 4  ;;  %s11959_s9 = int_to_ptr.vmem [resolvable:$true] %s11958_s9 }
0x2bd7   :  { %s15875_s23 = scalar_lea.vmem %s11959_s9, 16  ;;  %s15879_s29 = scalar_lea.vmem %s11959_s9, 32 }
0x2bd8   :  { %p15876_p5 = scmp.ne.s32.totalorder %s11959_s9, %s15875_s23  ;;  %p15880_p6 = scmp.lt.s32.totalorder %s11959_s9, %s11959_s9 }
0x2bd9   :  { %p15881_p7 = scmp.lt.s32.totalorder %s15879_s29, %s15875_s23 }
0x2bdb   :  { %p15882_p8 = por %p15881_p7, %p15880_p6 }
0x2bdd   :  { %p15883_p9 = pnand %p15882_p8, %p15876_p5 }
0x2c5b   :  { %v11921_v45 = vpop.xlane.xlu1 %11920 }
0x2c5c   :  { %15853 = vlog2.f32 %v11921_v45 }
0x2c69   :  { %v15854_v20 = vpop.eup %15853 }
0x2c6a   :  { %v11923_v53 = vmul.f32 0.6931472, %v15854_v20 }
0x2c6c   :  { %v11924_v19 = vadd.f32 %v11923_v53, %v11915_v29 }
0x2c6e   :  { %v11930_v5 = vsub.f32 %v11924_v19, %v11929_v31 }
0x2c70   :  { %v11931_v25 = vsel %vm209_vm5, %v11930_v5, 0.0 }
0x2c71   :  { %v11932_v63 = vrot.slane %v11931_v25, 4 }
0x2c73   :  { %v11933_v23 = vadd.f32 %v11932_v63, %v11931_v25 }
0x2c75   :  { %v11934_v4 = vrot.slane %v11933_v23, 2 }
0x2c77   :  { %v11935_v38 = vadd.f32 %v11934_v4, %v11933_v23 }
0x2c79   :  { %v11936_v41 = vrot.slane %v11935_v38, 1 }
0x2c7b   :  { %v11937_v14 = vadd.f32 %v11936_v41, %v11935_v38 }
0x2c7d   :  { %v11939_v39 = vmul.f32 0.5, %v11937_v14 }
0x2c7f   :  { %11941 = vst.msk [vmem:[#allocation4] sm:$0x1] %vm11940_vm12, %v11939_v39 }
0x2c80   :  { %15886 = shalt.err (!%p15883_p9)
}
0x2c81   :  { %11961 = dma.vmem_to_hbm [thread:$0]  %s11959_s9, 16, %s19682_s24, [#allocation5]  }
0x2c82   :  { %15895 = dma.done.wait [#allocation3], 32  }
0x2c83   :  { %15896 = vsyncadd [#allocation3], 4294967264 }
0x2c84   :  { %15897 = dma.done.wait [#allocation5], 16  }
0x2c85   :  { %15898 = vsyncadd [#allocation5], 4294967280 }
0x2c86   :  { %11968 = vsyncpa [#allocation3], 1 }
0x2c87   :  { %11969 = vsyncpa [#allocation5], 1 }

</bundles_post_ra>
